<compile_context>
chip_gen: v7x
topology: tpu7x:2x2x1
jax: 0.10.0
libtpu: 0.0.40
codegen_flags: <defaults>
</compile_context>

<pallas_src>
import functools

import jax
import jax.numpy as jnp
from jax.experimental import pallas as pl
from jax.experimental.pallas import tpu as pltpu


# ---------------------------------------------------------------------------
# Kernel: t_blk recurrent steps for ONE batch element.
# Grid = (batch [parallel], time-blocks [arbitrary/sequential]).
# ---------------------------------------------------------------------------
def _gril_kernel(
    # inputs
    x_ref, m_ref,                 # (t_blk*N, C) f32
    a1_ref, a2_ref,               # (N, N) bf16 fwd/bwd transition supports
    w_h_all_ref,                  # (H, 12H+2C) bf16  [ru_h | li_h | lo_h | fs | ro_h]
    w_li_x_ref,                   # (C, H)      bf16  decoder lin_in x-part
    w_gc_ref,                     # (H, 2H)     bf16  decoder graph_conv [A1 | A2]
    w_lo_o_ref,                   # (H, H)      bf16  decoder lin_out gc-part
    w_ro_o_ref,                   # (H, C)      bf16  decoder read_out dec-part
    w_m_all_ref,                  # (C, 16H)    bf16  [ru_m | c_m | li_m]
    w_x_all_ref,                  # (C, 15H)    bf16  [ru_x | c_x]
    w_ch_ref,                     # (H, 5H)     bf16  candidate h-part (applied to r*h)
    b_fs_ref, b_li_ref, b_gc_ref, b_lo_ref, b_ro_ref, b_ru_ref, b_c_ref,  # f32 biases
    prelu_ref,                    # (1, 1) f32
    # outputs
    xhat1_ref, xhat2_ref,         # (t_blk*N, C) f32
    dec_ref, hout_ref,            # (t_blk*N, H) f32
    # scratch
    h_scratch,                    # (N, H) f32 recurrent state across time blocks
    mpre_scratch,                 # (t_blk*N, 16H) f32 hoisted mask matmuls
    *, t_blk, n_nodes, hidden_size,
):
    H = hidden_size
    H2 = 2 * H
    N = n_nodes
    C = x_ref.shape[-1]

    # h0 = zeros (n_nodes=None path of GRIL.get_h0); reset at the first time
    # block of every batch element (time is the innermost grid axis).
    @pl.when(pl.program_id(1) == 0)
    def _():
        h_scratch[...] = jnp.zeros_like(h_scratch)

    def mm(a, b):
        # bf16 MXU inputs, f32 accumulation.
        return jnp.dot(a.astype(jnp.bfloat16), b.astype(jnp.bfloat16),
                       preferred_element_type=jnp.float32)

    # ---- grid-invariant loads, hoisted out of the unrolled step loop -------
    a1 = a1_ref[...]
    a2 = a2_ref[...]
    w_h_all = w_h_all_ref[...]
    w_li_x = w_li_x_ref[...]
    w_gc = w_gc_ref[...]
    w_lo_o = w_lo_o_ref[...]
    w_ro_o = w_ro_o_ref[...]
    w_x_all = w_x_all_ref[...]
    w_ch = w_ch_ref[...]
    b_fs = b_fs_ref[...]
    b_li = b_li_ref[...]
    b_gc = b_gc_ref[...]
    b_lo = b_lo_ref[...]
    b_ro = b_ro_ref[...]
    b_ru = b_ru_ref[...]
    b_c = b_c_ref[...]
    alpha = prelu_ref[...]                    # (1, 1), broadcasts (PReLU slope)

    # ---- mask-only matmuls hoisted out of the recurrence --------------------
    # lin_in m-term + m-part of all 10 gate diffusion levels as ONE matmul,
    # staged in VMEM and sliced per step (layout: [ru 10H | c 5H | li H]).
    mpre_scratch[...] = mm(m_ref[...], w_m_all_ref[...])

    h = h_scratch[...]                        # (N, H) f32 carried state
    for t in range(t_blk):                    # fully unrolled recurrence
        rows = pl.ds(t * N, N)
        x = x_ref[rows, :]                    # (N, C)
        m = m_ref[rows, :]
        keep = m > 0.5                        # hard {0,1} mask
        mp = mpre_scratch[rows, :]            # (N, 16H)

        # Every matmul whose LHS is h_{t-1}, fused into one wide matmul.
        hp = mm(h, w_h_all)                   # (N, 12H+2C)
        hp_ru = hp[:, :10 * H]
        hp_li = hp[:, 10 * H:11 * H]
        hp_lo = hp[:, 11 * H:12 * H]
        hp_fs = hp[:, 12 * H:12 * H + C]
        hp_ro = hp[:, 12 * H + C:]

        # ---- first-stage prediction + masked fill ---------------------------
        xhat1 = hp_fs + b_fs                                       # (N, C)
        x1 = jnp.where(keep, x, xhat1)

        # ---- SpatialDecoder (order=1, supports [a1, a2], include_self=False)
        x_in = mm(x1, w_li_x) + mp[:, 15 * H:] + hp_li + b_li      # lin_in
        gxw = mm(x_in, w_gc)                                       # (N, 2H)
        gc = mm(a1, gxw[:, :H]) + mm(a2, gxw[:, H:]) + b_gc        # graph_conv
        dec = mm(gc, w_lo_o) + hp_lo + b_lo                        # lin_out
        dec = jnp.where(dec > 0, dec, alpha * dec)                 # PReLU
        xhat2 = mm(dec, w_ro_o) + hp_ro + b_ro                     # read_out
        x2 = jnp.where(keep, x1, xhat2)

        # ---- GCGRU cell: order-2 diffusion over z = [x2, m, h] ---------------
        # sum_k (A^k z) W_k == p0 + A1 (p1 + A1 p2) + A2 (p3 + A2 p4),
        # with p_k = x2 W_k^x + m W_k^m + h W_k^h  (h -> r*h for the candidate).
        px = mm(x2, w_x_all)                                       # (N, 15H)

        def lvl_ru(k):
            sl = slice(k * H2, (k + 1) * H2)
            return px[:, sl] + mp[:, sl] + hp_ru[:, sl]

        p0, p1, p2, p3, p4 = [lvl_ru(k) for k in range(5)]
        ru = jax.nn.sigmoid(p0 + mm(a1, p1 + mm(a1, p2))
                            + mm(a2, p3 + mm(a2, p4)) + b_ru)      # (N, 2H)
        r = ru[:, :H]
        u = ru[:, H:]

        ph_c = mm(r * h, w_ch)                                     # (N, 5H)

        def lvl_c(k):
            sl = slice(10 * H + k * H, 10 * H + (k + 1) * H)
            return px[:, sl] + mp[:, sl] + ph_c[:, k * H:(k + 1) * H]

        q0, q1, q2, q3, q4 = [lvl_c(k) for k in range(5)]
        c = jnp.tanh(q0 + mm(a1, q1 + mm(a1, q2))
                     + mm(a2, q3 + mm(a2, q4)) + b_c)              # (N, H)
        h = u * h + (1.0 - u) * c                                  # f32 carry

        # ---- four separate lane-contiguous stores (no packed-slab concat) ----
        xhat1_ref[rows, :] = xhat1
        xhat2_ref[rows, :] = xhat2
        dec_ref[rows, :] = dec
        hout_ref[rows, :] = h

    h_scratch[...] = h


# ---------------------------------------------------------------------------
# Parameter construction (deterministic, synthetic).  All 1x1 conv weights are
# stored as (in_features, out_features), in the module's concatenation order.
# ---------------------------------------------------------------------------
def init_params(key, input_size, hidden_size):
    C, H = input_size, hidden_size
    d_dec_in = 2 * C + H            # SpatialDecoder d_in (rnn_input_size + H, u=None)
    d_gate_in = 5 * (2 * C + H)     # (order*support_len + 1) * (rnn_in + H): 2*2+1

    def w(k, shape, scale=0.1):
        return (scale * jax.random.normal(k, shape)).astype(jnp.float32)

    ks = jax.random.split(key, 16)
    return dict(
        w_fs=w(ks[0], (H, C)),          b_fs=w(ks[1], (1, C)),
        w_li=w(ks[2], (d_dec_in, H)),   b_li=w(ks[3], (1, H)),
        w_gc=w(ks[4], (2 * H, H)),      b_gc=w(ks[5], (1, H)),
        w_lo=w(ks[6], (2 * H, H)),      b_lo=w(ks[7], (1, H)),
        w_ro=w(ks[8], (2 * H, C)),      b_ro=w(ks[9], (1, C)),
        prelu=jnp.full((1, 1), 0.25, jnp.float32),
        w_r=w(ks[10], (d_gate_in, H)),  b_r=w(ks[11], (1, H)),
        w_u=w(ks[12], (d_gate_in, H)),  b_u=w(ks[13], (1, H)),
        w_c=w(ks[14], (d_gate_in, H)),  b_c=w(ks[15], (1, H)),
    )


def _pack_weights(params, input_size, hidden_size):
    """Split / fuse weights (trace-time layout plumbing, zero kernel cost)."""
    C, H = input_size, hidden_size
    d_z = 2 * C + H
    p = params

    w_li = p['w_li']                               # rows [x | m | h]
    w_li_x, w_li_m, w_li_h = w_li[:C], w_li[C:2 * C], w_li[2 * C:]
    w_gc = p['w_gc']                               # rows [A1-part | A2-part]
    w_gc_f = jnp.concatenate([w_gc[:H], w_gc[H:]], axis=1)      # (H, 2H)
    w_lo_o, w_lo_h = p['w_lo'][:H], p['w_lo'][H:]  # rows [gc | h]
    w_ro_o, w_ro_h = p['w_ro'][:H], p['w_ro'][H:]  # rows [dec | h]

    # Gate weights: (5 levels, d_z rows=[x|m|h], out), level order
    # [z, A1 z, A1^2 z, A2 z, A2^2 z].  r|u fused along the output axis.
    w_ru = jnp.concatenate([p['w_r'], p['w_u']], axis=1).reshape(5, d_z, 2 * H)
    w_cc = p['w_c'].reshape(5, d_z, H)

    def lvl_major(w):                              # (5, rows, out) -> (rows, 5*out)
        return jnp.transpose(w, (1, 0, 2)).reshape(w.shape[1], -1)

    w_ru_x = lvl_major(w_ru[:, :C, :])             # (C, 10H)
    w_ru_m = lvl_major(w_ru[:, C:2 * C, :])        # (C, 10H)
    w_ru_h = lvl_major(w_ru[:, 2 * C:, :])         # (H, 10H)
    w_c_x = lvl_major(w_cc[:, :C, :])              # (C, 5H)
    w_c_m = lvl_major(w_cc[:, C:2 * C, :])         # (C, 5H)
    w_c_h = lvl_major(w_cc[:, 2 * C:, :])          # (H, 5H)

    # Wide fused weights: all matmuls with the same LHS share one matmul.
    w_h_all = jnp.concatenate([w_ru_h, w_li_h, w_lo_h, p['w_fs'], w_ro_h], axis=1)
    w_m_all = jnp.concatenate([w_ru_m, w_c_m, w_li_m], axis=1)   # (C, 16H)
    w_x_all = jnp.concatenate([w_ru_x, w_c_x], axis=1)           # (C, 15H)
    b_ru = jnp.concatenate([p['b_r'], p['b_u']], axis=1)         # (1, 2H)

    mats = [w_h_all, w_li_x, w_gc_f, w_lo_o, w_ro_o, w_m_all, w_x_all, w_c_h]
    mats = [w.astype(jnp.bfloat16) for w in mats]                # bf16 MXU operands
    vecs = [p['b_fs'], p['b_li'], p['b_gc'], p['b_lo'], p['b_ro'], b_ru,
            p['b_c'], p['prelu']]
    vecs = [v.astype(jnp.float32) for v in vecs]                 # f32 bias adds
    return mats + vecs


# ---------------------------------------------------------------------------
# Wrapper: layout plumbing (supports, weight fusion, output unpack)
# ---------------------------------------------------------------------------
def gril_forward(x, mask, adj, params, t_blk=None):
    """x, mask: (B, C, N, S) as in the PyTorch module.  adj: dense (N, N).

    Returns (imputations, predictions, representations, states) with PyTorch
    shapes (B,C,N,S), (B,C,N,S), (B,2H,N,S), (n_layers=1,B,H,N,S).
    """
    B, C, N, S = x.shape
    H = params['w_fs'].shape[0]

    if t_blk is None:
        # Prefer the largest time block that divides S (fewer grid steps).
        t_blk = next(t for t in (16, 8, 4, 2, 1) if S % t == 0)
    assert S % t_blk == 0
    n_blocks = S // t_blk

    # SpatialConvOrderK.compute_support: row-normalized fwd/bwd transition
    # matrices; kept (N, N) — the batch is a parallel grid axis, NOT kron'd in.
    a1 = adj / (adj.sum(axis=1, keepdims=True) + 1e-8)
    adj_t = adj.T
    a2 = adj_t / (adj_t.sum(axis=1, keepdims=True) + 1e-8)
    a1 = a1.astype(jnp.bfloat16)
    a2 = a2.astype(jnp.bfloat16)

    # (B, C, N, S) -> (B, S*N, C): per-batch time-major rows, lane-dense feats.
    x_t = jnp.transpose(x, (0, 3, 2, 1)).reshape(B, S * N, C).astype(jnp.float32)
    m_t = jnp.transpose(mask, (0, 3, 2, 1)).reshape(B, S * N, C).astype(jnp.float32)

    weight_args = _pack_weights(params, C, H)

    def time_spec(feat):
        return pl.BlockSpec((None, t_blk * N, feat), lambda b, s: (b, s, 0))

    def const_spec(shape):
        nd = len(shape)
        return pl.BlockSpec(shape, lambda b, s, _nd=nd: (0,) * _nd)

    in_specs = ([time_spec(C), time_spec(C),
                 const_spec((N, N)), const_spec((N, N))]
                + [const_spec(tuple(w.shape)) for w in weight_args])

    out_specs = [time_spec(C), time_spec(C), time_spec(H), time_spec(H)]
    out_shape = (jax.ShapeDtypeStruct((B, S * N, C), jnp.float32),
                 jax.ShapeDtypeStruct((B, S * N, C), jnp.float32),
                 jax.ShapeDtypeStruct((B, S * N, H), jnp.float32),
                 jax.ShapeDtypeStruct((B, S * N, H), jnp.float32))

    kernel = functools.partial(_gril_kernel, t_blk=t_blk, n_nodes=N,
                               hidden_size=H)

    xhat1, xhat2, dec, h_all = pl.pallas_call(
        kernel,
        grid=(B, n_blocks),
        in_specs=in_specs,
        out_specs=out_specs,
        out_shape=out_shape,
        scratch_shapes=[pltpu.VMEM((N, H), jnp.float32),
                        pltpu.VMEM((t_blk * N, 16 * H), jnp.float32)],
        compiler_params=pltpu.CompilerParams(
            dimension_semantics=("parallel", "arbitrary"),   # batch || , time seq
            vmem_limit_bytes=32 * 1024 * 1024),
    )(x_t, m_t, a1, a2, *weight_args)

    # ---- unpack back to PyTorch layouts -------------------------------------
    xhat1 = xhat1.reshape(B, S, N, C)
    xhat2 = xhat2.reshape(B, S, N, C)
    dec = dec.reshape(B, S, N, H)
    h_all = h_all.reshape(B, S, N, H)

    # representations_t = [decoder out_t, h_{t-1}];  h_{-1} = h0 = zeros
    h_prev = jnp.concatenate([jnp.zeros_like(h_all[:, :1]), h_all[:, :-1]], axis=1)
    repr_seq = jnp.concatenate([dec, h_prev], axis=-1)       # (B, S, N, 2H)

    def to_torch(a):                                         # (B,S,N,F) -> (B,F,N,S)
        return jnp.transpose(a, (0, 3, 2, 1))

    imputations = to_torch(xhat2)                            # (B, C, N, S)
    predictions = to_torch(xhat1)                            # (B, C, N, S)
    representations = to_torch(repr_seq)                     # (B, 2H, N, S)
    states = to_torch(h_all)[None]                           # (1, B, H, N, S)
    return imputations, predictions, representations, states


if __name__ == "__main__":
    B, C, N, S, H = 2, 4, 16, 8, 32

    key = jax.random.PRNGKey(0)
    k_p, k_x, k_m, k_a = jax.random.split(key, 4)

    params = init_params(k_p, C, H)
    x = jax.random.normal(k_x, (B, C, N, S), dtype=jnp.float32)
    mask = (jax.random.uniform(k_m, (B, C, N, S)) > 0.3).astype(jnp.float32)
    adj = jax.random.uniform(k_a, (N, N), dtype=jnp.float32)
    adj = adj * (1.0 - jnp.eye(N, dtype=jnp.float32))  # no self-loops

    fwd = jax.jit(lambda xx, mk, aa: gril_forward(xx, mk, aa, params))
    imputations, predictions, representations, states = fwd(x, mask, adj)
    jax.block_until_ready((imputations, predictions, representations, states))

    assert imputations.shape == (B, C, N, S)
    assert predictions.shape == (B, C, N, S)
    assert representations.shape == (B, 2 * H, N, S)
    assert states.shape == (1, B, H, N, S)
    for a in (imputations, predictions, representations, states):
        assert bool(jnp.all(jnp.isfinite(a)))
    print("KERNEL_OK")
</pallas_src>

<mosaic_0001>
module attributes {stable_mosaic.version = 11 : i64} {
  func.func @_gril_kernel(%arg0: i32, %arg1: i32, %arg2: memref<1x128x4xf32, #tpu.memory_space<vmem>>, %arg3: memref<1x128x4xf32, #tpu.memory_space<vmem>>, %arg4: memref<16x16xbf16, #tpu.memory_space<vmem>>, %arg5: memref<16x16xbf16, #tpu.memory_space<vmem>>, %arg6: memref<32x392xbf16, #tpu.memory_space<vmem>>, %arg7: memref<4x32xbf16, #tpu.memory_space<vmem>>, %arg8: memref<32x64xbf16, #tpu.memory_space<vmem>>, %arg9: memref<32x32xbf16, #tpu.memory_space<vmem>>, %arg10: memref<32x4xbf16, #tpu.memory_space<vmem>>, %arg11: memref<4x512xbf16, #tpu.memory_space<vmem>>, %arg12: memref<4x480xbf16, #tpu.memory_space<vmem>>, %arg13: memref<32x160xbf16, #tpu.memory_space<vmem>>, %arg14: memref<1x4xf32, #tpu.memory_space<vmem>>, %arg15: memref<1x32xf32, #tpu.memory_space<vmem>>, %arg16: memref<1x32xf32, #tpu.memory_space<vmem>>, %arg17: memref<1x32xf32, #tpu.memory_space<vmem>>, %arg18: memref<1x4xf32, #tpu.memory_space<vmem>>, %arg19: memref<1x64xf32, #tpu.memory_space<vmem>>, %arg20: memref<1x32xf32, #tpu.memory_space<vmem>>, %arg21: memref<1x1xf32, #tpu.memory_space<vmem>>, %arg22: memref<1x128x4xf32, #tpu.memory_space<vmem>>, %arg23: memref<1x128x4xf32, #tpu.memory_space<vmem>>, %arg24: memref<1x128x32xf32, #tpu.memory_space<vmem>>, %arg25: memref<1x128x32xf32, #tpu.memory_space<vmem>>, %arg26: memref<16x32xf32, #tpu.memory_space<vmem>>, %arg27: memref<128x512xf32, #tpu.memory_space<vmem>>) attributes {dimension_semantics = [#tpu.dimension_semantics<parallel>, #tpu.dimension_semantics<arbitrary>], iteration_bounds = array<i64: 2, 1>, scalar_prefetch = 0 : i64, scratch_operands = 2 : i64, tpu.core_type = #tpu.core_type<tc>, window_params = [{transform_indices = @transform_0, window_bounds = array<i64: 1, 128, 4>}, {transform_indices = @transform_1, window_bounds = array<i64: 1, 128, 4>}, {pipeline_mode = #tpu.pipeline_mode<synchronous>, transform_indices = @transform_2, window_bounds = array<i64: 16, 16>}, {pipeline_mode = #tpu.pipeline_mode<synchronous>, transform_indices = @transform_3, window_bounds = array<i64: 16, 16>}, {pipeline_mode = #tpu.pipeline_mode<synchronous>, transform_indices = @transform_4, window_bounds = array<i64: 32, 392>}, {pipeline_mode = #tpu.pipeline_mode<synchronous>, transform_indices = @transform_5, window_bounds = array<i64: 4, 32>}, {pipeline_mode = #tpu.pipeline_mode<synchronous>, transform_indices = @transform_6, window_bounds = array<i64: 32, 64>}, {pipeline_mode = #tpu.pipeline_mode<synchronous>, transform_indices = @transform_7, window_bounds = array<i64: 32, 32>}, {pipeline_mode = #tpu.pipeline_mode<synchronous>, transform_indices = @transform_8, window_bounds = array<i64: 32, 4>}, {pipeline_mode = #tpu.pipeline_mode<synchronous>, transform_indices = @transform_9, window_bounds = array<i64: 4, 512>}, {pipeline_mode = #tpu.pipeline_mode<synchronous>, transform_indices = @transform_10, window_bounds = array<i64: 4, 480>}, {pipeline_mode = #tpu.pipeline_mode<synchronous>, transform_indices = @transform_11, window_bounds = array<i64: 32, 160>}, {pipeline_mode = #tpu.pipeline_mode<synchronous>, transform_indices = @transform_12, window_bounds = array<i64: 1, 4>}, {pipeline_mode = #tpu.pipeline_mode<synchronous>, transform_indices = @transform_13, window_bounds = array<i64: 1, 32>}, {pipeline_mode = #tpu.pipeline_mode<synchronous>, transform_indices = @transform_14, window_bounds = array<i64: 1, 32>}, {pipeline_mode = #tpu.pipeline_mode<synchronous>, transform_indices = @transform_15, window_bounds = array<i64: 1, 32>}, {pipeline_mode = #tpu.pipeline_mode<synchronous>, transform_indices = @transform_16, window_bounds = array<i64: 1, 4>}, {pipeline_mode = #tpu.pipeline_mode<synchronous>, transform_indices = @transform_17, window_bounds = array<i64: 1, 64>}, {pipeline_mode = #tpu.pipeline_mode<synchronous>, transform_indices = @transform_18, window_bounds = array<i64: 1, 32>}, {pipeline_mode = #tpu.pipeline_mode<synchronous>, transform_indices = @transform_19, window_bounds = array<i64: 1, 1>}, {transform_indices = @transform_20, window_bounds = array<i64: 1, 128, 4>}, {transform_indices = @transform_21, window_bounds = array<i64: 1, 128, 4>}, {transform_indices = @transform_22, window_bounds = array<i64: 1, 128, 32>}, {transform_indices = @transform_23, window_bounds = array<i64: 1, 128, 32>}]} {
    %c0_i32 = arith.constant 0 : i32
    %0 = arith.cmpi eq, %arg1, %c0_i32 : i32
    %1 = arith.extui %0 : i1 to i32
    %c0_i32_0 = arith.constant 0 : i32
    %2 = arith.cmpi ne, %1, %c0_i32_0 : i32
    scf.if %2 {
      %cst_366 = arith.constant 0.000000e+00 : f32
      %1300 = vector.broadcast %cst_366 : f32 to vector<16x32xf32>
      %c0_367 = arith.constant 0 : index
      %c0_368 = arith.constant 0 : index
      %1301 = vector.load %arg26[%c0_367, %c0_368] : memref<16x32xf32, #tpu.memory_space<vmem>>, vector<16x32xf32>
      tpu.vector_store %arg26[%c0_367, %c0_368], %1300 {strides = array<i32>} : memref<16x32xf32, #tpu.memory_space<vmem>>, vector<16x32xf32>,
    } else {
    }
    %c0 = arith.constant 0 : index
    %c0_1 = arith.constant 0 : index
    %3 = vector.load %arg4[%c0, %c0_1] : memref<16x16xbf16, #tpu.memory_space<vmem>>, vector<16x16xbf16>
    %c0_2 = arith.constant 0 : index
    %c0_3 = arith.constant 0 : index
    %4 = vector.load %arg5[%c0_2, %c0_3] : memref<16x16xbf16, #tpu.memory_space<vmem>>, vector<16x16xbf16>
    %c0_4 = arith.constant 0 : index
    %c0_5 = arith.constant 0 : index
    %5 = vector.load %arg6[%c0_4, %c0_5] : memref<32x392xbf16, #tpu.memory_space<vmem>>, vector<32x392xbf16>
    %c0_6 = arith.constant 0 : index
    %c0_7 = arith.constant 0 : index
    %6 = vector.load %arg7[%c0_6, %c0_7] : memref<4x32xbf16, #tpu.memory_space<vmem>>, vector<4x32xbf16>
    %c0_8 = arith.constant 0 : index
    %c0_9 = arith.constant 0 : index
    %7 = vector.load %arg8[%c0_8, %c0_9] : memref<32x64xbf16, #tpu.memory_space<vmem>>, vector<32x64xbf16>
    %c0_10 = arith.constant 0 : index
    %c0_11 = arith.constant 0 : index
    %8 = vector.load %arg9[%c0_10, %c0_11] : memref<32x32xbf16, #tpu.memory_space<vmem>>, vector<32x32xbf16>
    %c0_12 = arith.constant 0 : index
    %c0_13 = arith.constant 0 : index
    %9 = vector.load %arg10[%c0_12, %c0_13] : memref<32x4xbf16, #tpu.memory_space<vmem>>, vector<32x4xbf16>
    %c0_14 = arith.constant 0 : index
    %c0_15 = arith.constant 0 : index
    %10 = vector.load %arg12[%c0_14, %c0_15] : memref<4x480xbf16, #tpu.memory_space<vmem>>, vector<4x480xbf16>
    %c0_16 = arith.constant 0 : index
    %c0_17 = arith.constant 0 : index
    %11 = vector.load %arg13[%c0_16, %c0_17] : memref<32x160xbf16, #tpu.memory_space<vmem>>, vector<32x160xbf16>
    %c0_18 = arith.constant 0 : index
    %c0_19 = arith.constant 0 : index
    %12 = vector.load %arg14[%c0_18, %c0_19] : memref<1x4xf32, #tpu.memory_space<vmem>>, vector<1x4xf32>
    %c0_20 = arith.constant 0 : index
    %c0_21 = arith.constant 0 : index
    %13 = vector.load %arg15[%c0_20, %c0_21] : memref<1x32xf32, #tpu.memory_space<vmem>>, vector<1x32xf32>
    %c0_22 = arith.constant 0 : index
    %c0_23 = arith.constant 0 : index
    %14 = vector.load %arg16[%c0_22, %c0_23] : memref<1x32xf32, #tpu.memory_space<vmem>>, vector<1x32xf32>
    %c0_24 = arith.constant 0 : index
    %c0_25 = arith.constant 0 : index
    %15 = vector.load %arg17[%c0_24, %c0_25] : memref<1x32xf32, #tpu.memory_space<vmem>>, vector<1x32xf32>
    %c0_26 = arith.constant 0 : index
    %c0_27 = arith.constant 0 : index
    %16 = vector.load %arg18[%c0_26, %c0_27] : memref<1x4xf32, #tpu.memory_space<vmem>>, vector<1x4xf32>
    %c0_28 = arith.constant 0 : index
    %c0_29 = arith.constant 0 : index
    %17 = vector.load %arg19[%c0_28, %c0_29] : memref<1x64xf32, #tpu.memory_space<vmem>>, vector<1x64xf32>
    %c0_30 = arith.constant 0 : index
    %c0_31 = arith.constant 0 : index
    %18 = vector.load %arg20[%c0_30, %c0_31] : memref<1x32xf32, #tpu.memory_space<vmem>>, vector<1x32xf32>
    %c0_32 = arith.constant 0 : index
    %c0_33 = arith.constant 0 : index
    %19 = vector.load %arg21[%c0_32, %c0_33] : memref<1x1xf32, #tpu.memory_space<vmem>>, vector<1x1xf32>
    %c0_34 = arith.constant 0 : index
    %c0_35 = arith.constant 0 : index
    %c0_36 = arith.constant 0 : index
    %20 = vector.load %arg3[%c0_34, %c0_35, %c0_36] : memref<1x128x4xf32, #tpu.memory_space<vmem>>, vector<1x128x4xf32>
    %21 = vector.shape_cast %20 : vector<1x128x4xf32> to vector<128x4xf32>
    %c0_37 = arith.constant 0 : index
    %c0_38 = arith.constant 0 : index
    %22 = vector.load %arg11[%c0_37, %c0_38] : memref<4x512xbf16, #tpu.memory_space<vmem>>, vector<4x512xbf16>
    %23 = arith.truncf %21 : vector<128x4xf32> to vector<128x4xbf16>
    %cst = arith.constant dense<0.000000e+00> : vector<128x512xf32>
    %24 = tpu.matmul %23, %22, %cst {dimension_numbers = #tpu.dot_dimension_numbers<[1], [0], [0], [1], [0, 0, 1, 1], [], []>} : vector<128x4xbf16>, vector<4x512xbf16>, vector<128x512xf32> -> vector<128x512xf32>
    %c0_39 = arith.constant 0 : index
    %c0_40 = arith.constant 0 : index
    %25 = vector.load %arg27[%c0_39, %c0_40] : memref<128x512xf32, #tpu.memory_space<vmem>>, vector<128x512xf32>
    tpu.vector_store %arg27[%c0_39, %c0_40], %24 {strides = array<i32>} : memref<128x512xf32, #tpu.memory_space<vmem>>, vector<128x512xf32>,
    %c0_41 = arith.constant 0 : index
    %c0_42 = arith.constant 0 : index
    %26 = vector.load %arg26[%c0_41, %c0_42] : memref<16x32xf32, #tpu.memory_space<vmem>>, vector<16x32xf32>
    %c0_43 = arith.constant 0 : index
    %c0_44 = arith.constant 0 : index
    %c0_45 = arith.constant 0 : index
    %27 = vector.load %arg2[%c0_43, %c0_44, %c0_45] : memref<1x128x4xf32, #tpu.memory_space<vmem>>, vector<1x16x4xf32>
    %28 = vector.shape_cast %27 : vector<1x16x4xf32> to vector<16x4xf32>
    %c0_46 = arith.constant 0 : index
    %c0_47 = arith.constant 0 : index
    %c0_48 = arith.constant 0 : index
    %29 = vector.load %arg3[%c0_46, %c0_47, %c0_48] : memref<1x128x4xf32, #tpu.memory_space<vmem>>, vector<1x16x4xf32>
    %30 = vector.shape_cast %29 : vector<1x16x4xf32> to vector<16x4xf32>
    %cst_49 = arith.constant 5.000000e-01 : f32
    %31 = vector.broadcast %cst_49 : f32 to vector<16x4xf32>
    %32 = arith.cmpf ogt, %30, %31 : vector<16x4xf32>
    %c0_50 = arith.constant 0 : index
    %c0_51 = arith.constant 0 : index
    %33 = vector.load %arg27[%c0_50, %c0_51] : memref<128x512xf32, #tpu.memory_space<vmem>>, vector<16x512xf32>
    %34 = arith.truncf %26 : vector<16x32xf32> to vector<16x32xbf16>
    %cst_52 = arith.constant dense<0.000000e+00> : vector<16x392xf32>
    %35 = tpu.matmul %34, %5, %cst_52 {dimension_numbers = #tpu.dot_dimension_numbers<[1], [0], [0], [1], [0, 0, 1, 1], [], []>} : vector<16x32xbf16>, vector<32x392xbf16>, vector<16x392xf32> -> vector<16x392xf32>
    %36 = vector.extract_strided_slice %35 {offsets = [0, 0], sizes = [16, 320], strides = [1, 1]} : vector<16x392xf32> to vector<16x320xf32>
    %37 = vector.extract_strided_slice %35 {offsets = [0, 320], sizes = [16, 32], strides = [1, 1]} : vector<16x392xf32> to vector<16x32xf32>
    %38 = vector.extract_strided_slice %35 {offsets = [0, 352], sizes = [16, 32], strides = [1, 1]} : vector<16x392xf32> to vector<16x32xf32>
    %39 = vector.extract_strided_slice %35 {offsets = [0, 384], sizes = [16, 4], strides = [1, 1]} : vector<16x392xf32> to vector<16x4xf32>
    %40 = vector.extract_strided_slice %35 {offsets = [0, 388], sizes = [16, 4], strides = [1, 1]} : vector<16x392xf32> to vector<16x4xf32>
    %41 = vector.broadcast %12 : vector<1x4xf32> to vector<16x4xf32>
    %42 = arith.addf %39, %41 : vector<16x4xf32>
    %43 = arith.select %32, %28, %42 : vector<16x4xi1>, vector<16x4xf32>
    %44 = arith.truncf %43 : vector<16x4xf32> to vector<16x4xbf16>
    %cst_53 = arith.constant dense<0.000000e+00> : vector<16x32xf32>
    %45 = tpu.matmul %44, %6, %cst_53 {dimension_numbers = #tpu.dot_dimension_numbers<[1], [0], [0], [1], [0, 0, 1, 1], [], []>} : vector<16x4xbf16>, vector<4x32xbf16>, vector<16x32xf32> -> vector<16x32xf32>
    %46 = vector.extract_strided_slice %33 {offsets = [0, 480], sizes = [16, 32], strides = [1, 1]} : vector<16x512xf32> to vector<16x32xf32>
    %47 = arith.addf %45, %46 : vector<16x32xf32>
    %48 = arith.addf %47, %37 : vector<16x32xf32>
    %49 = vector.broadcast %13 : vector<1x32xf32> to vector<16x32xf32>
    %50 = arith.addf %48, %49 : vector<16x32xf32>
    %51 = arith.truncf %50 : vector<16x32xf32> to vector<16x32xbf16>
    %cst_54 = arith.constant dense<0.000000e+00> : vector<16x64xf32>
    %52 = tpu.matmul %51, %7, %cst_54 {dimension_numbers = #tpu.dot_dimension_numbers<[1], [0], [0], [1], [0, 0, 1, 1], [], []>} : vector<16x32xbf16>, vector<32x64xbf16>, vector<16x64xf32> -> vector<16x64xf32>
    %53 = vector.extract_strided_slice %52 {offsets = [0, 0], sizes = [16, 32], strides = [1, 1]} : vector<16x64xf32> to vector<16x32xf32>
    %54 = arith.truncf %53 : vector<16x32xf32> to vector<16x32xbf16>
    %cst_55 = arith.constant dense<0.000000e+00> : vector<16x32xf32>
    %55 = tpu.matmul %3, %54, %cst_55 {dimension_numbers = #tpu.dot_dimension_numbers<[1], [0], [0], [1], [0, 0, 1, 1], [], []>} : vector<16x16xbf16>, vector<16x32xbf16>, vector<16x32xf32> -> vector<16x32xf32>
    %56 = vector.extract_strided_slice %52 {offsets = [0, 32], sizes = [16, 32], strides = [1, 1]} : vector<16x64xf32> to vector<16x32xf32>
    %57 = arith.truncf %56 : vector<16x32xf32> to vector<16x32xbf16>
    %cst_56 = arith.constant dense<0.000000e+00> : vector<16x32xf32>
    %58 = tpu.matmul %4, %57, %cst_56 {dimension_numbers = #tpu.dot_dimension_numbers<[1], [0], [0], [1], [0, 0, 1, 1], [], []>} : vector<16x16xbf16>, vector<16x32xbf16>, vector<16x32xf32> -> vector<16x32xf32>
    %59 = arith.addf %55, %58 : vector<16x32xf32>
    %60 = vector.broadcast %14 : vector<1x32xf32> to vector<16x32xf32>
    %61 = arith.addf %59, %60 : vector<16x32xf32>
    %62 = arith.truncf %61 : vector<16x32xf32> to vector<16x32xbf16>
    %cst_57 = arith.constant dense<0.000000e+00> : vector<16x32xf32>
    %63 = tpu.matmul %62, %8, %cst_57 {dimension_numbers = #tpu.dot_dimension_numbers<[1], [0], [0], [1], [0, 0, 1, 1], [], []>} : vector<16x32xbf16>, vector<32x32xbf16>, vector<16x32xf32> -> vector<16x32xf32>
    %64 = arith.addf %63, %38 : vector<16x32xf32>
    %65 = vector.broadcast %15 : vector<1x32xf32> to vector<16x32xf32>
    %66 = arith.addf %64, %65 : vector<16x32xf32>
    %cst_58 = arith.constant 0.000000e+00 : f32
    %67 = vector.broadcast %cst_58 : f32 to vector<16x32xf32>
    %68 = arith.cmpf ogt, %66, %67 : vector<16x32xf32>
    %69 = vector.broadcast %19 : vector<1x1xf32> to vector<16x32xf32>
    %70 = arith.mulf %69, %66 : vector<16x32xf32>
    %71 = arith.select %68, %66, %70 : vector<16x32xi1>, vector<16x32xf32>
    %72 = arith.truncf %71 : vector<16x32xf32> to vector<16x32xbf16>
    %cst_59 = arith.constant dense<0.000000e+00> : vector<16x4xf32>
    %73 = tpu.matmul %72, %9, %cst_59 {dimension_numbers = #tpu.dot_dimension_numbers<[1], [0], [0], [1], [0, 0, 1, 1], [], []>} : vector<16x32xbf16>, vector<32x4xbf16>, vector<16x4xf32> -> vector<16x4xf32>
    %74 = arith.addf %73, %40 : vector<16x4xf32>
    %75 = vector.broadcast %16 : vector<1x4xf32> to vector<16x4xf32>
    %76 = arith.addf %74, %75 : vector<16x4xf32>
    %77 = arith.select %32, %43, %76 : vector<16x4xi1>, vector<16x4xf32>
    %78 = arith.truncf %77 : vector<16x4xf32> to vector<16x4xbf16>
    %cst_60 = arith.constant dense<0.000000e+00> : vector<16x480xf32>
    %79 = tpu.matmul %78, %10, %cst_60 {dimension_numbers = #tpu.dot_dimension_numbers<[1], [0], [0], [1], [0, 0, 1, 1], [], []>} : vector<16x4xbf16>, vector<4x480xbf16>, vector<16x480xf32> -> vector<16x480xf32>
    %80 = vector.extract_strided_slice %79 {offsets = [0, 0], sizes = [16, 64], strides = [1, 1]} : vector<16x480xf32> to vector<16x64xf32>
    %81 = vector.extract_strided_slice %33 {offsets = [0, 0], sizes = [16, 64], strides = [1, 1]} : vector<16x512xf32> to vector<16x64xf32>
    %82 = arith.addf %80, %81 : vector<16x64xf32>
    %83 = vector.extract_strided_slice %36 {offsets = [0, 0], sizes = [16, 64], strides = [1, 1]} : vector<16x320xf32> to vector<16x64xf32>
    %84 = arith.addf %82, %83 : vector<16x64xf32>
    %85 = vector.extract_strided_slice %79 {offsets = [0, 64], sizes = [16, 64], strides = [1, 1]} : vector<16x480xf32> to vector<16x64xf32>
    %86 = vector.extract_strided_slice %33 {offsets = [0, 64], sizes = [16, 64], strides = [1, 1]} : vector<16x512xf32> to vector<16x64xf32>
    %87 = arith.addf %85, %86 : vector<16x64xf32>
    %88 = vector.extract_strided_slice %36 {offsets = [0, 64], sizes = [16, 64], strides = [1, 1]} : vector<16x320xf32> to vector<16x64xf32>
    %89 = arith.addf %87, %88 : vector<16x64xf32>
    %90 = vector.extract_strided_slice %79 {offsets = [0, 128], sizes = [16, 64], strides = [1, 1]} : vector<16x480xf32> to vector<16x64xf32>
    %91 = vector.extract_strided_slice %33 {offsets = [0, 128], sizes = [16, 64], strides = [1, 1]} : vector<16x512xf32> to vector<16x64xf32>
    %92 = arith.addf %90, %91 : vector<16x64xf32>
    %93 = vector.extract_strided_slice %36 {offsets = [0, 128], sizes = [16, 64], strides = [1, 1]} : vector<16x320xf32> to vector<16x64xf32>
    %94 = arith.addf %92, %93 : vector<16x64xf32>
    %95 = vector.extract_strided_slice %79 {offsets = [0, 192], sizes = [16, 64], strides = [1, 1]} : vector<16x480xf32> to vector<16x64xf32>
    %96 = vector.extract_strided_slice %33 {offsets = [0, 192], sizes = [16, 64], strides = [1, 1]} : vector<16x512xf32> to vector<16x64xf32>
    %97 = arith.addf %95, %96 : vector<16x64xf32>
    %98 = vector.extract_strided_slice %36 {offsets = [0, 192], sizes = [16, 64], strides = [1, 1]} : vector<16x320xf32> to vector<16x64xf32>
    %99 = arith.addf %97, %98 : vector<16x64xf32>
    %100 = vector.extract_strided_slice %79 {offsets = [0, 256], sizes = [16, 64], strides = [1, 1]} : vector<16x480xf32> to vector<16x64xf32>
    %101 = vector.extract_strided_slice %33 {offsets = [0, 256], sizes = [16, 64], strides = [1, 1]} : vector<16x512xf32> to vector<16x64xf32>
    %102 = arith.addf %100, %101 : vector<16x64xf32>
    %103 = vector.extract_strided_slice %36 {offsets = [0, 256], sizes = [16, 64], strides = [1, 1]} : vector<16x320xf32> to vector<16x64xf32>
    %104 = arith.addf %102, %103 : vector<16x64xf32>
    %105 = arith.truncf %94 : vector<16x64xf32> to vector<16x64xbf16>
    %cst_61 = arith.constant dense<0.000000e+00> : vector<16x64xf32>
    %106 = tpu.matmul %3, %105, %cst_61 {dimension_numbers = #tpu.dot_dimension_numbers<[1], [0], [0], [1], [0, 0, 1, 1], [], []>} : vector<16x16xbf16>, vector<16x64xbf16>, vector<16x64xf32> -> vector<16x64xf32>
    %107 = arith.addf %89, %106 : vector<16x64xf32>
    %108 = arith.truncf %107 : vector<16x64xf32> to vector<16x64xbf16>
    %cst_62 = arith.constant dense<0.000000e+00> : vector<16x64xf32>
    %109 = tpu.matmul %3, %108, %cst_62 {dimension_numbers = #tpu.dot_dimension_numbers<[1], [0], [0], [1], [0, 0, 1, 1], [], []>} : vector<16x16xbf16>, vector<16x64xbf16>, vector<16x64xf32> -> vector<16x64xf32>
    %110 = arith.addf %84, %109 : vector<16x64xf32>
    %111 = arith.truncf %104 : vector<16x64xf32> to vector<16x64xbf16>
    %cst_63 = arith.constant dense<0.000000e+00> : vector<16x64xf32>
    %112 = tpu.matmul %4, %111, %cst_63 {dimension_numbers = #tpu.dot_dimension_numbers<[1], [0], [0], [1], [0, 0, 1, 1], [], []>} : vector<16x16xbf16>, vector<16x64xbf16>, vector<16x64xf32> -> vector<16x64xf32>
    %113 = arith.addf %99, %112 : vector<16x64xf32>
    %114 = arith.truncf %113 : vector<16x64xf32> to vector<16x64xbf16>
    %cst_64 = arith.constant dense<0.000000e+00> : vector<16x64xf32>
    %115 = tpu.matmul %4, %114, %cst_64 {dimension_numbers = #tpu.dot_dimension_numbers<[1], [0], [0], [1], [0, 0, 1, 1], [], []>} : vector<16x16xbf16>, vector<16x64xbf16>, vector<16x64xf32> -> vector<16x64xf32>
    %116 = arith.addf %110, %115 : vector<16x64xf32>
    %117 = vector.broadcast %17 : vector<1x64xf32> to vector<16x64xf32>
    %118 = arith.addf %116, %117 : vector<16x64xf32>
    %119 = arith.negf %118 : vector<16x64xf32>
    %120 = math.exp %119 : vector<16x64xf32>
    %cst_65 = arith.constant 1.000000e+00 : f32
    %121 = vector.broadcast %cst_65 : f32 to vector<16x64xf32>
    %122 = arith.addf %121, %120 : vector<16x64xf32>
    %123 = arith.divf %121, %122 : vector<16x64xf32>
    %124 = vector.extract_strided_slice %123 {offsets = [0, 0], sizes = [16, 32], strides = [1, 1]} : vector<16x64xf32> to vector<16x32xf32>
    %125 = vector.extract_strided_slice %123 {offsets = [0, 32], sizes = [16, 32], strides = [1, 1]} : vector<16x64xf32> to vector<16x32xf32>
    %126 = arith.mulf %124, %26 : vector<16x32xf32>
    %127 = arith.truncf %126 : vector<16x32xf32> to vector<16x32xbf16>
    %cst_66 = arith.constant dense<0.000000e+00> : vector<16x160xf32>
    %128 = tpu.matmul %127, %11, %cst_66 {dimension_numbers = #tpu.dot_dimension_numbers<[1], [0], [0], [1], [0, 0, 1, 1], [], []>} : vector<16x32xbf16>, vector<32x160xbf16>, vector<16x160xf32> -> vector<16x160xf32>
    %129 = vector.extract_strided_slice %79 {offsets = [0, 320], sizes = [16, 32], strides = [1, 1]} : vector<16x480xf32> to vector<16x32xf32>
    %130 = vector.extract_strided_slice %33 {offsets = [0, 320], sizes = [16, 32], strides = [1, 1]} : vector<16x512xf32> to vector<16x32xf32>
    %131 = arith.addf %129, %130 : vector<16x32xf32>
    %132 = vector.extract_strided_slice %128 {offsets = [0, 0], sizes = [16, 32], strides = [1, 1]} : vector<16x160xf32> to vector<16x32xf32>
    %133 = arith.addf %131, %132 : vector<16x32xf32>
    %134 = vector.extract_strided_slice %79 {offsets = [0, 352], sizes = [16, 32], strides = [1, 1]} : vector<16x480xf32> to vector<16x32xf32>
    %135 = vector.extract_strided_slice %33 {offsets = [0, 352], sizes = [16, 32], strides = [1, 1]} : vector<16x512xf32> to vector<16x32xf32>
    %136 = arith.addf %134, %135 : vector<16x32xf32>
    %137 = vector.extract_strided_slice %128 {offsets = [0, 32], sizes = [16, 32], strides = [1, 1]} : vector<16x160xf32> to vector<16x32xf32>
    %138 = arith.addf %136, %137 : vector<16x32xf32>
    %139 = vector.extract_strided_slice %79 {offsets = [0, 384], sizes = [16, 32], strides = [1, 1]} : vector<16x480xf32> to vector<16x32xf32>
    %140 = vector.extract_strided_slice %33 {offsets = [0, 384], sizes = [16, 32], strides = [1, 1]} : vector<16x512xf32> to vector<16x32xf32>
    %141 = arith.addf %139, %140 : vector<16x32xf32>
    %142 = vector.extract_strided_slice %128 {offsets = [0, 64], sizes = [16, 32], strides = [1, 1]} : vector<16x160xf32> to vector<16x32xf32>
    %143 = arith.addf %141, %142 : vector<16x32xf32>
    %144 = vector.extract_strided_slice %79 {offsets = [0, 416], sizes = [16, 32], strides = [1, 1]} : vector<16x480xf32> to vector<16x32xf32>
    %145 = vector.extract_strided_slice %33 {offsets = [0, 416], sizes = [16, 32], strides = [1, 1]} : vector<16x512xf32> to vector<16x32xf32>
    %146 = arith.addf %144, %145 : vector<16x32xf32>
    %147 = vector.extract_strided_slice %128 {offsets = [0, 96], sizes = [16, 32], strides = [1, 1]} : vector<16x160xf32> to vector<16x32xf32>
    %148 = arith.addf %146, %147 : vector<16x32xf32>
    %149 = vector.extract_strided_slice %79 {offsets = [0, 448], sizes = [16, 32], strides = [1, 1]} : vector<16x480xf32> to vector<16x32xf32>
    %150 = vector.extract_strided_slice %33 {offsets = [0, 448], sizes = [16, 32], strides = [1, 1]} : vector<16x512xf32> to vector<16x32xf32>
    %151 = arith.addf %149, %150 : vector<16x32xf32>
    %152 = vector.extract_strided_slice %128 {offsets = [0, 128], sizes = [16, 32], strides = [1, 1]} : vector<16x160xf32> to vector<16x32xf32>
    %153 = arith.addf %151, %152 : vector<16x32xf32>
    %154 = arith.truncf %143 : vector<16x32xf32> to vector<16x32xbf16>
    %cst_67 = arith.constant dense<0.000000e+00> : vector<16x32xf32>
    %155 = tpu.matmul %3, %154, %cst_67 {dimension_numbers = #tpu.dot_dimension_numbers<[1], [0], [0], [1], [0, 0, 1, 1], [], []>} : vector<16x16xbf16>, vector<16x32xbf16>, vector<16x32xf32> -> vector<16x32xf32>
    %156 = arith.addf %138, %155 : vector<16x32xf32>
    %157 = arith.truncf %156 : vector<16x32xf32> to vector<16x32xbf16>
    %cst_68 = arith.constant dense<0.000000e+00> : vector<16x32xf32>
    %158 = tpu.matmul %3, %157, %cst_68 {dimension_numbers = #tpu.dot_dimension_numbers<[1], [0], [0], [1], [0, 0, 1, 1], [], []>} : vector<16x16xbf16>, vector<16x32xbf16>, vector<16x32xf32> -> vector<16x32xf32>
    %159 = arith.addf %133, %158 : vector<16x32xf32>
    %160 = arith.truncf %153 : vector<16x32xf32> to vector<16x32xbf16>
    %cst_69 = arith.constant dense<0.000000e+00> : vector<16x32xf32>
    %161 = tpu.matmul %4, %160, %cst_69 {dimension_numbers = #tpu.dot_dimension_numbers<[1], [0], [0], [1], [0, 0, 1, 1], [], []>} : vector<16x16xbf16>, vector<16x32xbf16>, vector<16x32xf32> -> vector<16x32xf32>
    %162 = arith.addf %148, %161 : vector<16x32xf32>
    %163 = arith.truncf %162 : vector<16x32xf32> to vector<16x32xbf16>
    %cst_70 = arith.constant dense<0.000000e+00> : vector<16x32xf32>
    %164 = tpu.matmul %4, %163, %cst_70 {dimension_numbers = #tpu.dot_dimension_numbers<[1], [0], [0], [1], [0, 0, 1, 1], [], []>} : vector<16x16xbf16>, vector<16x32xbf16>, vector<16x32xf32> -> vector<16x32xf32>
    %165 = arith.addf %159, %164 : vector<16x32xf32>
    %166 = vector.broadcast %18 : vector<1x32xf32> to vector<16x32xf32>
    %167 = arith.addf %165, %166 : vector<16x32xf32>
    %168 = math.tanh %167 : vector<16x32xf32>
    %169 = arith.mulf %125, %26 : vector<16x32xf32>
    %cst_71 = arith.constant 1.000000e+00 : f32
    %170 = vector.broadcast %cst_71 : f32 to vector<16x32xf32>
    %171 = arith.subf %170, %125 : vector<16x32xf32>
    %172 = arith.mulf %171, %168 : vector<16x32xf32>
    %173 = arith.addf %169, %172 : vector<16x32xf32>
    %c0_72 = arith.constant 0 : index
    %c0_73 = arith.constant 0 : index
    %c0_74 = arith.constant 0 : index
    %174 = vector.load %arg22[%c0_72, %c0_73, %c0_74] : memref<1x128x4xf32, #tpu.memory_space<vmem>>, vector<1x16x4xf32>
    %175 = vector.shape_cast %174 : vector<1x16x4xf32> to vector<16x4xf32>
    %176 = vector.shape_cast %42 : vector<16x4xf32> to vector<1x16x4xf32>
    tpu.vector_store %arg22[%c0_72, %c0_73, %c0_74], %176 {strides = array<i32>} : memref<1x128x4xf32, #tpu.memory_space<vmem>>, vector<1x16x4xf32>,
    %c0_75 = arith.constant 0 : index
    %c0_76 = arith.constant 0 : index
    %c0_77 = arith.constant 0 : index
    %177 = vector.load %arg23[%c0_75, %c0_76, %c0_77] : memref<1x128x4xf32, #tpu.memory_space<vmem>>, vector<1x16x4xf32>
    %178 = vector.shape_cast %177 : vector<1x16x4xf32> to vector<16x4xf32>
    %179 = vector.shape_cast %76 : vector<16x4xf32> to vector<1x16x4xf32>
    tpu.vector_store %arg23[%c0_75, %c0_76, %c0_77], %179 {strides = array<i32>} : memref<1x128x4xf32, #tpu.memory_space<vmem>>, vector<1x16x4xf32>,
    %c0_78 = arith.constant 0 : index
    %c0_79 = arith.constant 0 : index
    %c0_80 = arith.constant 0 : index
    %180 = vector.load %arg24[%c0_78, %c0_79, %c0_80] : memref<1x128x32xf32, #tpu.memory_space<vmem>>, vector<1x16x32xf32>
    %181 = vector.shape_cast %180 : vector<1x16x32xf32> to vector<16x32xf32>
    %182 = vector.shape_cast %71 : vector<16x32xf32> to vector<1x16x32xf32>
    tpu.vector_store %arg24[%c0_78, %c0_79, %c0_80], %182 {strides = array<i32>} : memref<1x128x32xf32, #tpu.memory_space<vmem>>, vector<1x16x32xf32>,
    %c0_81 = arith.constant 0 : index
    %c0_82 = arith.constant 0 : index
    %c0_83 = arith.constant 0 : index
    %183 = vector.load %arg25[%c0_81, %c0_82, %c0_83] : memref<1x128x32xf32, #tpu.memory_space<vmem>>, vector<1x16x32xf32>
    %184 = vector.shape_cast %183 : vector<1x16x32xf32> to vector<16x32xf32>
    %185 = vector.shape_cast %173 : vector<16x32xf32> to vector<1x16x32xf32>
    tpu.vector_store %arg25[%c0_81, %c0_82, %c0_83], %185 {strides = array<i32>} : memref<1x128x32xf32, #tpu.memory_space<vmem>>, vector<1x16x32xf32>,
    %c0_84 = arith.constant 0 : index
    %c16 = arith.constant 16 : index
    %c0_85 = arith.constant 0 : index
    %186 = vector.load %arg2[%c0_84, %c16, %c0_85] : memref<1x128x4xf32, #tpu.memory_space<vmem>>, vector<1x16x4xf32>
    %187 = vector.shape_cast %186 : vector<1x16x4xf32> to vector<16x4xf32>
    %c0_86 = arith.constant 0 : index
    %c16_87 = arith.constant 16 : index
    %c0_88 = arith.constant 0 : index
    %188 = vector.load %arg3[%c0_86, %c16_87, %c0_88] : memref<1x128x4xf32, #tpu.memory_space<vmem>>, vector<1x16x4xf32>
    %189 = vector.shape_cast %188 : vector<1x16x4xf32> to vector<16x4xf32>
    %cst_89 = arith.constant 5.000000e-01 : f32
    %190 = vector.broadcast %cst_89 : f32 to vector<16x4xf32>
    %191 = arith.cmpf ogt, %189, %190 : vector<16x4xf32>
    %c16_90 = arith.constant 16 : index
    %c0_91 = arith.constant 0 : index
    %192 = vector.load %arg27[%c16_90, %c0_91] : memref<128x512xf32, #tpu.memory_space<vmem>>, vector<16x512xf32>
    %193 = arith.truncf %173 : vector<16x32xf32> to vector<16x32xbf16>
    %cst_92 = arith.constant dense<0.000000e+00> : vector<16x392xf32>
    %194 = tpu.matmul %193, %5, %cst_92 {dimension_numbers = #tpu.dot_dimension_numbers<[1], [0], [0], [1], [0, 0, 1, 1], [], []>} : vector<16x32xbf16>, vector<32x392xbf16>, vector<16x392xf32> -> vector<16x392xf32>
    %195 = vector.extract_strided_slice %194 {offsets = [0, 0], sizes = [16, 320], strides = [1, 1]} : vector<16x392xf32> to vector<16x320xf32>
    %196 = vector.extract_strided_slice %194 {offsets = [0, 320], sizes = [16, 32], strides = [1, 1]} : vector<16x392xf32> to vector<16x32xf32>
    %197 = vector.extract_strided_slice %194 {offsets = [0, 352], sizes = [16, 32], strides = [1, 1]} : vector<16x392xf32> to vector<16x32xf32>
    %198 = vector.extract_strided_slice %194 {offsets = [0, 384], sizes = [16, 4], strides = [1, 1]} : vector<16x392xf32> to vector<16x4xf32>
    %199 = vector.extract_strided_slice %194 {offsets = [0, 388], sizes = [16, 4], strides = [1, 1]} : vector<16x392xf32> to vector<16x4xf32>
    %200 = vector.broadcast %12 : vector<1x4xf32> to vector<16x4xf32>
    %201 = arith.addf %198, %200 : vector<16x4xf32>
    %202 = arith.select %191, %187, %201 : vector<16x4xi1>, vector<16x4xf32>
    %203 = arith.truncf %202 : vector<16x4xf32> to vector<16x4xbf16>
    %cst_93 = arith.constant dense<0.000000e+00> : vector<16x32xf32>
    %204 = tpu.matmul %203, %6, %cst_93 {dimension_numbers = #tpu.dot_dimension_numbers<[1], [0], [0], [1], [0, 0, 1, 1], [], []>} : vector<16x4xbf16>, vector<4x32xbf16>, vector<16x32xf32> -> vector<16x32xf32>
    %205 = vector.extract_strided_slice %192 {offsets = [0, 480], sizes = [16, 32], strides = [1, 1]} : vector<16x512xf32> to vector<16x32xf32>
    %206 = arith.addf %204, %205 : vector<16x32xf32>
    %207 = arith.addf %206, %196 : vector<16x32xf32>
    %208 = vector.broadcast %13 : vector<1x32xf32> to vector<16x32xf32>
    %209 = arith.addf %207, %208 : vector<16x32xf32>
    %210 = arith.truncf %209 : vector<16x32xf32> to vector<16x32xbf16>
    %cst_94 = arith.constant dense<0.000000e+00> : vector<16x64xf32>
    %211 = tpu.matmul %210, %7, %cst_94 {dimension_numbers = #tpu.dot_dimension_numbers<[1], [0], [0], [1], [0, 0, 1, 1], [], []>} : vector<16x32xbf16>, vector<32x64xbf16>, vector<16x64xf32> -> vector<16x64xf32>
    %212 = vector.extract_strided_slice %211 {offsets = [0, 0], sizes = [16, 32], strides = [1, 1]} : vector<16x64xf32> to vector<16x32xf32>
    %213 = arith.truncf %212 : vector<16x32xf32> to vector<16x32xbf16>
    %cst_95 = arith.constant dense<0.000000e+00> : vector<16x32xf32>
    %214 = tpu.matmul %3, %213, %cst_95 {dimension_numbers = #tpu.dot_dimension_numbers<[1], [0], [0], [1], [0, 0, 1, 1], [], []>} : vector<16x16xbf16>, vector<16x32xbf16>, vector<16x32xf32> -> vector<16x32xf32>
    %215 = vector.extract_strided_slice %211 {offsets = [0, 32], sizes = [16, 32], strides = [1, 1]} : vector<16x64xf32> to vector<16x32xf32>
    %216 = arith.truncf %215 : vector<16x32xf32> to vector<16x32xbf16>
    %cst_96 = arith.constant dense<0.000000e+00> : vector<16x32xf32>
    %217 = tpu.matmul %4, %216, %cst_96 {dimension_numbers = #tpu.dot_dimension_numbers<[1], [0], [0], [1], [0, 0, 1, 1], [], []>} : vector<16x16xbf16>, vector<16x32xbf16>, vector<16x32xf32> -> vector<16x32xf32>
    %218 = arith.addf %214, %217 : vector<16x32xf32>
    %219 = vector.broadcast %14 : vector<1x32xf32> to vector<16x32xf32>
    %220 = arith.addf %218, %219 : vector<16x32xf32>
    %221 = arith.truncf %220 : vector<16x32xf32> to vector<16x32xbf16>
    %cst_97 = arith.constant dense<0.000000e+00> : vector<16x32xf32>
    %222 = tpu.matmul %221, %8, %cst_97 {dimension_numbers = #tpu.dot_dimension_numbers<[1], [0], [0], [1], [0, 0, 1, 1], [], []>} : vector<16x32xbf16>, vector<32x32xbf16>, vector<16x32xf32> -> vector<16x32xf32>
    %223 = arith.addf %222, %197 : vector<16x32xf32>
    %224 = vector.broadcast %15 : vector<1x32xf32> to vector<16x32xf32>
    %225 = arith.addf %223, %224 : vector<16x32xf32>
    %cst_98 = arith.constant 0.000000e+00 : f32
    %226 = vector.broadcast %cst_98 : f32 to vector<16x32xf32>
    %227 = arith.cmpf ogt, %225, %226 : vector<16x32xf32>
    %228 = vector.broadcast %19 : vector<1x1xf32> to vector<16x32xf32>
    %229 = arith.mulf %228, %225 : vector<16x32xf32>
    %230 = arith.select %227, %225, %229 : vector<16x32xi1>, vector<16x32xf32>
    %231 = arith.truncf %230 : vector<16x32xf32> to vector<16x32xbf16>
    %cst_99 = arith.constant dense<0.000000e+00> : vector<16x4xf32>
    %232 = tpu.matmul %231, %9, %cst_99 {dimension_numbers = #tpu.dot_dimension_numbers<[1], [0], [0], [1], [0, 0, 1, 1], [], []>} : vector<16x32xbf16>, vector<32x4xbf16>, vector<16x4xf32> -> vector<16x4xf32>
    %233 = arith.addf %232, %199 : vector<16x4xf32>
    %234 = vector.broadcast %16 : vector<1x4xf32> to vector<16x4xf32>
    %235 = arith.addf %233, %234 : vector<16x4xf32>
    %236 = arith.select %191, %202, %235 : vector<16x4xi1>, vector<16x4xf32>
    %237 = arith.truncf %236 : vector<16x4xf32> to vector<16x4xbf16>
    %cst_100 = arith.constant dense<0.000000e+00> : vector<16x480xf32>
    %238 = tpu.matmul %237, %10, %cst_100 {dimension_numbers = #tpu.dot_dimension_numbers<[1], [0], [0], [1], [0, 0, 1, 1], [], []>} : vector<16x4xbf16>, vector<4x480xbf16>, vector<16x480xf32> -> vector<16x480xf32>
    %239 = vector.extract_strided_slice %238 {offsets = [0, 0], sizes = [16, 64], strides = [1, 1]} : vector<16x480xf32> to vector<16x64xf32>
    %240 = vector.extract_strided_slice %192 {offsets = [0, 0], sizes = [16, 64], strides = [1, 1]} : vector<16x512xf32> to vector<16x64xf32>
    %241 = arith.addf %239, %240 : vector<16x64xf32>
    %242 = vector.extract_strided_slice %195 {offsets = [0, 0], sizes = [16, 64], strides = [1, 1]} : vector<16x320xf32> to vector<16x64xf32>
    %243 = arith.addf %241, %242 : vector<16x64xf32>
    %244 = vector.extract_strided_slice %238 {offsets = [0, 64], sizes = [16, 64], strides = [1, 1]} : vector<16x480xf32> to vector<16x64xf32>
    %245 = vector.extract_strided_slice %192 {offsets = [0, 64], sizes = [16, 64], strides = [1, 1]} : vector<16x512xf32> to vector<16x64xf32>
    %246 = arith.addf %244, %245 : vector<16x64xf32>
    %247 = vector.extract_strided_slice %195 {offsets = [0, 64], sizes = [16, 64], strides = [1, 1]} : vector<16x320xf32> to vector<16x64xf32>
    %248 = arith.addf %246, %247 : vector<16x64xf32>
    %249 = vector.extract_strided_slice %238 {offsets = [0, 128], sizes = [16, 64], strides = [1, 1]} : vector<16x480xf32> to vector<16x64xf32>
    %250 = vector.extract_strided_slice %192 {offsets = [0, 128], sizes = [16, 64], strides = [1, 1]} : vector<16x512xf32> to vector<16x64xf32>
    %251 = arith.addf %249, %250 : vector<16x64xf32>
    %252 = vector.extract_strided_slice %195 {offsets = [0, 128], sizes = [16, 64], strides = [1, 1]} : vector<16x320xf32> to vector<16x64xf32>
    %253 = arith.addf %251, %252 : vector<16x64xf32>
    %254 = vector.extract_strided_slice %238 {offsets = [0, 192], sizes = [16, 64], strides = [1, 1]} : vector<16x480xf32> to vector<16x64xf32>
    %255 = vector.extract_strided_slice %192 {offsets = [0, 192], sizes = [16, 64], strides = [1, 1]} : vector<16x512xf32> to vector<16x64xf32>
    %256 = arith.addf %254, %255 : vector<16x64xf32>
    %257 = vector.extract_strided_slice %195 {offsets = [0, 192], sizes = [16, 64], strides = [1, 1]} : vector<16x320xf32> to vector<16x64xf32>
    %258 = arith.addf %256, %257 : vector<16x64xf32>
    %259 = vector.extract_strided_slice %238 {offsets = [0, 256], sizes = [16, 64], strides = [1, 1]} : vector<16x480xf32> to vector<16x64xf32>
    %260 = vector.extract_strided_slice %192 {offsets = [0, 256], sizes = [16, 64], strides = [1, 1]} : vector<16x512xf32> to vector<16x64xf32>
    %261 = arith.addf %259, %260 : vector<16x64xf32>
    %262 = vector.extract_strided_slice %195 {offsets = [0, 256], sizes = [16, 64], strides = [1, 1]} : vector<16x320xf32> to vector<16x64xf32>
    %263 = arith.addf %261, %262 : vector<16x64xf32>
    %264 = arith.truncf %253 : vector<16x64xf32> to vector<16x64xbf16>
    %cst_101 = arith.constant dense<0.000000e+00> : vector<16x64xf32>
    %265 = tpu.matmul %3, %264, %cst_101 {dimension_numbers = #tpu.dot_dimension_numbers<[1], [0], [0], [1], [0, 0, 1, 1], [], []>} : vector<16x16xbf16>, vector<16x64xbf16>, vector<16x64xf32> -> vector<16x64xf32>
    %266 = arith.addf %248, %265 : vector<16x64xf32>
    %267 = arith.truncf %266 : vector<16x64xf32> to vector<16x64xbf16>
    %cst_102 = arith.constant dense<0.000000e+00> : vector<16x64xf32>
    %268 = tpu.matmul %3, %267, %cst_102 {dimension_numbers = #tpu.dot_dimension_numbers<[1], [0], [0], [1], [0, 0, 1, 1], [], []>} : vector<16x16xbf16>, vector<16x64xbf16>, vector<16x64xf32> -> vector<16x64xf32>
    %269 = arith.addf %243, %268 : vector<16x64xf32>
    %270 = arith.truncf %263 : vector<16x64xf32> to vector<16x64xbf16>
    %cst_103 = arith.constant dense<0.000000e+00> : vector<16x64xf32>
    %271 = tpu.matmul %4, %270, %cst_103 {dimension_numbers = #tpu.dot_dimension_numbers<[1], [0], [0], [1], [0, 0, 1, 1], [], []>} : vector<16x16xbf16>, vector<16x64xbf16>, vector<16x64xf32> -> vector<16x64xf32>
    %272 = arith.addf %258, %271 : vector<16x64xf32>
    %273 = arith.truncf %272 : vector<16x64xf32> to vector<16x64xbf16>
    %cst_104 = arith.constant dense<0.000000e+00> : vector<16x64xf32>
    %274 = tpu.matmul %4, %273, %cst_104 {dimension_numbers = #tpu.dot_dimension_numbers<[1], [0], [0], [1], [0, 0, 1, 1], [], []>} : vector<16x16xbf16>, vector<16x64xbf16>, vector<16x64xf32> -> vector<16x64xf32>
    %275 = arith.addf %269, %274 : vector<16x64xf32>
    %276 = vector.broadcast %17 : vector<1x64xf32> to vector<16x64xf32>
    %277 = arith.addf %275, %276 : vector<16x64xf32>
    %278 = arith.negf %277 : vector<16x64xf32>
    %279 = math.exp %278 : vector<16x64xf32>
    %cst_105 = arith.constant 1.000000e+00 : f32
    %280 = vector.broadcast %cst_105 : f32 to vector<16x64xf32>
    %281 = arith.addf %280, %279 : vector<16x64xf32>
    %282 = arith.divf %280, %281 : vector<16x64xf32>
    %283 = vector.extract_strided_slice %282 {offsets = [0, 0], sizes = [16, 32], strides = [1, 1]} : vector<16x64xf32> to vector<16x32xf32>
    %284 = vector.extract_strided_slice %282 {offsets = [0, 32], sizes = [16, 32], strides = [1, 1]} : vector<16x64xf32> to vector<16x32xf32>
    %285 = arith.mulf %283, %173 : vector<16x32xf32>
    %286 = arith.truncf %285 : vector<16x32xf32> to vector<16x32xbf16>
    %cst_106 = arith.constant dense<0.000000e+00> : vector<16x160xf32>
    %287 = tpu.matmul %286, %11, %cst_106 {dimension_numbers = #tpu.dot_dimension_numbers<[1], [0], [0], [1], [0, 0, 1, 1], [], []>} : vector<16x32xbf16>, vector<32x160xbf16>, vector<16x160xf32> -> vector<16x160xf32>
    %288 = vector.extract_strided_slice %238 {offsets = [0, 320], sizes = [16, 32], strides = [1, 1]} : vector<16x480xf32> to vector<16x32xf32>
    %289 = vector.extract_strided_slice %192 {offsets = [0, 320], sizes = [16, 32], strides = [1, 1]} : vector<16x512xf32> to vector<16x32xf32>
    %290 = arith.addf %288, %289 : vector<16x32xf32>
    %291 = vector.extract_strided_slice %287 {offsets = [0, 0], sizes = [16, 32], strides = [1, 1]} : vector<16x160xf32> to vector<16x32xf32>
    %292 = arith.addf %290, %291 : vector<16x32xf32>
    %293 = vector.extract_strided_slice %238 {offsets = [0, 352], sizes = [16, 32], strides = [1, 1]} : vector<16x480xf32> to vector<16x32xf32>
    %294 = vector.extract_strided_slice %192 {offsets = [0, 352], sizes = [16, 32], strides = [1, 1]} : vector<16x512xf32> to vector<16x32xf32>
    %295 = arith.addf %293, %294 : vector<16x32xf32>
    %296 = vector.extract_strided_slice %287 {offsets = [0, 32], sizes = [16, 32], strides = [1, 1]} : vector<16x160xf32> to vector<16x32xf32>
    %297 = arith.addf %295, %296 : vector<16x32xf32>
    %298 = vector.extract_strided_slice %238 {offsets = [0, 384], sizes = [16, 32], strides = [1, 1]} : vector<16x480xf32> to vector<16x32xf32>
    %299 = vector.extract_strided_slice %192 {offsets = [0, 384], sizes = [16, 32], strides = [1, 1]} : vector<16x512xf32> to vector<16x32xf32>
    %300 = arith.addf %298, %299 : vector<16x32xf32>
    %301 = vector.extract_strided_slice %287 {offsets = [0, 64], sizes = [16, 32], strides = [1, 1]} : vector<16x160xf32> to vector<16x32xf32>
    %302 = arith.addf %300, %301 : vector<16x32xf32>
    %303 = vector.extract_strided_slice %238 {offsets = [0, 416], sizes = [16, 32], strides = [1, 1]} : vector<16x480xf32> to vector<16x32xf32>
    %304 = vector.extract_strided_slice %192 {offsets = [0, 416], sizes = [16, 32], strides = [1, 1]} : vector<16x512xf32> to vector<16x32xf32>
    %305 = arith.addf %303, %304 : vector<16x32xf32>
    %306 = vector.extract_strided_slice %287 {offsets = [0, 96], sizes = [16, 32], strides = [1, 1]} : vector<16x160xf32> to vector<16x32xf32>
    %307 = arith.addf %305, %306 : vector<16x32xf32>
    %308 = vector.extract_strided_slice %238 {offsets = [0, 448], sizes = [16, 32], strides = [1, 1]} : vector<16x480xf32> to vector<16x32xf32>
    %309 = vector.extract_strided_slice %192 {offsets = [0, 448], sizes = [16, 32], strides = [1, 1]} : vector<16x512xf32> to vector<16x32xf32>
    %310 = arith.addf %308, %309 : vector<16x32xf32>
    %311 = vector.extract_strided_slice %287 {offsets = [0, 128], sizes = [16, 32], strides = [1, 1]} : vector<16x160xf32> to vector<16x32xf32>
    %312 = arith.addf %310, %311 : vector<16x32xf32>
    %313 = arith.truncf %302 : vector<16x32xf32> to vector<16x32xbf16>
    %cst_107 = arith.constant dense<0.000000e+00> : vector<16x32xf32>
    %314 = tpu.matmul %3, %313, %cst_107 {dimension_numbers = #tpu.dot_dimension_numbers<[1], [0], [0], [1], [0, 0, 1, 1], [], []>} : vector<16x16xbf16>, vector<16x32xbf16>, vector<16x32xf32> -> vector<16x32xf32>
    %315 = arith.addf %297, %314 : vector<16x32xf32>
    %316 = arith.truncf %315 : vector<16x32xf32> to vector<16x32xbf16>
    %cst_108 = arith.constant dense<0.000000e+00> : vector<16x32xf32>
    %317 = tpu.matmul %3, %316, %cst_108 {dimension_numbers = #tpu.dot_dimension_numbers<[1], [0], [0], [1], [0, 0, 1, 1], [], []>} : vector<16x16xbf16>, vector<16x32xbf16>, vector<16x32xf32> -> vector<16x32xf32>
    %318 = arith.addf %292, %317 : vector<16x32xf32>
    %319 = arith.truncf %312 : vector<16x32xf32> to vector<16x32xbf16>
    %cst_109 = arith.constant dense<0.000000e+00> : vector<16x32xf32>
    %320 = tpu.matmul %4, %319, %cst_109 {dimension_numbers = #tpu.dot_dimension_numbers<[1], [0], [0], [1], [0, 0, 1, 1], [], []>} : vector<16x16xbf16>, vector<16x32xbf16>, vector<16x32xf32> -> vector<16x32xf32>
    %321 = arith.addf %307, %320 : vector<16x32xf32>
    %322 = arith.truncf %321 : vector<16x32xf32> to vector<16x32xbf16>
    %cst_110 = arith.constant dense<0.000000e+00> : vector<16x32xf32>
    %323 = tpu.matmul %4, %322, %cst_110 {dimension_numbers = #tpu.dot_dimension_numbers<[1], [0], [0], [1], [0, 0, 1, 1], [], []>} : vector<16x16xbf16>, vector<16x32xbf16>, vector<16x32xf32> -> vector<16x32xf32>
    %324 = arith.addf %318, %323 : vector<16x32xf32>
    %325 = vector.broadcast %18 : vector<1x32xf32> to vector<16x32xf32>
    %326 = arith.addf %324, %325 : vector<16x32xf32>
    %327 = math.tanh %326 : vector<16x32xf32>
    %328 = arith.mulf %284, %173 : vector<16x32xf32>
    %cst_111 = arith.constant 1.000000e+00 : f32
    %329 = vector.broadcast %cst_111 : f32 to vector<16x32xf32>
    %330 = arith.subf %329, %284 : vector<16x32xf32>
    %331 = arith.mulf %330, %327 : vector<16x32xf32>
    %332 = arith.addf %328, %331 : vector<16x32xf32>
    %c0_112 = arith.constant 0 : index
    %c16_113 = arith.constant 16 : index
    %c0_114 = arith.constant 0 : index
    %333 = vector.load %arg22[%c0_112, %c16_113, %c0_114] : memref<1x128x4xf32, #tpu.memory_space<vmem>>, vector<1x16x4xf32>
    %334 = vector.shape_cast %333 : vector<1x16x4xf32> to vector<16x4xf32>
    %335 = vector.shape_cast %201 : vector<16x4xf32> to vector<1x16x4xf32>
    tpu.vector_store %arg22[%c0_112, %c16_113, %c0_114], %335 {strides = array<i32>} : memref<1x128x4xf32, #tpu.memory_space<vmem>>, vector<1x16x4xf32>,
    %c0_115 = arith.constant 0 : index
    %c16_116 = arith.constant 16 : index
    %c0_117 = arith.constant 0 : index
    %336 = vector.load %arg23[%c0_115, %c16_116, %c0_117] : memref<1x128x4xf32, #tpu.memory_space<vmem>>, vector<1x16x4xf32>
    %337 = vector.shape_cast %336 : vector<1x16x4xf32> to vector<16x4xf32>
    %338 = vector.shape_cast %235 : vector<16x4xf32> to vector<1x16x4xf32>
    tpu.vector_store %arg23[%c0_115, %c16_116, %c0_117], %338 {strides = array<i32>} : memref<1x128x4xf32, #tpu.memory_space<vmem>>, vector<1x16x4xf32>,
    %c0_118 = arith.constant 0 : index
    %c16_119 = arith.constant 16 : index
    %c0_120 = arith.constant 0 : index
    %339 = vector.load %arg24[%c0_118, %c16_119, %c0_120] : memref<1x128x32xf32, #tpu.memory_space<vmem>>, vector<1x16x32xf32>
    %340 = vector.shape_cast %339 : vector<1x16x32xf32> to vector<16x32xf32>
    %341 = vector.shape_cast %230 : vector<16x32xf32> to vector<1x16x32xf32>
    tpu.vector_store %arg24[%c0_118, %c16_119, %c0_120], %341 {strides = array<i32>} : memref<1x128x32xf32, #tpu.memory_space<vmem>>, vector<1x16x32xf32>,
    %c0_121 = arith.constant 0 : index
    %c16_122 = arith.constant 16 : index
    %c0_123 = arith.constant 0 : index
    %342 = vector.load %arg25[%c0_121, %c16_122, %c0_123] : memref<1x128x32xf32, #tpu.memory_space<vmem>>, vector<1x16x32xf32>
    %343 = vector.shape_cast %342 : vector<1x16x32xf32> to vector<16x32xf32>
    %344 = vector.shape_cast %332 : vector<16x32xf32> to vector<1x16x32xf32>
    tpu.vector_store %arg25[%c0_121, %c16_122, %c0_123], %344 {strides = array<i32>} : memref<1x128x32xf32, #tpu.memory_space<vmem>>, vector<1x16x32xf32>,
    %c0_124 = arith.constant 0 : index
    %c32 = arith.constant 32 : index
    %c0_125 = arith.constant 0 : index
    %345 = vector.load %arg2[%c0_124, %c32, %c0_125] : memref<1x128x4xf32, #tpu.memory_space<vmem>>, vector<1x16x4xf32>
    %346 = vector.shape_cast %345 : vector<1x16x4xf32> to vector<16x4xf32>
    %c0_126 = arith.constant 0 : index
    %c32_127 = arith.constant 32 : index
    %c0_128 = arith.constant 0 : index
    %347 = vector.load %arg3[%c0_126, %c32_127, %c0_128] : memref<1x128x4xf32, #tpu.memory_space<vmem>>, vector<1x16x4xf32>
    %348 = vector.shape_cast %347 : vector<1x16x4xf32> to vector<16x4xf32>
    %cst_129 = arith.constant 5.000000e-01 : f32
    %349 = vector.broadcast %cst_129 : f32 to vector<16x4xf32>
    %350 = arith.cmpf ogt, %348, %349 : vector<16x4xf32>
    %c32_130 = arith.constant 32 : index
    %c0_131 = arith.constant 0 : index
    %351 = vector.load %arg27[%c32_130, %c0_131] : memref<128x512xf32, #tpu.memory_space<vmem>>, vector<16x512xf32>
    %352 = arith.truncf %332 : vector<16x32xf32> to vector<16x32xbf16>
    %cst_132 = arith.constant dense<0.000000e+00> : vector<16x392xf32>
    %353 = tpu.matmul %352, %5, %cst_132 {dimension_numbers = #tpu.dot_dimension_numbers<[1], [0], [0], [1], [0, 0, 1, 1], [], []>} : vector<16x32xbf16>, vector<32x392xbf16>, vector<16x392xf32> -> vector<16x392xf32>
    %354 = vector.extract_strided_slice %353 {offsets = [0, 0], sizes = [16, 320], strides = [1, 1]} : vector<16x392xf32> to vector<16x320xf32>
    %355 = vector.extract_strided_slice %353 {offsets = [0, 320], sizes = [16, 32], strides = [1, 1]} : vector<16x392xf32> to vector<16x32xf32>
    %356 = vector.extract_strided_slice %353 {offsets = [0, 352], sizes = [16, 32], strides = [1, 1]} : vector<16x392xf32> to vector<16x32xf32>
    %357 = vector.extract_strided_slice %353 {offsets = [0, 384], sizes = [16, 4], strides = [1, 1]} : vector<16x392xf32> to vector<16x4xf32>
    %358 = vector.extract_strided_slice %353 {offsets = [0, 388], sizes = [16, 4], strides = [1, 1]} : vector<16x392xf32> to vector<16x4xf32>
    %359 = vector.broadcast %12 : vector<1x4xf32> to vector<16x4xf32>
    %360 = arith.addf %357, %359 : vector<16x4xf32>
    %361 = arith.select %350, %346, %360 : vector<16x4xi1>, vector<16x4xf32>
    %362 = arith.truncf %361 : vector<16x4xf32> to vector<16x4xbf16>
    %cst_133 = arith.constant dense<0.000000e+00> : vector<16x32xf32>
    %363 = tpu.matmul %362, %6, %cst_133 {dimension_numbers = #tpu.dot_dimension_numbers<[1], [0], [0], [1], [0, 0, 1, 1], [], []>} : vector<16x4xbf16>, vector<4x32xbf16>, vector<16x32xf32> -> vector<16x32xf32>
    %364 = vector.extract_strided_slice %351 {offsets = [0, 480], sizes = [16, 32], strides = [1, 1]} : vector<16x512xf32> to vector<16x32xf32>
    %365 = arith.addf %363, %364 : vector<16x32xf32>
    %366 = arith.addf %365, %355 : vector<16x32xf32>
    %367 = vector.broadcast %13 : vector<1x32xf32> to vector<16x32xf32>
    %368 = arith.addf %366, %367 : vector<16x32xf32>
    %369 = arith.truncf %368 : vector<16x32xf32> to vector<16x32xbf16>
    %cst_134 = arith.constant dense<0.000000e+00> : vector<16x64xf32>
    %370 = tpu.matmul %369, %7, %cst_134 {dimension_numbers = #tpu.dot_dimension_numbers<[1], [0], [0], [1], [0, 0, 1, 1], [], []>} : vector<16x32xbf16>, vector<32x64xbf16>, vector<16x64xf32> -> vector<16x64xf32>
    %371 = vector.extract_strided_slice %370 {offsets = [0, 0], sizes = [16, 32], strides = [1, 1]} : vector<16x64xf32> to vector<16x32xf32>
    %372 = arith.truncf %371 : vector<16x32xf32> to vector<16x32xbf16>
    %cst_135 = arith.constant dense<0.000000e+00> : vector<16x32xf32>
    %373 = tpu.matmul %3, %372, %cst_135 {dimension_numbers = #tpu.dot_dimension_numbers<[1], [0], [0], [1], [0, 0, 1, 1], [], []>} : vector<16x16xbf16>, vector<16x32xbf16>, vector<16x32xf32> -> vector<16x32xf32>
    %374 = vector.extract_strided_slice %370 {offsets = [0, 32], sizes = [16, 32], strides = [1, 1]} : vector<16x64xf32> to vector<16x32xf32>
    %375 = arith.truncf %374 : vector<16x32xf32> to vector<16x32xbf16>
    %cst_136 = arith.constant dense<0.000000e+00> : vector<16x32xf32>
    %376 = tpu.matmul %4, %375, %cst_136 {dimension_numbers = #tpu.dot_dimension_numbers<[1], [0], [0], [1], [0, 0, 1, 1], [], []>} : vector<16x16xbf16>, vector<16x32xbf16>, vector<16x32xf32> -> vector<16x32xf32>
    %377 = arith.addf %373, %376 : vector<16x32xf32>
    %378 = vector.broadcast %14 : vector<1x32xf32> to vector<16x32xf32>
    %379 = arith.addf %377, %378 : vector<16x32xf32>
    %380 = arith.truncf %379 : vector<16x32xf32> to vector<16x32xbf16>
    %cst_137 = arith.constant dense<0.000000e+00> : vector<16x32xf32>
    %381 = tpu.matmul %380, %8, %cst_137 {dimension_numbers = #tpu.dot_dimension_numbers<[1], [0], [0], [1], [0, 0, 1, 1], [], []>} : vector<16x32xbf16>, vector<32x32xbf16>, vector<16x32xf32> -> vector<16x32xf32>
    %382 = arith.addf %381, %356 : vector<16x32xf32>
    %383 = vector.broadcast %15 : vector<1x32xf32> to vector<16x32xf32>
    %384 = arith.addf %382, %383 : vector<16x32xf32>
    %cst_138 = arith.constant 0.000000e+00 : f32
    %385 = vector.broadcast %cst_138 : f32 to vector<16x32xf32>
    %386 = arith.cmpf ogt, %384, %385 : vector<16x32xf32>
    %387 = vector.broadcast %19 : vector<1x1xf32> to vector<16x32xf32>
    %388 = arith.mulf %387, %384 : vector<16x32xf32>
    %389 = arith.select %386, %384, %388 : vector<16x32xi1>, vector<16x32xf32>
    %390 = arith.truncf %389 : vector<16x32xf32> to vector<16x32xbf16>
    %cst_139 = arith.constant dense<0.000000e+00> : vector<16x4xf32>
    %391 = tpu.matmul %390, %9, %cst_139 {dimension_numbers = #tpu.dot_dimension_numbers<[1], [0], [0], [1], [0, 0, 1, 1], [], []>} : vector<16x32xbf16>, vector<32x4xbf16>, vector<16x4xf32> -> vector<16x4xf32>
    %392 = arith.addf %391, %358 : vector<16x4xf32>
    %393 = vector.broadcast %16 : vector<1x4xf32> to vector<16x4xf32>
    %394 = arith.addf %392, %393 : vector<16x4xf32>
    %395 = arith.select %350, %361, %394 : vector<16x4xi1>, vector<16x4xf32>
    %396 = arith.truncf %395 : vector<16x4xf32> to vector<16x4xbf16>
    %cst_140 = arith.constant dense<0.000000e+00> : vector<16x480xf32>
    %397 = tpu.matmul %396, %10, %cst_140 {dimension_numbers = #tpu.dot_dimension_numbers<[1], [0], [0], [1], [0, 0, 1, 1], [], []>} : vector<16x4xbf16>, vector<4x480xbf16>, vector<16x480xf32> -> vector<16x480xf32>
    %398 = vector.extract_strided_slice %397 {offsets = [0, 0], sizes = [16, 64], strides = [1, 1]} : vector<16x480xf32> to vector<16x64xf32>
    %399 = vector.extract_strided_slice %351 {offsets = [0, 0], sizes = [16, 64], strides = [1, 1]} : vector<16x512xf32> to vector<16x64xf32>
    %400 = arith.addf %398, %399 : vector<16x64xf32>
    %401 = vector.extract_strided_slice %354 {offsets = [0, 0], sizes = [16, 64], strides = [1, 1]} : vector<16x320xf32> to vector<16x64xf32>
    %402 = arith.addf %400, %401 : vector<16x64xf32>
    %403 = vector.extract_strided_slice %397 {offsets = [0, 64], sizes = [16, 64], strides = [1, 1]} : vector<16x480xf32> to vector<16x64xf32>
    %404 = vector.extract_strided_slice %351 {offsets = [0, 64], sizes = [16, 64], strides = [1, 1]} : vector<16x512xf32> to vector<16x64xf32>
    %405 = arith.addf %403, %404 : vector<16x64xf32>
    %406 = vector.extract_strided_slice %354 {offsets = [0, 64], sizes = [16, 64], strides = [1, 1]} : vector<16x320xf32> to vector<16x64xf32>
    %407 = arith.addf %405, %406 : vector<16x64xf32>
    %408 = vector.extract_strided_slice %397 {offsets = [0, 128], sizes = [16, 64], strides = [1, 1]} : vector<16x480xf32> to vector<16x64xf32>
    %409 = vector.extract_strided_slice %351 {offsets = [0, 128], sizes = [16, 64], strides = [1, 1]} : vector<16x512xf32> to vector<16x64xf32>
    %410 = arith.addf %408, %409 : vector<16x64xf32>
    %411 = vector.extract_strided_slice %354 {offsets = [0, 128], sizes = [16, 64], strides = [1, 1]} : vector<16x320xf32> to vector<16x64xf32>
    %412 = arith.addf %410, %411 : vector<16x64xf32>
    %413 = vector.extract_strided_slice %397 {offsets = [0, 192], sizes = [16, 64], strides = [1, 1]} : vector<16x480xf32> to vector<16x64xf32>
    %414 = vector.extract_strided_slice %351 {offsets = [0, 192], sizes = [16, 64], strides = [1, 1]} : vector<16x512xf32> to vector<16x64xf32>
    %415 = arith.addf %413, %414 : vector<16x64xf32>
    %416 = vector.extract_strided_slice %354 {offsets = [0, 192], sizes = [16, 64], strides = [1, 1]} : vector<16x320xf32> to vector<16x64xf32>
    %417 = arith.addf %415, %416 : vector<16x64xf32>
    %418 = vector.extract_strided_slice %397 {offsets = [0, 256], sizes = [16, 64], strides = [1, 1]} : vector<16x480xf32> to vector<16x64xf32>
    %419 = vector.extract_strided_slice %351 {offsets = [0, 256], sizes = [16, 64], strides = [1, 1]} : vector<16x512xf32> to vector<16x64xf32>
    %420 = arith.addf %418, %419 : vector<16x64xf32>
    %421 = vector.extract_strided_slice %354 {offsets = [0, 256], sizes = [16, 64], strides = [1, 1]} : vector<16x320xf32> to vector<16x64xf32>
    %422 = arith.addf %420, %421 : vector<16x64xf32>
    %423 = arith.truncf %412 : vector<16x64xf32> to vector<16x64xbf16>
    %cst_141 = arith.constant dense<0.000000e+00> : vector<16x64xf32>
    %424 = tpu.matmul %3, %423, %cst_141 {dimension_numbers = #tpu.dot_dimension_numbers<[1], [0], [0], [1], [0, 0, 1, 1], [], []>} : vector<16x16xbf16>, vector<16x64xbf16>, vector<16x64xf32> -> vector<16x64xf32>
    %425 = arith.addf %407, %424 : vector<16x64xf32>
    %426 = arith.truncf %425 : vector<16x64xf32> to vector<16x64xbf16>
    %cst_142 = arith.constant dense<0.000000e+00> : vector<16x64xf32>
    %427 = tpu.matmul %3, %426, %cst_142 {dimension_numbers = #tpu.dot_dimension_numbers<[1], [0], [0], [1], [0, 0, 1, 1], [], []>} : vector<16x16xbf16>, vector<16x64xbf16>, vector<16x64xf32> -> vector<16x64xf32>
    %428 = arith.addf %402, %427 : vector<16x64xf32>
    %429 = arith.truncf %422 : vector<16x64xf32> to vector<16x64xbf16>
    %cst_143 = arith.constant dense<0.000000e+00> : vector<16x64xf32>
    %430 = tpu.matmul %4, %429, %cst_143 {dimension_numbers = #tpu.dot_dimension_numbers<[1], [0], [0], [1], [0, 0, 1, 1], [], []>} : vector<16x16xbf16>, vector<16x64xbf16>, vector<16x64xf32> -> vector<16x64xf32>
    %431 = arith.addf %417, %430 : vector<16x64xf32>
    %432 = arith.truncf %431 : vector<16x64xf32> to vector<16x64xbf16>
    %cst_144 = arith.constant dense<0.000000e+00> : vector<16x64xf32>
    %433 = tpu.matmul %4, %432, %cst_144 {dimension_numbers = #tpu.dot_dimension_numbers<[1], [0], [0], [1], [0, 0, 1, 1], [], []>} : vector<16x16xbf16>, vector<16x64xbf16>, vector<16x64xf32> -> vector<16x64xf32>
    %434 = arith.addf %428, %433 : vector<16x64xf32>
    %435 = vector.broadcast %17 : vector<1x64xf32> to vector<16x64xf32>
    %436 = arith.addf %434, %435 : vector<16x64xf32>
    %437 = arith.negf %436 : vector<16x64xf32>
    %438 = math.exp %437 : vector<16x64xf32>
    %cst_145 = arith.constant 1.000000e+00 : f32
    %439 = vector.broadcast %cst_145 : f32 to vector<16x64xf32>
    %440 = arith.addf %439, %438 : vector<16x64xf32>
    %441 = arith.divf %439, %440 : vector<16x64xf32>
    %442 = vector.extract_strided_slice %441 {offsets = [0, 0], sizes = [16, 32], strides = [1, 1]} : vector<16x64xf32> to vector<16x32xf32>
    %443 = vector.extract_strided_slice %441 {offsets = [0, 32], sizes = [16, 32], strides = [1, 1]} : vector<16x64xf32> to vector<16x32xf32>
    %444 = arith.mulf %442, %332 : vector<16x32xf32>
    %445 = arith.truncf %444 : vector<16x32xf32> to vector<16x32xbf16>
    %cst_146 = arith.constant dense<0.000000e+00> : vector<16x160xf32>
    %446 = tpu.matmul %445, %11, %cst_146 {dimension_numbers = #tpu.dot_dimension_numbers<[1], [0], [0], [1], [0, 0, 1, 1], [], []>} : vector<16x32xbf16>, vector<32x160xbf16>, vector<16x160xf32> -> vector<16x160xf32>
    %447 = vector.extract_strided_slice %397 {offsets = [0, 320], sizes = [16, 32], strides = [1, 1]} : vector<16x480xf32> to vector<16x32xf32>
    %448 = vector.extract_strided_slice %351 {offsets = [0, 320], sizes = [16, 32], strides = [1, 1]} : vector<16x512xf32> to vector<16x32xf32>
    %449 = arith.addf %447, %448 : vector<16x32xf32>
    %450 = vector.extract_strided_slice %446 {offsets = [0, 0], sizes = [16, 32], strides = [1, 1]} : vector<16x160xf32> to vector<16x32xf32>
    %451 = arith.addf %449, %450 : vector<16x32xf32>
    %452 = vector.extract_strided_slice %397 {offsets = [0, 352], sizes = [16, 32], strides = [1, 1]} : vector<16x480xf32> to vector<16x32xf32>
    %453 = vector.extract_strided_slice %351 {offsets = [0, 352], sizes = [16, 32], strides = [1, 1]} : vector<16x512xf32> to vector<16x32xf32>
    %454 = arith.addf %452, %453 : vector<16x32xf32>
    %455 = vector.extract_strided_slice %446 {offsets = [0, 32], sizes = [16, 32], strides = [1, 1]} : vector<16x160xf32> to vector<16x32xf32>
    %456 = arith.addf %454, %455 : vector<16x32xf32>
    %457 = vector.extract_strided_slice %397 {offsets = [0, 384], sizes = [16, 32], strides = [1, 1]} : vector<16x480xf32> to vector<16x32xf32>
    %458 = vector.extract_strided_slice %351 {offsets = [0, 384], sizes = [16, 32], strides = [1, 1]} : vector<16x512xf32> to vector<16x32xf32>
    %459 = arith.addf %457, %458 : vector<16x32xf32>
    %460 = vector.extract_strided_slice %446 {offsets = [0, 64], sizes = [16, 32], strides = [1, 1]} : vector<16x160xf32> to vector<16x32xf32>
    %461 = arith.addf %459, %460 : vector<16x32xf32>
    %462 = vector.extract_strided_slice %397 {offsets = [0, 416], sizes = [16, 32], strides = [1, 1]} : vector<16x480xf32> to vector<16x32xf32>
    %463 = vector.extract_strided_slice %351 {offsets = [0, 416], sizes = [16, 32], strides = [1, 1]} : vector<16x512xf32> to vector<16x32xf32>
    %464 = arith.addf %462, %463 : vector<16x32xf32>
    %465 = vector.extract_strided_slice %446 {offsets = [0, 96], sizes = [16, 32], strides = [1, 1]} : vector<16x160xf32> to vector<16x32xf32>
    %466 = arith.addf %464, %465 : vector<16x32xf32>
    %467 = vector.extract_strided_slice %397 {offsets = [0, 448], sizes = [16, 32], strides = [1, 1]} : vector<16x480xf32> to vector<16x32xf32>
    %468 = vector.extract_strided_slice %351 {offsets = [0, 448], sizes = [16, 32], strides = [1, 1]} : vector<16x512xf32> to vector<16x32xf32>
    %469 = arith.addf %467, %468 : vector<16x32xf32>
    %470 = vector.extract_strided_slice %446 {offsets = [0, 128], sizes = [16, 32], strides = [1, 1]} : vector<16x160xf32> to vector<16x32xf32>
    %471 = arith.addf %469, %470 : vector<16x32xf32>
    %472 = arith.truncf %461 : vector<16x32xf32> to vector<16x32xbf16>
    %cst_147 = arith.constant dense<0.000000e+00> : vector<16x32xf32>
    %473 = tpu.matmul %3, %472, %cst_147 {dimension_numbers = #tpu.dot_dimension_numbers<[1], [0], [0], [1], [0, 0, 1, 1], [], []>} : vector<16x16xbf16>, vector<16x32xbf16>, vector<16x32xf32> -> vector<16x32xf32>
    %474 = arith.addf %456, %473 : vector<16x32xf32>
    %475 = arith.truncf %474 : vector<16x32xf32> to vector<16x32xbf16>
    %cst_148 = arith.constant dense<0.000000e+00> : vector<16x32xf32>
    %476 = tpu.matmul %3, %475, %cst_148 {dimension_numbers = #tpu.dot_dimension_numbers<[1], [0], [0], [1], [0, 0, 1, 1], [], []>} : vector<16x16xbf16>, vector<16x32xbf16>, vector<16x32xf32> -> vector<16x32xf32>
    %477 = arith.addf %451, %476 : vector<16x32xf32>
    %478 = arith.truncf %471 : vector<16x32xf32> to vector<16x32xbf16>
    %cst_149 = arith.constant dense<0.000000e+00> : vector<16x32xf32>
    %479 = tpu.matmul %4, %478, %cst_149 {dimension_numbers = #tpu.dot_dimension_numbers<[1], [0], [0], [1], [0, 0, 1, 1], [], []>} : vector<16x16xbf16>, vector<16x32xbf16>, vector<16x32xf32> -> vector<16x32xf32>
    %480 = arith.addf %466, %479 : vector<16x32xf32>
    %481 = arith.truncf %480 : vector<16x32xf32> to vector<16x32xbf16>
    %cst_150 = arith.constant dense<0.000000e+00> : vector<16x32xf32>
    %482 = tpu.matmul %4, %481, %cst_150 {dimension_numbers = #tpu.dot_dimension_numbers<[1], [0], [0], [1], [0, 0, 1, 1], [], []>} : vector<16x16xbf16>, vector<16x32xbf16>, vector<16x32xf32> -> vector<16x32xf32>
    %483 = arith.addf %477, %482 : vector<16x32xf32>
    %484 = vector.broadcast %18 : vector<1x32xf32> to vector<16x32xf32>
    %485 = arith.addf %483, %484 : vector<16x32xf32>
    %486 = math.tanh %485 : vector<16x32xf32>
    %487 = arith.mulf %443, %332 : vector<16x32xf32>
    %cst_151 = arith.constant 1.000000e+00 : f32
    %488 = vector.broadcast %cst_151 : f32 to vector<16x32xf32>
    %489 = arith.subf %488, %443 : vector<16x32xf32>
    %490 = arith.mulf %489, %486 : vector<16x32xf32>
    %491 = arith.addf %487, %490 : vector<16x32xf32>
    %c0_152 = arith.constant 0 : index
    %c32_153 = arith.constant 32 : index
    %c0_154 = arith.constant 0 : index
    %492 = vector.load %arg22[%c0_152, %c32_153, %c0_154] : memref<1x128x4xf32, #tpu.memory_space<vmem>>, vector<1x16x4xf32>
    %493 = vector.shape_cast %492 : vector<1x16x4xf32> to vector<16x4xf32>
    %494 = vector.shape_cast %360 : vector<16x4xf32> to vector<1x16x4xf32>
    tpu.vector_store %arg22[%c0_152, %c32_153, %c0_154], %494 {strides = array<i32>} : memref<1x128x4xf32, #tpu.memory_space<vmem>>, vector<1x16x4xf32>,
    %c0_155 = arith.constant 0 : index
    %c32_156 = arith.constant 32 : index
    %c0_157 = arith.constant 0 : index
    %495 = vector.load %arg23[%c0_155, %c32_156, %c0_157] : memref<1x128x4xf32, #tpu.memory_space<vmem>>, vector<1x16x4xf32>
    %496 = vector.shape_cast %495 : vector<1x16x4xf32> to vector<16x4xf32>
    %497 = vector.shape_cast %394 : vector<16x4xf32> to vector<1x16x4xf32>
    tpu.vector_store %arg23[%c0_155, %c32_156, %c0_157], %497 {strides = array<i32>} : memref<1x128x4xf32, #tpu.memory_space<vmem>>, vector<1x16x4xf32>,
    %c0_158 = arith.constant 0 : index
    %c32_159 = arith.constant 32 : index
    %c0_160 = arith.constant 0 : index
    %498 = vector.load %arg24[%c0_158, %c32_159, %c0_160] : memref<1x128x32xf32, #tpu.memory_space<vmem>>, vector<1x16x32xf32>
    %499 = vector.shape_cast %498 : vector<1x16x32xf32> to vector<16x32xf32>
    %500 = vector.shape_cast %389 : vector<16x32xf32> to vector<1x16x32xf32>
    tpu.vector_store %arg24[%c0_158, %c32_159, %c0_160], %500 {strides = array<i32>} : memref<1x128x32xf32, #tpu.memory_space<vmem>>, vector<1x16x32xf32>,
    %c0_161 = arith.constant 0 : index
    %c32_162 = arith.constant 32 : index
    %c0_163 = arith.constant 0 : index
    %501 = vector.load %arg25[%c0_161, %c32_162, %c0_163] : memref<1x128x32xf32, #tpu.memory_space<vmem>>, vector<1x16x32xf32>
    %502 = vector.shape_cast %501 : vector<1x16x32xf32> to vector<16x32xf32>
    %503 = vector.shape_cast %491 : vector<16x32xf32> to vector<1x16x32xf32>
    tpu.vector_store %arg25[%c0_161, %c32_162, %c0_163], %503 {strides = array<i32>} : memref<1x128x32xf32, #tpu.memory_space<vmem>>, vector<1x16x32xf32>,
    %c0_164 = arith.constant 0 : index
    %c48 = arith.constant 48 : index
    %c0_165 = arith.constant 0 : index
    %504 = vector.load %arg2[%c0_164, %c48, %c0_165] : memref<1x128x4xf32, #tpu.memory_space<vmem>>, vector<1x16x4xf32>
    %505 = vector.shape_cast %504 : vector<1x16x4xf32> to vector<16x4xf32>
    %c0_166 = arith.constant 0 : index
    %c48_167 = arith.constant 48 : index
    %c0_168 = arith.constant 0 : index
    %506 = vector.load %arg3[%c0_166, %c48_167, %c0_168] : memref<1x128x4xf32, #tpu.memory_space<vmem>>, vector<1x16x4xf32>
    %507 = vector.shape_cast %506 : vector<1x16x4xf32> to vector<16x4xf32>
    %cst_169 = arith.constant 5.000000e-01 : f32
    %508 = vector.broadcast %cst_169 : f32 to vector<16x4xf32>
    %509 = arith.cmpf ogt, %507, %508 : vector<16x4xf32>
    %c48_170 = arith.constant 48 : index
    %c0_171 = arith.constant 0 : index
    %510 = vector.load %arg27[%c48_170, %c0_171] : memref<128x512xf32, #tpu.memory_space<vmem>>, vector<16x512xf32>
    %511 = arith.truncf %491 : vector<16x32xf32> to vector<16x32xbf16>
    %cst_172 = arith.constant dense<0.000000e+00> : vector<16x392xf32>
    %512 = tpu.matmul %511, %5, %cst_172 {dimension_numbers = #tpu.dot_dimension_numbers<[1], [0], [0], [1], [0, 0, 1, 1], [], []>} : vector<16x32xbf16>, vector<32x392xbf16>, vector<16x392xf32> -> vector<16x392xf32>
    %513 = vector.extract_strided_slice %512 {offsets = [0, 0], sizes = [16, 320], strides = [1, 1]} : vector<16x392xf32> to vector<16x320xf32>
    %514 = vector.extract_strided_slice %512 {offsets = [0, 320], sizes = [16, 32], strides = [1, 1]} : vector<16x392xf32> to vector<16x32xf32>
    %515 = vector.extract_strided_slice %512 {offsets = [0, 352], sizes = [16, 32], strides = [1, 1]} : vector<16x392xf32> to vector<16x32xf32>
    %516 = vector.extract_strided_slice %512 {offsets = [0, 384], sizes = [16, 4], strides = [1, 1]} : vector<16x392xf32> to vector<16x4xf32>
    %517 = vector.extract_strided_slice %512 {offsets = [0, 388], sizes = [16, 4], strides = [1, 1]} : vector<16x392xf32> to vector<16x4xf32>
    %518 = vector.broadcast %12 : vector<1x4xf32> to vector<16x4xf32>
    %519 = arith.addf %516, %518 : vector<16x4xf32>
    %520 = arith.select %509, %505, %519 : vector<16x4xi1>, vector<16x4xf32>
    %521 = arith.truncf %520 : vector<16x4xf32> to vector<16x4xbf16>
    %cst_173 = arith.constant dense<0.000000e+00> : vector<16x32xf32>
    %522 = tpu.matmul %521, %6, %cst_173 {dimension_numbers = #tpu.dot_dimension_numbers<[1], [0], [0], [1], [0, 0, 1, 1], [], []>} : vector<16x4xbf16>, vector<4x32xbf16>, vector<16x32xf32> -> vector<16x32xf32>
    %523 = vector.extract_strided_slice %510 {offsets = [0, 480], sizes = [16, 32], strides = [1, 1]} : vector<16x512xf32> to vector<16x32xf32>
    %524 = arith.addf %522, %523 : vector<16x32xf32>
    %525 = arith.addf %524, %514 : vector<16x32xf32>
    %526 = vector.broadcast %13 : vector<1x32xf32> to vector<16x32xf32>
    %527 = arith.addf %525, %526 : vector<16x32xf32>
    %528 = arith.truncf %527 : vector<16x32xf32> to vector<16x32xbf16>
    %cst_174 = arith.constant dense<0.000000e+00> : vector<16x64xf32>
    %529 = tpu.matmul %528, %7, %cst_174 {dimension_numbers = #tpu.dot_dimension_numbers<[1], [0], [0], [1], [0, 0, 1, 1], [], []>} : vector<16x32xbf16>, vector<32x64xbf16>, vector<16x64xf32> -> vector<16x64xf32>
    %530 = vector.extract_strided_slice %529 {offsets = [0, 0], sizes = [16, 32], strides = [1, 1]} : vector<16x64xf32> to vector<16x32xf32>
    %531 = arith.truncf %530 : vector<16x32xf32> to vector<16x32xbf16>
    %cst_175 = arith.constant dense<0.000000e+00> : vector<16x32xf32>
    %532 = tpu.matmul %3, %531, %cst_175 {dimension_numbers = #tpu.dot_dimension_numbers<[1], [0], [0], [1], [0, 0, 1, 1], [], []>} : vector<16x16xbf16>, vector<16x32xbf16>, vector<16x32xf32> -> vector<16x32xf32>
    %533 = vector.extract_strided_slice %529 {offsets = [0, 32], sizes = [16, 32], strides = [1, 1]} : vector<16x64xf32> to vector<16x32xf32>
    %534 = arith.truncf %533 : vector<16x32xf32> to vector<16x32xbf16>
    %cst_176 = arith.constant dense<0.000000e+00> : vector<16x32xf32>
    %535 = tpu.matmul %4, %534, %cst_176 {dimension_numbers = #tpu.dot_dimension_numbers<[1], [0], [0], [1], [0, 0, 1, 1], [], []>} : vector<16x16xbf16>, vector<16x32xbf16>, vector<16x32xf32> -> vector<16x32xf32>
    %536 = arith.addf %532, %535 : vector<16x32xf32>
    %537 = vector.broadcast %14 : vector<1x32xf32> to vector<16x32xf32>
    %538 = arith.addf %536, %537 : vector<16x32xf32>
    %539 = arith.truncf %538 : vector<16x32xf32> to vector<16x32xbf16>
    %cst_177 = arith.constant dense<0.000000e+00> : vector<16x32xf32>
    %540 = tpu.matmul %539, %8, %cst_177 {dimension_numbers = #tpu.dot_dimension_numbers<[1], [0], [0], [1], [0, 0, 1, 1], [], []>} : vector<16x32xbf16>, vector<32x32xbf16>, vector<16x32xf32> -> vector<16x32xf32>
    %541 = arith.addf %540, %515 : vector<16x32xf32>
    %542 = vector.broadcast %15 : vector<1x32xf32> to vector<16x32xf32>
    %543 = arith.addf %541, %542 : vector<16x32xf32>
    %cst_178 = arith.constant 0.000000e+00 : f32
    %544 = vector.broadcast %cst_178 : f32 to vector<16x32xf32>
    %545 = arith.cmpf ogt, %543, %544 : vector<16x32xf32>
    %546 = vector.broadcast %19 : vector<1x1xf32> to vector<16x32xf32>
    %547 = arith.mulf %546, %543 : vector<16x32xf32>
    %548 = arith.select %545, %543, %547 : vector<16x32xi1>, vector<16x32xf32>
    %549 = arith.truncf %548 : vector<16x32xf32> to vector<16x32xbf16>
    %cst_179 = arith.constant dense<0.000000e+00> : vector<16x4xf32>
    %550 = tpu.matmul %549, %9, %cst_179 {dimension_numbers = #tpu.dot_dimension_numbers<[1], [0], [0], [1], [0, 0, 1, 1], [], []>} : vector<16x32xbf16>, vector<32x4xbf16>, vector<16x4xf32> -> vector<16x4xf32>
    %551 = arith.addf %550, %517 : vector<16x4xf32>
    %552 = vector.broadcast %16 : vector<1x4xf32> to vector<16x4xf32>
    %553 = arith.addf %551, %552 : vector<16x4xf32>
    %554 = arith.select %509, %520, %553 : vector<16x4xi1>, vector<16x4xf32>
    %555 = arith.truncf %554 : vector<16x4xf32> to vector<16x4xbf16>
    %cst_180 = arith.constant dense<0.000000e+00> : vector<16x480xf32>
    %556 = tpu.matmul %555, %10, %cst_180 {dimension_numbers = #tpu.dot_dimension_numbers<[1], [0], [0], [1], [0, 0, 1, 1], [], []>} : vector<16x4xbf16>, vector<4x480xbf16>, vector<16x480xf32> -> vector<16x480xf32>
    %557 = vector.extract_strided_slice %556 {offsets = [0, 0], sizes = [16, 64], strides = [1, 1]} : vector<16x480xf32> to vector<16x64xf32>
    %558 = vector.extract_strided_slice %510 {offsets = [0, 0], sizes = [16, 64], strides = [1, 1]} : vector<16x512xf32> to vector<16x64xf32>
    %559 = arith.addf %557, %558 : vector<16x64xf32>
    %560 = vector.extract_strided_slice %513 {offsets = [0, 0], sizes = [16, 64], strides = [1, 1]} : vector<16x320xf32> to vector<16x64xf32>
    %561 = arith.addf %559, %560 : vector<16x64xf32>
    %562 = vector.extract_strided_slice %556 {offsets = [0, 64], sizes = [16, 64], strides = [1, 1]} : vector<16x480xf32> to vector<16x64xf32>
    %563 = vector.extract_strided_slice %510 {offsets = [0, 64], sizes = [16, 64], strides = [1, 1]} : vector<16x512xf32> to vector<16x64xf32>
    %564 = arith.addf %562, %563 : vector<16x64xf32>
    %565 = vector.extract_strided_slice %513 {offsets = [0, 64], sizes = [16, 64], strides = [1, 1]} : vector<16x320xf32> to vector<16x64xf32>
    %566 = arith.addf %564, %565 : vector<16x64xf32>
    %567 = vector.extract_strided_slice %556 {offsets = [0, 128], sizes = [16, 64], strides = [1, 1]} : vector<16x480xf32> to vector<16x64xf32>
    %568 = vector.extract_strided_slice %510 {offsets = [0, 128], sizes = [16, 64], strides = [1, 1]} : vector<16x512xf32> to vector<16x64xf32>
    %569 = arith.addf %567, %568 : vector<16x64xf32>
    %570 = vector.extract_strided_slice %513 {offsets = [0, 128], sizes = [16, 64], strides = [1, 1]} : vector<16x320xf32> to vector<16x64xf32>
    %571 = arith.addf %569, %570 : vector<16x64xf32>
    %572 = vector.extract_strided_slice %556 {offsets = [0, 192], sizes = [16, 64], strides = [1, 1]} : vector<16x480xf32> to vector<16x64xf32>
    %573 = vector.extract_strided_slice %510 {offsets = [0, 192], sizes = [16, 64], strides = [1, 1]} : vector<16x512xf32> to vector<16x64xf32>
    %574 = arith.addf %572, %573 : vector<16x64xf32>
    %575 = vector.extract_strided_slice %513 {offsets = [0, 192], sizes = [16, 64], strides = [1, 1]} : vector<16x320xf32> to vector<16x64xf32>
    %576 = arith.addf %574, %575 : vector<16x64xf32>
    %577 = vector.extract_strided_slice %556 {offsets = [0, 256], sizes = [16, 64], strides = [1, 1]} : vector<16x480xf32> to vector<16x64xf32>
    %578 = vector.extract_strided_slice %510 {offsets = [0, 256], sizes = [16, 64], strides = [1, 1]} : vector<16x512xf32> to vector<16x64xf32>
    %579 = arith.addf %577, %578 : vector<16x64xf32>
    %580 = vector.extract_strided_slice %513 {offsets = [0, 256], sizes = [16, 64], strides = [1, 1]} : vector<16x320xf32> to vector<16x64xf32>
    %581 = arith.addf %579, %580 : vector<16x64xf32>
    %582 = arith.truncf %571 : vector<16x64xf32> to vector<16x64xbf16>
    %cst_181 = arith.constant dense<0.000000e+00> : vector<16x64xf32>
    %583 = tpu.matmul %3, %582, %cst_181 {dimension_numbers = #tpu.dot_dimension_numbers<[1], [0], [0], [1], [0, 0, 1, 1], [], []>} : vector<16x16xbf16>, vector<16x64xbf16>, vector<16x64xf32> -> vector<16x64xf32>
    %584 = arith.addf %566, %583 : vector<16x64xf32>
    %585 = arith.truncf %584 : vector<16x64xf32> to vector<16x64xbf16>
    %cst_182 = arith.constant dense<0.000000e+00> : vector<16x64xf32>
    %586 = tpu.matmul %3, %585, %cst_182 {dimension_numbers = #tpu.dot_dimension_numbers<[1], [0], [0], [1], [0, 0, 1, 1], [], []>} : vector<16x16xbf16>, vector<16x64xbf16>, vector<16x64xf32> -> vector<16x64xf32>
    %587 = arith.addf %561, %586 : vector<16x64xf32>
    %588 = arith.truncf %581 : vector<16x64xf32> to vector<16x64xbf16>
    %cst_183 = arith.constant dense<0.000000e+00> : vector<16x64xf32>
    %589 = tpu.matmul %4, %588, %cst_183 {dimension_numbers = #tpu.dot_dimension_numbers<[1], [0], [0], [1], [0, 0, 1, 1], [], []>} : vector<16x16xbf16>, vector<16x64xbf16>, vector<16x64xf32> -> vector<16x64xf32>
    %590 = arith.addf %576, %589 : vector<16x64xf32>
    %591 = arith.truncf %590 : vector<16x64xf32> to vector<16x64xbf16>
    %cst_184 = arith.constant dense<0.000000e+00> : vector<16x64xf32>
    %592 = tpu.matmul %4, %591, %cst_184 {dimension_numbers = #tpu.dot_dimension_numbers<[1], [0], [0], [1], [0, 0, 1, 1], [], []>} : vector<16x16xbf16>, vector<16x64xbf16>, vector<16x64xf32> -> vector<16x64xf32>
    %593 = arith.addf %587, %592 : vector<16x64xf32>
    %594 = vector.broadcast %17 : vector<1x64xf32> to vector<16x64xf32>
    %595 = arith.addf %593, %594 : vector<16x64xf32>
    %596 = arith.negf %595 : vector<16x64xf32>
    %597 = math.exp %596 : vector<16x64xf32>
    %cst_185 = arith.constant 1.000000e+00 : f32
    %598 = vector.broadcast %cst_185 : f32 to vector<16x64xf32>
    %599 = arith.addf %598, %597 : vector<16x64xf32>
    %600 = arith.divf %598, %599 : vector<16x64xf32>
    %601 = vector.extract_strided_slice %600 {offsets = [0, 0], sizes = [16, 32], strides = [1, 1]} : vector<16x64xf32> to vector<16x32xf32>
    %602 = vector.extract_strided_slice %600 {offsets = [0, 32], sizes = [16, 32], strides = [1, 1]} : vector<16x64xf32> to vector<16x32xf32>
    %603 = arith.mulf %601, %491 : vector<16x32xf32>
    %604 = arith.truncf %603 : vector<16x32xf32> to vector<16x32xbf16>
    %cst_186 = arith.constant dense<0.000000e+00> : vector<16x160xf32>
    %605 = tpu.matmul %604, %11, %cst_186 {dimension_numbers = #tpu.dot_dimension_numbers<[1], [0], [0], [1], [0, 0, 1, 1], [], []>} : vector<16x32xbf16>, vector<32x160xbf16>, vector<16x160xf32> -> vector<16x160xf32>
    %606 = vector.extract_strided_slice %556 {offsets = [0, 320], sizes = [16, 32], strides = [1, 1]} : vector<16x480xf32> to vector<16x32xf32>
    %607 = vector.extract_strided_slice %510 {offsets = [0, 320], sizes = [16, 32], strides = [1, 1]} : vector<16x512xf32> to vector<16x32xf32>
    %608 = arith.addf %606, %607 : vector<16x32xf32>
    %609 = vector.extract_strided_slice %605 {offsets = [0, 0], sizes = [16, 32], strides = [1, 1]} : vector<16x160xf32> to vector<16x32xf32>
    %610 = arith.addf %608, %609 : vector<16x32xf32>
    %611 = vector.extract_strided_slice %556 {offsets = [0, 352], sizes = [16, 32], strides = [1, 1]} : vector<16x480xf32> to vector<16x32xf32>
    %612 = vector.extract_strided_slice %510 {offsets = [0, 352], sizes = [16, 32], strides = [1, 1]} : vector<16x512xf32> to vector<16x32xf32>
    %613 = arith.addf %611, %612 : vector<16x32xf32>
    %614 = vector.extract_strided_slice %605 {offsets = [0, 32], sizes = [16, 32], strides = [1, 1]} : vector<16x160xf32> to vector<16x32xf32>
    %615 = arith.addf %613, %614 : vector<16x32xf32>
    %616 = vector.extract_strided_slice %556 {offsets = [0, 384], sizes = [16, 32], strides = [1, 1]} : vector<16x480xf32> to vector<16x32xf32>
    %617 = vector.extract_strided_slice %510 {offsets = [0, 384], sizes = [16, 32], strides = [1, 1]} : vector<16x512xf32> to vector<16x32xf32>
    %618 = arith.addf %616, %617 : vector<16x32xf32>
    %619 = vector.extract_strided_slice %605 {offsets = [0, 64], sizes = [16, 32], strides = [1, 1]} : vector<16x160xf32> to vector<16x32xf32>
    %620 = arith.addf %618, %619 : vector<16x32xf32>
    %621 = vector.extract_strided_slice %556 {offsets = [0, 416], sizes = [16, 32], strides = [1, 1]} : vector<16x480xf32> to vector<16x32xf32>
    %622 = vector.extract_strided_slice %510 {offsets = [0, 416], sizes = [16, 32], strides = [1, 1]} : vector<16x512xf32> to vector<16x32xf32>
    %623 = arith.addf %621, %622 : vector<16x32xf32>
    %624 = vector.extract_strided_slice %605 {offsets = [0, 96], sizes = [16, 32], strides = [1, 1]} : vector<16x160xf32> to vector<16x32xf32>
    %625 = arith.addf %623, %624 : vector<16x32xf32>
    %626 = vector.extract_strided_slice %556 {offsets = [0, 448], sizes = [16, 32], strides = [1, 1]} : vector<16x480xf32> to vector<16x32xf32>
    %627 = vector.extract_strided_slice %510 {offsets = [0, 448], sizes = [16, 32], strides = [1, 1]} : vector<16x512xf32> to vector<16x32xf32>
    %628 = arith.addf %626, %627 : vector<16x32xf32>
    %629 = vector.extract_strided_slice %605 {offsets = [0, 128], sizes = [16, 32], strides = [1, 1]} : vector<16x160xf32> to vector<16x32xf32>
    %630 = arith.addf %628, %629 : vector<16x32xf32>
    %631 = arith.truncf %620 : vector<16x32xf32> to vector<16x32xbf16>
    %cst_187 = arith.constant dense<0.000000e+00> : vector<16x32xf32>
    %632 = tpu.matmul %3, %631, %cst_187 {dimension_numbers = #tpu.dot_dimension_numbers<[1], [0], [0], [1], [0, 0, 1, 1], [], []>} : vector<16x16xbf16>, vector<16x32xbf16>, vector<16x32xf32> -> vector<16x32xf32>
    %633 = arith.addf %615, %632 : vector<16x32xf32>
    %634 = arith.truncf %633 : vector<16x32xf32> to vector<16x32xbf16>
    %cst_188 = arith.constant dense<0.000000e+00> : vector<16x32xf32>
    %635 = tpu.matmul %3, %634, %cst_188 {dimension_numbers = #tpu.dot_dimension_numbers<[1], [0], [0], [1], [0, 0, 1, 1], [], []>} : vector<16x16xbf16>, vector<16x32xbf16>, vector<16x32xf32> -> vector<16x32xf32>
    %636 = arith.addf %610, %635 : vector<16x32xf32>
    %637 = arith.truncf %630 : vector<16x32xf32> to vector<16x32xbf16>
    %cst_189 = arith.constant dense<0.000000e+00> : vector<16x32xf32>
    %638 = tpu.matmul %4, %637, %cst_189 {dimension_numbers = #tpu.dot_dimension_numbers<[1], [0], [0], [1], [0, 0, 1, 1], [], []>} : vector<16x16xbf16>, vector<16x32xbf16>, vector<16x32xf32> -> vector<16x32xf32>
    %639 = arith.addf %625, %638 : vector<16x32xf32>
    %640 = arith.truncf %639 : vector<16x32xf32> to vector<16x32xbf16>
    %cst_190 = arith.constant dense<0.000000e+00> : vector<16x32xf32>
    %641 = tpu.matmul %4, %640, %cst_190 {dimension_numbers = #tpu.dot_dimension_numbers<[1], [0], [0], [1], [0, 0, 1, 1], [], []>} : vector<16x16xbf16>, vector<16x32xbf16>, vector<16x32xf32> -> vector<16x32xf32>
    %642 = arith.addf %636, %641 : vector<16x32xf32>
    %643 = vector.broadcast %18 : vector<1x32xf32> to vector<16x32xf32>
    %644 = arith.addf %642, %643 : vector<16x32xf32>
    %645 = math.tanh %644 : vector<16x32xf32>
    %646 = arith.mulf %602, %491 : vector<16x32xf32>
    %cst_191 = arith.constant 1.000000e+00 : f32
    %647 = vector.broadcast %cst_191 : f32 to vector<16x32xf32>
    %648 = arith.subf %647, %602 : vector<16x32xf32>
    %649 = arith.mulf %648, %645 : vector<16x32xf32>
    %650 = arith.addf %646, %649 : vector<16x32xf32>
    %c0_192 = arith.constant 0 : index
    %c48_193 = arith.constant 48 : index
    %c0_194 = arith.constant 0 : index
    %651 = vector.load %arg22[%c0_192, %c48_193, %c0_194] : memref<1x128x4xf32, #tpu.memory_space<vmem>>, vector<1x16x4xf32>
    %652 = vector.shape_cast %651 : vector<1x16x4xf32> to vector<16x4xf32>
    %653 = vector.shape_cast %519 : vector<16x4xf32> to vector<1x16x4xf32>
    tpu.vector_store %arg22[%c0_192, %c48_193, %c0_194], %653 {strides = array<i32>} : memref<1x128x4xf32, #tpu.memory_space<vmem>>, vector<1x16x4xf32>,
    %c0_195 = arith.constant 0 : index
    %c48_196 = arith.constant 48 : index
    %c0_197 = arith.constant 0 : index
    %654 = vector.load %arg23[%c0_195, %c48_196, %c0_197] : memref<1x128x4xf32, #tpu.memory_space<vmem>>, vector<1x16x4xf32>
    %655 = vector.shape_cast %654 : vector<1x16x4xf32> to vector<16x4xf32>
    %656 = vector.shape_cast %553 : vector<16x4xf32> to vector<1x16x4xf32>
    tpu.vector_store %arg23[%c0_195, %c48_196, %c0_197], %656 {strides = array<i32>} : memref<1x128x4xf32, #tpu.memory_space<vmem>>, vector<1x16x4xf32>,
    %c0_198 = arith.constant 0 : index
    %c48_199 = arith.constant 48 : index
    %c0_200 = arith.constant 0 : index
    %657 = vector.load %arg24[%c0_198, %c48_199, %c0_200] : memref<1x128x32xf32, #tpu.memory_space<vmem>>, vector<1x16x32xf32>
    %658 = vector.shape_cast %657 : vector<1x16x32xf32> to vector<16x32xf32>
    %659 = vector.shape_cast %548 : vector<16x32xf32> to vector<1x16x32xf32>
    tpu.vector_store %arg24[%c0_198, %c48_199, %c0_200], %659 {strides = array<i32>} : memref<1x128x32xf32, #tpu.memory_space<vmem>>, vector<1x16x32xf32>,
    %c0_201 = arith.constant 0 : index
    %c48_202 = arith.constant 48 : index
    %c0_203 = arith.constant 0 : index
    %660 = vector.load %arg25[%c0_201, %c48_202, %c0_203] : memref<1x128x32xf32, #tpu.memory_space<vmem>>, vector<1x16x32xf32>
    %661 = vector.shape_cast %660 : vector<1x16x32xf32> to vector<16x32xf32>
    %662 = vector.shape_cast %650 : vector<16x32xf32> to vector<1x16x32xf32>
    tpu.vector_store %arg25[%c0_201, %c48_202, %c0_203], %662 {strides = array<i32>} : memref<1x128x32xf32, #tpu.memory_space<vmem>>, vector<1x16x32xf32>,
    %c0_204 = arith.constant 0 : index
    %c64 = arith.constant 64 : index
    %c0_205 = arith.constant 0 : index
    %663 = vector.load %arg2[%c0_204, %c64, %c0_205] : memref<1x128x4xf32, #tpu.memory_space<vmem>>, vector<1x16x4xf32>
    %664 = vector.shape_cast %663 : vector<1x16x4xf32> to vector<16x4xf32>
    %c0_206 = arith.constant 0 : index
    %c64_207 = arith.constant 64 : index
    %c0_208 = arith.constant 0 : index
    %665 = vector.load %arg3[%c0_206, %c64_207, %c0_208] : memref<1x128x4xf32, #tpu.memory_space<vmem>>, vector<1x16x4xf32>
    %666 = vector.shape_cast %665 : vector<1x16x4xf32> to vector<16x4xf32>
    %cst_209 = arith.constant 5.000000e-01 : f32
    %667 = vector.broadcast %cst_209 : f32 to vector<16x4xf32>
    %668 = arith.cmpf ogt, %666, %667 : vector<16x4xf32>
    %c64_210 = arith.constant 64 : index
    %c0_211 = arith.constant 0 : index
    %669 = vector.load %arg27[%c64_210, %c0_211] : memref<128x512xf32, #tpu.memory_space<vmem>>, vector<16x512xf32>
    %670 = arith.truncf %650 : vector<16x32xf32> to vector<16x32xbf16>
    %cst_212 = arith.constant dense<0.000000e+00> : vector<16x392xf32>
    %671 = tpu.matmul %670, %5, %cst_212 {dimension_numbers = #tpu.dot_dimension_numbers<[1], [0], [0], [1], [0, 0, 1, 1], [], []>} : vector<16x32xbf16>, vector<32x392xbf16>, vector<16x392xf32> -> vector<16x392xf32>
    %672 = vector.extract_strided_slice %671 {offsets = [0, 0], sizes = [16, 320], strides = [1, 1]} : vector<16x392xf32> to vector<16x320xf32>
    %673 = vector.extract_strided_slice %671 {offsets = [0, 320], sizes = [16, 32], strides = [1, 1]} : vector<16x392xf32> to vector<16x32xf32>
    %674 = vector.extract_strided_slice %671 {offsets = [0, 352], sizes = [16, 32], strides = [1, 1]} : vector<16x392xf32> to vector<16x32xf32>
    %675 = vector.extract_strided_slice %671 {offsets = [0, 384], sizes = [16, 4], strides = [1, 1]} : vector<16x392xf32> to vector<16x4xf32>
    %676 = vector.extract_strided_slice %671 {offsets = [0, 388], sizes = [16, 4], strides = [1, 1]} : vector<16x392xf32> to vector<16x4xf32>
    %677 = vector.broadcast %12 : vector<1x4xf32> to vector<16x4xf32>
    %678 = arith.addf %675, %677 : vector<16x4xf32>
    %679 = arith.select %668, %664, %678 : vector<16x4xi1>, vector<16x4xf32>
    %680 = arith.truncf %679 : vector<16x4xf32> to vector<16x4xbf16>
    %cst_213 = arith.constant dense<0.000000e+00> : vector<16x32xf32>
    %681 = tpu.matmul %680, %6, %cst_213 {dimension_numbers = #tpu.dot_dimension_numbers<[1], [0], [0], [1], [0, 0, 1, 1], [], []>} : vector<16x4xbf16>, vector<4x32xbf16>, vector<16x32xf32> -> vector<16x32xf32>
    %682 = vector.extract_strided_slice %669 {offsets = [0, 480], sizes = [16, 32], strides = [1, 1]} : vector<16x512xf32> to vector<16x32xf32>
    %683 = arith.addf %681, %682 : vector<16x32xf32>
    %684 = arith.addf %683, %673 : vector<16x32xf32>
    %685 = vector.broadcast %13 : vector<1x32xf32> to vector<16x32xf32>
    %686 = arith.addf %684, %685 : vector<16x32xf32>
    %687 = arith.truncf %686 : vector<16x32xf32> to vector<16x32xbf16>
    %cst_214 = arith.constant dense<0.000000e+00> : vector<16x64xf32>
    %688 = tpu.matmul %687, %7, %cst_214 {dimension_numbers = #tpu.dot_dimension_numbers<[1], [0], [0], [1], [0, 0, 1, 1], [], []>} : vector<16x32xbf16>, vector<32x64xbf16>, vector<16x64xf32> -> vector<16x64xf32>
    %689 = vector.extract_strided_slice %688 {offsets = [0, 0], sizes = [16, 32], strides = [1, 1]} : vector<16x64xf32> to vector<16x32xf32>
    %690 = arith.truncf %689 : vector<16x32xf32> to vector<16x32xbf16>
    %cst_215 = arith.constant dense<0.000000e+00> : vector<16x32xf32>
    %691 = tpu.matmul %3, %690, %cst_215 {dimension_numbers = #tpu.dot_dimension_numbers<[1], [0], [0], [1], [0, 0, 1, 1], [], []>} : vector<16x16xbf16>, vector<16x32xbf16>, vector<16x32xf32> -> vector<16x32xf32>
    %692 = vector.extract_strided_slice %688 {offsets = [0, 32], sizes = [16, 32], strides = [1, 1]} : vector<16x64xf32> to vector<16x32xf32>
    %693 = arith.truncf %692 : vector<16x32xf32> to vector<16x32xbf16>
    %cst_216 = arith.constant dense<0.000000e+00> : vector<16x32xf32>
    %694 = tpu.matmul %4, %693, %cst_216 {dimension_numbers = #tpu.dot_dimension_numbers<[1], [0], [0], [1], [0, 0, 1, 1], [], []>} : vector<16x16xbf16>, vector<16x32xbf16>, vector<16x32xf32> -> vector<16x32xf32>
    %695 = arith.addf %691, %694 : vector<16x32xf32>
    %696 = vector.broadcast %14 : vector<1x32xf32> to vector<16x32xf32>
    %697 = arith.addf %695, %696 : vector<16x32xf32>
    %698 = arith.truncf %697 : vector<16x32xf32> to vector<16x32xbf16>
    %cst_217 = arith.constant dense<0.000000e+00> : vector<16x32xf32>
    %699 = tpu.matmul %698, %8, %cst_217 {dimension_numbers = #tpu.dot_dimension_numbers<[1], [0], [0], [1], [0, 0, 1, 1], [], []>} : vector<16x32xbf16>, vector<32x32xbf16>, vector<16x32xf32> -> vector<16x32xf32>
    %700 = arith.addf %699, %674 : vector<16x32xf32>
    %701 = vector.broadcast %15 : vector<1x32xf32> to vector<16x32xf32>
    %702 = arith.addf %700, %701 : vector<16x32xf32>
    %cst_218 = arith.constant 0.000000e+00 : f32
    %703 = vector.broadcast %cst_218 : f32 to vector<16x32xf32>
    %704 = arith.cmpf ogt, %702, %703 : vector<16x32xf32>
    %705 = vector.broadcast %19 : vector<1x1xf32> to vector<16x32xf32>
    %706 = arith.mulf %705, %702 : vector<16x32xf32>
    %707 = arith.select %704, %702, %706 : vector<16x32xi1>, vector<16x32xf32>
    %708 = arith.truncf %707 : vector<16x32xf32> to vector<16x32xbf16>
    %cst_219 = arith.constant dense<0.000000e+00> : vector<16x4xf32>
    %709 = tpu.matmul %708, %9, %cst_219 {dimension_numbers = #tpu.dot_dimension_numbers<[1], [0], [0], [1], [0, 0, 1, 1], [], []>} : vector<16x32xbf16>, vector<32x4xbf16>, vector<16x4xf32> -> vector<16x4xf32>
    %710 = arith.addf %709, %676 : vector<16x4xf32>
    %711 = vector.broadcast %16 : vector<1x4xf32> to vector<16x4xf32>
    %712 = arith.addf %710, %711 : vector<16x4xf32>
    %713 = arith.select %668, %679, %712 : vector<16x4xi1>, vector<16x4xf32>
    %714 = arith.truncf %713 : vector<16x4xf32> to vector<16x4xbf16>
    %cst_220 = arith.constant dense<0.000000e+00> : vector<16x480xf32>
    %715 = tpu.matmul %714, %10, %cst_220 {dimension_numbers = #tpu.dot_dimension_numbers<[1], [0], [0], [1], [0, 0, 1, 1], [], []>} : vector<16x4xbf16>, vector<4x480xbf16>, vector<16x480xf32> -> vector<16x480xf32>
    %716 = vector.extract_strided_slice %715 {offsets = [0, 0], sizes = [16, 64], strides = [1, 1]} : vector<16x480xf32> to vector<16x64xf32>
    %717 = vector.extract_strided_slice %669 {offsets = [0, 0], sizes = [16, 64], strides = [1, 1]} : vector<16x512xf32> to vector<16x64xf32>
    %718 = arith.addf %716, %717 : vector<16x64xf32>
    %719 = vector.extract_strided_slice %672 {offsets = [0, 0], sizes = [16, 64], strides = [1, 1]} : vector<16x320xf32> to vector<16x64xf32>
    %720 = arith.addf %718, %719 : vector<16x64xf32>
    %721 = vector.extract_strided_slice %715 {offsets = [0, 64], sizes = [16, 64], strides = [1, 1]} : vector<16x480xf32> to vector<16x64xf32>
    %722 = vector.extract_strided_slice %669 {offsets = [0, 64], sizes = [16, 64], strides = [1, 1]} : vector<16x512xf32> to vector<16x64xf32>
    %723 = arith.addf %721, %722 : vector<16x64xf32>
    %724 = vector.extract_strided_slice %672 {offsets = [0, 64], sizes = [16, 64], strides = [1, 1]} : vector<16x320xf32> to vector<16x64xf32>
    %725 = arith.addf %723, %724 : vector<16x64xf32>
    %726 = vector.extract_strided_slice %715 {offsets = [0, 128], sizes = [16, 64], strides = [1, 1]} : vector<16x480xf32> to vector<16x64xf32>
    %727 = vector.extract_strided_slice %669 {offsets = [0, 128], sizes = [16, 64], strides = [1, 1]} : vector<16x512xf32> to vector<16x64xf32>
    %728 = arith.addf %726, %727 : vector<16x64xf32>
    %729 = vector.extract_strided_slice %672 {offsets = [0, 128], sizes = [16, 64], strides = [1, 1]} : vector<16x320xf32> to vector<16x64xf32>
    %730 = arith.addf %728, %729 : vector<16x64xf32>
    %731 = vector.extract_strided_slice %715 {offsets = [0, 192], sizes = [16, 64], strides = [1, 1]} : vector<16x480xf32> to vector<16x64xf32>
    %732 = vector.extract_strided_slice %669 {offsets = [0, 192], sizes = [16, 64], strides = [1, 1]} : vector<16x512xf32> to vector<16x64xf32>
    %733 = arith.addf %731, %732 : vector<16x64xf32>
    %734 = vector.extract_strided_slice %672 {offsets = [0, 192], sizes = [16, 64], strides = [1, 1]} : vector<16x320xf32> to vector<16x64xf32>
    %735 = arith.addf %733, %734 : vector<16x64xf32>
    %736 = vector.extract_strided_slice %715 {offsets = [0, 256], sizes = [16, 64], strides = [1, 1]} : vector<16x480xf32> to vector<16x64xf32>
    %737 = vector.extract_strided_slice %669 {offsets = [0, 256], sizes = [16, 64], strides = [1, 1]} : vector<16x512xf32> to vector<16x64xf32>
    %738 = arith.addf %736, %737 : vector<16x64xf32>
    %739 = vector.extract_strided_slice %672 {offsets = [0, 256], sizes = [16, 64], strides = [1, 1]} : vector<16x320xf32> to vector<16x64xf32>
    %740 = arith.addf %738, %739 : vector<16x64xf32>
    %741 = arith.truncf %730 : vector<16x64xf32> to vector<16x64xbf16>
    %cst_221 = arith.constant dense<0.000000e+00> : vector<16x64xf32>
    %742 = tpu.matmul %3, %741, %cst_221 {dimension_numbers = #tpu.dot_dimension_numbers<[1], [0], [0], [1], [0, 0, 1, 1], [], []>} : vector<16x16xbf16>, vector<16x64xbf16>, vector<16x64xf32> -> vector<16x64xf32>
    %743 = arith.addf %725, %742 : vector<16x64xf32>
    %744 = arith.truncf %743 : vector<16x64xf32> to vector<16x64xbf16>
    %cst_222 = arith.constant dense<0.000000e+00> : vector<16x64xf32>
    %745 = tpu.matmul %3, %744, %cst_222 {dimension_numbers = #tpu.dot_dimension_numbers<[1], [0], [0], [1], [0, 0, 1, 1], [], []>} : vector<16x16xbf16>, vector<16x64xbf16>, vector<16x64xf32> -> vector<16x64xf32>
    %746 = arith.addf %720, %745 : vector<16x64xf32>
    %747 = arith.truncf %740 : vector<16x64xf32> to vector<16x64xbf16>
    %cst_223 = arith.constant dense<0.000000e+00> : vector<16x64xf32>
    %748 = tpu.matmul %4, %747, %cst_223 {dimension_numbers = #tpu.dot_dimension_numbers<[1], [0], [0], [1], [0, 0, 1, 1], [], []>} : vector<16x16xbf16>, vector<16x64xbf16>, vector<16x64xf32> -> vector<16x64xf32>
    %749 = arith.addf %735, %748 : vector<16x64xf32>
    %750 = arith.truncf %749 : vector<16x64xf32> to vector<16x64xbf16>
    %cst_224 = arith.constant dense<0.000000e+00> : vector<16x64xf32>
    %751 = tpu.matmul %4, %750, %cst_224 {dimension_numbers = #tpu.dot_dimension_numbers<[1], [0], [0], [1], [0, 0, 1, 1], [], []>} : vector<16x16xbf16>, vector<16x64xbf16>, vector<16x64xf32> -> vector<16x64xf32>
    %752 = arith.addf %746, %751 : vector<16x64xf32>
    %753 = vector.broadcast %17 : vector<1x64xf32> to vector<16x64xf32>
    %754 = arith.addf %752, %753 : vector<16x64xf32>
    %755 = arith.negf %754 : vector<16x64xf32>
    %756 = math.exp %755 : vector<16x64xf32>
    %cst_225 = arith.constant 1.000000e+00 : f32
    %757 = vector.broadcast %cst_225 : f32 to vector<16x64xf32>
    %758 = arith.addf %757, %756 : vector<16x64xf32>
    %759 = arith.divf %757, %758 : vector<16x64xf32>
    %760 = vector.extract_strided_slice %759 {offsets = [0, 0], sizes = [16, 32], strides = [1, 1]} : vector<16x64xf32> to vector<16x32xf32>
    %761 = vector.extract_strided_slice %759 {offsets = [0, 32], sizes = [16, 32], strides = [1, 1]} : vector<16x64xf32> to vector<16x32xf32>
    %762 = arith.mulf %760, %650 : vector<16x32xf32>
    %763 = arith.truncf %762 : vector<16x32xf32> to vector<16x32xbf16>
    %cst_226 = arith.constant dense<0.000000e+00> : vector<16x160xf32>
    %764 = tpu.matmul %763, %11, %cst_226 {dimension_numbers = #tpu.dot_dimension_numbers<[1], [0], [0], [1], [0, 0, 1, 1], [], []>} : vector<16x32xbf16>, vector<32x160xbf16>, vector<16x160xf32> -> vector<16x160xf32>
    %765 = vector.extract_strided_slice %715 {offsets = [0, 320], sizes = [16, 32], strides = [1, 1]} : vector<16x480xf32> to vector<16x32xf32>
    %766 = vector.extract_strided_slice %669 {offsets = [0, 320], sizes = [16, 32], strides = [1, 1]} : vector<16x512xf32> to vector<16x32xf32>
    %767 = arith.addf %765, %766 : vector<16x32xf32>
    %768 = vector.extract_strided_slice %764 {offsets = [0, 0], sizes = [16, 32], strides = [1, 1]} : vector<16x160xf32> to vector<16x32xf32>
    %769 = arith.addf %767, %768 : vector<16x32xf32>
    %770 = vector.extract_strided_slice %715 {offsets = [0, 352], sizes = [16, 32], strides = [1, 1]} : vector<16x480xf32> to vector<16x32xf32>
    %771 = vector.extract_strided_slice %669 {offsets = [0, 352], sizes = [16, 32], strides = [1, 1]} : vector<16x512xf32> to vector<16x32xf32>
    %772 = arith.addf %770, %771 : vector<16x32xf32>
    %773 = vector.extract_strided_slice %764 {offsets = [0, 32], sizes = [16, 32], strides = [1, 1]} : vector<16x160xf32> to vector<16x32xf32>
    %774 = arith.addf %772, %773 : vector<16x32xf32>
    %775 = vector.extract_strided_slice %715 {offsets = [0, 384], sizes = [16, 32], strides = [1, 1]} : vector<16x480xf32> to vector<16x32xf32>
    %776 = vector.extract_strided_slice %669 {offsets = [0, 384], sizes = [16, 32], strides = [1, 1]} : vector<16x512xf32> to vector<16x32xf32>
    %777 = arith.addf %775, %776 : vector<16x32xf32>
    %778 = vector.extract_strided_slice %764 {offsets = [0, 64], sizes = [16, 32], strides = [1, 1]} : vector<16x160xf32> to vector<16x32xf32>
    %779 = arith.addf %777, %778 : vector<16x32xf32>
    %780 = vector.extract_strided_slice %715 {offsets = [0, 416], sizes = [16, 32], strides = [1, 1]} : vector<16x480xf32> to vector<16x32xf32>
    %781 = vector.extract_strided_slice %669 {offsets = [0, 416], sizes = [16, 32], strides = [1, 1]} : vector<16x512xf32> to vector<16x32xf32>
    %782 = arith.addf %780, %781 : vector<16x32xf32>
    %783 = vector.extract_strided_slice %764 {offsets = [0, 96], sizes = [16, 32], strides = [1, 1]} : vector<16x160xf32> to vector<16x32xf32>
    %784 = arith.addf %782, %783 : vector<16x32xf32>
    %785 = vector.extract_strided_slice %715 {offsets = [0, 448], sizes = [16, 32], strides = [1, 1]} : vector<16x480xf32> to vector<16x32xf32>
    %786 = vector.extract_strided_slice %669 {offsets = [0, 448], sizes = [16, 32], strides = [1, 1]} : vector<16x512xf32> to vector<16x32xf32>
    %787 = arith.addf %785, %786 : vector<16x32xf32>
    %788 = vector.extract_strided_slice %764 {offsets = [0, 128], sizes = [16, 32], strides = [1, 1]} : vector<16x160xf32> to vector<16x32xf32>
    %789 = arith.addf %787, %788 : vector<16x32xf32>
    %790 = arith.truncf %779 : vector<16x32xf32> to vector<16x32xbf16>
    %cst_227 = arith.constant dense<0.000000e+00> : vector<16x32xf32>
    %791 = tpu.matmul %3, %790, %cst_227 {dimension_numbers = #tpu.dot_dimension_numbers<[1], [0], [0], [1], [0, 0, 1, 1], [], []>} : vector<16x16xbf16>, vector<16x32xbf16>, vector<16x32xf32> -> vector<16x32xf32>
    %792 = arith.addf %774, %791 : vector<16x32xf32>
    %793 = arith.truncf %792 : vector<16x32xf32> to vector<16x32xbf16>
    %cst_228 = arith.constant dense<0.000000e+00> : vector<16x32xf32>
    %794 = tpu.matmul %3, %793, %cst_228 {dimension_numbers = #tpu.dot_dimension_numbers<[1], [0], [0], [1], [0, 0, 1, 1], [], []>} : vector<16x16xbf16>, vector<16x32xbf16>, vector<16x32xf32> -> vector<16x32xf32>
    %795 = arith.addf %769, %794 : vector<16x32xf32>
    %796 = arith.truncf %789 : vector<16x32xf32> to vector<16x32xbf16>
    %cst_229 = arith.constant dense<0.000000e+00> : vector<16x32xf32>
    %797 = tpu.matmul %4, %796, %cst_229 {dimension_numbers = #tpu.dot_dimension_numbers<[1], [0], [0], [1], [0, 0, 1, 1], [], []>} : vector<16x16xbf16>, vector<16x32xbf16>, vector<16x32xf32> -> vector<16x32xf32>
    %798 = arith.addf %784, %797 : vector<16x32xf32>
    %799 = arith.truncf %798 : vector<16x32xf32> to vector<16x32xbf16>
    %cst_230 = arith.constant dense<0.000000e+00> : vector<16x32xf32>
    %800 = tpu.matmul %4, %799, %cst_230 {dimension_numbers = #tpu.dot_dimension_numbers<[1], [0], [0], [1], [0, 0, 1, 1], [], []>} : vector<16x16xbf16>, vector<16x32xbf16>, vector<16x32xf32> -> vector<16x32xf32>
    %801 = arith.addf %795, %800 : vector<16x32xf32>
    %802 = vector.broadcast %18 : vector<1x32xf32> to vector<16x32xf32>
    %803 = arith.addf %801, %802 : vector<16x32xf32>
    %804 = math.tanh %803 : vector<16x32xf32>
    %805 = arith.mulf %761, %650 : vector<16x32xf32>
    %cst_231 = arith.constant 1.000000e+00 : f32
    %806 = vector.broadcast %cst_231 : f32 to vector<16x32xf32>
    %807 = arith.subf %806, %761 : vector<16x32xf32>
    %808 = arith.mulf %807, %804 : vector<16x32xf32>
    %809 = arith.addf %805, %808 : vector<16x32xf32>
    %c0_232 = arith.constant 0 : index
    %c64_233 = arith.constant 64 : index
    %c0_234 = arith.constant 0 : index
    %810 = vector.load %arg22[%c0_232, %c64_233, %c0_234] : memref<1x128x4xf32, #tpu.memory_space<vmem>>, vector<1x16x4xf32>
    %811 = vector.shape_cast %810 : vector<1x16x4xf32> to vector<16x4xf32>
    %812 = vector.shape_cast %678 : vector<16x4xf32> to vector<1x16x4xf32>
    tpu.vector_store %arg22[%c0_232, %c64_233, %c0_234], %812 {strides = array<i32>} : memref<1x128x4xf32, #tpu.memory_space<vmem>>, vector<1x16x4xf32>,
    %c0_235 = arith.constant 0 : index
    %c64_236 = arith.constant 64 : index
    %c0_237 = arith.constant 0 : index
    %813 = vector.load %arg23[%c0_235, %c64_236, %c0_237] : memref<1x128x4xf32, #tpu.memory_space<vmem>>, vector<1x16x4xf32>
    %814 = vector.shape_cast %813 : vector<1x16x4xf32> to vector<16x4xf32>
    %815 = vector.shape_cast %712 : vector<16x4xf32> to vector<1x16x4xf32>
    tpu.vector_store %arg23[%c0_235, %c64_236, %c0_237], %815 {strides = array<i32>} : memref<1x128x4xf32, #tpu.memory_space<vmem>>, vector<1x16x4xf32>,
    %c0_238 = arith.constant 0 : index
    %c64_239 = arith.constant 64 : index
    %c0_240 = arith.constant 0 : index
    %816 = vector.load %arg24[%c0_238, %c64_239, %c0_240] : memref<1x128x32xf32, #tpu.memory_space<vmem>>, vector<1x16x32xf32>
    %817 = vector.shape_cast %816 : vector<1x16x32xf32> to vector<16x32xf32>
    %818 = vector.shape_cast %707 : vector<16x32xf32> to vector<1x16x32xf32>
    tpu.vector_store %arg24[%c0_238, %c64_239, %c0_240], %818 {strides = array<i32>} : memref<1x128x32xf32, #tpu.memory_space<vmem>>, vector<1x16x32xf32>,
    %c0_241 = arith.constant 0 : index
    %c64_242 = arith.constant 64 : index
    %c0_243 = arith.constant 0 : index
    %819 = vector.load %arg25[%c0_241, %c64_242, %c0_243] : memref<1x128x32xf32, #tpu.memory_space<vmem>>, vector<1x16x32xf32>
    %820 = vector.shape_cast %819 : vector<1x16x32xf32> to vector<16x32xf32>
    %821 = vector.shape_cast %809 : vector<16x32xf32> to vector<1x16x32xf32>
    tpu.vector_store %arg25[%c0_241, %c64_242, %c0_243], %821 {strides = array<i32>} : memref<1x128x32xf32, #tpu.memory_space<vmem>>, vector<1x16x32xf32>,
    %c0_244 = arith.constant 0 : index
    %c80 = arith.constant 80 : index
    %c0_245 = arith.constant 0 : index
    %822 = vector.load %arg2[%c0_244, %c80, %c0_245] : memref<1x128x4xf32, #tpu.memory_space<vmem>>, vector<1x16x4xf32>
    %823 = vector.shape_cast %822 : vector<1x16x4xf32> to vector<16x4xf32>
    %c0_246 = arith.constant 0 : index
    %c80_247 = arith.constant 80 : index
    %c0_248 = arith.constant 0 : index
    %824 = vector.load %arg3[%c0_246, %c80_247, %c0_248] : memref<1x128x4xf32, #tpu.memory_space<vmem>>, vector<1x16x4xf32>
    %825 = vector.shape_cast %824 : vector<1x16x4xf32> to vector<16x4xf32>
    %cst_249 = arith.constant 5.000000e-01 : f32
    %826 = vector.broadcast %cst_249 : f32 to vector<16x4xf32>
    %827 = arith.cmpf ogt, %825, %826 : vector<16x4xf32>
    %c80_250 = arith.constant 80 : index
    %c0_251 = arith.constant 0 : index
    %828 = vector.load %arg27[%c80_250, %c0_251] : memref<128x512xf32, #tpu.memory_space<vmem>>, vector<16x512xf32>
    %829 = arith.truncf %809 : vector<16x32xf32> to vector<16x32xbf16>
    %cst_252 = arith.constant dense<0.000000e+00> : vector<16x392xf32>
    %830 = tpu.matmul %829, %5, %cst_252 {dimension_numbers = #tpu.dot_dimension_numbers<[1], [0], [0], [1], [0, 0, 1, 1], [], []>} : vector<16x32xbf16>, vector<32x392xbf16>, vector<16x392xf32> -> vector<16x392xf32>
    %831 = vector.extract_strided_slice %830 {offsets = [0, 0], sizes = [16, 320], strides = [1, 1]} : vector<16x392xf32> to vector<16x320xf32>
    %832 = vector.extract_strided_slice %830 {offsets = [0, 320], sizes = [16, 32], strides = [1, 1]} : vector<16x392xf32> to vector<16x32xf32>
    %833 = vector.extract_strided_slice %830 {offsets = [0, 352], sizes = [16, 32], strides = [1, 1]} : vector<16x392xf32> to vector<16x32xf32>
    %834 = vector.extract_strided_slice %830 {offsets = [0, 384], sizes = [16, 4], strides = [1, 1]} : vector<16x392xf32> to vector<16x4xf32>
    %835 = vector.extract_strided_slice %830 {offsets = [0, 388], sizes = [16, 4], strides = [1, 1]} : vector<16x392xf32> to vector<16x4xf32>
    %836 = vector.broadcast %12 : vector<1x4xf32> to vector<16x4xf32>
    %837 = arith.addf %834, %836 : vector<16x4xf32>
    %838 = arith.select %827, %823, %837 : vector<16x4xi1>, vector<16x4xf32>
    %839 = arith.truncf %838 : vector<16x4xf32> to vector<16x4xbf16>
    %cst_253 = arith.constant dense<0.000000e+00> : vector<16x32xf32>
    %840 = tpu.matmul %839, %6, %cst_253 {dimension_numbers = #tpu.dot_dimension_numbers<[1], [0], [0], [1], [0, 0, 1, 1], [], []>} : vector<16x4xbf16>, vector<4x32xbf16>, vector<16x32xf32> -> vector<16x32xf32>
    %841 = vector.extract_strided_slice %828 {offsets = [0, 480], sizes = [16, 32], strides = [1, 1]} : vector<16x512xf32> to vector<16x32xf32>
    %842 = arith.addf %840, %841 : vector<16x32xf32>
    %843 = arith.addf %842, %832 : vector<16x32xf32>
    %844 = vector.broadcast %13 : vector<1x32xf32> to vector<16x32xf32>
    %845 = arith.addf %843, %844 : vector<16x32xf32>
    %846 = arith.truncf %845 : vector<16x32xf32> to vector<16x32xbf16>
    %cst_254 = arith.constant dense<0.000000e+00> : vector<16x64xf32>
    %847 = tpu.matmul %846, %7, %cst_254 {dimension_numbers = #tpu.dot_dimension_numbers<[1], [0], [0], [1], [0, 0, 1, 1], [], []>} : vector<16x32xbf16>, vector<32x64xbf16>, vector<16x64xf32> -> vector<16x64xf32>
    %848 = vector.extract_strided_slice %847 {offsets = [0, 0], sizes = [16, 32], strides = [1, 1]} : vector<16x64xf32> to vector<16x32xf32>
    %849 = arith.truncf %848 : vector<16x32xf32> to vector<16x32xbf16>
    %cst_255 = arith.constant dense<0.000000e+00> : vector<16x32xf32>
    %850 = tpu.matmul %3, %849, %cst_255 {dimension_numbers = #tpu.dot_dimension_numbers<[1], [0], [0], [1], [0, 0, 1, 1], [], []>} : vector<16x16xbf16>, vector<16x32xbf16>, vector<16x32xf32> -> vector<16x32xf32>
    %851 = vector.extract_strided_slice %847 {offsets = [0, 32], sizes = [16, 32], strides = [1, 1]} : vector<16x64xf32> to vector<16x32xf32>
    %852 = arith.truncf %851 : vector<16x32xf32> to vector<16x32xbf16>
    %cst_256 = arith.constant dense<0.000000e+00> : vector<16x32xf32>
    %853 = tpu.matmul %4, %852, %cst_256 {dimension_numbers = #tpu.dot_dimension_numbers<[1], [0], [0], [1], [0, 0, 1, 1], [], []>} : vector<16x16xbf16>, vector<16x32xbf16>, vector<16x32xf32> -> vector<16x32xf32>
    %854 = arith.addf %850, %853 : vector<16x32xf32>
    %855 = vector.broadcast %14 : vector<1x32xf32> to vector<16x32xf32>
    %856 = arith.addf %854, %855 : vector<16x32xf32>
    %857 = arith.truncf %856 : vector<16x32xf32> to vector<16x32xbf16>
    %cst_257 = arith.constant dense<0.000000e+00> : vector<16x32xf32>
    %858 = tpu.matmul %857, %8, %cst_257 {dimension_numbers = #tpu.dot_dimension_numbers<[1], [0], [0], [1], [0, 0, 1, 1], [], []>} : vector<16x32xbf16>, vector<32x32xbf16>, vector<16x32xf32> -> vector<16x32xf32>
    %859 = arith.addf %858, %833 : vector<16x32xf32>
    %860 = vector.broadcast %15 : vector<1x32xf32> to vector<16x32xf32>
    %861 = arith.addf %859, %860 : vector<16x32xf32>
    %cst_258 = arith.constant 0.000000e+00 : f32
    %862 = vector.broadcast %cst_258 : f32 to vector<16x32xf32>
    %863 = arith.cmpf ogt, %861, %862 : vector<16x32xf32>
    %864 = vector.broadcast %19 : vector<1x1xf32> to vector<16x32xf32>
    %865 = arith.mulf %864, %861 : vector<16x32xf32>
    %866 = arith.select %863, %861, %865 : vector<16x32xi1>, vector<16x32xf32>
    %867 = arith.truncf %866 : vector<16x32xf32> to vector<16x32xbf16>
    %cst_259 = arith.constant dense<0.000000e+00> : vector<16x4xf32>
    %868 = tpu.matmul %867, %9, %cst_259 {dimension_numbers = #tpu.dot_dimension_numbers<[1], [0], [0], [1], [0, 0, 1, 1], [], []>} : vector<16x32xbf16>, vector<32x4xbf16>, vector<16x4xf32> -> vector<16x4xf32>
    %869 = arith.addf %868, %835 : vector<16x4xf32>
    %870 = vector.broadcast %16 : vector<1x4xf32> to vector<16x4xf32>
    %871 = arith.addf %869, %870 : vector<16x4xf32>
    %872 = arith.select %827, %838, %871 : vector<16x4xi1>, vector<16x4xf32>
    %873 = arith.truncf %872 : vector<16x4xf32> to vector<16x4xbf16>
    %cst_260 = arith.constant dense<0.000000e+00> : vector<16x480xf32>
    %874 = tpu.matmul %873, %10, %cst_260 {dimension_numbers = #tpu.dot_dimension_numbers<[1], [0], [0], [1], [0, 0, 1, 1], [], []>} : vector<16x4xbf16>, vector<4x480xbf16>, vector<16x480xf32> -> vector<16x480xf32>
    %875 = vector.extract_strided_slice %874 {offsets = [0, 0], sizes = [16, 64], strides = [1, 1]} : vector<16x480xf32> to vector<16x64xf32>
    %876 = vector.extract_strided_slice %828 {offsets = [0, 0], sizes = [16, 64], strides = [1, 1]} : vector<16x512xf32> to vector<16x64xf32>
    %877 = arith.addf %875, %876 : vector<16x64xf32>
    %878 = vector.extract_strided_slice %831 {offsets = [0, 0], sizes = [16, 64], strides = [1, 1]} : vector<16x320xf32> to vector<16x64xf32>
    %879 = arith.addf %877, %878 : vector<16x64xf32>
    %880 = vector.extract_strided_slice %874 {offsets = [0, 64], sizes = [16, 64], strides = [1, 1]} : vector<16x480xf32> to vector<16x64xf32>
    %881 = vector.extract_strided_slice %828 {offsets = [0, 64], sizes = [16, 64], strides = [1, 1]} : vector<16x512xf32> to vector<16x64xf32>
    %882 = arith.addf %880, %881 : vector<16x64xf32>
    %883 = vector.extract_strided_slice %831 {offsets = [0, 64], sizes = [16, 64], strides = [1, 1]} : vector<16x320xf32> to vector<16x64xf32>
    %884 = arith.addf %882, %883 : vector<16x64xf32>
    %885 = vector.extract_strided_slice %874 {offsets = [0, 128], sizes = [16, 64], strides = [1, 1]} : vector<16x480xf32> to vector<16x64xf32>
    %886 = vector.extract_strided_slice %828 {offsets = [0, 128], sizes = [16, 64], strides = [1, 1]} : vector<16x512xf32> to vector<16x64xf32>
    %887 = arith.addf %885, %886 : vector<16x64xf32>
    %888 = vector.extract_strided_slice %831 {offsets = [0, 128], sizes = [16, 64], strides = [1, 1]} : vector<16x320xf32> to vector<16x64xf32>
    %889 = arith.addf %887, %888 : vector<16x64xf32>
    %890 = vector.extract_strided_slice %874 {offsets = [0, 192], sizes = [16, 64], strides = [1, 1]} : vector<16x480xf32> to vector<16x64xf32>
    %891 = vector.extract_strided_slice %828 {offsets = [0, 192], sizes = [16, 64], strides = [1, 1]} : vector<16x512xf32> to vector<16x64xf32>
    %892 = arith.addf %890, %891 : vector<16x64xf32>
    %893 = vector.extract_strided_slice %831 {offsets = [0, 192], sizes = [16, 64], strides = [1, 1]} : vector<16x320xf32> to vector<16x64xf32>
    %894 = arith.addf %892, %893 : vector<16x64xf32>
    %895 = vector.extract_strided_slice %874 {offsets = [0, 256], sizes = [16, 64], strides = [1, 1]} : vector<16x480xf32> to vector<16x64xf32>
    %896 = vector.extract_strided_slice %828 {offsets = [0, 256], sizes = [16, 64], strides = [1, 1]} : vector<16x512xf32> to vector<16x64xf32>
    %897 = arith.addf %895, %896 : vector<16x64xf32>
    %898 = vector.extract_strided_slice %831 {offsets = [0, 256], sizes = [16, 64], strides = [1, 1]} : vector<16x320xf32> to vector<16x64xf32>
    %899 = arith.addf %897, %898 : vector<16x64xf32>
    %900 = arith.truncf %889 : vector<16x64xf32> to vector<16x64xbf16>
    %cst_261 = arith.constant dense<0.000000e+00> : vector<16x64xf32>
    %901 = tpu.matmul %3, %900, %cst_261 {dimension_numbers = #tpu.dot_dimension_numbers<[1], [0], [0], [1], [0, 0, 1, 1], [], []>} : vector<16x16xbf16>, vector<16x64xbf16>, vector<16x64xf32> -> vector<16x64xf32>
    %902 = arith.addf %884, %901 : vector<16x64xf32>
    %903 = arith.truncf %902 : vector<16x64xf32> to vector<16x64xbf16>
    %cst_262 = arith.constant dense<0.000000e+00> : vector<16x64xf32>
    %904 = tpu.matmul %3, %903, %cst_262 {dimension_numbers = #tpu.dot_dimension_numbers<[1], [0], [0], [1], [0, 0, 1, 1], [], []>} : vector<16x16xbf16>, vector<16x64xbf16>, vector<16x64xf32> -> vector<16x64xf32>
    %905 = arith.addf %879, %904 : vector<16x64xf32>
    %906 = arith.truncf %899 : vector<16x64xf32> to vector<16x64xbf16>
    %cst_263 = arith.constant dense<0.000000e+00> : vector<16x64xf32>
    %907 = tpu.matmul %4, %906, %cst_263 {dimension_numbers = #tpu.dot_dimension_numbers<[1], [0], [0], [1], [0, 0, 1, 1], [], []>} : vector<16x16xbf16>, vector<16x64xbf16>, vector<16x64xf32> -> vector<16x64xf32>
    %908 = arith.addf %894, %907 : vector<16x64xf32>
    %909 = arith.truncf %908 : vector<16x64xf32> to vector<16x64xbf16>
    %cst_264 = arith.constant dense<0.000000e+00> : vector<16x64xf32>
    %910 = tpu.matmul %4, %909, %cst_264 {dimension_numbers = #tpu.dot_dimension_numbers<[1], [0], [0], [1], [0, 0, 1, 1], [], []>} : vector<16x16xbf16>, vector<16x64xbf16>, vector<16x64xf32> -> vector<16x64xf32>
    %911 = arith.addf %905, %910 : vector<16x64xf32>
    %912 = vector.broadcast %17 : vector<1x64xf32> to vector<16x64xf32>
    %913 = arith.addf %911, %912 : vector<16x64xf32>
    %914 = arith.negf %913 : vector<16x64xf32>
    %915 = math.exp %914 : vector<16x64xf32>
    %cst_265 = arith.constant 1.000000e+00 : f32
    %916 = vector.broadcast %cst_265 : f32 to vector<16x64xf32>
    %917 = arith.addf %916, %915 : vector<16x64xf32>
    %918 = arith.divf %916, %917 : vector<16x64xf32>
    %919 = vector.extract_strided_slice %918 {offsets = [0, 0], sizes = [16, 32], strides = [1, 1]} : vector<16x64xf32> to vector<16x32xf32>
    %920 = vector.extract_strided_slice %918 {offsets = [0, 32], sizes = [16, 32], strides = [1, 1]} : vector<16x64xf32> to vector<16x32xf32>
    %921 = arith.mulf %919, %809 : vector<16x32xf32>
    %922 = arith.truncf %921 : vector<16x32xf32> to vector<16x32xbf16>
    %cst_266 = arith.constant dense<0.000000e+00> : vector<16x160xf32>
    %923 = tpu.matmul %922, %11, %cst_266 {dimension_numbers = #tpu.dot_dimension_numbers<[1], [0], [0], [1], [0, 0, 1, 1], [], []>} : vector<16x32xbf16>, vector<32x160xbf16>, vector<16x160xf32> -> vector<16x160xf32>
    %924 = vector.extract_strided_slice %874 {offsets = [0, 320], sizes = [16, 32], strides = [1, 1]} : vector<16x480xf32> to vector<16x32xf32>
    %925 = vector.extract_strided_slice %828 {offsets = [0, 320], sizes = [16, 32], strides = [1, 1]} : vector<16x512xf32> to vector<16x32xf32>
    %926 = arith.addf %924, %925 : vector<16x32xf32>
    %927 = vector.extract_strided_slice %923 {offsets = [0, 0], sizes = [16, 32], strides = [1, 1]} : vector<16x160xf32> to vector<16x32xf32>
    %928 = arith.addf %926, %927 : vector<16x32xf32>
    %929 = vector.extract_strided_slice %874 {offsets = [0, 352], sizes = [16, 32], strides = [1, 1]} : vector<16x480xf32> to vector<16x32xf32>
    %930 = vector.extract_strided_slice %828 {offsets = [0, 352], sizes = [16, 32], strides = [1, 1]} : vector<16x512xf32> to vector<16x32xf32>
    %931 = arith.addf %929, %930 : vector<16x32xf32>
    %932 = vector.extract_strided_slice %923 {offsets = [0, 32], sizes = [16, 32], strides = [1, 1]} : vector<16x160xf32> to vector<16x32xf32>
    %933 = arith.addf %931, %932 : vector<16x32xf32>
    %934 = vector.extract_strided_slice %874 {offsets = [0, 384], sizes = [16, 32], strides = [1, 1]} : vector<16x480xf32> to vector<16x32xf32>
    %935 = vector.extract_strided_slice %828 {offsets = [0, 384], sizes = [16, 32], strides = [1, 1]} : vector<16x512xf32> to vector<16x32xf32>
    %936 = arith.addf %934, %935 : vector<16x32xf32>
    %937 = vector.extract_strided_slice %923 {offsets = [0, 64], sizes = [16, 32], strides = [1, 1]} : vector<16x160xf32> to vector<16x32xf32>
    %938 = arith.addf %936, %937 : vector<16x32xf32>
    %939 = vector.extract_strided_slice %874 {offsets = [0, 416], sizes = [16, 32], strides = [1, 1]} : vector<16x480xf32> to vector<16x32xf32>
    %940 = vector.extract_strided_slice %828 {offsets = [0, 416], sizes = [16, 32], strides = [1, 1]} : vector<16x512xf32> to vector<16x32xf32>
    %941 = arith.addf %939, %940 : vector<16x32xf32>
    %942 = vector.extract_strided_slice %923 {offsets = [0, 96], sizes = [16, 32], strides = [1, 1]} : vector<16x160xf32> to vector<16x32xf32>
    %943 = arith.addf %941, %942 : vector<16x32xf32>
    %944 = vector.extract_strided_slice %874 {offsets = [0, 448], sizes = [16, 32], strides = [1, 1]} : vector<16x480xf32> to vector<16x32xf32>
    %945 = vector.extract_strided_slice %828 {offsets = [0, 448], sizes = [16, 32], strides = [1, 1]} : vector<16x512xf32> to vector<16x32xf32>
    %946 = arith.addf %944, %945 : vector<16x32xf32>
    %947 = vector.extract_strided_slice %923 {offsets = [0, 128], sizes = [16, 32], strides = [1, 1]} : vector<16x160xf32> to vector<16x32xf32>
    %948 = arith.addf %946, %947 : vector<16x32xf32>
    %949 = arith.truncf %938 : vector<16x32xf32> to vector<16x32xbf16>
    %cst_267 = arith.constant dense<0.000000e+00> : vector<16x32xf32>
    %950 = tpu.matmul %3, %949, %cst_267 {dimension_numbers = #tpu.dot_dimension_numbers<[1], [0], [0], [1], [0, 0, 1, 1], [], []>} : vector<16x16xbf16>, vector<16x32xbf16>, vector<16x32xf32> -> vector<16x32xf32>
    %951 = arith.addf %933, %950 : vector<16x32xf32>
    %952 = arith.truncf %951 : vector<16x32xf32> to vector<16x32xbf16>
    %cst_268 = arith.constant dense<0.000000e+00> : vector<16x32xf32>
    %953 = tpu.matmul %3, %952, %cst_268 {dimension_numbers = #tpu.dot_dimension_numbers<[1], [0], [0], [1], [0, 0, 1, 1], [], []>} : vector<16x16xbf16>, vector<16x32xbf16>, vector<16x32xf32> -> vector<16x32xf32>
    %954 = arith.addf %928, %953 : vector<16x32xf32>
    %955 = arith.truncf %948 : vector<16x32xf32> to vector<16x32xbf16>
    %cst_269 = arith.constant dense<0.000000e+00> : vector<16x32xf32>
    %956 = tpu.matmul %4, %955, %cst_269 {dimension_numbers = #tpu.dot_dimension_numbers<[1], [0], [0], [1], [0, 0, 1, 1], [], []>} : vector<16x16xbf16>, vector<16x32xbf16>, vector<16x32xf32> -> vector<16x32xf32>
    %957 = arith.addf %943, %956 : vector<16x32xf32>
    %958 = arith.truncf %957 : vector<16x32xf32> to vector<16x32xbf16>
    %cst_270 = arith.constant dense<0.000000e+00> : vector<16x32xf32>
    %959 = tpu.matmul %4, %958, %cst_270 {dimension_numbers = #tpu.dot_dimension_numbers<[1], [0], [0], [1], [0, 0, 1, 1], [], []>} : vector<16x16xbf16>, vector<16x32xbf16>, vector<16x32xf32> -> vector<16x32xf32>
    %960 = arith.addf %954, %959 : vector<16x32xf32>
    %961 = vector.broadcast %18 : vector<1x32xf32> to vector<16x32xf32>
    %962 = arith.addf %960, %961 : vector<16x32xf32>
    %963 = math.tanh %962 : vector<16x32xf32>
    %964 = arith.mulf %920, %809 : vector<16x32xf32>
    %cst_271 = arith.constant 1.000000e+00 : f32
    %965 = vector.broadcast %cst_271 : f32 to vector<16x32xf32>
    %966 = arith.subf %965, %920 : vector<16x32xf32>
    %967 = arith.mulf %966, %963 : vector<16x32xf32>
    %968 = arith.addf %964, %967 : vector<16x32xf32>
    %c0_272 = arith.constant 0 : index
    %c80_273 = arith.constant 80 : index
    %c0_274 = arith.constant 0 : index
    %969 = vector.load %arg22[%c0_272, %c80_273, %c0_274] : memref<1x128x4xf32, #tpu.memory_space<vmem>>, vector<1x16x4xf32>
    %970 = vector.shape_cast %969 : vector<1x16x4xf32> to vector<16x4xf32>
    %971 = vector.shape_cast %837 : vector<16x4xf32> to vector<1x16x4xf32>
    tpu.vector_store %arg22[%c0_272, %c80_273, %c0_274], %971 {strides = array<i32>} : memref<1x128x4xf32, #tpu.memory_space<vmem>>, vector<1x16x4xf32>,
    %c0_275 = arith.constant 0 : index
    %c80_276 = arith.constant 80 : index
    %c0_277 = arith.constant 0 : index
    %972 = vector.load %arg23[%c0_275, %c80_276, %c0_277] : memref<1x128x4xf32, #tpu.memory_space<vmem>>, vector<1x16x4xf32>
    %973 = vector.shape_cast %972 : vector<1x16x4xf32> to vector<16x4xf32>
    %974 = vector.shape_cast %871 : vector<16x4xf32> to vector<1x16x4xf32>
    tpu.vector_store %arg23[%c0_275, %c80_276, %c0_277], %974 {strides = array<i32>} : memref<1x128x4xf32, #tpu.memory_space<vmem>>, vector<1x16x4xf32>,
    %c0_278 = arith.constant 0 : index
    %c80_279 = arith.constant 80 : index
    %c0_280 = arith.constant 0 : index
    %975 = vector.load %arg24[%c0_278, %c80_279, %c0_280] : memref<1x128x32xf32, #tpu.memory_space<vmem>>, vector<1x16x32xf32>
    %976 = vector.shape_cast %975 : vector<1x16x32xf32> to vector<16x32xf32>
    %977 = vector.shape_cast %866 : vector<16x32xf32> to vector<1x16x32xf32>
    tpu.vector_store %arg24[%c0_278, %c80_279, %c0_280], %977 {strides = array<i32>} : memref<1x128x32xf32, #tpu.memory_space<vmem>>, vector<1x16x32xf32>,
    %c0_281 = arith.constant 0 : index
    %c80_282 = arith.constant 80 : index
    %c0_283 = arith.constant 0 : index
    %978 = vector.load %arg25[%c0_281, %c80_282, %c0_283] : memref<1x128x32xf32, #tpu.memory_space<vmem>>, vector<1x16x32xf32>
    %979 = vector.shape_cast %978 : vector<1x16x32xf32> to vector<16x32xf32>
    %980 = vector.shape_cast %968 : vector<16x32xf32> to vector<1x16x32xf32>
    tpu.vector_store %arg25[%c0_281, %c80_282, %c0_283], %980 {strides = array<i32>} : memref<1x128x32xf32, #tpu.memory_space<vmem>>, vector<1x16x32xf32>,
    %c0_284 = arith.constant 0 : index
    %c96 = arith.constant 96 : index
    %c0_285 = arith.constant 0 : index
    %981 = vector.load %arg2[%c0_284, %c96, %c0_285] : memref<1x128x4xf32, #tpu.memory_space<vmem>>, vector<1x16x4xf32>
    %982 = vector.shape_cast %981 : vector<1x16x4xf32> to vector<16x4xf32>
    %c0_286 = arith.constant 0 : index
    %c96_287 = arith.constant 96 : index
    %c0_288 = arith.constant 0 : index
    %983 = vector.load %arg3[%c0_286, %c96_287, %c0_288] : memref<1x128x4xf32, #tpu.memory_space<vmem>>, vector<1x16x4xf32>
    %984 = vector.shape_cast %983 : vector<1x16x4xf32> to vector<16x4xf32>
    %cst_289 = arith.constant 5.000000e-01 : f32
    %985 = vector.broadcast %cst_289 : f32 to vector<16x4xf32>
    %986 = arith.cmpf ogt, %984, %985 : vector<16x4xf32>
    %c96_290 = arith.constant 96 : index
    %c0_291 = arith.constant 0 : index
    %987 = vector.load %arg27[%c96_290, %c0_291] : memref<128x512xf32, #tpu.memory_space<vmem>>, vector<16x512xf32>
    %988 = arith.truncf %968 : vector<16x32xf32> to vector<16x32xbf16>
    %cst_292 = arith.constant dense<0.000000e+00> : vector<16x392xf32>
    %989 = tpu.matmul %988, %5, %cst_292 {dimension_numbers = #tpu.dot_dimension_numbers<[1], [0], [0], [1], [0, 0, 1, 1], [], []>} : vector<16x32xbf16>, vector<32x392xbf16>, vector<16x392xf32> -> vector<16x392xf32>
    %990 = vector.extract_strided_slice %989 {offsets = [0, 0], sizes = [16, 320], strides = [1, 1]} : vector<16x392xf32> to vector<16x320xf32>
    %991 = vector.extract_strided_slice %989 {offsets = [0, 320], sizes = [16, 32], strides = [1, 1]} : vector<16x392xf32> to vector<16x32xf32>
    %992 = vector.extract_strided_slice %989 {offsets = [0, 352], sizes = [16, 32], strides = [1, 1]} : vector<16x392xf32> to vector<16x32xf32>
    %993 = vector.extract_strided_slice %989 {offsets = [0, 384], sizes = [16, 4], strides = [1, 1]} : vector<16x392xf32> to vector<16x4xf32>
    %994 = vector.extract_strided_slice %989 {offsets = [0, 388], sizes = [16, 4], strides = [1, 1]} : vector<16x392xf32> to vector<16x4xf32>
    %995 = vector.broadcast %12 : vector<1x4xf32> to vector<16x4xf32>
    %996 = arith.addf %993, %995 : vector<16x4xf32>
    %997 = arith.select %986, %982, %996 : vector<16x4xi1>, vector<16x4xf32>
    %998 = arith.truncf %997 : vector<16x4xf32> to vector<16x4xbf16>
    %cst_293 = arith.constant dense<0.000000e+00> : vector<16x32xf32>
    %999 = tpu.matmul %998, %6, %cst_293 {dimension_numbers = #tpu.dot_dimension_numbers<[1], [0], [0], [1], [0, 0, 1, 1], [], []>} : vector<16x4xbf16>, vector<4x32xbf16>, vector<16x32xf32> -> vector<16x32xf32>
    %1000 = vector.extract_strided_slice %987 {offsets = [0, 480], sizes = [16, 32], strides = [1, 1]} : vector<16x512xf32> to vector<16x32xf32>
    %1001 = arith.addf %999, %1000 : vector<16x32xf32>
    %1002 = arith.addf %1001, %991 : vector<16x32xf32>
    %1003 = vector.broadcast %13 : vector<1x32xf32> to vector<16x32xf32>
    %1004 = arith.addf %1002, %1003 : vector<16x32xf32>
    %1005 = arith.truncf %1004 : vector<16x32xf32> to vector<16x32xbf16>
    %cst_294 = arith.constant dense<0.000000e+00> : vector<16x64xf32>
    %1006 = tpu.matmul %1005, %7, %cst_294 {dimension_numbers = #tpu.dot_dimension_numbers<[1], [0], [0], [1], [0, 0, 1, 1], [], []>} : vector<16x32xbf16>, vector<32x64xbf16>, vector<16x64xf32> -> vector<16x64xf32>
    %1007 = vector.extract_strided_slice %1006 {offsets = [0, 0], sizes = [16, 32], strides = [1, 1]} : vector<16x64xf32> to vector<16x32xf32>
    %1008 = arith.truncf %1007 : vector<16x32xf32> to vector<16x32xbf16>
    %cst_295 = arith.constant dense<0.000000e+00> : vector<16x32xf32>
    %1009 = tpu.matmul %3, %1008, %cst_295 {dimension_numbers = #tpu.dot_dimension_numbers<[1], [0], [0], [1], [0, 0, 1, 1], [], []>} : vector<16x16xbf16>, vector<16x32xbf16>, vector<16x32xf32> -> vector<16x32xf32>
    %1010 = vector.extract_strided_slice %1006 {offsets = [0, 32], sizes = [16, 32], strides = [1, 1]} : vector<16x64xf32> to vector<16x32xf32>
    %1011 = arith.truncf %1010 : vector<16x32xf32> to vector<16x32xbf16>
    %cst_296 = arith.constant dense<0.000000e+00> : vector<16x32xf32>
    %1012 = tpu.matmul %4, %1011, %cst_296 {dimension_numbers = #tpu.dot_dimension_numbers<[1], [0], [0], [1], [0, 0, 1, 1], [], []>} : vector<16x16xbf16>, vector<16x32xbf16>, vector<16x32xf32> -> vector<16x32xf32>
    %1013 = arith.addf %1009, %1012 : vector<16x32xf32>
    %1014 = vector.broadcast %14 : vector<1x32xf32> to vector<16x32xf32>
    %1015 = arith.addf %1013, %1014 : vector<16x32xf32>
    %1016 = arith.truncf %1015 : vector<16x32xf32> to vector<16x32xbf16>
    %cst_297 = arith.constant dense<0.000000e+00> : vector<16x32xf32>
    %1017 = tpu.matmul %1016, %8, %cst_297 {dimension_numbers = #tpu.dot_dimension_numbers<[1], [0], [0], [1], [0, 0, 1, 1], [], []>} : vector<16x32xbf16>, vector<32x32xbf16>, vector<16x32xf32> -> vector<16x32xf32>
    %1018 = arith.addf %1017, %992 : vector<16x32xf32>
    %1019 = vector.broadcast %15 : vector<1x32xf32> to vector<16x32xf32>
    %1020 = arith.addf %1018, %1019 : vector<16x32xf32>
    %cst_298 = arith.constant 0.000000e+00 : f32
    %1021 = vector.broadcast %cst_298 : f32 to vector<16x32xf32>
    %1022 = arith.cmpf ogt, %1020, %1021 : vector<16x32xf32>
    %1023 = vector.broadcast %19 : vector<1x1xf32> to vector<16x32xf32>
    %1024 = arith.mulf %1023, %1020 : vector<16x32xf32>
    %1025 = arith.select %1022, %1020, %1024 : vector<16x32xi1>, vector<16x32xf32>
    %1026 = arith.truncf %1025 : vector<16x32xf32> to vector<16x32xbf16>
    %cst_299 = arith.constant dense<0.000000e+00> : vector<16x4xf32>
    %1027 = tpu.matmul %1026, %9, %cst_299 {dimension_numbers = #tpu.dot_dimension_numbers<[1], [0], [0], [1], [0, 0, 1, 1], [], []>} : vector<16x32xbf16>, vector<32x4xbf16>, vector<16x4xf32> -> vector<16x4xf32>
    %1028 = arith.addf %1027, %994 : vector<16x4xf32>
    %1029 = vector.broadcast %16 : vector<1x4xf32> to vector<16x4xf32>
    %1030 = arith.addf %1028, %1029 : vector<16x4xf32>
    %1031 = arith.select %986, %997, %1030 : vector<16x4xi1>, vector<16x4xf32>
    %1032 = arith.truncf %1031 : vector<16x4xf32> to vector<16x4xbf16>
    %cst_300 = arith.constant dense<0.000000e+00> : vector<16x480xf32>
    %1033 = tpu.matmul %1032, %10, %cst_300 {dimension_numbers = #tpu.dot_dimension_numbers<[1], [0], [0], [1], [0, 0, 1, 1], [], []>} : vector<16x4xbf16>, vector<4x480xbf16>, vector<16x480xf32> -> vector<16x480xf32>
    %1034 = vector.extract_strided_slice %1033 {offsets = [0, 0], sizes = [16, 64], strides = [1, 1]} : vector<16x480xf32> to vector<16x64xf32>
    %1035 = vector.extract_strided_slice %987 {offsets = [0, 0], sizes = [16, 64], strides = [1, 1]} : vector<16x512xf32> to vector<16x64xf32>
    %1036 = arith.addf %1034, %1035 : vector<16x64xf32>
    %1037 = vector.extract_strided_slice %990 {offsets = [0, 0], sizes = [16, 64], strides = [1, 1]} : vector<16x320xf32> to vector<16x64xf32>
    %1038 = arith.addf %1036, %1037 : vector<16x64xf32>
    %1039 = vector.extract_strided_slice %1033 {offsets = [0, 64], sizes = [16, 64], strides = [1, 1]} : vector<16x480xf32> to vector<16x64xf32>
    %1040 = vector.extract_strided_slice %987 {offsets = [0, 64], sizes = [16, 64], strides = [1, 1]} : vector<16x512xf32> to vector<16x64xf32>
    %1041 = arith.addf %1039, %1040 : vector<16x64xf32>
    %1042 = vector.extract_strided_slice %990 {offsets = [0, 64], sizes = [16, 64], strides = [1, 1]} : vector<16x320xf32> to vector<16x64xf32>
    %1043 = arith.addf %1041, %1042 : vector<16x64xf32>
    %1044 = vector.extract_strided_slice %1033 {offsets = [0, 128], sizes = [16, 64], strides = [1, 1]} : vector<16x480xf32> to vector<16x64xf32>
    %1045 = vector.extract_strided_slice %987 {offsets = [0, 128], sizes = [16, 64], strides = [1, 1]} : vector<16x512xf32> to vector<16x64xf32>
    %1046 = arith.addf %1044, %1045 : vector<16x64xf32>
    %1047 = vector.extract_strided_slice %990 {offsets = [0, 128], sizes = [16, 64], strides = [1, 1]} : vector<16x320xf32> to vector<16x64xf32>
    %1048 = arith.addf %1046, %1047 : vector<16x64xf32>
    %1049 = vector.extract_strided_slice %1033 {offsets = [0, 192], sizes = [16, 64], strides = [1, 1]} : vector<16x480xf32> to vector<16x64xf32>
    %1050 = vector.extract_strided_slice %987 {offsets = [0, 192], sizes = [16, 64], strides = [1, 1]} : vector<16x512xf32> to vector<16x64xf32>
    %1051 = arith.addf %1049, %1050 : vector<16x64xf32>
    %1052 = vector.extract_strided_slice %990 {offsets = [0, 192], sizes = [16, 64], strides = [1, 1]} : vector<16x320xf32> to vector<16x64xf32>
    %1053 = arith.addf %1051, %1052 : vector<16x64xf32>
    %1054 = vector.extract_strided_slice %1033 {offsets = [0, 256], sizes = [16, 64], strides = [1, 1]} : vector<16x480xf32> to vector<16x64xf32>
    %1055 = vector.extract_strided_slice %987 {offsets = [0, 256], sizes = [16, 64], strides = [1, 1]} : vector<16x512xf32> to vector<16x64xf32>
    %1056 = arith.addf %1054, %1055 : vector<16x64xf32>
    %1057 = vector.extract_strided_slice %990 {offsets = [0, 256], sizes = [16, 64], strides = [1, 1]} : vector<16x320xf32> to vector<16x64xf32>
    %1058 = arith.addf %1056, %1057 : vector<16x64xf32>
    %1059 = arith.truncf %1048 : vector<16x64xf32> to vector<16x64xbf16>
    %cst_301 = arith.constant dense<0.000000e+00> : vector<16x64xf32>
    %1060 = tpu.matmul %3, %1059, %cst_301 {dimension_numbers = #tpu.dot_dimension_numbers<[1], [0], [0], [1], [0, 0, 1, 1], [], []>} : vector<16x16xbf16>, vector<16x64xbf16>, vector<16x64xf32> -> vector<16x64xf32>
    %1061 = arith.addf %1043, %1060 : vector<16x64xf32>
    %1062 = arith.truncf %1061 : vector<16x64xf32> to vector<16x64xbf16>
    %cst_302 = arith.constant dense<0.000000e+00> : vector<16x64xf32>
    %1063 = tpu.matmul %3, %1062, %cst_302 {dimension_numbers = #tpu.dot_dimension_numbers<[1], [0], [0], [1], [0, 0, 1, 1], [], []>} : vector<16x16xbf16>, vector<16x64xbf16>, vector<16x64xf32> -> vector<16x64xf32>
    %1064 = arith.addf %1038, %1063 : vector<16x64xf32>
    %1065 = arith.truncf %1058 : vector<16x64xf32> to vector<16x64xbf16>
    %cst_303 = arith.constant dense<0.000000e+00> : vector<16x64xf32>
    %1066 = tpu.matmul %4, %1065, %cst_303 {dimension_numbers = #tpu.dot_dimension_numbers<[1], [0], [0], [1], [0, 0, 1, 1], [], []>} : vector<16x16xbf16>, vector<16x64xbf16>, vector<16x64xf32> -> vector<16x64xf32>
    %1067 = arith.addf %1053, %1066 : vector<16x64xf32>
    %1068 = arith.truncf %1067 : vector<16x64xf32> to vector<16x64xbf16>
    %cst_304 = arith.constant dense<0.000000e+00> : vector<16x64xf32>
    %1069 = tpu.matmul %4, %1068, %cst_304 {dimension_numbers = #tpu.dot_dimension_numbers<[1], [0], [0], [1], [0, 0, 1, 1], [], []>} : vector<16x16xbf16>, vector<16x64xbf16>, vector<16x64xf32> -> vector<16x64xf32>
    %1070 = arith.addf %1064, %1069 : vector<16x64xf32>
    %1071 = vector.broadcast %17 : vector<1x64xf32> to vector<16x64xf32>
    %1072 = arith.addf %1070, %1071 : vector<16x64xf32>
    %1073 = arith.negf %1072 : vector<16x64xf32>
    %1074 = math.exp %1073 : vector<16x64xf32>
    %cst_305 = arith.constant 1.000000e+00 : f32
    %1075 = vector.broadcast %cst_305 : f32 to vector<16x64xf32>
    %1076 = arith.addf %1075, %1074 : vector<16x64xf32>
    %1077 = arith.divf %1075, %1076 : vector<16x64xf32>
    %1078 = vector.extract_strided_slice %1077 {offsets = [0, 0], sizes = [16, 32], strides = [1, 1]} : vector<16x64xf32> to vector<16x32xf32>
    %1079 = vector.extract_strided_slice %1077 {offsets = [0, 32], sizes = [16, 32], strides = [1, 1]} : vector<16x64xf32> to vector<16x32xf32>
    %1080 = arith.mulf %1078, %968 : vector<16x32xf32>
    %1081 = arith.truncf %1080 : vector<16x32xf32> to vector<16x32xbf16>
    %cst_306 = arith.constant dense<0.000000e+00> : vector<16x160xf32>
    %1082 = tpu.matmul %1081, %11, %cst_306 {dimension_numbers = #tpu.dot_dimension_numbers<[1], [0], [0], [1], [0, 0, 1, 1], [], []>} : vector<16x32xbf16>, vector<32x160xbf16>, vector<16x160xf32> -> vector<16x160xf32>
    %1083 = vector.extract_strided_slice %1033 {offsets = [0, 320], sizes = [16, 32], strides = [1, 1]} : vector<16x480xf32> to vector<16x32xf32>
    %1084 = vector.extract_strided_slice %987 {offsets = [0, 320], sizes = [16, 32], strides = [1, 1]} : vector<16x512xf32> to vector<16x32xf32>
    %1085 = arith.addf %1083, %1084 : vector<16x32xf32>
    %1086 = vector.extract_strided_slice %1082 {offsets = [0, 0], sizes = [16, 32], strides = [1, 1]} : vector<16x160xf32> to vector<16x32xf32>
    %1087 = arith.addf %1085, %1086 : vector<16x32xf32>
    %1088 = vector.extract_strided_slice %1033 {offsets = [0, 352], sizes = [16, 32], strides = [1, 1]} : vector<16x480xf32> to vector<16x32xf32>
    %1089 = vector.extract_strided_slice %987 {offsets = [0, 352], sizes = [16, 32], strides = [1, 1]} : vector<16x512xf32> to vector<16x32xf32>
    %1090 = arith.addf %1088, %1089 : vector<16x32xf32>
    %1091 = vector.extract_strided_slice %1082 {offsets = [0, 32], sizes = [16, 32], strides = [1, 1]} : vector<16x160xf32> to vector<16x32xf32>
    %1092 = arith.addf %1090, %1091 : vector<16x32xf32>
    %1093 = vector.extract_strided_slice %1033 {offsets = [0, 384], sizes = [16, 32], strides = [1, 1]} : vector<16x480xf32> to vector<16x32xf32>
    %1094 = vector.extract_strided_slice %987 {offsets = [0, 384], sizes = [16, 32], strides = [1, 1]} : vector<16x512xf32> to vector<16x32xf32>
    %1095 = arith.addf %1093, %1094 : vector<16x32xf32>
    %1096 = vector.extract_strided_slice %1082 {offsets = [0, 64], sizes = [16, 32], strides = [1, 1]} : vector<16x160xf32> to vector<16x32xf32>
    %1097 = arith.addf %1095, %1096 : vector<16x32xf32>
    %1098 = vector.extract_strided_slice %1033 {offsets = [0, 416], sizes = [16, 32], strides = [1, 1]} : vector<16x480xf32> to vector<16x32xf32>
    %1099 = vector.extract_strided_slice %987 {offsets = [0, 416], sizes = [16, 32], strides = [1, 1]} : vector<16x512xf32> to vector<16x32xf32>
    %1100 = arith.addf %1098, %1099 : vector<16x32xf32>
    %1101 = vector.extract_strided_slice %1082 {offsets = [0, 96], sizes = [16, 32], strides = [1, 1]} : vector<16x160xf32> to vector<16x32xf32>
    %1102 = arith.addf %1100, %1101 : vector<16x32xf32>
    %1103 = vector.extract_strided_slice %1033 {offsets = [0, 448], sizes = [16, 32], strides = [1, 1]} : vector<16x480xf32> to vector<16x32xf32>
    %1104 = vector.extract_strided_slice %987 {offsets = [0, 448], sizes = [16, 32], strides = [1, 1]} : vector<16x512xf32> to vector<16x32xf32>
    %1105 = arith.addf %1103, %1104 : vector<16x32xf32>
    %1106 = vector.extract_strided_slice %1082 {offsets = [0, 128], sizes = [16, 32], strides = [1, 1]} : vector<16x160xf32> to vector<16x32xf32>
    %1107 = arith.addf %1105, %1106 : vector<16x32xf32>
    %1108 = arith.truncf %1097 : vector<16x32xf32> to vector<16x32xbf16>
    %cst_307 = arith.constant dense<0.000000e+00> : vector<16x32xf32>
    %1109 = tpu.matmul %3, %1108, %cst_307 {dimension_numbers = #tpu.dot_dimension_numbers<[1], [0], [0], [1], [0, 0, 1, 1], [], []>} : vector<16x16xbf16>, vector<16x32xbf16>, vector<16x32xf32> -> vector<16x32xf32>
    %1110 = arith.addf %1092, %1109 : vector<16x32xf32>
    %1111 = arith.truncf %1110 : vector<16x32xf32> to vector<16x32xbf16>
    %cst_308 = arith.constant dense<0.000000e+00> : vector<16x32xf32>
    %1112 = tpu.matmul %3, %1111, %cst_308 {dimension_numbers = #tpu.dot_dimension_numbers<[1], [0], [0], [1], [0, 0, 1, 1], [], []>} : vector<16x16xbf16>, vector<16x32xbf16>, vector<16x32xf32> -> vector<16x32xf32>
    %1113 = arith.addf %1087, %1112 : vector<16x32xf32>
    %1114 = arith.truncf %1107 : vector<16x32xf32> to vector<16x32xbf16>
    %cst_309 = arith.constant dense<0.000000e+00> : vector<16x32xf32>
    %1115 = tpu.matmul %4, %1114, %cst_309 {dimension_numbers = #tpu.dot_dimension_numbers<[1], [0], [0], [1], [0, 0, 1, 1], [], []>} : vector<16x16xbf16>, vector<16x32xbf16>, vector<16x32xf32> -> vector<16x32xf32>
    %1116 = arith.addf %1102, %1115 : vector<16x32xf32>
    %1117 = arith.truncf %1116 : vector<16x32xf32> to vector<16x32xbf16>
    %cst_310 = arith.constant dense<0.000000e+00> : vector<16x32xf32>
    %1118 = tpu.matmul %4, %1117, %cst_310 {dimension_numbers = #tpu.dot_dimension_numbers<[1], [0], [0], [1], [0, 0, 1, 1], [], []>} : vector<16x16xbf16>, vector<16x32xbf16>, vector<16x32xf32> -> vector<16x32xf32>
    %1119 = arith.addf %1113, %1118 : vector<16x32xf32>
    %1120 = vector.broadcast %18 : vector<1x32xf32> to vector<16x32xf32>
    %1121 = arith.addf %1119, %1120 : vector<16x32xf32>
    %1122 = math.tanh %1121 : vector<16x32xf32>
    %1123 = arith.mulf %1079, %968 : vector<16x32xf32>
    %cst_311 = arith.constant 1.000000e+00 : f32
    %1124 = vector.broadcast %cst_311 : f32 to vector<16x32xf32>
    %1125 = arith.subf %1124, %1079 : vector<16x32xf32>
    %1126 = arith.mulf %1125, %1122 : vector<16x32xf32>
    %1127 = arith.addf %1123, %1126 : vector<16x32xf32>
    %c0_312 = arith.constant 0 : index
    %c96_313 = arith.constant 96 : index
    %c0_314 = arith.constant 0 : index
    %1128 = vector.load %arg22[%c0_312, %c96_313, %c0_314] : memref<1x128x4xf32, #tpu.memory_space<vmem>>, vector<1x16x4xf32>
    %1129 = vector.shape_cast %1128 : vector<1x16x4xf32> to vector<16x4xf32>
    %1130 = vector.shape_cast %996 : vector<16x4xf32> to vector<1x16x4xf32>
    tpu.vector_store %arg22[%c0_312, %c96_313, %c0_314], %1130 {strides = array<i32>} : memref<1x128x4xf32, #tpu.memory_space<vmem>>, vector<1x16x4xf32>,
    %c0_315 = arith.constant 0 : index
    %c96_316 = arith.constant 96 : index
    %c0_317 = arith.constant 0 : index
    %1131 = vector.load %arg23[%c0_315, %c96_316, %c0_317] : memref<1x128x4xf32, #tpu.memory_space<vmem>>, vector<1x16x4xf32>
    %1132 = vector.shape_cast %1131 : vector<1x16x4xf32> to vector<16x4xf32>
    %1133 = vector.shape_cast %1030 : vector<16x4xf32> to vector<1x16x4xf32>
    tpu.vector_store %arg23[%c0_315, %c96_316, %c0_317], %1133 {strides = array<i32>} : memref<1x128x4xf32, #tpu.memory_space<vmem>>, vector<1x16x4xf32>,
    %c0_318 = arith.constant 0 : index
    %c96_319 = arith.constant 96 : index
    %c0_320 = arith.constant 0 : index
    %1134 = vector.load %arg24[%c0_318, %c96_319, %c0_320] : memref<1x128x32xf32, #tpu.memory_space<vmem>>, vector<1x16x32xf32>
    %1135 = vector.shape_cast %1134 : vector<1x16x32xf32> to vector<16x32xf32>
    %1136 = vector.shape_cast %1025 : vector<16x32xf32> to vector<1x16x32xf32>
    tpu.vector_store %arg24[%c0_318, %c96_319, %c0_320], %1136 {strides = array<i32>} : memref<1x128x32xf32, #tpu.memory_space<vmem>>, vector<1x16x32xf32>,
    %c0_321 = arith.constant 0 : index
    %c96_322 = arith.constant 96 : index
    %c0_323 = arith.constant 0 : index
    %1137 = vector.load %arg25[%c0_321, %c96_322, %c0_323] : memref<1x128x32xf32, #tpu.memory_space<vmem>>, vector<1x16x32xf32>
    %1138 = vector.shape_cast %1137 : vector<1x16x32xf32> to vector<16x32xf32>
    %1139 = vector.shape_cast %1127 : vector<16x32xf32> to vector<1x16x32xf32>
    tpu.vector_store %arg25[%c0_321, %c96_322, %c0_323], %1139 {strides = array<i32>} : memref<1x128x32xf32, #tpu.memory_space<vmem>>, vector<1x16x32xf32>,
    %c0_324 = arith.constant 0 : index
    %c112 = arith.constant 112 : index
    %c0_325 = arith.constant 0 : index
    %1140 = vector.load %arg2[%c0_324, %c112, %c0_325] : memref<1x128x4xf32, #tpu.memory_space<vmem>>, vector<1x16x4xf32>
    %1141 = vector.shape_cast %1140 : vector<1x16x4xf32> to vector<16x4xf32>
    %c0_326 = arith.constant 0 : index
    %c112_327 = arith.constant 112 : index
    %c0_328 = arith.constant 0 : index
    %1142 = vector.load %arg3[%c0_326, %c112_327, %c0_328] : memref<1x128x4xf32, #tpu.memory_space<vmem>>, vector<1x16x4xf32>
    %1143 = vector.shape_cast %1142 : vector<1x16x4xf32> to vector<16x4xf32>
    %cst_329 = arith.constant 5.000000e-01 : f32
    %1144 = vector.broadcast %cst_329 : f32 to vector<16x4xf32>
    %1145 = arith.cmpf ogt, %1143, %1144 : vector<16x4xf32>
    %c112_330 = arith.constant 112 : index
    %c0_331 = arith.constant 0 : index
    %1146 = vector.load %arg27[%c112_330, %c0_331] : memref<128x512xf32, #tpu.memory_space<vmem>>, vector<16x512xf32>
    %1147 = arith.truncf %1127 : vector<16x32xf32> to vector<16x32xbf16>
    %cst_332 = arith.constant dense<0.000000e+00> : vector<16x392xf32>
    %1148 = tpu.matmul %1147, %5, %cst_332 {dimension_numbers = #tpu.dot_dimension_numbers<[1], [0], [0], [1], [0, 0, 1, 1], [], []>} : vector<16x32xbf16>, vector<32x392xbf16>, vector<16x392xf32> -> vector<16x392xf32>
    %1149 = vector.extract_strided_slice %1148 {offsets = [0, 0], sizes = [16, 320], strides = [1, 1]} : vector<16x392xf32> to vector<16x320xf32>
    %1150 = vector.extract_strided_slice %1148 {offsets = [0, 320], sizes = [16, 32], strides = [1, 1]} : vector<16x392xf32> to vector<16x32xf32>
    %1151 = vector.extract_strided_slice %1148 {offsets = [0, 352], sizes = [16, 32], strides = [1, 1]} : vector<16x392xf32> to vector<16x32xf32>
    %1152 = vector.extract_strided_slice %1148 {offsets = [0, 384], sizes = [16, 4], strides = [1, 1]} : vector<16x392xf32> to vector<16x4xf32>
    %1153 = vector.extract_strided_slice %1148 {offsets = [0, 388], sizes = [16, 4], strides = [1, 1]} : vector<16x392xf32> to vector<16x4xf32>
    %1154 = vector.broadcast %12 : vector<1x4xf32> to vector<16x4xf32>
    %1155 = arith.addf %1152, %1154 : vector<16x4xf32>
    %1156 = arith.select %1145, %1141, %1155 : vector<16x4xi1>, vector<16x4xf32>
    %1157 = arith.truncf %1156 : vector<16x4xf32> to vector<16x4xbf16>
    %cst_333 = arith.constant dense<0.000000e+00> : vector<16x32xf32>
    %1158 = tpu.matmul %1157, %6, %cst_333 {dimension_numbers = #tpu.dot_dimension_numbers<[1], [0], [0], [1], [0, 0, 1, 1], [], []>} : vector<16x4xbf16>, vector<4x32xbf16>, vector<16x32xf32> -> vector<16x32xf32>
    %1159 = vector.extract_strided_slice %1146 {offsets = [0, 480], sizes = [16, 32], strides = [1, 1]} : vector<16x512xf32> to vector<16x32xf32>
    %1160 = arith.addf %1158, %1159 : vector<16x32xf32>
    %1161 = arith.addf %1160, %1150 : vector<16x32xf32>
    %1162 = vector.broadcast %13 : vector<1x32xf32> to vector<16x32xf32>
    %1163 = arith.addf %1161, %1162 : vector<16x32xf32>
    %1164 = arith.truncf %1163 : vector<16x32xf32> to vector<16x32xbf16>
    %cst_334 = arith.constant dense<0.000000e+00> : vector<16x64xf32>
    %1165 = tpu.matmul %1164, %7, %cst_334 {dimension_numbers = #tpu.dot_dimension_numbers<[1], [0], [0], [1], [0, 0, 1, 1], [], []>} : vector<16x32xbf16>, vector<32x64xbf16>, vector<16x64xf32> -> vector<16x64xf32>
    %1166 = vector.extract_strided_slice %1165 {offsets = [0, 0], sizes = [16, 32], strides = [1, 1]} : vector<16x64xf32> to vector<16x32xf32>
    %1167 = arith.truncf %1166 : vector<16x32xf32> to vector<16x32xbf16>
    %cst_335 = arith.constant dense<0.000000e+00> : vector<16x32xf32>
    %1168 = tpu.matmul %3, %1167, %cst_335 {dimension_numbers = #tpu.dot_dimension_numbers<[1], [0], [0], [1], [0, 0, 1, 1], [], []>} : vector<16x16xbf16>, vector<16x32xbf16>, vector<16x32xf32> -> vector<16x32xf32>
    %1169 = vector.extract_strided_slice %1165 {offsets = [0, 32], sizes = [16, 32], strides = [1, 1]} : vector<16x64xf32> to vector<16x32xf32>
    %1170 = arith.truncf %1169 : vector<16x32xf32> to vector<16x32xbf16>
    %cst_336 = arith.constant dense<0.000000e+00> : vector<16x32xf32>
    %1171 = tpu.matmul %4, %1170, %cst_336 {dimension_numbers = #tpu.dot_dimension_numbers<[1], [0], [0], [1], [0, 0, 1, 1], [], []>} : vector<16x16xbf16>, vector<16x32xbf16>, vector<16x32xf32> -> vector<16x32xf32>
    %1172 = arith.addf %1168, %1171 : vector<16x32xf32>
    %1173 = vector.broadcast %14 : vector<1x32xf32> to vector<16x32xf32>
    %1174 = arith.addf %1172, %1173 : vector<16x32xf32>
    %1175 = arith.truncf %1174 : vector<16x32xf32> to vector<16x32xbf16>
    %cst_337 = arith.constant dense<0.000000e+00> : vector<16x32xf32>
    %1176 = tpu.matmul %1175, %8, %cst_337 {dimension_numbers = #tpu.dot_dimension_numbers<[1], [0], [0], [1], [0, 0, 1, 1], [], []>} : vector<16x32xbf16>, vector<32x32xbf16>, vector<16x32xf32> -> vector<16x32xf32>
    %1177 = arith.addf %1176, %1151 : vector<16x32xf32>
    %1178 = vector.broadcast %15 : vector<1x32xf32> to vector<16x32xf32>
    %1179 = arith.addf %1177, %1178 : vector<16x32xf32>
    %cst_338 = arith.constant 0.000000e+00 : f32
    %1180 = vector.broadcast %cst_338 : f32 to vector<16x32xf32>
    %1181 = arith.cmpf ogt, %1179, %1180 : vector<16x32xf32>
    %1182 = vector.broadcast %19 : vector<1x1xf32> to vector<16x32xf32>
    %1183 = arith.mulf %1182, %1179 : vector<16x32xf32>
    %1184 = arith.select %1181, %1179, %1183 : vector<16x32xi1>, vector<16x32xf32>
    %1185 = arith.truncf %1184 : vector<16x32xf32> to vector<16x32xbf16>
    %cst_339 = arith.constant dense<0.000000e+00> : vector<16x4xf32>
    %1186 = tpu.matmul %1185, %9, %cst_339 {dimension_numbers = #tpu.dot_dimension_numbers<[1], [0], [0], [1], [0, 0, 1, 1], [], []>} : vector<16x32xbf16>, vector<32x4xbf16>, vector<16x4xf32> -> vector<16x4xf32>
    %1187 = arith.addf %1186, %1153 : vector<16x4xf32>
    %1188 = vector.broadcast %16 : vector<1x4xf32> to vector<16x4xf32>
    %1189 = arith.addf %1187, %1188 : vector<16x4xf32>
    %1190 = arith.select %1145, %1156, %1189 : vector<16x4xi1>, vector<16x4xf32>
    %1191 = arith.truncf %1190 : vector<16x4xf32> to vector<16x4xbf16>
    %cst_340 = arith.constant dense<0.000000e+00> : vector<16x480xf32>
    %1192 = tpu.matmul %1191, %10, %cst_340 {dimension_numbers = #tpu.dot_dimension_numbers<[1], [0], [0], [1], [0, 0, 1, 1], [], []>} : vector<16x4xbf16>, vector<4x480xbf16>, vector<16x480xf32> -> vector<16x480xf32>
    %1193 = vector.extract_strided_slice %1192 {offsets = [0, 0], sizes = [16, 64], strides = [1, 1]} : vector<16x480xf32> to vector<16x64xf32>
    %1194 = vector.extract_strided_slice %1146 {offsets = [0, 0], sizes = [16, 64], strides = [1, 1]} : vector<16x512xf32> to vector<16x64xf32>
    %1195 = arith.addf %1193, %1194 : vector<16x64xf32>
    %1196 = vector.extract_strided_slice %1149 {offsets = [0, 0], sizes = [16, 64], strides = [1, 1]} : vector<16x320xf32> to vector<16x64xf32>
    %1197 = arith.addf %1195, %1196 : vector<16x64xf32>
    %1198 = vector.extract_strided_slice %1192 {offsets = [0, 64], sizes = [16, 64], strides = [1, 1]} : vector<16x480xf32> to vector<16x64xf32>
    %1199 = vector.extract_strided_slice %1146 {offsets = [0, 64], sizes = [16, 64], strides = [1, 1]} : vector<16x512xf32> to vector<16x64xf32>
    %1200 = arith.addf %1198, %1199 : vector<16x64xf32>
    %1201 = vector.extract_strided_slice %1149 {offsets = [0, 64], sizes = [16, 64], strides = [1, 1]} : vector<16x320xf32> to vector<16x64xf32>
    %1202 = arith.addf %1200, %1201 : vector<16x64xf32>
    %1203 = vector.extract_strided_slice %1192 {offsets = [0, 128], sizes = [16, 64], strides = [1, 1]} : vector<16x480xf32> to vector<16x64xf32>
    %1204 = vector.extract_strided_slice %1146 {offsets = [0, 128], sizes = [16, 64], strides = [1, 1]} : vector<16x512xf32> to vector<16x64xf32>
    %1205 = arith.addf %1203, %1204 : vector<16x64xf32>
    %1206 = vector.extract_strided_slice %1149 {offsets = [0, 128], sizes = [16, 64], strides = [1, 1]} : vector<16x320xf32> to vector<16x64xf32>
    %1207 = arith.addf %1205, %1206 : vector<16x64xf32>
    %1208 = vector.extract_strided_slice %1192 {offsets = [0, 192], sizes = [16, 64], strides = [1, 1]} : vector<16x480xf32> to vector<16x64xf32>
    %1209 = vector.extract_strided_slice %1146 {offsets = [0, 192], sizes = [16, 64], strides = [1, 1]} : vector<16x512xf32> to vector<16x64xf32>
    %1210 = arith.addf %1208, %1209 : vector<16x64xf32>
    %1211 = vector.extract_strided_slice %1149 {offsets = [0, 192], sizes = [16, 64], strides = [1, 1]} : vector<16x320xf32> to vector<16x64xf32>
    %1212 = arith.addf %1210, %1211 : vector<16x64xf32>
    %1213 = vector.extract_strided_slice %1192 {offsets = [0, 256], sizes = [16, 64], strides = [1, 1]} : vector<16x480xf32> to vector<16x64xf32>
    %1214 = vector.extract_strided_slice %1146 {offsets = [0, 256], sizes = [16, 64], strides = [1, 1]} : vector<16x512xf32> to vector<16x64xf32>
    %1215 = arith.addf %1213, %1214 : vector<16x64xf32>
    %1216 = vector.extract_strided_slice %1149 {offsets = [0, 256], sizes = [16, 64], strides = [1, 1]} : vector<16x320xf32> to vector<16x64xf32>
    %1217 = arith.addf %1215, %1216 : vector<16x64xf32>
    %1218 = arith.truncf %1207 : vector<16x64xf32> to vector<16x64xbf16>
    %cst_341 = arith.constant dense<0.000000e+00> : vector<16x64xf32>
    %1219 = tpu.matmul %3, %1218, %cst_341 {dimension_numbers = #tpu.dot_dimension_numbers<[1], [0], [0], [1], [0, 0, 1, 1], [], []>} : vector<16x16xbf16>, vector<16x64xbf16>, vector<16x64xf32> -> vector<16x64xf32>
    %1220 = arith.addf %1202, %1219 : vector<16x64xf32>
    %1221 = arith.truncf %1220 : vector<16x64xf32> to vector<16x64xbf16>
    %cst_342 = arith.constant dense<0.000000e+00> : vector<16x64xf32>
    %1222 = tpu.matmul %3, %1221, %cst_342 {dimension_numbers = #tpu.dot_dimension_numbers<[1], [0], [0], [1], [0, 0, 1, 1], [], []>} : vector<16x16xbf16>, vector<16x64xbf16>, vector<16x64xf32> -> vector<16x64xf32>
    %1223 = arith.addf %1197, %1222 : vector<16x64xf32>
    %1224 = arith.truncf %1217 : vector<16x64xf32> to vector<16x64xbf16>
    %cst_343 = arith.constant dense<0.000000e+00> : vector<16x64xf32>
    %1225 = tpu.matmul %4, %1224, %cst_343 {dimension_numbers = #tpu.dot_dimension_numbers<[1], [0], [0], [1], [0, 0, 1, 1], [], []>} : vector<16x16xbf16>, vector<16x64xbf16>, vector<16x64xf32> -> vector<16x64xf32>
    %1226 = arith.addf %1212, %1225 : vector<16x64xf32>
    %1227 = arith.truncf %1226 : vector<16x64xf32> to vector<16x64xbf16>
    %cst_344 = arith.constant dense<0.000000e+00> : vector<16x64xf32>
    %1228 = tpu.matmul %4, %1227, %cst_344 {dimension_numbers = #tpu.dot_dimension_numbers<[1], [0], [0], [1], [0, 0, 1, 1], [], []>} : vector<16x16xbf16>, vector<16x64xbf16>, vector<16x64xf32> -> vector<16x64xf32>
    %1229 = arith.addf %1223, %1228 : vector<16x64xf32>
    %1230 = vector.broadcast %17 : vector<1x64xf32> to vector<16x64xf32>
    %1231 = arith.addf %1229, %1230 : vector<16x64xf32>
    %1232 = arith.negf %1231 : vector<16x64xf32>
    %1233 = math.exp %1232 : vector<16x64xf32>
    %cst_345 = arith.constant 1.000000e+00 : f32
    %1234 = vector.broadcast %cst_345 : f32 to vector<16x64xf32>
    %1235 = arith.addf %1234, %1233 : vector<16x64xf32>
    %1236 = arith.divf %1234, %1235 : vector<16x64xf32>
    %1237 = vector.extract_strided_slice %1236 {offsets = [0, 0], sizes = [16, 32], strides = [1, 1]} : vector<16x64xf32> to vector<16x32xf32>
    %1238 = vector.extract_strided_slice %1236 {offsets = [0, 32], sizes = [16, 32], strides = [1, 1]} : vector<16x64xf32> to vector<16x32xf32>
    %1239 = arith.mulf %1237, %1127 : vector<16x32xf32>
    %1240 = arith.truncf %1239 : vector<16x32xf32> to vector<16x32xbf16>
    %cst_346 = arith.constant dense<0.000000e+00> : vector<16x160xf32>
    %1241 = tpu.matmul %1240, %11, %cst_346 {dimension_numbers = #tpu.dot_dimension_numbers<[1], [0], [0], [1], [0, 0, 1, 1], [], []>} : vector<16x32xbf16>, vector<32x160xbf16>, vector<16x160xf32> -> vector<16x160xf32>
    %1242 = vector.extract_strided_slice %1192 {offsets = [0, 320], sizes = [16, 32], strides = [1, 1]} : vector<16x480xf32> to vector<16x32xf32>
    %1243 = vector.extract_strided_slice %1146 {offsets = [0, 320], sizes = [16, 32], strides = [1, 1]} : vector<16x512xf32> to vector<16x32xf32>
    %1244 = arith.addf %1242, %1243 : vector<16x32xf32>
    %1245 = vector.extract_strided_slice %1241 {offsets = [0, 0], sizes = [16, 32], strides = [1, 1]} : vector<16x160xf32> to vector<16x32xf32>
    %1246 = arith.addf %1244, %1245 : vector<16x32xf32>
    %1247 = vector.extract_strided_slice %1192 {offsets = [0, 352], sizes = [16, 32], strides = [1, 1]} : vector<16x480xf32> to vector<16x32xf32>
    %1248 = vector.extract_strided_slice %1146 {offsets = [0, 352], sizes = [16, 32], strides = [1, 1]} : vector<16x512xf32> to vector<16x32xf32>
    %1249 = arith.addf %1247, %1248 : vector<16x32xf32>
    %1250 = vector.extract_strided_slice %1241 {offsets = [0, 32], sizes = [16, 32], strides = [1, 1]} : vector<16x160xf32> to vector<16x32xf32>
    %1251 = arith.addf %1249, %1250 : vector<16x32xf32>
    %1252 = vector.extract_strided_slice %1192 {offsets = [0, 384], sizes = [16, 32], strides = [1, 1]} : vector<16x480xf32> to vector<16x32xf32>
    %1253 = vector.extract_strided_slice %1146 {offsets = [0, 384], sizes = [16, 32], strides = [1, 1]} : vector<16x512xf32> to vector<16x32xf32>
    %1254 = arith.addf %1252, %1253 : vector<16x32xf32>
    %1255 = vector.extract_strided_slice %1241 {offsets = [0, 64], sizes = [16, 32], strides = [1, 1]} : vector<16x160xf32> to vector<16x32xf32>
    %1256 = arith.addf %1254, %1255 : vector<16x32xf32>
    %1257 = vector.extract_strided_slice %1192 {offsets = [0, 416], sizes = [16, 32], strides = [1, 1]} : vector<16x480xf32> to vector<16x32xf32>
    %1258 = vector.extract_strided_slice %1146 {offsets = [0, 416], sizes = [16, 32], strides = [1, 1]} : vector<16x512xf32> to vector<16x32xf32>
    %1259 = arith.addf %1257, %1258 : vector<16x32xf32>
    %1260 = vector.extract_strided_slice %1241 {offsets = [0, 96], sizes = [16, 32], strides = [1, 1]} : vector<16x160xf32> to vector<16x32xf32>
    %1261 = arith.addf %1259, %1260 : vector<16x32xf32>
    %1262 = vector.extract_strided_slice %1192 {offsets = [0, 448], sizes = [16, 32], strides = [1, 1]} : vector<16x480xf32> to vector<16x32xf32>
    %1263 = vector.extract_strided_slice %1146 {offsets = [0, 448], sizes = [16, 32], strides = [1, 1]} : vector<16x512xf32> to vector<16x32xf32>
    %1264 = arith.addf %1262, %1263 : vector<16x32xf32>
    %1265 = vector.extract_strided_slice %1241 {offsets = [0, 128], sizes = [16, 32], strides = [1, 1]} : vector<16x160xf32> to vector<16x32xf32>
    %1266 = arith.addf %1264, %1265 : vector<16x32xf32>
    %1267 = arith.truncf %1256 : vector<16x32xf32> to vector<16x32xbf16>
    %cst_347 = arith.constant dense<0.000000e+00> : vector<16x32xf32>
    %1268 = tpu.matmul %3, %1267, %cst_347 {dimension_numbers = #tpu.dot_dimension_numbers<[1], [0], [0], [1], [0, 0, 1, 1], [], []>} : vector<16x16xbf16>, vector<16x32xbf16>, vector<16x32xf32> -> vector<16x32xf32>
    %1269 = arith.addf %1251, %1268 : vector<16x32xf32>
    %1270 = arith.truncf %1269 : vector<16x32xf32> to vector<16x32xbf16>
    %cst_348 = arith.constant dense<0.000000e+00> : vector<16x32xf32>
    %1271 = tpu.matmul %3, %1270, %cst_348 {dimension_numbers = #tpu.dot_dimension_numbers<[1], [0], [0], [1], [0, 0, 1, 1], [], []>} : vector<16x16xbf16>, vector<16x32xbf16>, vector<16x32xf32> -> vector<16x32xf32>
    %1272 = arith.addf %1246, %1271 : vector<16x32xf32>
    %1273 = arith.truncf %1266 : vector<16x32xf32> to vector<16x32xbf16>
    %cst_349 = arith.constant dense<0.000000e+00> : vector<16x32xf32>
    %1274 = tpu.matmul %4, %1273, %cst_349 {dimension_numbers = #tpu.dot_dimension_numbers<[1], [0], [0], [1], [0, 0, 1, 1], [], []>} : vector<16x16xbf16>, vector<16x32xbf16>, vector<16x32xf32> -> vector<16x32xf32>
    %1275 = arith.addf %1261, %1274 : vector<16x32xf32>
    %1276 = arith.truncf %1275 : vector<16x32xf32> to vector<16x32xbf16>
    %cst_350 = arith.constant dense<0.000000e+00> : vector<16x32xf32>
    %1277 = tpu.matmul %4, %1276, %cst_350 {dimension_numbers = #tpu.dot_dimension_numbers<[1], [0], [0], [1], [0, 0, 1, 1], [], []>} : vector<16x16xbf16>, vector<16x32xbf16>, vector<16x32xf32> -> vector<16x32xf32>
    %1278 = arith.addf %1272, %1277 : vector<16x32xf32>
    %1279 = vector.broadcast %18 : vector<1x32xf32> to vector<16x32xf32>
    %1280 = arith.addf %1278, %1279 : vector<16x32xf32>
    %1281 = math.tanh %1280 : vector<16x32xf32>
    %1282 = arith.mulf %1238, %1127 : vector<16x32xf32>
    %cst_351 = arith.constant 1.000000e+00 : f32
    %1283 = vector.broadcast %cst_351 : f32 to vector<16x32xf32>
    %1284 = arith.subf %1283, %1238 : vector<16x32xf32>
    %1285 = arith.mulf %1284, %1281 : vector<16x32xf32>
    %1286 = arith.addf %1282, %1285 : vector<16x32xf32>
    %c0_352 = arith.constant 0 : index
    %c112_353 = arith.constant 112 : index
    %c0_354 = arith.constant 0 : index
    %1287 = vector.load %arg22[%c0_352, %c112_353, %c0_354] : memref<1x128x4xf32, #tpu.memory_space<vmem>>, vector<1x16x4xf32>
    %1288 = vector.shape_cast %1287 : vector<1x16x4xf32> to vector<16x4xf32>
    %1289 = vector.shape_cast %1155 : vector<16x4xf32> to vector<1x16x4xf32>
    tpu.vector_store %arg22[%c0_352, %c112_353, %c0_354], %1289 {strides = array<i32>} : memref<1x128x4xf32, #tpu.memory_space<vmem>>, vector<1x16x4xf32>,
    %c0_355 = arith.constant 0 : index
    %c112_356 = arith.constant 112 : index
    %c0_357 = arith.constant 0 : index
    %1290 = vector.load %arg23[%c0_355, %c112_356, %c0_357] : memref<1x128x4xf32, #tpu.memory_space<vmem>>, vector<1x16x4xf32>
    %1291 = vector.shape_cast %1290 : vector<1x16x4xf32> to vector<16x4xf32>
    %1292 = vector.shape_cast %1189 : vector<16x4xf32> to vector<1x16x4xf32>
    tpu.vector_store %arg23[%c0_355, %c112_356, %c0_357], %1292 {strides = array<i32>} : memref<1x128x4xf32, #tpu.memory_space<vmem>>, vector<1x16x4xf32>,
    %c0_358 = arith.constant 0 : index
    %c112_359 = arith.constant 112 : index
    %c0_360 = arith.constant 0 : index
    %1293 = vector.load %arg24[%c0_358, %c112_359, %c0_360] : memref<1x128x32xf32, #tpu.memory_space<vmem>>, vector<1x16x32xf32>
    %1294 = vector.shape_cast %1293 : vector<1x16x32xf32> to vector<16x32xf32>
    %1295 = vector.shape_cast %1184 : vector<16x32xf32> to vector<1x16x32xf32>
    tpu.vector_store %arg24[%c0_358, %c112_359, %c0_360], %1295 {strides = array<i32>} : memref<1x128x32xf32, #tpu.memory_space<vmem>>, vector<1x16x32xf32>,
    %c0_361 = arith.constant 0 : index
    %c112_362 = arith.constant 112 : index
    %c0_363 = arith.constant 0 : index
    %1296 = vector.load %arg25[%c0_361, %c112_362, %c0_363] : memref<1x128x32xf32, #tpu.memory_space<vmem>>, vector<1x16x32xf32>
    %1297 = vector.shape_cast %1296 : vector<1x16x32xf32> to vector<16x32xf32>
    %1298 = vector.shape_cast %1286 : vector<16x32xf32> to vector<1x16x32xf32>
    tpu.vector_store %arg25[%c0_361, %c112_362, %c0_363], %1298 {strides = array<i32>} : memref<1x128x32xf32, #tpu.memory_space<vmem>>, vector<1x16x32xf32>,
    %c0_364 = arith.constant 0 : index
    %c0_365 = arith.constant 0 : index
    %1299 = vector.load %arg26[%c0_364, %c0_365] : memref<16x32xf32, #tpu.memory_space<vmem>>, vector<16x32xf32>
    tpu.vector_store %arg26[%c0_364, %c0_365], %1286 {strides = array<i32>} : memref<16x32xf32, #tpu.memory_space<vmem>>, vector<16x32xf32>,
    return
  }
  func.func @transform_0(%arg0: i32, %arg1: i32) -> (i32, i32, i32) {
    %c0_i32 = arith.constant 0 : i32
    %c0_i32_0 = arith.constant 0 : i32
    return %arg0, %arg1, %c0_i32 : i32, i32, i32
  }
  func.func @transform_1(%arg0: i32, %arg1: i32) -> (i32, i32, i32) {
    %c0_i32 = arith.constant 0 : i32
    %c0_i32_0 = arith.constant 0 : i32
    return %arg0, %arg1, %c0_i32 : i32, i32, i32
  }
  func.func @transform_2(%arg0: i32, %arg1: i32) -> (i32, i32) {
    %c0_i32 = arith.constant 0 : i32
    %c0_i32_0 = arith.constant 0 : i32
    %c0_i32_1 = arith.constant 0 : i32
    return %c0_i32, %c0_i32_0 : i32, i32
  }
  func.func @transform_3(%arg0: i32, %arg1: i32) -> (i32, i32) {
    %c0_i32 = arith.constant 0 : i32
    %c0_i32_0 = arith.constant 0 : i32
    %c0_i32_1 = arith.constant 0 : i32
    return %c0_i32, %c0_i32_0 : i32, i32
  }
  func.func @transform_4(%arg0: i32, %arg1: i32) -> (i32, i32) {
    %c0_i32 = arith.constant 0 : i32
    %c0_i32_0 = arith.constant 0 : i32
    %c0_i32_1 = arith.constant 0 : i32
    return %c0_i32, %c0_i32_0 : i32, i32
  }
  func.func @transform_5(%arg0: i32, %arg1: i32) -> (i32, i32) {
    %c0_i32 = arith.constant 0 : i32
    %c0_i32_0 = arith.constant 0 : i32
    %c0_i32_1 = arith.constant 0 : i32
    return %c0_i32, %c0_i32_0 : i32, i32
  }
  func.func @transform_6(%arg0: i32, %arg1: i32) -> (i32, i32) {
    %c0_i32 = arith.constant 0 : i32
    %c0_i32_0 = arith.constant 0 : i32
    %c0_i32_1 = arith.constant 0 : i32
    return %c0_i32, %c0_i32_0 : i32, i32
  }
  func.func @transform_7(%arg0: i32, %arg1: i32) -> (i32, i32) {
    %c0_i32 = arith.constant 0 : i32
    %c0_i32_0 = arith.constant 0 : i32
    %c0_i32_1 = arith.constant 0 : i32
    return %c0_i32, %c0_i32_0 : i32, i32
  }
  func.func @transform_8(%arg0: i32, %arg1: i32) -> (i32, i32) {
    %c0_i32 = arith.constant 0 : i32
    %c0_i32_0 = arith.constant 0 : i32
    %c0_i32_1 = arith.constant 0 : i32
    return %c0_i32, %c0_i32_0 : i32, i32
  }
  func.func @transform_9(%arg0: i32, %arg1: i32) -> (i32, i32) {
    %c0_i32 = arith.constant 0 : i32
    %c0_i32_0 = arith.constant 0 : i32
    %c0_i32_1 = arith.constant 0 : i32
    return %c0_i32, %c0_i32_0 : i32, i32
  }
  func.func @transform_10(%arg0: i32, %arg1: i32) -> (i32, i32) {
    %c0_i32 = arith.constant 0 : i32
    %c0_i32_0 = arith.constant 0 : i32
    %c0_i32_1 = arith.constant 0 : i32
    return %c0_i32, %c0_i32_0 : i32, i32
  }
  func.func @transform_11(%arg0: i32, %arg1: i32) -> (i32, i32) {
    %c0_i32 = arith.constant 0 : i32
    %c0_i32_0 = arith.constant 0 : i32
    %c0_i32_1 = arith.constant 0 : i32
    return %c0_i32, %c0_i32_0 : i32, i32
  }
  func.func @transform_12(%arg0: i32, %arg1: i32) -> (i32, i32) {
    %c0_i32 = arith.constant 0 : i32
    %c0_i32_0 = arith.constant 0 : i32
    %c0_i32_1 = arith.constant 0 : i32
    return %c0_i32, %c0_i32_0 : i32, i32
  }
  func.func @transform_13(%arg0: i32, %arg1: i32) -> (i32, i32) {
    %c0_i32 = arith.constant 0 : i32
    %c0_i32_0 = arith.constant 0 : i32
    %c0_i32_1 = arith.constant 0 : i32
    return %c0_i32, %c0_i32_0 : i32, i32
  }
  func.func @transform_14(%arg0: i32, %arg1: i32) -> (i32, i32) {
    %c0_i32 = arith.constant 0 : i32
    %c0_i32_0 = arith.constant 0 : i32
    %c0_i32_1 = arith.constant 0 : i32
    return %c0_i32, %c0_i32_0 : i32, i32
  }
  func.func @transform_15(%arg0: i32, %arg1: i32) -> (i32, i32) {
    %c0_i32 = arith.constant 0 : i32
    %c0_i32_0 = arith.constant 0 : i32
    %c0_i32_1 = arith.constant 0 : i32
    return %c0_i32, %c0_i32_0 : i32, i32
  }
  func.func @transform_16(%arg0: i32, %arg1: i32) -> (i32, i32) {
    %c0_i32 = arith.constant 0 : i32
    %c0_i32_0 = arith.constant 0 : i32
    %c0_i32_1 = arith.constant 0 : i32
    return %c0_i32, %c0_i32_0 : i32, i32
  }
  func.func @transform_17(%arg0: i32, %arg1: i32) -> (i32, i32) {
    %c0_i32 = arith.constant 0 : i32
    %c0_i32_0 = arith.constant 0 : i32
    %c0_i32_1 = arith.constant 0 : i32
    return %c0_i32, %c0_i32_0 : i32, i32
  }
  func.func @transform_18(%arg0: i32, %arg1: i32) -> (i32, i32) {
    %c0_i32 = arith.constant 0 : i32
    %c0_i32_0 = arith.constant 0 : i32
    %c0_i32_1 = arith.constant 0 : i32
    return %c0_i32, %c0_i32_0 : i32, i32
  }
  func.func @transform_19(%arg0: i32, %arg1: i32) -> (i32, i32) {
    %c0_i32 = arith.constant 0 : i32
    %c0_i32_0 = arith.constant 0 : i32
    %c0_i32_1 = arith.constant 0 : i32
    return %c0_i32, %c0_i32_0 : i32, i32
  }
  func.func @transform_20(%arg0: i32, %arg1: i32) -> (i32, i32, i32) {
    %c0_i32 = arith.constant 0 : i32
    %c0_i32_0 = arith.constant 0 : i32
    return %arg0, %arg1, %c0_i32 : i32, i32, i32
  }
  func.func @transform_21(%arg0: i32, %arg1: i32) -> (i32, i32, i32) {
    %c0_i32 = arith.constant 0 : i32
    %c0_i32_0 = arith.constant 0 : i32
    return %arg0, %arg1, %c0_i32 : i32, i32, i32
  }
  func.func @transform_22(%arg0: i32, %arg1: i32) -> (i32, i32, i32) {
    %c0_i32 = arith.constant 0 : i32
    %c0_i32_0 = arith.constant 0 : i32
    return %arg0, %arg1, %c0_i32 : i32, i32, i32
  }
  func.func @transform_23(%arg0: i32, %arg1: i32) -> (i32, i32, i32) {
    %c0_i32 = arith.constant 0 : i32
    %c0_i32_0 = arith.constant 0 : i32
    return %arg0, %arg1, %c0_i32 : i32, i32, i32
  }
}

</mosaic_0001>

<bundles_post_ra>
// kernel: _lambda_.1
= control target key start
LH: loop header
LB: loop body
LE: loop exit
PB: predicated region body
PF: predicated region fallthrough
CT: control target
= control target key end

     0   :  { %s11987_s24 = smov 0   ;;  %s11989_s25 = smov 0   ;;  %s14809_s0 = inlined_call_operand.vmem [shape: f32[2,128,4], index: 0, kind: input, shape index: {}]   ;;  %s14810_s1 = inlined_call_operand.vmem [shape: f32[2,128,4], index: 1, kind: input, shape index: {}]   ;;  %s14811_s2 = inlined_call_operand.vmem [shape: bf16[16,16], index: 2, kind: input, shape index: {}]   ;;  %s14812_s3 = inlined_call_operand.vmem [shape: bf16[16,16], index: 3, kind: input, shape index: {}]   ;;  %s14813_s4 = inlined_call_operand.vmem [shape: bf16[32,392], index: 4, kind: input, shape index: {}]   ;;  %s14814_s5 = inlined_call_operand.vmem [shape: bf16[4,32], index: 5, kind: input, shape index: {}]   ;;  %s14815_s6 = inlined_call_operand.vmem [shape: bf16[32,64], index: 6, kind: input, shape index: {}]   ;;  %s14816_s7 = inlined_call_operand.vmem [shape: bf16[32,32], index: 7, kind: input, shape index: {}]   ;;  %s14817_s8 = inlined_call_operand.vmem [shape: bf16[32,4], index: 8, kind: input, shape index: {}]   ;;  %s14818_s9 = inlined_call_operand.vmem [shape: bf16[4,512], index: 9, kind: input, shape index: {}]   ;;  %s14819_s10 = inlined_call_operand.vmem [shape: bf16[4,480], index: 10, kind: input, shape index: {}]   ;;  %s14820_s11 = inlined_call_operand.vmem [shape: bf16[32,160], index: 11, kind: input, shape index: {}]   ;;  %s14821_s12 = inlined_call_operand.vmem [shape: f32[1,4], index: 12, kind: input, shape index: {}]   ;;  %s14822_s13 = inlined_call_operand.vmem [shape: f32[1,32], index: 13, kind: input, shape index: {}]   ;;  %s14823_s14 = inlined_call_operand.vmem [shape: f32[1,32], index: 14, kind: input, shape index: {}]   ;;  %s14824_s15 = inlined_call_operand.vmem [shape: f32[1,32], index: 15, kind: input, shape index: {}]   ;;  %s14825_s16 = inlined_call_operand.vmem [shape: f32[1,4], index: 16, kind: input, shape index: {}]   ;;  %s14826_s17 = inlined_call_operand.vmem [shape: f32[1,64], index: 17, kind: input, shape index: {}]   ;;  %s14827_s18 = inlined_call_operand.vmem [shape: f32[1,32], index: 18, kind: input, shape index: {}]   ;;  %s14828_s19 = inlined_call_operand.<no memory space> [shape: f32[1,1], index: 19, kind: input, shape index: {}]   ;;  %s14829_s20 = inlined_call_operand.vmem [shape: f32[2,128,4], index: 20, kind: output, shape index: {0}]   ;;  %s14830_s21 = inlined_call_operand.vmem [shape: f32[2,128,4], index: 21, kind: output, shape index: {1}]   ;;  %s14831_s22 = inlined_call_operand.vmem [shape: f32[2,128,32], index: 22, kind: output, shape index: {2}]   ;;  %s14832_s23 = inlined_call_operand.vmem [shape: f32[2,128,32], index: 23, kind: output, shape index: {3}]  }
   0x1   :  { %14862 = sst [smem:[#allocation29_spill]] %s14809_s0  ;;  %v29_v0 = vstv %s14828_s19 }
   0x2   :  { %14863 = sst [smem:[#allocation30_spill]] %s14810_s1  ;;  %30 = vst [vmem:[#allocation4] sm:$0x1] %v29_v0 }
   0x3   :  { %14864 = sst [smem:[#allocation31_spill]] %s14811_s2 }
   0x4   :  { %14865 = sst [smem:[#allocation32_spill]] %s14812_s3 }
   0x5   :  { %14866 = sst [smem:[#allocation33_spill]] %s14813_s4 }
   0x6   :  { %14867 = sst [smem:[#allocation34_spill]] %s14814_s5  ;;  %s11991_s5 = smov 0  }
   0x7   :  { %14868 = sst [smem:[#allocation35_spill]] %s14815_s6 }
   0x8   :  { %14869 = sst [smem:[#allocation36_spill]] %s14816_s7 }
   0x9   :  { %14870 = sst [smem:[#allocation37_spill]] %s14818_s9 }
   0xa   :  { %14871 = sst [smem:[#allocation38_spill]] %s14819_s10 }
   0xb   :  { %14872 = sst [smem:[#allocation39_spill]] %s14829_s20 }
   0xc   :  { %14873 = sst [smem:[#allocation40_spill]] %s14830_s21 }
   0xd   :  { %14874 = sst [smem:[#allocation41_spill]] %s14831_s22 }
   0xe LB: > { %14875 = sst [smem:[#allocation5_spill]] %s11850_s25  ;;  %s48_s19 = sadd.s32 1, %s11850_s25  ;;  %s11854_s5 = sphi %s11991_s5, %s36_s5   ;;  %s11850_s25 = sphi %s11989_s25, %s14943_s25   ;;  %s11846_s24 = sphi %s11987_s24, %s14942_s24  }
   0xf   : > { %14876 = sst [smem:[#allocation6_spill]] %s11854_s5  ;;  %p10311_p0 = scmp.ge.s32.totalorder %s11854_s5, 1 }
  0x10   : > { %p50_p1 = scmp.ge.s32.totalorder %s48_s19, 2  ;;  %p690_p2 = scmp.lt.s32.totalorder %s11854_s5, 3 }
  0x12   : > { %s14945_s19 = smov (%p50_p1, %s48_s19), 0  ;;  %p691_p3 = pnand %p10311_p0, %p690_p2 }
  0x13   : > { %14877 = sst [smem:[#allocation7_spill]] %s14945_s19 }
  0x14   : > { %694 = sbr.rel (%p691_p3) target bundleno = 30909 (0x78bd), region = 100 }
  0x1b   : > { %s14878_s10 = sld [smem:[#allocation38_spill]]  ;;  %s14879_s9 = sld [smem:[#allocation37_spill]]  ;;  %v934_v3 = vlaneseq  ;;  %v11856_v4 = vmov 1983009808   ;;  %v14840_v6 = vmov 0   ;;  %vm863_vm0 = vcmask 261120  }
  0x1c   : > { %v932_v5 = vunpack.c.l.s4 %v11856_v4  ;;  %1130 = vmatprep.mubr.bf16.mxu1 %v14840_v6  ;;  %p799_p4 = scmp.lt.s32.totalorder %s11846_s24, 1  ;;  %1017 = vmatprep.mubr.bf16.mxu0 %v14840_v6  ;;  %vm972_vm1 = vcmask 1041408   ;;  %v14845_v11 = vmov 0.0   ;;  %s14880_s29 = sld [smem:[#allocation30_spill]]  ;;  %vm947_vm2 = vcmask 31744  }
  0x1d   : > { %v935_v7 = vshrl.u32 %v934_v3, 7  ;;  %11626 = vset.pattern.permute.xlu1 %v14840_v6  ;;  %11627 = vset.pattern.permute.xlu0 %v14840_v6  ;;  %864 = vst.msk [vmem:[#allocation2] sm:$0xff] %vm863_vm0, %v14845_v11  ;;  %865 = vst.msk [vmem:[#allocation2 + $0x8] sm:$0xff] %vm863_vm0, %v14845_v11  ;;  %s14881_s30 = sld [smem:[#allocation33_spill]]  ;;  %s14882_s28 = sld [smem:[#allocation34_spill]]  ;;  %vm11859_vm3 = vmmov 0  }
  0x1e   : > { %v933_v9 = vunpack.c.0.s8 %v932_v5  ;;  %s14947_s24 = smov (!%p799_p4, %s11846_s24), 1  ;;  %s14904_s26 = sld [smem:[#allocation29_spill]]  ;;  %vm1573_vm6 = vcmask 130048  }
  0x1f   : > { %s12025_s27 = sshll.u32 %s14947_s24, 7  ;;  %s14848_s6 = smov 64  }
  0x20   : > { %v12023_v12 = vsub.s32 %v933_v9, %v935_v7  ;;  %s14905_s20 = sld [smem:[#allocation39_spill]]  ;;  %s14906_s0 = smov 32  }
  0x21   : > { %v12008_v1 = vld [vmem:[%s14878_s10] sm:$0xff]  ;;  %s14852_s4 = smov 124   ;;  %s14909_s24 = sld [smem:[#allocation31_spill]] }
  0x22   : > { %v920_v2 = vld [vmem:[%s14879_s9] sm:$0xff]  ;;  %v1838_v10 = vcombine.high %v12008_v1, %v12008_v1  ;;  %s12031_s3 = scalar_lea.vmem %s14880_s29, %s12025_s27  ;;  %s14838_s29 = smov 32  }
  0x23   : > { %v930_v8 = vcombine.high %v920_v2, %v920_v2  ;;  %v937_v15 = vrot.slane %v920_v2, %v12023_v12  ;;  %v12039_v16 = vld [vmem:[%s12031_s3] sm:$0xff]  ;;  %v12042_v17 = vld [vmem:[%s12031_s3 + $0x8] sm:$0xff]  ;;  %v906_v26 = vld [vmem:[%s12031_s3 + $0x10] sm:$0xff]  ;;  %s14913_s10 = sld [smem:[#allocation36_spill]]  ;;  %s14915_s22 = sld [smem:[#allocation41_spill]] }
  0x24   : > { %v12035_v14 = vrot.slane %v1838_v10, %v12023_v12  ;;  %v12048_v20 = vld [vmem:[%s14881_s30 + $0xc] ss:$16 sps:$4 sm:$0xff]   ;;  %v921_v22 = vpack.c.bf16 %v12042_v17, %v12039_v16  ;;  %v12057_v24 = vld [vmem:[%s14881_s30 + $0x8] ss:$16 sps:$4 sm:$0xff]   ;;  %v908_v30 = vld [vmem:[%s12031_s3 + $0x20] sm:$0xff]  ;;  %s12245_s2 = scalar_lea.vmem %s14904_s26, %s12025_s27  ;;  %vm1281_vm4 = vcmp.gt.f32.partialorder %v12039_v16, 0.5 }
  0x25   : > { %v944_v13 = vrot.slane %v930_v8, %v12023_v12  ;;  %v945_v21 = vcombine.high %v937_v15, %v937_v15  ;;  %v974_v23 = vsel %vm972_vm1, %v937_v15, 0  ;;  %v12062_v25 = vld [vmem:[%s14881_s30 + $0x2c] ss:$16 sps:$4 sm:$0xff]   ;;  %v12071_v28 = vld [vmem:[%s14881_s30 + $0x28] ss:$16 sps:$4 sm:$0xff]   ;;  %v910_v33 = vld [vmem:[%s12031_s3 + $0x30] sm:$0xff] }
  0x26   : > { %v907_v27 = vld [vmem:[%s12031_s3 + $0x18] sm:$0xff]  ;;  %v909_v31 = vld [vmem:[%s12031_s3 + $0x28] sm:$0xff]  ;;  %v912_v36 = vld [vmem:[%s12031_s3 + $0x40] sm:$0xff]  ;;  %vm1282_vm5 = vcmp.gt.f32.partialorder %v12042_v17, 0.5  ;;  %s14907_s26 = sld [smem:[#allocation35_spill]]  ;;  %s14916_s21 = sld [smem:[#allocation40_spill]] }
  0x27   : > { %v946_v18 = vcombine.high %v944_v13, %v944_v13  ;;  %v980_v19 = vsel %vm972_vm1, %v944_v13, 0  ;;  %10324 = vmatprep.subr.msk.bf16.mxu0 %vm972_vm1, %v945_v21  ;;  %v922_v29 = vpack.c.bf16 %v907_v27, %v906_v26  ;;  %v923_v32 = vpack.c.bf16 %v909_v31, %v908_v30  ;;  %v911_v34 = vld [vmem:[%s12031_s3 + $0x38] sm:$0xff]  ;;  %v913_v37 = vld [vmem:[%s12031_s3 + $0x48] sm:$0xff]  ;;  %v914_v39 = vld [vmem:[%s12031_s3 + $0x50] sm:$0xff]  ;;  %s14910_s1 = smov %s14909_s24  ;;  %s14918_s25 = smov 96  }
  0x28   : > { %986 = vmatpush1.bf16.msra.mxu0 %v974_v23  ;;  %v924_v35 = vpack.c.bf16 %v911_v34, %v910_v33  ;;  %v925_v38 = vpack.c.bf16 %v913_v37, %v912_v36  ;;  %v915_v40 = vld [vmem:[%s12031_s3 + $0x58] sm:$0xff]  ;;  %v916_v42 = vld [vmem:[%s12031_s3 + $0x60] sm:$0xff]  ;;  %v917_v43 = vld [vmem:[%s12031_s3 + $0x68] sm:$0xff] }
  0x29   : > { %10333 = vmatprep.subr.msk.bf16.mxu1 %vm972_vm1, %v946_v18  ;;  %v926_v41 = vpack.c.bf16 %v915_v40, %v914_v39  ;;  %v927_v44 = vpack.c.bf16 %v917_v43, %v916_v42  ;;  %v918_v45 = vld [vmem:[%s12031_s3 + $0x70] sm:$0xff]  ;;  %v919_v46 = vld [vmem:[%s12031_s3 + $0x78] sm:$0xff]  ;;  %v12119_v48 = vld [vmem:[#allocation2] sm:$0xff] }
  0x2a   : > { %1099 = vmatpush1.bf16.msra.mxu1 %v980_v19  ;;  %v928_v47 = vpack.c.bf16 %v919_v46, %v918_v45  ;;  %v12121_v49 = vld [vmem:[#allocation2 + $0x8] sm:$0xff]  ;;  %v12131_v51 = vld [vmem:[%s14881_s30 + $0x4] ss:$16 sps:$4 sm:$0xff]   ;;  %v12137_v52 = vld [vmem:[%s14881_s30] ss:$16 sps:$4 sm:$0xff]  }
  0x2b   : > { %1379 = vmatprep.subr.bf16.mxu1 %v12048_v20  ;;  %10325 = vmatmul.mubr.msk.bf16.vlgmr.msra.gmra.mrb[0].mxu0 %vm947_vm2, %v921_v22  ;;  %v1291_v50 = vpack.c.bf16 %v12121_v49, %v12119_v48  ;;  %v12143_v53 = vld [vmem:[%s14881_s30 + $0x24] ss:$16 sps:$4 sm:$0xff]   ;;  %v12148_v54 = vld [vmem:[%s14881_s30 + $0x20] ss:$16 sps:$4 sm:$0xff]   ;;  %v12263_v42 = vld [vmem:[%s12245_s2 + $0x8] sm:$0xff] }
  0x2c   : > { %1027 = vmatprep.mubr.bf16.mxu0 %v14840_v6  ;;  %1336 = vmatprep.subr.bf16.mxu0 %v12131_v51  ;;  %v878_v55 = vld [vmem:[%s14882_s28] sm:$0x3] }
  0x2d   : > { %10334 = vmatmul.mubr.msk.bf16.vlgmr.msra.gmra.mrb[0].mxu1 %vm947_vm2, %v921_v22  ;;  %1337 = vmatpush1.bf16.msra.mxu0 %v12137_v52  ;;  %v12158_v56 = vsel %vm972_vm1, %v878_v55, 0  ;;  %v12237_v36 = vld [vmem:[%s14821_s12] ss:$0 sm:$0xff] }
  0x2e   : > { %1380 = vmatpush1.bf16.msra.mxu1 %v12057_v24  ;;  %1140 = vmatprep.mubr.bf16.mxu1 %v14840_v6  ;;  %v12288_v55 = vld [vmem:[%s14907_s26] sm:$0xff]  }
  0x2f   : > { %1381 = vmatprep.subr.bf16.mxu1 %v12062_v25  ;;  %1338 = vmatprep.subr.bf16.mxu0 %v12143_v53 }
  0x31   : > { %1339 = vmatpush1.bf16.msra.mxu0 %v12148_v54 }
  0x32   : > { %1382 = vmatpush1.bf16.msra.mxu1 %v12071_v28  ;;  %10810 = vmatprep.subr.bf16.mxu0 %v14845_v11 }
  0x33   : > { %10816 = vmatprep.subr.bf16.mxu1 %v14845_v11  ;;  %10326 = vmatmul.mubr.msk.bf16.gmra.mrb[4].mxu0 %vm947_vm2, %v922_v29 }
  0x34   : > { %1037 = vmatprep.mubr.bf16.mxu0 %v14840_v6 }
  0x35   : > { %10335 = vmatmul.mubr.msk.bf16.gmra.mrb[4].mxu1 %vm947_vm2, %v922_v29 }
  0x36   : > { %1150 = vmatprep.mubr.bf16.mxu1 %v14840_v6 }
  0x3b   : > { %10327 = vmatmul.mubr.msk.bf16.gmra.mrb[8].mxu0 %vm947_vm2, %v923_v32 }
  0x3c   : > { %1047 = vmatprep.mubr.bf16.mxu0 %v14840_v6 }
  0x3d   : > { %10336 = vmatmul.mubr.msk.bf16.gmra.mrb[8].mxu1 %vm947_vm2, %v923_v32 }
  0x3e   : > { %1160 = vmatprep.mubr.bf16.mxu1 %v14840_v6 }
  0x43   : > { %10328 = vmatmul.mubr.msk.bf16.gmra.mrb[12].mxu0 %vm947_vm2, %v924_v35 }
  0x44   : > { %1057 = vmatprep.mubr.bf16.mxu0 %v14840_v6 }
  0x45   : > { %10337 = vmatmul.mubr.msk.bf16.gmra.mrb[12].mxu1 %vm947_vm2, %v924_v35 }
  0x46   : > { %1170 = vmatprep.mubr.bf16.mxu1 %v14840_v6 }
  0x4b   : > { %10329 = vmatmul.mubr.msk.bf16.gmra.mrb[16].mxu0 %vm947_vm2, %v925_v38 }
  0x4c   : > { %1067 = vmatprep.mubr.bf16.mxu0 %v14840_v6 }
  0x4d   : > { %10338 = vmatmul.mubr.msk.bf16.gmra.mrb[16].mxu1 %vm947_vm2, %v925_v38 }
  0x4e   : > { %1180 = vmatprep.mubr.bf16.mxu1 %v14840_v6 }
  0x53   : > { %10330 = vmatmul.mubr.msk.bf16.gmra.mrb[20].mxu0 %vm947_vm2, %v926_v41 }
  0x54   : > { %1077 = vmatprep.mubr.bf16.mxu0 %v14840_v6 }
  0x55   : > { %10339 = vmatmul.mubr.msk.bf16.gmra.mrb[20].mxu1 %vm947_vm2, %v926_v41  ;;  %v12259_v41 = vld [vmem:[%s12245_s2] sm:$0xff] }
  0x56   : > { %1190 = vmatprep.mubr.bf16.mxu1 %v14840_v6 }
  0x5b   : > { %10331 = vmatmul.mubr.msk.bf16.gmra.mrb[24].mxu0 %vm947_vm2, %v927_v44 }
  0x5c   : > { %1087 = vmatprep.mubr.bf16.mxu0 %v14840_v6 }
  0x5d   : > { %10340 = vmatmul.mubr.msk.bf16.gmra.mrb[24].mxu1 %vm947_vm2, %v927_v44 }
  0x5e   : > { %1200 = vmatprep.mubr.bf16.mxu1 %v14840_v6 }
  0x63   : > { %10332 = vmatmul.mubr.msk.bf16.gmra.mrb[28].mxu0 %vm947_vm2, %v928_v47 }
  0x64   : > { %1368 = vmatprep.mubr.bf16.mxu0 %v14840_v6 }
  0x65   : > { %10341 = vmatmul.mubr.msk.bf16.gmra.mrb[28].mxu1 %vm947_vm2, %v928_v47  ;;  %v10367_v47 = vld [vmem:[#allocation4] ss:$0 sm:$0xff] }
  0x66   : > { %1411 = vmatprep.mubr.bf16.mxu1 %v14840_v6 }
  0x6b   : > { %10350 = vmatmul.mubr.msk.bf16.vlgmr.msra.gmra.mrb[0].mxu0 %vm863_vm0, %v1291_v50 }
  0x6c   : > { %10811 = vmatpush3.bf16.msra.mxu0 %v12158_v56  ;;  %10812 = vmatprep.mubr.msk.bf16.mxu0 %vm11859_vm3, %v14845_v11 }
  0x6d   : > { %10351 = vmatmul.mubr.msk.bf16.vlgmr.msra.gmra.mrb[32].mxu1 %vm863_vm0, %v1291_v50  ;;  %10824 = vmatprep.subr.bf16.mxu0 %v14845_v11 }
  0x6e   : > { %10820 = vmatprep.mubr.msk.bf16.mxu1 %vm11859_vm3, %v14845_v11  ;;  %10817 = vmatpush3.bf16.msra.mxu1 %v12288_v55 }
  0x6f   : > { %10818 = vmatprep.subr.bf16.mxu1 %v14845_v11 }
 0x100   : > { %v12166_v57 = vpop.f32.mrb[0].mxu1 }
 0x101   : > { %v12168_v58 = vpop.f32.mrb[1].mxu1 }
 0x102   : > { %1435 = vrot.lane.b32.xlu0 %v12168_v58, %s14838_s29  ;;  %v12172_v59 = vpop.f32.mrb[2].mxu1 }
 0x103   : > { %v12174_v60 = vpop.f32.mrb[3].mxu1 }
 0x106   : > { %1437 = vrot.lane.b32.xlu0 %v12174_v60, %s14838_s29  ;;  %s12253_s29 = scalar_lea.vmem %s14905_s20, %s12025_s27  ;;  %s12423_s20 = scalar_lea.vmem %s14916_s21, %s12025_s27 }
 0x107   : > { %s12776_s21 = scalar_lea.vmem %s14832_s23, %s12025_s27 }
 0x108   : > { %v12178_v61 = vpop.f32.mrb[4].mxu1 }
 0x109   : > { %v12180_v62 = vpop.f32.mrb[5].mxu1 }
 0x10a   : > { %v12182_v63 = vpop.f32.mrb[6].mxu1 }
 0x10b   : > { %v12184_v0 = vpop.f32.mrb[7].mxu1 }
 0x110   : > { %v12186_v2 = vpop.f32.mrb[8].mxu1 }
 0x111   : > { %v12188_v3 = vpop.f32.mrb[9].mxu1 }
 0x112   : > { %v12190_v4 = vpop.f32.mrb[10].mxu1 }
 0x113   : > { %14883 = vst [vmem:[#allocation8_spill] sm:$0xff] %v12190_v4  ;;  %v12192_v5 = vpop.f32.mrb[11].mxu1 }
 0x118   : > { %v12194_v7 = vpop.f32.mrb[12].mxu1 }
 0x119   : > { %14884 = vst [vmem:[#allocation9_spill] sm:$0xff] %v12194_v7  ;;  %v12196_v8 = vpop.f32.mrb[13].mxu1 }
 0x11a   : > { %14885 = vst [vmem:[#allocation10_spill] sm:$0xff] %v12196_v8  ;;  %v12198_v9 = vpop.f32.mrb[14].mxu1 }
 0x11b   : > { %14886 = vst [vmem:[#allocation11_spill] sm:$0xff] %v12198_v9  ;;  %v12200_v10 = vpop.f32.mrb[15].mxu1 }
 0x11c   : > { %14887 = vst [vmem:[#allocation12_spill] sm:$0xff] %v12200_v10 }
 0x120   : > { %v12202_v13 = vpop.f32.mrb[16].mxu1 }
 0x121   : > { %14888 = vst [vmem:[#allocation13_spill] sm:$0xff] %v12202_v13  ;;  %v12204_v15 = vpop.f32.mrb[17].mxu1 }
 0x122   : > { %14889 = vst [vmem:[#allocation14_spill] sm:$0xff] %v12204_v15  ;;  %v12206_v18 = vpop.f32.mrb[18].mxu1 }
 0x123   : > { %14890 = vst [vmem:[#allocation15_spill] sm:$0xff] %v12206_v18  ;;  %v12208_v19 = vpop.f32.mrb[19].mxu1 }
 0x124   : > { %14891 = vst [vmem:[#allocation16_spill] sm:$0xff] %v12208_v19 }
 0x128   : > { %v12210_v21 = vpop.f32.mrb[20].mxu1 }
 0x129   : > { %14892 = vst [vmem:[#allocation17_spill] sm:$0xff] %v12210_v21  ;;  %v12212_v22 = vpop.f32.mrb[21].mxu1 }
 0x12a   : > { %14893 = vst [vmem:[#allocation18_spill] sm:$0xff] %v12212_v22  ;;  %v12214_v23 = vpop.f32.mrb[22].mxu1 }
 0x12b   : > { %14894 = vst [vmem:[#allocation19_spill] sm:$0xff] %v12214_v23  ;;  %v12216_v26 = vpop.f32.mrb[23].mxu1 }
 0x12c   : > { %14895 = vst [vmem:[#allocation20_spill] sm:$0xff] %v12216_v26 }
 0x130   : > { %v12218_v27 = vpop.f32.mrb[24].mxu1 }
 0x131   : > { %14896 = vst [vmem:[#allocation21_spill] sm:$0xff] %v12218_v27  ;;  %v12220_v29 = vpop.f32.mrb[25].mxu1 }
 0x132   : > { %14897 = vst [vmem:[#allocation22_spill] sm:$0xff] %v12220_v29  ;;  %v12222_v30 = vpop.f32.mrb[26].mxu1 }
 0x133   : > { %14898 = vst [vmem:[#allocation23_spill] sm:$0xff] %v12222_v30  ;;  %v12224_v31 = vpop.f32.mrb[27].mxu1  ;;  %v12302_v30 = vld [vmem:[%s14822_s13] ss:$0 sm:$0xff] }
 0x134   : > { %14899 = vst [vmem:[#allocation24_spill] sm:$0xff] %v12224_v31 }
 0x138   : > { %v12226_v32 = vpop.f32.mrb[28].mxu1 }
 0x139   : > { %14900 = vst [vmem:[#allocation25_spill] sm:$0xff] %v12226_v32  ;;  %v12228_v33 = vpop.f32.mrb[29].mxu1 }
 0x13a   : > { %14901 = vst [vmem:[#allocation26_spill] sm:$0xff] %v12228_v33  ;;  %v12230_v34 = vpop.f32.mrb[30].mxu1 }
 0x13b   : > { %14902 = vst [vmem:[#allocation27_spill] sm:$0xff] %v12230_v34  ;;  %v12232_v35 = vpop.f32.mrb[31].mxu1 }
 0x13c   : > { %14903 = vst [vmem:[#allocation28_spill] sm:$0xff] %v12232_v35 }
 0x140   : > { %v12239_v37 = vpop.f32.mrb[32].mxu1 }
 0x141   : > { %1490 = vrot.lane.b32.xlu1 %v12239_v37, %s14848_s6  ;;  %v1415_v38 = vpop.f32.mrb[33].mxu1 }
 0x142   : > { %v1428_v39 = vadd.f32 %v12237_v36, %v1415_v38  ;;  %v12256_v40 = vpop.f32.mrb[34].mxu1 }
 0x143   : > { %v1419_v43 = vpop.f32.mrb[35].mxu1 }
 0x144   : > { %2537 = vst.msk [vmem:[%s12253_s29] sm:$0xff] %vm947_vm2, %v1428_v39  ;;  %v1429_v44 = vadd.f32 %v12237_v36, %v1419_v43  ;;  %v1430_v45 = vsel %vm1281_vm4, %v12259_v41, %v1428_v39  ;;  %v12295_v39 = vld [vmem:[%s14907_s26 + $0x8] sm:$0xff]  }
 0x145   : > { %1492 = vrot.lane.b32.xlu1 %v12256_v40, %s14848_s6  ;;  %10819 = vmatpush3.bf16.msra.mxu1 %v12295_v39  ;;  %s14850_s6 = smov 96  }
 0x146   : > { %v1431_v46 = vsel %vm1282_vm5, %v12263_v42, %v1429_v44  ;;  %2538 = vst.msk [vmem:[%s12253_s29 + $0x8] sm:$0xff] %vm947_vm2, %v1429_v44  ;;  %10830 = vmatprep.subr.bf16.mxu1 %v14845_v11 }
 0x147   : > { %v1432_v50 = vpack.c.bf16 %v1431_v46, %v1430_v45 }
 0x149   : > { %1754 = vperm.xlu1 %11626, %v10367_v47   ;;  %10813 = vmatmul.mubr.msk.bf16.vlgmr.msra.gmra.mrb[32].mxu0 %vm947_vm2, %v1432_v50 }
 0x14a   : > { %10826 = vmatprep.mubr.msk.bf16.mxu0 %vm11859_vm3, %v14845_v11 }
 0x14d   : > { %1690 = vrot.lane.b32.xlu1 %v12256_v40, %s14906_s0 }
 0x151   : > { %1778 = vrot.lane.b32.xlu1 %v1419_v43, %s14852_s4 }
 0x174   : > { %v1436_v44 = vpop.permute.xlu0 %1435 }
 0x178   : > { %v1438_v50 = vpop.permute.xlu0 %1437 }
 0x1b3   : > { %v1491_v43 = vpop.permute.xlu1 %1490 }
 0x1b7   : > { %v1493_v33 = vpop.permute.xlu1 %1492 }
 0x21c   : > { %v1481_v45 = vpop.f32.mrb[32].mxu0 }
 0x21d   : > { %v1482_v46 = vadd.f32 %v1481_v45, %v1436_v44  ;;  %v10814_v47 = vpop.f32.mrb[33].mxu0  ;;  %v14908_v44 = vmov 0.0  }
 0x21e   : > { %v1484_v6 = vpop.f32.mrb[34].mxu0  ;;  %v12312_v47 = vld [vmem:[%s14909_s24] sm:$0xff]   ;;  %s14911_s24 = sld [smem:[#allocation32_spill]] }
 0x21f   : > { %v1496_v34 = vadd.f32 %v1491_v43, %v1482_v46  ;;  %v1485_v32 = vadd.f32 %v1484_v6, %v1438_v50  ;;  %v10815_v35 = vpop.f32.mrb[35].mxu0 }
 0x221   : > { %v1497_v27 = vadd.f32 %v1493_v33, %v1485_v32  ;;  %v1504_v31 = vadd.f32 %v12302_v30, %v1496_v34  ;;  %v12347_v33 = vld [vmem:[%s14913_s10 + $0x8] sm:$0xff]  }
 0x223   : > { %v1505_v11 = vadd.f32 %v12302_v30, %v1497_v27 }
 0x224   : > { %s14912_s9 = smov %s14911_s24  ;;  %v12326_v27 = vld [vmem:[%s14911_s24] sm:$0xff]   ;;  %s14919_s24 = smov 124  }
 0x225   : > { %v1506_v29 = vpack.c.bf16 %v1505_v11, %v1504_v31  ;;  %v12338_v31 = vld [vmem:[%s14913_s10] sm:$0xff]  }
 0x227   : > { %10821 = vmatmul.mubr.msk.bf16.vlgmr.msra.gmra.mrb[36].mxu1 %vm863_vm0, %v1506_v29  ;;  %v1845_v29 = vrot.slane %v12008_v1, %v12023_v12 }
 0x228   : > { %10832 = vmatprep.mubr.msk.bf16.mxu1 %vm11859_vm3, %v14908_v44 }
 0x229   : > { %v12341_v32 = vcombine.high %v1845_v29, %v1845_v29 }
 0x2fa   : > { %v1556_v43 = vpop.f32.mrb[36].mxu1 }
 0x2fb   : > { %v10822_v6 = vpop.f32.mrb[37].mxu1 }
 0x2fc   : > { %v1559_v35 = vpop.f32.mrb[38].mxu1 }
 0x2fd   : > { %v1563_v45 = vpack.c.bf16 %v1559_v35, %v1556_v43  ;;  %v10823_v46 = vpop.f32.mrb[39].mxu1  ;;  %v12355_v35 = vld [vmem:[%s14823_s14] ss:$0 sm:$0xff] }
 0x2ff   : > { %1570 = vrot.lane.b32.xlu0 %v1563_v45, %s14850_s6  ;;  %10831 = vmatpush3.bf16.msra.mxu1 %v1563_v45  ;;  %s12392_s6 = scalar_lea.vmem %s14915_s22, %s12025_s27 }
 0x300   : > { %10844 = vmatprep.subr.bf16.mxu1 %v14908_v44 }
 0x302   : > { %10833 = vmatmul.mubr.msk.bf16.vlgmr.msra.gmra.mrb[40].mxu1 %vm1573_vm6, %v12312_v47 }
 0x303   : > { %1688 = vrot.lane.b32.xlu0 %v12239_v37, %s14906_s0  ;;  %10848 = vmatprep.mubr.msk.bf16.mxu1 %vm11859_vm3, %v14908_v44 }
 0x307   : > { %1776 = vrot.lane.b32.xlu0 %v1415_v38, %s14852_s4  ;;  %s14917_s4 = smov 64  }
 0x371   : > { %v1571_v11 = vpop.permute.xlu0 %1570 }
 0x372   : > { %10825 = vmatpush3.bf16.msra.mxu0 %v1571_v11 }
 0x373   : > { %10836 = vmatprep.subr.bf16.mxu0 %v14908_v44 }
 0x375   : > { %10827 = vmatmul.mubr.msk.bf16.vlgmr.msra.gmra.mrb[36].mxu0 %vm1573_vm6, %v12326_v27 }
 0x376   : > { %10840 = vmatprep.mubr.msk.bf16.mxu0 %vm11859_vm3, %v14908_v44  ;;  %10837 = vmatpush3.bf16.msra.mxu0 %v12338_v31 }
 0x377   : > { %10838 = vmatprep.subr.bf16.mxu0 %v14908_v44 }
 0x37a   : > { %10839 = vmatpush3.bf16.msra.mxu0 %v12347_v33 }
 0x37b   : > { %10372 = vmatprep.subr.msk.bf16.mxu0 %vm972_vm1, %v12341_v32 }
 0x3d5   : > { %v1660_v1 = vpop.f32.mrb[40].mxu1 }
 0x3d6   : > { %v10834_v12 = vpop.f32.mrb[41].mxu1 }
 0x3d7   : > { %v1663_v34 = vpop.f32.mrb[42].mxu1  ;;  %v14914_v12 = vmov 0  }
 0x3d8   : > { %v10835_v38 = vpop.f32.mrb[43].mxu1 }
 0x3d9   : > { %v12385_v38 = vld [vmem:[%s14824_s15] ss:$0 sm:$0xff] }
 0x448   : > { %v1611_v50 = vpop.f32.mrb[36].mxu0 }
 0x449   : > { %v1661_v43 = vadd.f32 %v1660_v1, %v1611_v50  ;;  %v10828_v6 = vpop.f32.mrb[37].mxu0  ;;  %v12364_v1 = vld [vmem:[%s14817_s8] sm:$0xff]  }
 0x44a   : > { %v1614_v45 = vpop.f32.mrb[38].mxu0  ;;  %10845 = vmatpush3.bf16.msra.mxu1 %v12364_v1 }
 0x44b   : > { %v1664_v46 = vadd.f32 %v1663_v34, %v1614_v45  ;;  %v10829_v11 = vpop.f32.mrb[39].mxu0  ;;  %v1673_v23 = vadd.f32 %v12355_v35, %v1661_v43  ;;  %v12369_v34 = vcombine.high %v12035_v14, %v12035_v14  ;;  %10846 = vmatprep.subr.bf16.mxu1 %v14908_v44 }
 0x44d   : > { %v1674_v21 = vadd.f32 %v12355_v35, %v1664_v46 }
 0x44f   : > { %v1675_v26 = vpack.c.bf16 %v1674_v21, %v1673_v23  ;;  %v12375_v21 = vld [vmem:[%s14817_s8 + $0x8] sm:$0xff]   ;;  %v12380_v23 = vpop.permute.xlu1 %1754 }
 0x450   : > { %10847 = vmatpush3.bf16.msra.mxu1 %v12375_v21 }
 0x451   : > { %10841 = vmatmul.mubr.msk.bf16.vlgmr.msra.gmra.mrb[40].mxu0 %vm863_vm0, %v1675_v26  ;;  %10374 = vmatprep.subr.msk.bf16.mxu1 %vm972_vm1, %v12369_v34  ;;  %v1689_v26 = vpop.permute.xlu0 %1688 }
 0x452   : > { %1902 = vmatprep.mubr.bf16.mxu0 %v14914_v12 }
 0x453   : > { %v1691_v45 = vpop.permute.xlu1 %1690 }
 0x524   : > { %v1731_v50 = vpop.f32.mrb[40].mxu0 }
 0x525   : > { %v1732_v43 = vadd.f32 %v1731_v50, %v1689_v26  ;;  %v10842_v6 = vpop.f32.mrb[41].mxu0 }
 0x526   : > { %v1734_v46 = vpop.f32.mrb[42].mxu0  ;;  %v12404_v6 = vsel %vm972_vm1, %v1845_v29, 0 }
 0x527   : > { %v1744_v11 = vadd.f32 %v12385_v38, %v1732_v43  ;;  %v1735_v22 = vadd.f32 %v1734_v46, %v1691_v45  ;;  %v10843_v18 = vpop.f32.mrb[43].mxu0  ;;  %1871 = vmatpush1.bf16.msra.mxu0 %v12404_v6 }
 0x528   : > { %10852 = vmatprep.subr.bf16.mxu0 %v14908_v44 }
 0x529   : > { %vm1746_vm7 = vcmp.gt.f32.partialorder %v1744_v11, 0.0  ;;  %v1757_v13 = vmul.f32 %v12380_v23, %v1744_v11  ;;  %v1745_v19 = vadd.f32 %v12385_v38, %v1735_v22  ;;  %v12417_v22 = vld [vmem:[%s14825_s16] ss:$0 sm:$0xff] }
 0x52b   : > { %v1759_v26 = vsel %vm1746_vm7, %v1744_v11, %v1757_v13  ;;  %vm1747_vm8 = vcmp.gt.f32.partialorder %v1745_v19, 0.0  ;;  %v1758_v50 = vmul.f32 %v12380_v23, %v1745_v19  ;;  %v12408_v13 = vsel %vm972_vm1, %v12035_v14, 0  ;;  %v1779_v11 = vpop.permute.xlu1 %1778 }
 0x52c   : > { %2541 = vst.msk [vmem:[%s12392_s6] sm:$0xff] %vm863_vm0, %v1759_v26 }
 0x52d   : > { %v1760_v43 = vsel %vm1747_vm8, %v1745_v19, %v1758_v50  ;;  %v1777_v19 = vpop.permute.xlu0 %1776 }
 0x52e   : > { %v1761_v18 = vpack.c.bf16 %v1760_v43, %v1759_v26  ;;  %2542 = vst.msk [vmem:[%s12392_s6 + $0x8] sm:$0xff] %vm863_vm0, %v1760_v43 }
 0x530   : > { %10849 = vmatmul.mubr.msk.bf16.vlgmr.msra.gmra.mrb[44].mxu1 %vm863_vm0, %v1761_v18 }
 0x531   : > { %1945 = vmatprep.mubr.bf16.mxu1 %v14914_v12  ;;  %1914 = vmatpush1.bf16.msra.mxu1 %v12408_v13 }
 0x532   : > { %10858 = vmatprep.subr.bf16.mxu1 %v14908_v44 }
 0x603   : > { %v1819_v29 = vpop.f32.mrb[44].mxu1 }
 0x604   : > { %v1820_v45 = vadd.f32 %v1819_v29, %v1777_v19  ;;  %v10850_v46 = vpop.f32.mrb[45].mxu1 }
 0x605   : > { %v1822_v14 = vpop.f32.mrb[46].mxu1 }
 0x606   : > { %v1832_v26 = vadd.f32 %v12417_v22, %v1820_v45  ;;  %v1823_v50 = vadd.f32 %v1822_v14, %v1779_v11  ;;  %v10851_v43 = vpop.f32.mrb[47].mxu1 }
 0x608   : > { %2539 = vst.msk [vmem:[%s12423_s20] sm:$0xff] %vm947_vm2, %v1832_v26  ;;  %v1833_v18 = vadd.f32 %v12417_v22, %v1823_v50  ;;  %v1834_v19 = vsel %vm1281_vm4, %v12259_v41, %v1832_v26 }
 0x60a   : > { %v1835_v29 = vsel %vm1282_vm5, %v12263_v42, %v1833_v18  ;;  %2540 = vst.msk [vmem:[%s12423_s20 + $0x8] sm:$0xff] %vm947_vm2, %v1833_v18 }
 0x60b   : > { %v1836_v46 = vpack.c.bf16 %v1835_v29, %v1834_v19 }
 0x60d   : > { %10373 = vmatmul.mubr.msk.bf16.vlgmr.msra.gmra.mrb[0].mxu0 %vm947_vm2, %v1836_v46  ;;  %10375 = vmatmul.mubr.msk.bf16.vlgmr.msra.gmra.mrb[48].mxu1 %vm947_vm2, %v1836_v46 }
 0x60e   : > { %10854 = vmatprep.mubr.msk.bf16.mxu0 %vm11859_vm3, %v14908_v44  ;;  %10860 = vmatprep.mubr.msk.bf16.mxu1 %vm11859_vm3, %v14908_v44 }
 0x6e0   : > { %v12443_v45 = vpop.f32.mrb[0].mxu0  ;;  %v1947_v16 = vpop.f32.mrb[48].mxu1 }
 0x6e1   : > { %v12446_v41 = vadd.f32 %v1947_v16, %v12166_v57  ;;  %v1906_v17 = vpop.f32.mrb[1].mxu0  ;;  %v1949_v42 = vpop.f32.mrb[49].mxu1 }
 0x6e2   : > { %v12449_v11 = vadd.f32 %v1949_v42, %v12168_v58  ;;  %v12451_v14 = vpop.f32.mrb[2].mxu0  ;;  %v1951_v26 = vpop.f32.mrb[50].mxu1 }
 0x6e3   : > { %v12454_v50 = vadd.f32 %v1951_v26, %v12172_v59  ;;  %v1910_v43 = vpop.f32.mrb[3].mxu0  ;;  %v1953_v18 = vpop.f32.mrb[51].mxu1  ;;  %v1966_v57 = vadd.f32 %v12446_v41, %v12239_v37 }
 0x6e4   : > { %v1968_v19 = vpack.c.bf16 %v1910_v43, %v1906_v17  ;;  %v12457_v29 = vadd.f32 %v1953_v18, %v12174_v60 }
 0x6e5   : > { %v1967_v46 = vadd.f32 %v12454_v50, %v12256_v40 }
 0x6e6   : > { %10853 = vmatpush3.bf16.msra.mxu0 %v1968_v19 }
 0x6e7   : > { %10864 = vmatprep.subr.bf16.mxu0 %v14908_v44  ;;  %v2068_v58 = vpack.c.bf16 %v1967_v46, %v1966_v57 }
 0x6e9   : > { %10855 = vmatmul.mubr.msk.bf16.vlgmr.msra.gmra.mrb[44].mxu0 %vm1573_vm6, %v12312_v47 }
 0x6ea   : > { %10865 = vmatpush3.bf16.msra.mxu0 %v2068_v58  ;;  %10866 = vmatprep.mubr.msk.bf16.mxu0 %vm11859_vm3, %v14908_v44 }
 0x6f1   : > { %10867 = vmatmul.mubr.msk.bf16.vlgmr.msra.gmra.mrb[48].mxu0 %vm1573_vm6, %v12326_v27 }
 0x6f2   : > { %2246 = vmatprep.mubr.bf16.mxu0 %v14914_v12 }
 0x7bc   : > { %v2003_v59 = vpop.f32.mrb[44].mxu0 }
 0x7bd   : > { %2012 = vrot.lane.b32.xlu0 %v2003_v59, %s14917_s4  ;;  %v10856_v60 = vpop.f32.mrb[45].mxu0 }
 0x7be   : > { %v2006_v37 = vpop.f32.mrb[46].mxu0 }
 0x7bf   : > { %2014 = vrot.lane.b32.xlu1 %v2006_v37, %s14917_s4  ;;  %v10857_v40 = vpop.f32.mrb[47].mxu0 }
 0x7c4   : > { %v2103_v16 = vpop.f32.mrb[48].mxu0 }
 0x7c5   : > { %2112 = vrot.lane.b32.xlu0 %v2103_v16, %s14917_s4  ;;  %v10868_v42 = vpop.f32.mrb[49].mxu0 }
 0x7c6   : > { %v2106_v26 = vpop.f32.mrb[50].mxu0 }
 0x7c7   : > { %2114 = vrot.lane.b32.xlu1 %v2106_v26, %s14917_s4  ;;  %v10869_v18 = vpop.f32.mrb[51].mxu0 }
 0x82f   : > { %v2013_v19 = vpop.permute.xlu0 %2012 }
 0x830   : > { %v2018_v46 = vadd.f32 %v2013_v19, %v12443_v45 }
 0x831   : > { %v2015_v57 = vpop.permute.xlu1 %2014 }
 0x832   : > { %v2019_v58 = vadd.f32 %v2015_v57, %v12451_v14 }
 0x834   : > { %v2020_v59 = vpack.c.bf16 %v2019_v58, %v2018_v46 }
 0x836   : > { %2022 = vrot.lane.b32.xlu0 %v2020_v59, %s14917_s4  ;;  %v12519_v59 = vld [vmem:[%s14826_s17] ss:$0 sm:$0xff] }
 0x837   : > { %v2113_v60 = vpop.permute.xlu0 %2112 }
 0x838   : > { %v2118_v40 = vadd.f32 %v2113_v60, %v1906_v17  ;;  %v12502_v17 = vld [vmem:[%s14820_s11 + $0x14] ss:$8 sps:$4 sm:$0xff]  }
 0x839   : > { %v2115_v37 = vpop.permute.xlu1 %2114 }
 0x83a   : > { %v2119_v15 = vadd.f32 %v2115_v37, %v1910_v43  ;;  %v12509_v43 = vld [vmem:[%s14820_s11 + $0x10] ss:$8 sps:$4 sm:$0xff]  }
 0x83c   : > { %v2120_v9 = vpack.c.bf16 %v2119_v15, %v2118_v40  ;;  %v12497_v15 = vld [vmem:[%s14820_s11] ss:$8 sps:$4 sm:$0xff]  }
 0x83e   : > { %2122 = vrot.lane.b32.xlu1 %v2120_v9, %s14917_s4  ;;  %v12492_v9 = vld [vmem:[%s14820_s11 + $0x4] ss:$8 sps:$4 sm:$0xff]  }
 0x83f   : > { %2214 = vmatprep.subr.bf16.mxu0 %v12492_v9 }
 0x840   : > { %2215 = vmatpush1.bf16.msra.mxu0 %v12497_v15 }
 0x841   : > { %2216 = vmatprep.subr.bf16.mxu0 %v12502_v17 }
 0x844   : > { %2217 = vmatpush1.bf16.msra.mxu0 %v12509_v43 }
 0x845   : > { %10882 = vmatprep.subr.bf16.mxu0 %v14908_v44 }
 0x8a8   : > { %v2023_v16 = vpop.permute.xlu0 %2022 }
 0x8a9   : > { %10859 = vmatpush3.bf16.msra.mxu1 %v2023_v16 }
 0x8aa   : > { %10870 = vmatprep.subr.bf16.mxu1 %v14908_v44 }
 0x8ac   : > { %10861 = vmatmul.mubr.msk.bf16.vlgmr.msra.gmra.mrb[52].mxu1 %vm1573_vm6, %v12312_v47 }
 0x8ad   : > { %10872 = vmatprep.mubr.msk.bf16.mxu1 %vm11859_vm3, %v14908_v44 }
 0x8b0   : > { %v2123_v42 = vpop.permute.xlu1 %2122 }
 0x8b1   : > { %10871 = vmatpush3.bf16.msra.mxu1 %v2123_v42 }
 0x8b2   : > { %10876 = vmatprep.subr.bf16.mxu1 %v14908_v44 }
 0x8b4   : > { %10873 = vmatmul.mubr.msk.bf16.vlgmr.msra.gmra.mrb[56].mxu1 %vm1573_vm6, %v12326_v27 }
 0x8b5   : > { %10878 = vmatprep.mubr.msk.bf16.mxu1 %vm11859_vm3, %v14908_v44 }
 0x97f   : > { %v2059_v26 = vpop.f32.mrb[52].mxu1 }
 0x980   : > { %v2066_v18 = vadd.f32 %v2059_v26, %v12443_v45  ;;  %v10862_v19 = vpop.f32.mrb[53].mxu1 }
 0x981   : > { %v2062_v57 = vpop.f32.mrb[54].mxu1 }
 0x982   : > { %v2067_v46 = vadd.f32 %v2062_v57, %v12451_v14  ;;  %v10863_v58 = vpop.f32.mrb[55].mxu1 }
 0x987   : > { %v2159_v60 = vpop.f32.mrb[56].mxu1 }
 0x988   : > { %v2166_v37 = vadd.f32 %v2159_v60, %v2066_v18  ;;  %v10874_v40 = vpop.f32.mrb[57].mxu1 }
 0x989   : > { %v2162_v16 = vpop.f32.mrb[58].mxu1 }
 0x98a   : > { %v2174_v42 = vadd.f32 %v12519_v59, %v2166_v37  ;;  %v2167_v7 = vadd.f32 %v2162_v16, %v2067_v46  ;;  %v10875_v10 = vpop.f32.mrb[59].mxu1 }
 0x98c   : > { %v10381_v8 = vmul.f32 -1.442695, %v2174_v42  ;;  %v2175_v45 = vadd.f32 %v12519_v59, %v2167_v7 }
 0x98e   : > { %11656 = vpow2.f32 %v10381_v8  ;;  %v10382_v26 = vmul.f32 -1.442695, %v2175_v45 }
 0x990   : > { %11658 = vpow2.f32 %v10382_v26 }
 0x998   : > { %v11657_v14 = vpop.eup %11656 }
 0x999   : > { %v2182_v19 = vadd.f32 1.0, %v11657_v14 }
 0x99a   : > { %v11659_v57 = vpop.eup %11658 }
 0x99b   : > { %11660 = vrcp.f32 %v2182_v19  ;;  %v2183_v58 = vadd.f32 1.0, %v11659_v57 }
 0x99d   : > { %11662 = vrcp.f32 %v2183_v58 }
 0x9a5   : > { %v12523_v4 = vpop.eup %11660 }
 0x9a6   : > { %v2188_v46 = vmul.f32 %v12523_v4, %v12119_v48 }
 0x9a7   : > { %v12525_v18 = vpop.eup %11662 }
 0x9a8   : > { %v2189_v10 = vmul.f32 %v12525_v18, %v12121_v49 }
 0x9aa   : > { %v2190_v7 = vpack.c.bf16 %v2189_v10, %v2188_v46 }
 0x9ac   : > { %10387 = vmatmul.mubr.msk.bf16.vlgmr.msra.gmra.mrb[52].mxu0 %vm863_vm0, %v2190_v7 }
 0x9ad   : > { %10884 = vmatprep.mubr.msk.bf16.mxu0 %vm11859_vm3, %v14908_v44 }
 0xa7f   : > { %v2248_v8 = vpop.f32.mrb[52].mxu0 }
 0xa80   : > { %v2250_v60 = vpop.f32.mrb[53].mxu0 }
 0xa81   : > { %2273 = vrot.lane.b32.xlu0 %v2250_v60, %s14917_s4  ;;  %v2252_v37 = vpop.f32.mrb[54].mxu0 }
 0xa82   : > { %v2254_v40 = vpop.f32.mrb[55].mxu0 }
 0xa83   : > { %2275 = vrot.lane.b32.xlu1 %v2254_v40, %s14917_s4 }
 0xa85   : > { %2259 = vrot.lane.b32.xlu0 %v2248_v8, %s14917_s4 }
 0xa87   : > { %2261 = vrot.lane.b32.xlu1 %v2252_v37, %s14917_s4 }
 0xaf3   : > { %v2274_v16 = vpop.permute.xlu0 %2273 }
 0xaf4   : > { %v2279_v45 = vadd.f32 %v2274_v16, %v12449_v11 }
 0xaf5   : > { %v2276_v42 = vpop.permute.xlu1 %2275 }
 0xaf6   : > { %v2280_v26 = vadd.f32 %v2276_v42, %v12457_v29 }
 0xaf7   : > { %v2260_v14 = vpop.permute.xlu0 %2259 }
 0xaf8   : > { %v2389_v19 = vpack.c.bf16 %v2280_v26, %v2279_v45  ;;  %v2269_v58 = vadd.f32 %v12449_v11, %v2260_v14 }
 0xaf9   : > { %v2262_v57 = vpop.permute.xlu1 %2261 }
 0xafa   : > { %v2270_v46 = vadd.f32 %v12457_v29, %v2262_v57  ;;  %2391 = vrot.lane.b32.xlu0 %v2389_v19, %s14917_s4  ;;  %v2266_v16 = vadd.f32 %v2262_v57, %v12454_v50 }
 0xafc   : > { %v2281_v10 = vpack.c.bf16 %v2270_v46, %v2269_v58 }
 0xafe   : > { %10877 = vmatpush3.bf16.msra.mxu1 %v2281_v10 }
 0xaff   : > { %10888 = vmatprep.subr.bf16.mxu1 %v14908_v44 }
 0xb01   : > { %10879 = vmatmul.mubr.msk.bf16.vlgmr.msra.gmra.mrb[60].mxu1 %vm1573_vm6, %v12312_v47 }
 0xb02   : > { %10890 = vmatprep.mubr.msk.bf16.mxu1 %vm11859_vm3, %v14908_v44 }
 0xb6c   : > { %v2392_v7 = vpop.permute.xlu0 %2391 }
 0xb6d   : > { %10889 = vmatpush3.bf16.msra.mxu1 %v2392_v7 }
 0xb6e   : > { %2617 = vmatprep.subr.bf16.mxu1 %v12048_v20 }
 0xb70   : > { %10891 = vmatmul.mubr.msk.bf16.vlgmr.msra.gmra.mrb[64].mxu1 %vm1573_vm6, %v12326_v27 }
 0xb71   : > { %2618 = vmatpush1.bf16.msra.mxu1 %v12057_v24  ;;  %2649 = vmatprep.mubr.bf16.mxu1 %v14914_v12 }
 0xb72   : > { %2619 = vmatprep.subr.bf16.mxu1 %v12062_v25 }
 0xb75   : > { %2620 = vmatpush1.bf16.msra.mxu1 %v12071_v28  ;;  %v2265_v28 = vadd.f32 %v2260_v14, %v12446_v41 }
 0xb76   : > { %10900 = vmatprep.subr.bf16.mxu1 %v14908_v44 }
 0xbd4   : > { %v2316_v11 = vpop.f32.mrb[60].mxu1 }
 0xbd5   : > { %2325 = vrot.lane.b32.xlu1 %v2316_v11, %s14918_s25  ;;  %v10880_v29 = vpop.f32.mrb[61].mxu1 }
 0xbd6   : > { %v2319_v8 = vpop.f32.mrb[62].mxu1 }
 0xbd7   : > { %2327 = vrot.lane.b32.xlu0 %v2319_v8, %s14918_s25  ;;  %v10881_v20 = vpop.f32.mrb[63].mxu1 }
 0xc43   : > { %v2428_v60 = vpop.f32.mrb[64].mxu1 }
 0xc44   : > { %2437 = vrot.lane.b32.xlu1 %v2428_v60, %s14906_s0  ;;  %v10892_v24 = vpop.f32.mrb[65].mxu1 }
 0xc45   : > { %v2431_v37 = vpop.f32.mrb[66].mxu1 }
 0xc46   : > { %2439 = vrot.lane.b32.xlu0 %v2431_v37, %s14906_s0  ;;  %v10893_v25 = vpop.f32.mrb[67].mxu1 }
 0xc47   : > { %v2326_v40 = vpop.permute.xlu1 %2325 }
 0xc48   : > { %v2331_v45 = vadd.f32 %v2326_v40, %v2265_v28 }
 0xc49   : > { %v2328_v42 = vpop.permute.xlu0 %2327 }
 0xc4a   : > { %v2332_v26 = vadd.f32 %v2328_v42, %v2266_v16 }
 0xc4c   : > { %v2333_v19 = vpack.c.bf16 %v2332_v26, %v2331_v45 }
 0xc4e   : > { %2335 = vrot.lane.b32.xlu1 %v2333_v19, %s14906_s0 }
 0xcb6   : > { %v2438_v10 = vpop.permute.xlu1 %2437 }
 0xcb7   : > { %v2443_v11 = vadd.f32 %v2438_v10, %v2269_v58 }
 0xcb8   : > { %v2440_v7 = vpop.permute.xlu0 %2439 }
 0xcb9   : > { %v2444_v29 = vadd.f32 %v2440_v7, %v2270_v46 }
 0xcbb   : > { %v2445_v8 = vpack.c.bf16 %v2444_v29, %v2443_v11  ;;  %v2524_v29 = vsub.f32 1.0, %v12525_v18 }
 0xcbd   : > { %2447 = vrot.lane.b32.xlu0 %v2445_v8, %s14918_s25 }
 0xcc0   : > { %v2336_v20 = vpop.permute.xlu1 %2335 }
 0xcc1   : > { %10883 = vmatpush3.bf16.msra.mxu0 %v2336_v20 }
 0xcc2   : > { %10894 = vmatprep.subr.bf16.mxu0 %v14908_v44 }
 0xcc4   : > { %10885 = vmatmul.mubr.msk.bf16.vlgmr.msra.gmra.mrb[56].mxu0 %vm1573_vm6, %v12312_v47 }
 0xcc5   : > { %10896 = vmatprep.mubr.msk.bf16.mxu0 %vm11859_vm3, %v14908_v44 }
 0xd2f   : > { %v2448_v41 = vpop.permute.xlu0 %2447 }
 0xd30   : > { %10895 = vmatpush3.bf16.msra.mxu0 %v2448_v41 }
 0xd31   : > { %2574 = vmatprep.subr.bf16.mxu0 %v12131_v51 }
 0xd33   : > { %10897 = vmatmul.mubr.msk.bf16.vlgmr.msra.gmra.mrb[60].mxu0 %vm1573_vm6, %v12326_v27 }
 0xd34   : > { %2575 = vmatpush1.bf16.msra.mxu0 %v12137_v52  ;;  %2606 = vmatprep.mubr.bf16.mxu0 %v14914_v12 }
 0xd35   : > { %2576 = vmatprep.subr.bf16.mxu0 %v12143_v53  ;;  %v10392_v53 = vld [vmem:[%s14827_s18] ss:$0 sm:$0xff] }
 0xd38   : > { %2577 = vmatpush1.bf16.msra.mxu0 %v12148_v54 }
 0xd39   : > { %10906 = vmatprep.subr.bf16.mxu0 %v14908_v44 }
 0xd97   : > { %v2372_v50 = vpop.f32.mrb[56].mxu0 }
 0xd98   : > { %2381 = vrot.lane.b32.xlu1 %v2372_v50, %s14917_s4  ;;  %v10886_v14 = vpop.f32.mrb[57].mxu0 }
 0xd99   : > { %v2375_v57 = vpop.f32.mrb[58].mxu0 }
 0xd9a   : > { %2383 = vrot.lane.b32.xlu0 %v2375_v57, %s14917_s4  ;;  %v10887_v51 = vpop.f32.mrb[59].mxu0 }
 0xe06   : > { %v2484_v58 = vpop.f32.mrb[60].mxu0 }
 0xe07   : > { %2493 = vrot.lane.b32.xlu1 %v2484_v58, %s14917_s4  ;;  %v10898_v52 = vpop.f32.mrb[61].mxu0 }
 0xe08   : > { %v2487_v46 = vpop.f32.mrb[62].mxu0 }
 0xe09   : > { %2495 = vrot.lane.b32.xlu0 %v2487_v46, %s14917_s4  ;;  %v10899_v54 = vpop.f32.mrb[63].mxu0  ;;  %v12625_v46 = vld [vmem:[%s12031_s3 + $0x10] sm:$0xff] }
 0xe0a   : > { %v2382_v60 = vpop.permute.xlu1 %2381  ;;  %vm2557_vm9 = vcmp.gt.f32.partialorder %v12625_v46, 0.5 }
 0xe0b   : > { %2506 = vrot.lane.b32.xlu1 %v10392_v53, %s14917_s4  ;;  %v2387_v25 = vadd.f32 %v2382_v60, %v2265_v28  ;;  %v12628_v53 = vld [vmem:[%s12031_s3 + $0x18] sm:$0xff] }
 0xe0c   : > { %v2384_v24 = vpop.permute.xlu0 %2383  ;;  %vm2558_vm10 = vcmp.gt.f32.partialorder %v12628_v53, 0.5 }
 0xe0d   : > { %2515 = vrot.lane.b32.xlu0 %v12119_v48, %s14906_s0  ;;  %v2388_v40 = vadd.f32 %v2384_v24, %v2266_v16  ;;  %v2523_v16 = vsub.f32 1.0, %v12523_v4  ;;  %v12636_v24 = vld [vmem:[%s12245_s2 + $0x10] sm:$0xff] }
 0xe0f   : > { %2517 = vrot.lane.b32.xlu1 %v12121_v49, %s14906_s0 }
 0xe79   : > { %v2494_v37 = vpop.permute.xlu1 %2493 }
 0xe7a   : > { %v2499_v45 = vadd.f32 %v2494_v37, %v2387_v25 }
 0xe7b   : > { %v2496_v42 = vpop.permute.xlu0 %2495 }
 0xe7c   : > { %v2500_v26 = vadd.f32 %v2496_v42, %v2388_v40 }
 0xe7d   : > { %v12589_v19 = vpop.permute.xlu1 %2506 }
 0xe7e   : > { %v2509_v10 = vadd.f32 %v12589_v19, %v2499_v45  ;;  %v2510_v7 = vadd.f32 %v12589_v19, %v2500_v26 }
 0xe7f   : > { %v2516_v49 = vpop.permute.xlu0 %2515 }
 0xe80   : > { %11664 = vtanh.f32 %v2509_v10  ;;  %v2521_v20 = vmul.f32 %v12523_v4, %v2516_v49 }
 0xe81   : > { %11666 = vtanh.f32 %v2510_v7  ;;  %v2518_v28 = vpop.permute.xlu1 %2517 }
 0xe82   : > { %v2522_v14 = vmul.f32 %v12525_v18, %v2518_v28 }
 0xe8a   : > { %v11665_v48 = vpop.eup %11664 }
 0xe8b   : > { %v11667_v11 = vpop.eup %11666  ;;  %2527 = vrot.lane.b32.xlu0 %v11665_v48, %s14918_s25 }
 0xe8c   : > { %2529 = vrot.lane.b32.xlu1 %v11667_v11, %s14918_s25 }
 0xe90   : > { %2667 = vrot.lane.b32.xlu1 %v12180_v62, %s14906_s0 }
 0xefd   : > { %v2528_v8 = vpop.permute.xlu0 %2527 }
 0xefe   : > { %v2530_v41 = vpop.permute.xlu1 %2529  ;;  %v2533_v50 = vmul.f32 %v2528_v8, %v2523_v16 }
 0xeff   : > { %v2534_v57 = vmul.f32 %v2530_v41, %v2524_v29 }
 0xf00   : > { %v12601_v51 = vadd.f32 %v2533_v50, %v2521_v20 }
 0xf01   : > { %v12603_v58 = vadd.f32 %v2534_v57, %v2522_v14 }
 0xf03   : > { %v2567_v52 = vpack.c.bf16 %v12603_v58, %v12601_v51 }
 0xf05   : > { %2569 = vrot.lane.b32.xlu0 %v2567_v52, %s14918_s25 }
 0xf09   : > { %2669 = vrot.lane.b32.xlu0 %v12184_v0, %s14906_s0 }
 0xf77   : > { %v2570_v4 = vpop.permute.xlu0 %2569 }
 0xf78   : > { %10393 = vmatmul.mubr.msk.bf16.vlgmr.msra.gmra.mrb[4].mxu0 %vm863_vm0, %v2570_v4  ;;  %10394 = vmatmul.mubr.msk.bf16.vlgmr.msra.gmra.mrb[68].mxu1 %vm863_vm0, %v2570_v4 }
 0xf79   : > { %10901 = vmatpush3.bf16.msra.mxu1 %v12158_v56  ;;  %10902 = vmatprep.mubr.msk.bf16.mxu1 %vm11859_vm3, %v14908_v44 }
 0xf7a   : > { %10907 = vmatpush3.bf16.msra.mxu0 %v12288_v55  ;;  %10910 = vmatprep.mubr.msk.bf16.mxu0 %vm11859_vm3, %v14908_v44 }
 0xf7b   : > { %10908 = vmatprep.subr.bf16.mxu0 %v14908_v44  ;;  %10914 = vmatprep.subr.bf16.mxu1 %v14908_v44  ;;  %v2670_v26 = vpop.permute.xlu0 %2669 }
 0xf7e   : > { %10909 = vmatpush3.bf16.msra.mxu0 %v12295_v39  ;;  %v12642_v39 = vld [vmem:[%s12245_s2 + $0x18] sm:$0xff] }
 0xf7f   : > { %10920 = vmatprep.subr.bf16.mxu0 %v14908_v44 }
0x104b   : > { %v12622_v18 = vpop.f32.mrb[68].mxu1 }
0x104c   : > { %2719 = vrot.lane.b32.xlu1 %v12622_v18, %s14917_s4  ;;  %v2653_v55 = vpop.f32.mrb[69].mxu1 }
0x104d   : > { %v2660_v54 = vadd.f32 %v12237_v36, %v2653_v55  ;;  %v12633_v60 = vpop.f32.mrb[70].mxu1 }
0x104e   : > { %2721 = vrot.lane.b32.xlu0 %v12633_v60, %s14917_s4  ;;  %v2657_v37 = vpop.f32.mrb[71].mxu1 }
0x104f   : > { %3608 = vst.msk [vmem:[%s12253_s29 + $0x10] sm:$0xff] %vm947_vm2, %v2660_v54  ;;  %v2661_v25 = vadd.f32 %v12237_v36, %v2657_v37  ;;  %v2662_v40 = vsel %vm2557_vm9, %v12636_v24, %v2660_v54  ;;  %v2668_v36 = vpop.permute.xlu1 %2667 }
0x1051   : > { %v2663_v42 = vsel %vm2558_vm10, %v12642_v39, %v2661_v25  ;;  %3609 = vst.msk [vmem:[%s12253_s29 + $0x18] sm:$0xff] %vm947_vm2, %v2661_v25 }
0x1052   : > { %v2664_v45 = vpack.c.bf16 %v2663_v42, %v2662_v40  ;;  %2864 = vrot.lane.b32.xlu0 %v12622_v18, %s14906_s0 }
0x1054   : > { %10903 = vmatmul.mubr.msk.bf16.vlgmr.msra.gmra.mrb[72].mxu1 %vm947_vm2, %v2664_v45 }
0x1055   : > { %10916 = vmatprep.mubr.msk.bf16.mxu1 %vm11859_vm3, %v14908_v44 }
0x1056   : > { %2925 = vrot.lane.b32.xlu0 %v2653_v55, %s14919_s24 }
0x10be   : > { %v2720_v11 = vpop.permute.xlu1 %2719 }
0x10c0   : > { %v2722_v8 = vpop.permute.xlu0 %2721 }
0x1127   : > { %v2710_v10 = vpop.f32.mrb[72].mxu1 }
0x1128   : > { %v2711_v7 = vadd.f32 %v2710_v10, %v2668_v36  ;;  %v10904_v48 = vpop.f32.mrb[73].mxu1 }
0x1129   : > { %v2713_v49 = vpop.f32.mrb[74].mxu1 }
0x112a   : > { %v2725_v28 = vadd.f32 %v2720_v11, %v2711_v7  ;;  %v2714_v16 = vadd.f32 %v2713_v49, %v2670_v26  ;;  %v10905_v29 = vpop.f32.mrb[75].mxu1 }
0x112c   : > { %v2726_v20 = vadd.f32 %v2722_v8, %v2714_v16  ;;  %v2727_v41 = vadd.f32 %v12302_v30, %v2725_v28 }
0x112e   : > { %v2728_v50 = vadd.f32 %v12302_v30, %v2726_v20 }
0x1130   : > { %v2729_v14 = vpack.c.bf16 %v2728_v50, %v2727_v41 }
0x1132   : > { %10911 = vmatmul.mubr.msk.bf16.vlgmr.msra.gmra.mrb[64].mxu0 %vm863_vm0, %v2729_v14 }
0x1133   : > { %10922 = vmatprep.mubr.msk.bf16.mxu0 %vm11859_vm3, %v14908_v44 }
0x1205   : > { %v2767_v57 = vpop.f32.mrb[64].mxu0 }
0x1206   : > { %v10912_v52 = vpop.f32.mrb[65].mxu0 }
0x1207   : > { %v2770_v4 = vpop.f32.mrb[66].mxu0 }
0x1208   : > { %v2774_v55 = vpack.c.bf16 %v2770_v4, %v2767_v57  ;;  %v10913_v54 = vpop.f32.mrb[67].mxu0 }
0x120a   : > { %2776 = vrot.lane.b32.xlu1 %v2774_v55, %s14918_s25  ;;  %10921 = vmatpush3.bf16.msra.mxu0 %v2774_v55 }
0x120b   : > { %10934 = vmatprep.subr.bf16.mxu0 %v14908_v44 }
0x120d   : > { %10923 = vmatmul.mubr.msk.bf16.vlgmr.msra.gmra.mrb[68].mxu0 %vm1573_vm6, %v12312_v47 }
0x120e   : > { %2866 = vrot.lane.b32.xlu1 %v12633_v60, %s14906_s0  ;;  %10935 = vmatpush3.bf16.msra.mxu0 %v12364_v1 }
0x120f   : > { %10936 = vmatprep.subr.bf16.mxu0 %v14908_v44  ;;  %10938 = vmatprep.mubr.msk.bf16.mxu0 %vm11859_vm3, %v14908_v44 }
0x1212   : > { %2927 = vrot.lane.b32.xlu1 %v2657_v37, %s14919_s24  ;;  %10937 = vmatpush3.bf16.msra.mxu0 %v12375_v21 }
0x1213   : > { %10401 = vmatprep.subr.msk.bf16.mxu0 %vm972_vm1, %v12341_v32 }
0x127c   : > { %v2777_v30 = vpop.permute.xlu1 %2776 }
0x127d   : > { %10915 = vmatpush3.bf16.msra.mxu1 %v2777_v30 }
0x127e   : > { %10926 = vmatprep.subr.bf16.mxu1 %v14908_v44 }
0x1280   : > { %10917 = vmatmul.mubr.msk.bf16.vlgmr.msra.gmra.mrb[76].mxu1 %vm1573_vm6, %v12326_v27  ;;  %v2867_v16 = vpop.permute.xlu1 %2866 }
0x1281   : > { %10927 = vmatpush3.bf16.msra.mxu1 %v12338_v31  ;;  %10930 = vmatprep.mubr.msk.bf16.mxu1 %vm11859_vm3, %v14908_v44 }
0x1282   : > { %10928 = vmatprep.subr.bf16.mxu1 %v14908_v44 }
0x1285   : > { %10929 = vmatpush3.bf16.msra.mxu1 %v12347_v33  ;;  %v2865_v33 = vpop.permute.xlu0 %2864 }
0x1286   : > { %10403 = vmatprep.subr.msk.bf16.mxu1 %vm972_vm1, %v12369_v34 }
0x12e0   : > { %v2854_v1 = vpop.f32.mrb[68].mxu0 }
0x12e1   : > { %v10924_v21 = vpop.f32.mrb[69].mxu0 }
0x12e2   : > { %v2857_v37 = vpop.f32.mrb[70].mxu0 }
0x12e3   : > { %v10925_v25 = vpop.f32.mrb[71].mxu0 }
0x1353   : > { %v2813_v40 = vpop.f32.mrb[76].mxu1 }
0x1354   : > { %v2855_v42 = vadd.f32 %v2854_v1, %v2813_v40  ;;  %v10918_v45 = vpop.f32.mrb[77].mxu1  ;;  %v2928_v1 = vpop.permute.xlu1 %2927 }
0x1355   : > { %v2816_v36 = vpop.f32.mrb[78].mxu1 }
0x1356   : > { %v2858_v26 = vadd.f32 %v2857_v37, %v2816_v36  ;;  %v10919_v31 = vpop.f32.mrb[79].mxu1  ;;  %v2861_v10 = vadd.f32 %v12355_v35, %v2855_v42 }
0x1358   : > { %v2862_v7 = vadd.f32 %v12355_v35, %v2858_v26 }
0x135a   : > { %v2863_v48 = vpack.c.bf16 %v2862_v7, %v2861_v10 }
0x135c   : > { %10931 = vmatmul.mubr.msk.bf16.vlgmr.msra.gmra.mrb[80].mxu1 %vm863_vm0, %v2863_v48 }
0x135d   : > { %3027 = vmatpush1.bf16.msra.mxu1 %v12408_v13  ;;  %3058 = vmatprep.mubr.bf16.mxu1 %v14914_v12 }
0x135e   : > { %10942 = vmatprep.subr.bf16.mxu1 %v14908_v44 }
0x142f   : > { %v2907_v11 = vpop.f32.mrb[80].mxu1 }
0x1430   : > { %v2908_v49 = vadd.f32 %v2907_v11, %v2865_v33  ;;  %v10932_v28 = vpop.f32.mrb[81].mxu1 }
0x1431   : > { %v2910_v29 = vpop.f32.mrb[82].mxu1 }
0x1432   : > { %v2914_v8 = vadd.f32 %v12385_v38, %v2908_v49  ;;  %v2911_v35 = vadd.f32 %v2910_v29, %v2867_v16  ;;  %v10933_v20 = vpop.f32.mrb[83].mxu1 }
0x1434   : > { %vm2916_vm11 = vcmp.gt.f32.partialorder %v2914_v8, 0.0  ;;  %v2918_v41 = vmul.f32 %v2914_v8, %v12380_v23  ;;  %v2915_v50 = vadd.f32 %v12385_v38, %v2911_v35  ;;  %v2926_v38 = vpop.permute.xlu0 %2925 }
0x1436   : > { %v2920_v14 = vsel %vm2916_vm11, %v2914_v8, %v2918_v41  ;;  %vm2917_vm12 = vcmp.gt.f32.partialorder %v2915_v50, 0.0  ;;  %v2919_v57 = vmul.f32 %v2915_v50, %v12380_v23 }
0x1437   : > { %3612 = vst.msk [vmem:[%s12392_s6 + $0x10] sm:$0xff] %vm863_vm0, %v2920_v14 }
0x1438   : > { %v2921_v52 = vsel %vm2917_vm12, %v2915_v50, %v2919_v57 }
0x1439   : > { %v2922_v4 = vpack.c.bf16 %v2921_v52, %v2920_v14  ;;  %3613 = vst.msk [vmem:[%s12392_s6 + $0x18] sm:$0xff] %vm863_vm0, %v2921_v52 }
0x143b   : > { %10939 = vmatmul.mubr.msk.bf16.vlgmr.msra.gmra.mrb[72].mxu0 %vm863_vm0, %v2922_v4 }
0x143c   : > { %2984 = vmatpush1.bf16.msra.mxu0 %v12404_v6  ;;  %3015 = vmatprep.mubr.bf16.mxu0 %v14914_v12 }
0x143d   : > { %10948 = vmatprep.subr.bf16.mxu0 %v14908_v44 }
0x150e   : > { %v2968_v55 = vpop.f32.mrb[72].mxu0 }
0x150f   : > { %v2969_v54 = vadd.f32 %v2968_v55, %v2926_v38  ;;  %v10940_v30 = vpop.f32.mrb[73].mxu0 }
0x1510   : > { %v2971_v21 = vpop.f32.mrb[74].mxu0 }
0x1511   : > { %v2975_v37 = vadd.f32 %v12417_v22, %v2969_v54  ;;  %v2972_v25 = vadd.f32 %v2971_v21, %v2928_v1  ;;  %v10941_v40 = vpop.f32.mrb[75].mxu0 }
0x1513   : > { %3610 = vst.msk [vmem:[%s12423_s20 + $0x10] sm:$0xff] %vm947_vm2, %v2975_v37  ;;  %v2976_v42 = vadd.f32 %v12417_v22, %v2972_v25  ;;  %v2977_v45 = vsel %vm2557_vm9, %v12636_v24, %v2975_v37 }
0x1515   : > { %v2978_v36 = vsel %vm2558_vm10, %v12642_v39, %v2976_v42  ;;  %3611 = vst.msk [vmem:[%s12423_s20 + $0x18] sm:$0xff] %vm947_vm2, %v2976_v42 }
0x1516   : > { %v2979_v26 = vpack.c.bf16 %v2978_v36, %v2977_v45 }
0x1518   : > { %10402 = vmatmul.mubr.msk.bf16.vlgmr.msra.gmra.mrb[4].mxu0 %vm947_vm2, %v2979_v26  ;;  %10404 = vmatmul.mubr.msk.bf16.vlgmr.msra.gmra.mrb[84].mxu1 %vm947_vm2, %v2979_v26 }
0x1519   : > { %10944 = vmatprep.mubr.msk.bf16.mxu1 %vm11859_vm3, %v14908_v44  ;;  %10950 = vmatprep.mubr.msk.bf16.mxu0 %vm11859_vm3, %v14908_v44 }
0x15eb   : > { %v12727_v22 = vpop.f32.mrb[4].mxu0  ;;  %v3060_v46 = vpop.f32.mrb[84].mxu1 }
0x15ec   : > { %v12730_v24 = vadd.f32 %v3060_v46, %v12178_v61  ;;  %v3019_v53 = vpop.f32.mrb[5].mxu0  ;;  %v3062_v39 = vpop.f32.mrb[85].mxu1 }
0x15ed   : > { %v12733_v31 = vadd.f32 %v3062_v39, %v12180_v62  ;;  %v12735_v10 = vpop.f32.mrb[6].mxu0  ;;  %v3064_v7 = vpop.f32.mrb[86].mxu1 }
0x15ee   : > { %v12738_v48 = vadd.f32 %v3064_v7, %v12182_v63  ;;  %v3023_v33 = vpop.f32.mrb[7].mxu0  ;;  %v3066_v11 = vpop.f32.mrb[87].mxu1  ;;  %v3079_v61 = vadd.f32 %v12730_v24, %v12622_v18 }
0x15ef   : > { %v3081_v49 = vpack.c.bf16 %v3023_v33, %v3019_v53  ;;  %v12741_v28 = vadd.f32 %v3066_v11, %v12184_v0 }
0x15f0   : > { %v3080_v16 = vadd.f32 %v12738_v48, %v12633_v60 }
0x15f1   : > { %10943 = vmatpush3.bf16.msra.mxu1 %v3081_v49 }
0x15f2   : > { %v3181_v62 = vpack.c.bf16 %v3080_v16, %v3079_v61  ;;  %10954 = vmatprep.subr.bf16.mxu1 %v14908_v44 }
0x15f4   : > { %10945 = vmatmul.mubr.msk.bf16.vlgmr.msra.gmra.mrb[88].mxu1 %vm1573_vm6, %v12312_v47 }
0x15f5   : > { %10955 = vmatpush3.bf16.msra.mxu1 %v3181_v62  ;;  %10956 = vmatprep.mubr.msk.bf16.mxu1 %vm11859_vm3, %v14908_v44 }
0x15f6   : > { %3301 = vmatprep.subr.bf16.mxu1 %v12492_v9 }
0x15fc   : > { %10957 = vmatmul.mubr.msk.bf16.vlgmr.msra.gmra.mrb[92].mxu1 %vm1573_vm6, %v12326_v27 }
0x15fd   : > { %3302 = vmatpush1.bf16.msra.mxu1 %v12497_v15  ;;  %3333 = vmatprep.mubr.bf16.mxu1 %v14914_v12 }
0x15fe   : > { %3303 = vmatprep.subr.bf16.mxu1 %v12502_v17 }
0x1601   : > { %3304 = vmatpush1.bf16.msra.mxu1 %v12509_v43 }
0x1602   : > { %10972 = vmatprep.subr.bf16.mxu1 %v14908_v44 }
0x16c7   : > { %v3116_v63 = vpop.f32.mrb[88].mxu1 }
0x16c8   : > { %3125 = vrot.lane.b32.xlu0 %v3116_v63, %s14917_s4  ;;  %v10946_v0 = vpop.f32.mrb[89].mxu1 }
0x16c9   : > { %v3119_v18 = vpop.f32.mrb[90].mxu1 }
0x16ca   : > { %3127 = vrot.lane.b32.xlu1 %v3119_v18, %s14917_s4  ;;  %v10947_v9 = vpop.f32.mrb[91].mxu1 }
0x16cf   : > { %v3216_v60 = vpop.f32.mrb[92].mxu1 }
0x16d0   : > { %3225 = vrot.lane.b32.xlu0 %v3216_v60, %s14917_s4  ;;  %v10958_v15 = vpop.f32.mrb[93].mxu1 }
0x16d1   : > { %v3219_v29 = vpop.f32.mrb[94].mxu1 }
0x16d2   : > { %3227 = vrot.lane.b32.xlu1 %v3219_v29, %s14917_s4  ;;  %v10959_v17 = vpop.f32.mrb[95].mxu1 }
0x173a   : > { %v3126_v8 = vpop.permute.xlu0 %3125 }
0x173b   : > { %v3131_v35 = vadd.f32 %v3126_v8, %v12727_v22 }
0x173c   : > { %v3128_v43 = vpop.permute.xlu1 %3127 }
0x173d   : > { %v3132_v20 = vadd.f32 %v3128_v43, %v12735_v10 }
0x173f   : > { %v3133_v41 = vpack.c.bf16 %v3132_v20, %v3131_v35 }
0x1741   : > { %3135 = vrot.lane.b32.xlu0 %v3133_v41, %s14917_s4 }
0x1742   : > { %v3226_v50 = vpop.permute.xlu0 %3225 }
0x1743   : > { %v3231_v57 = vadd.f32 %v3226_v50, %v3019_v53 }
0x1744   : > { %v3228_v14 = vpop.permute.xlu1 %3227 }
0x1745   : > { %v3232_v52 = vadd.f32 %v3228_v14, %v3023_v33  ;;  %2545 = vrot.lane.b32.xlu0 %v12601_v51, %s14918_s25 }
0x1747   : > { %v3233_v4 = vpack.c.bf16 %v3232_v52, %v3231_v57  ;;  %v12818_v57 = vld [vmem:[%s14910_s1] sm:$0xff]  }
0x1748   : > { %v12833_v52 = vld [vmem:[%s14912_s9] sm:$0xff]  }
0x1749   : > { %3235 = vrot.lane.b32.xlu1 %v3233_v4, %s14917_s4  ;;  %v12840_v4 = vld [vmem:[%s14881_s30] ss:$16 sps:$4 sm:$0xff]  }
0x174d   : > { %2547 = vrot.lane.b32.xlu1 %v12603_v58, %s14918_s25 }
0x17b3   : > { %v3136_v38 = vpop.permute.xlu0 %3135 }
0x17b4   : > { %10949 = vmatpush3.bf16.msra.mxu0 %v3136_v38  ;;  %v12847_v38 = vld [vmem:[%s14881_s30 + $0x24] ss:$16 sps:$4 sm:$0xff]  }
0x17b5   : > { %10960 = vmatprep.subr.bf16.mxu0 %v14908_v44 }
0x17b7   : > { %10951 = vmatmul.mubr.msk.bf16.vlgmr.msra.gmra.mrb[76].mxu0 %vm1573_vm6, %v12312_v47  ;;  %v2546_v55 = vpop.permute.xlu0 %2545 }
0x17b8   : > { %2551 = vst.msk [vmem:[%s12776_s21] sm:$0xff] %vm863_vm0, %v2546_v55  ;;  %10962 = vmatprep.mubr.msk.bf16.mxu0 %vm11859_vm3, %v14908_v44 }
0x17bb   : > { %v3236_v54 = vpop.permute.xlu1 %3235 }
0x17bc   : > { %10961 = vmatpush3.bf16.msra.mxu0 %v3236_v54 }
0x17bd   : > { %10966 = vmatprep.subr.bf16.mxu0 %v14908_v44 }
0x17bf   : > { %10963 = vmatmul.mubr.msk.bf16.vlgmr.msra.gmra.mrb[80].mxu0 %vm1573_vm6, %v12326_v27  ;;  %v2548_v30 = vpop.permute.xlu1 %2547 }
0x17c0   : > { %2552 = vst.msk [vmem:[%s12776_s21 + $0x8] sm:$0xff] %vm863_vm0, %v2548_v30  ;;  %10968 = vmatprep.mubr.msk.bf16.mxu0 %vm11859_vm3, %v14908_v44 }
0x188a   : > { %v3172_v47 = vpop.f32.mrb[76].mxu0 }
0x188b   : > { %v3179_v1 = vadd.f32 %v3172_v47, %v12727_v22  ;;  %v10952_v21 = vpop.f32.mrb[77].mxu0 }
0x188c   : > { %v3175_v37 = vpop.f32.mrb[78].mxu0 }
0x188d   : > { %v3180_v25 = vadd.f32 %v3175_v37, %v12735_v10  ;;  %v10953_v40 = vpop.f32.mrb[79].mxu0 }
0x1892   : > { %v3272_v42 = vpop.f32.mrb[80].mxu0 }
0x1893   : > { %v3279_v45 = vadd.f32 %v3272_v42, %v3179_v1  ;;  %v10964_v36 = vpop.f32.mrb[81].mxu0 }
0x1894   : > { %v3275_v26 = vpop.f32.mrb[82].mxu0 }
0x1895   : > { %v3281_v27 = vadd.f32 %v12519_v59, %v3279_v45  ;;  %v3280_v46 = vadd.f32 %v3275_v26, %v3180_v25  ;;  %v10965_v53 = vpop.f32.mrb[83].mxu0 }
0x1897   : > { %v10409_v39 = vmul.f32 -1.442695, %v3281_v27  ;;  %v3282_v7 = vadd.f32 %v12519_v59, %v3280_v46 }
0x1899   : > { %11668 = vpow2.f32 %v10409_v39  ;;  %v10410_v33 = vmul.f32 -1.442695, %v3282_v7 }
0x189b   : > { %11670 = vpow2.f32 %v10410_v33 }
0x18a3   : > { %v11669_v22 = vpop.eup %11668 }
0x18a4   : > { %v3289_v11 = vadd.f32 1.0, %v11669_v22 }
0x18a5   : > { %v11671_v49 = vpop.eup %11670 }
0x18a6   : > { %11672 = vrcp.f32 %v3289_v11  ;;  %v3290_v10 = vadd.f32 1.0, %v11671_v49 }
0x18a8   : > { %11674 = vrcp.f32 %v3290_v10  ;;  %v12881_v10 = vld [vmem:[%s14881_s30 + $0x8] ss:$16 sps:$4 sm:$0xff]  }
0x18b0   : > { %v12796_v61 = vpop.eup %11672 }
0x18b1   : > { %v3295_v62 = vmul.f32 %v12796_v61, %v2546_v55  ;;  %v12853_v55 = vld [vmem:[%s14881_s30 + $0x20] ss:$16 sps:$4 sm:$0xff]  }
0x18b2   : > { %v12798_v16 = vpop.eup %11674 }
0x18b3   : > { %v3296_v63 = vmul.f32 %v12798_v16, %v2548_v30 }
0x18b5   : > { %v3297_v0 = vpack.c.bf16 %v3296_v63, %v3295_v62  ;;  %v12888_v62 = vld [vmem:[%s14881_s30 + $0x2c] ss:$16 sps:$4 sm:$0xff]   ;;  %v12894_v63 = vld [vmem:[%s14881_s30 + $0x28] ss:$16 sps:$4 sm:$0xff]  }
0x18b7   : > { %10411 = vmatmul.mubr.msk.bf16.vlgmr.msra.gmra.mrb[96].mxu1 %vm863_vm0, %v3297_v0 }
0x18b8   : > { %10974 = vmatprep.mubr.msk.bf16.mxu1 %vm11859_vm3, %v14908_v44 }
0x198a   : > { %v3335_v59 = vpop.f32.mrb[96].mxu1 }
0x198b   : > { %v3337_v18 = vpop.f32.mrb[97].mxu1 }
0x198c   : > { %3360 = vrot.lane.b32.xlu0 %v3337_v18, %s14917_s4  ;;  %v3339_v9 = vpop.f32.mrb[98].mxu1 }
0x198d   : > { %v3341_v60 = vpop.f32.mrb[99].mxu1 }
0x198e   : > { %3362 = vrot.lane.b32.xlu1 %v3341_v60, %s14917_s4 }
0x1990   : > { %3346 = vrot.lane.b32.xlu0 %v3335_v59, %s14917_s4 }
0x1992   : > { %3348 = vrot.lane.b32.xlu1 %v3339_v9, %s14917_s4 }
0x19fe   : > { %v3361_v15 = vpop.permute.xlu0 %3360 }
0x19ff   : > { %v3366_v17 = vadd.f32 %v3361_v15, %v12733_v31 }
0x1a00   : > { %v3363_v29 = vpop.permute.xlu1 %3362 }
0x1a01   : > { %v3367_v8 = vadd.f32 %v3363_v29, %v12741_v28 }
0x1a02   : > { %v3347_v43 = vpop.permute.xlu0 %3346 }
0x1a03   : > { %v3476_v35 = vpack.c.bf16 %v3367_v8, %v3366_v17  ;;  %v3356_v41 = vadd.f32 %v12733_v31, %v3347_v43  ;;  %v3352_v45 = vadd.f32 %v3347_v43, %v12730_v24 }
0x1a04   : > { %v3349_v20 = vpop.permute.xlu1 %3348 }
0x1a05   : > { %v3357_v50 = vadd.f32 %v12741_v28, %v3349_v20  ;;  %3478 = vrot.lane.b32.xlu0 %v3476_v35, %s14917_s4  ;;  %v12827_v28 = vld [vmem:[%s14881_s30 + $0x4] ss:$16 sps:$4 sm:$0xff]   ;;  %v3353_v36 = vadd.f32 %v3349_v20, %v12738_v48  ;;  %v12873_v48 = vld [vmem:[%s14881_s30 + $0xc] ss:$16 sps:$4 sm:$0xff]  }
0x1a07   : > { %v3368_v14 = vpack.c.bf16 %v3357_v50, %v3356_v41 }
0x1a09   : > { %10967 = vmatpush3.bf16.msra.mxu0 %v3368_v14 }
0x1a0a   : > { %10978 = vmatprep.subr.bf16.mxu0 %v14908_v44 }
0x1a0c   : > { %10969 = vmatmul.mubr.msk.bf16.vlgmr.msra.gmra.mrb[84].mxu0 %vm1573_vm6, %v12818_v57 }
0x1a0d   : > { %10980 = vmatprep.mubr.msk.bf16.mxu0 %vm11859_vm3, %v14908_v44 }
0x1a77   : > { %v3479_v31 = vpop.permute.xlu0 %3478 }
0x1a78   : > { %10979 = vmatpush3.bf16.msra.mxu0 %v3479_v31 }
0x1a79   : > { %3645 = vmatprep.subr.bf16.mxu0 %v12827_v28 }
0x1a7b   : > { %10981 = vmatmul.mubr.msk.bf16.vlgmr.msra.gmra.mrb[88].mxu0 %vm1573_vm6, %v12833_v52 }
0x1a7c   : > { %3646 = vmatpush1.bf16.msra.mxu0 %v12840_v4  ;;  %3677 = vmatprep.mubr.bf16.mxu0 %v14914_v12 }
0x1a7d   : > { %3647 = vmatprep.subr.bf16.mxu0 %v12847_v38 }
0x1a80   : > { %3648 = vmatpush1.bf16.msra.mxu0 %v12853_v55 }
0x1a81   : > { %10990 = vmatprep.subr.bf16.mxu0 %v14908_v44 }
0x1adf   : > { %v3403_v54 = vpop.f32.mrb[84].mxu0 }
0x1ae0   : > { %3412 = vrot.lane.b32.xlu1 %v3403_v54, %s14918_s25  ;;  %v10970_v30 = vpop.f32.mrb[85].mxu0 }
0x1ae1   : > { %v3406_v47 = vpop.f32.mrb[86].mxu0 }
0x1ae2   : > { %3414 = vrot.lane.b32.xlu0 %v3406_v47, %s14918_s25  ;;  %v10971_v1 = vpop.f32.mrb[87].mxu0 }
0x1b4e   : > { %v3515_v21 = vpop.f32.mrb[88].mxu0 }
0x1b4f   : > { %3524 = vrot.lane.b32.xlu1 %v3515_v21, %s14906_s0  ;;  %v10982_v37 = vpop.f32.mrb[89].mxu0  ;;  %v3594_v21 = vsub.f32 1.0, %v12796_v61 }
0x1b50   : > { %v3518_v25 = vpop.f32.mrb[90].mxu0 }
0x1b51   : > { %3526 = vrot.lane.b32.xlu0 %v3518_v25, %s14906_s0  ;;  %v10983_v40 = vpop.f32.mrb[91].mxu0 }
0x1b52   : > { %v3413_v42 = vpop.permute.xlu1 %3412  ;;  %v3595_v40 = vsub.f32 1.0, %v12798_v16 }
0x1b53   : > { %v3418_v27 = vadd.f32 %v3413_v42, %v3352_v45 }
0x1b54   : > { %v3415_v26 = vpop.permute.xlu0 %3414 }
0x1b55   : > { %v3419_v46 = vadd.f32 %v3415_v26, %v3353_v36 }
0x1b57   : > { %v3420_v53 = vpack.c.bf16 %v3419_v46, %v3418_v27 }
0x1b59   : > { %3422 = vrot.lane.b32.xlu1 %v3420_v53, %s14906_s0 }
0x1bc1   : > { %v3525_v39 = vpop.permute.xlu1 %3524 }
0x1bc2   : > { %v3530_v33 = vadd.f32 %v3525_v39, %v3356_v41 }
0x1bc3   : > { %v3527_v7 = vpop.permute.xlu0 %3526 }
0x1bc4   : > { %v3531_v22 = vadd.f32 %v3527_v7, %v3357_v50  ;;  %v12951_v7 = vld [vmem:[%s12031_s3 + $0x28] sm:$0xff] }
0x1bc5   : > { %vm3629_vm14 = vcmp.gt.f32.partialorder %v12951_v7, 0.5 }
0x1bc6   : > { %v3532_v11 = vpack.c.bf16 %v3531_v22, %v3530_v33  ;;  %v12958_v22 = vld [vmem:[%s14821_s12] ss:$0 sm:$0xff] }
0x1bc8   : > { %3534 = vrot.lane.b32.xlu0 %v3532_v11, %s14918_s25 }
0x1bcb   : > { %v3423_v49 = vpop.permute.xlu1 %3422 }
0x1bcc   : > { %10973 = vmatpush3.bf16.msra.mxu1 %v3423_v49 }
0x1bcd   : > { %10984 = vmatprep.subr.bf16.mxu1 %v14908_v44 }
0x1bcf   : > { %10975 = vmatmul.mubr.msk.bf16.vlgmr.msra.gmra.mrb[100].mxu1 %vm1573_vm6, %v12818_v57 }
0x1bd0   : > { %10986 = vmatprep.mubr.msk.bf16.mxu1 %vm11859_vm3, %v14908_v44 }
0x1c3a   : > { %v3535_v24 = vpop.permute.xlu0 %3534 }
0x1c3b   : > { %10985 = vmatpush3.bf16.msra.mxu1 %v3535_v24  ;;  %v12964_v24 = vld [vmem:[%s12245_s2 + $0x20] sm:$0xff] }
0x1c3c   : > { %3688 = vmatprep.subr.bf16.mxu1 %v12873_v48 }
0x1c3e   : > { %10987 = vmatmul.mubr.msk.bf16.vlgmr.msra.gmra.mrb[104].mxu1 %vm1573_vm6, %v12833_v52 }
0x1c3f   : > { %3689 = vmatpush1.bf16.msra.mxu1 %v12881_v10  ;;  %3720 = vmatprep.mubr.bf16.mxu1 %v14914_v12 }
0x1c40   : > { %3690 = vmatprep.subr.bf16.mxu1 %v12888_v62 }
0x1c43   : > { %3691 = vmatpush1.bf16.msra.mxu1 %v12894_v63 }
0x1c44   : > { %10996 = vmatprep.subr.bf16.mxu1 %v14908_v44 }
0x1ca2   : > { %v3459_v0 = vpop.f32.mrb[100].mxu1 }
0x1ca3   : > { %3468 = vrot.lane.b32.xlu1 %v3459_v0, %s14917_s4  ;;  %v10976_v59 = vpop.f32.mrb[101].mxu1  ;;  %v12970_v0 = vld [vmem:[%s12245_s2 + $0x28] sm:$0xff] }
0x1ca4   : > { %v3462_v18 = vpop.f32.mrb[102].mxu1 }
0x1ca5   : > { %3470 = vrot.lane.b32.xlu0 %v3462_v18, %s14917_s4  ;;  %v10977_v9 = vpop.f32.mrb[103].mxu1 }
0x1d11   : > { %v3571_v60 = vpop.f32.mrb[104].mxu1 }
0x1d12   : > { %3580 = vrot.lane.b32.xlu1 %v3571_v60, %s14917_s4  ;;  %v10988_v15 = vpop.f32.mrb[105].mxu1 }
0x1d13   : > { %v3574_v29 = vpop.f32.mrb[106].mxu1 }
0x1d14   : > { %3582 = vrot.lane.b32.xlu0 %v3574_v29, %s14917_s4  ;;  %v10989_v17 = vpop.f32.mrb[107].mxu1 }
0x1d15   : > { %v3469_v8 = vpop.permute.xlu1 %3468 }
0x1d16   : > { %v3474_v35 = vadd.f32 %v3469_v8, %v3352_v45  ;;  %v3592_v45 = vmul.f32 %v12796_v61, %v12601_v51  ;;  %v12931_v51 = vld [vmem:[%s14907_s26] sm:$0xff]  }
0x1d17   : > { %v3471_v43 = vpop.permute.xlu0 %3470 }
0x1d18   : > { %v3475_v41 = vadd.f32 %v3471_v43, %v3353_v36  ;;  %v3593_v36 = vmul.f32 %v12798_v16, %v12603_v58  ;;  %v12941_v58 = vld [vmem:[%s14907_s26 + $0x8] sm:$0xff]   ;;  %v12948_v16 = vld [vmem:[%s12031_s3 + $0x20] sm:$0xff] }
0x1d19   : > { %vm3628_vm13 = vcmp.gt.f32.partialorder %v12948_v16, 0.5 }
0x1d84   : > { %v3581_v20 = vpop.permute.xlu1 %3580 }
0x1d85   : > { %v3586_v50 = vadd.f32 %v3581_v20, %v3474_v35 }
0x1d86   : > { %v3583_v14 = vpop.permute.xlu0 %3582 }
0x1d87   : > { %v3588_v31 = vadd.f32 %v3586_v50, %v12589_v19  ;;  %v3587_v54 = vadd.f32 %v3583_v14, %v3475_v41 }
0x1d89   : > { %11676 = vtanh.f32 %v3588_v31  ;;  %v3589_v30 = vadd.f32 %v3587_v54, %v12589_v19 }
0x1d8b   : > { %11678 = vtanh.f32 %v3589_v30 }
0x1d93   : > { %v11677_v47 = vpop.eup %11676 }
0x1d94   : > { %3598 = vrot.lane.b32.xlu1 %v11677_v47, %s14918_s25  ;;  %v12993_v47 = vld [vmem:[%s14822_s13] ss:$0 sm:$0xff] }
0x1d95   : > { %v11679_v1 = vpop.eup %11678 }
0x1d96   : > { %3600 = vrot.lane.b32.xlu0 %v11679_v1, %s14918_s25 }
0x1d9a   : > { %3738 = vrot.lane.b32.xlu0 %v12188_v3, %s14906_s0 }
0x1e06   : > { %v3599_v37 = vpop.permute.xlu1 %3598 }
0x1e07   : > { %v3604_v25 = vmul.f32 %v3599_v37, %v3594_v21 }
0x1e08   : > { %v3601_v42 = vpop.permute.xlu0 %3600 }
0x1e09   : > { %v3605_v26 = vmul.f32 %v3601_v42, %v3595_v40  ;;  %v12914_v27 = vadd.f32 %v3604_v25, %v3592_v45 }
0x1e0b   : > { %v12916_v46 = vadd.f32 %v3605_v26, %v3593_v36  ;;  %v13009_v26 = vld [vmem:[%s14817_s8] sm:$0xff]  }
0x1e0c   : > { %v3739_v29 = vpop.permute.xlu0 %3738 }
0x1e0d   : > { %v3638_v53 = vpack.c.bf16 %v12916_v46, %v12914_v27 }
0x1e0f   : > { %3640 = vrot.lane.b32.xlu1 %v3638_v53, %s14918_s25  ;;  %v13019_v53 = vld [vmem:[%s14817_s8 + $0x8] sm:$0xff]  }
0x1e13   : > { %3740 = vrot.lane.b32.xlu1 %v12192_v5, %s14906_s0 }
0x1e81   : > { %v3641_v39 = vpop.permute.xlu1 %3640 }
0x1e82   : > { %10416 = vmatmul.mubr.msk.bf16.vlgmr.msra.gmra.mrb[8].mxu0 %vm863_vm0, %v3641_v39  ;;  %10417 = vmatmul.mubr.msk.bf16.vlgmr.msra.gmra.mrb[108].mxu1 %vm863_vm0, %v3641_v39 }
0x1e83   : > { %10991 = vmatpush3.bf16.msra.mxu0 %v12158_v56  ;;  %10992 = vmatprep.mubr.msk.bf16.mxu0 %vm11859_vm3, %v14908_v44 }
0x1e84   : > { %10997 = vmatpush3.bf16.msra.mxu1 %v12931_v51  ;;  %11000 = vmatprep.mubr.msk.bf16.mxu1 %vm11859_vm3, %v14908_v44 }
0x1e85   : > { %10998 = vmatprep.subr.bf16.mxu1 %v14908_v44  ;;  %11004 = vmatprep.subr.bf16.mxu0 %v14908_v44  ;;  %v3741_v17 = vpop.permute.xlu1 %3740 }
0x1e88   : > { %10999 = vmatpush3.bf16.msra.mxu1 %v12941_v58 }
0x1e89   : > { %11010 = vmatprep.subr.bf16.mxu1 %v14908_v44 }
0x1f55   : > { %v12945_v61 = vpop.f32.mrb[108].mxu1 }
0x1f56   : > { %3790 = vrot.lane.b32.xlu0 %v12945_v61, %s14917_s4  ;;  %v3724_v33 = vpop.f32.mrb[109].mxu1 }
0x1f57   : > { %v3731_v11 = vadd.f32 %v12958_v22, %v3724_v33  ;;  %v12961_v49 = vpop.f32.mrb[110].mxu1 }
0x1f58   : > { %3792 = vrot.lane.b32.xlu1 %v12961_v49, %s14917_s4  ;;  %v3728_v59 = vpop.f32.mrb[111].mxu1 }
0x1f59   : > { %4679 = vst.msk [vmem:[%s12253_s29 + $0x20] sm:$0xff] %vm947_vm2, %v3731_v11  ;;  %v3732_v18 = vadd.f32 %v12958_v22, %v3728_v59  ;;  %v3733_v9 = vsel %vm3628_vm13, %v12964_v24, %v3731_v11  ;;  %v13039_v11 = vld [vmem:[%s14913_s10 + $0x8] sm:$0xff]  }
0x1f5b   : > { %v3734_v60 = vsel %vm3629_vm14, %v12970_v0, %v3732_v18  ;;  %4680 = vst.msk [vmem:[%s12253_s29 + $0x28] sm:$0xff] %vm947_vm2, %v3732_v18 }
0x1f5c   : > { %v3735_v15 = vpack.c.bf16 %v3734_v60, %v3733_v9  ;;  %3935 = vrot.lane.b32.xlu1 %v12945_v61, %s14906_s0 }
0x1f5e   : > { %10993 = vmatmul.mubr.msk.bf16.vlgmr.msra.gmra.mrb[92].mxu0 %vm947_vm2, %v3735_v15 }
0x1f5f   : > { %11006 = vmatprep.mubr.msk.bf16.mxu0 %vm11859_vm3, %v14908_v44 }
0x1f60   : > { %3996 = vrot.lane.b32.xlu1 %v3724_v33, %s14919_s24  ;;  %v13030_v33 = vld [vmem:[%s14913_s10] sm:$0xff]  }
0x1fc8   : > { %v3791_v20 = vpop.permute.xlu0 %3790 }
0x1fca   : > { %v3793_v54 = vpop.permute.xlu1 %3792 }
0x2031   : > { %v3781_v8 = vpop.f32.mrb[92].mxu0 }
0x2032   : > { %v3782_v43 = vadd.f32 %v3781_v8, %v3739_v29  ;;  %v10994_v35 = vpop.f32.mrb[93].mxu0 }
0x2033   : > { %v3784_v41 = vpop.f32.mrb[94].mxu0 }
0x2034   : > { %v3796_v50 = vadd.f32 %v3791_v20, %v3782_v43  ;;  %v3785_v14 = vadd.f32 %v3784_v41, %v3741_v17  ;;  %v10995_v31 = vpop.f32.mrb[95].mxu0  ;;  %v13047_v20 = vld [vmem:[%s14823_s14] ss:$0 sm:$0xff] }
0x2035   : > { %v3936_v31 = vpop.permute.xlu1 %3935 }
0x2036   : > { %v3797_v30 = vadd.f32 %v3793_v54, %v3785_v14  ;;  %v3798_v1 = vadd.f32 %v12993_v47, %v3796_v50 }
0x2038   : > { %v3799_v21 = vadd.f32 %v12993_v47, %v3797_v30 }
0x203a   : > { %v3800_v37 = vpack.c.bf16 %v3799_v21, %v3798_v1 }
0x203c   : > { %11001 = vmatmul.mubr.msk.bf16.vlgmr.msra.gmra.mrb[112].mxu1 %vm863_vm0, %v3800_v37 }
0x203d   : > { %11012 = vmatprep.mubr.msk.bf16.mxu1 %vm11859_vm3, %v14908_v44 }
0x210f   : > { %v3838_v25 = vpop.f32.mrb[112].mxu1 }
0x2110   : > { %v11002_v40 = vpop.f32.mrb[113].mxu1 }
0x2111   : > { %v3841_v42 = vpop.f32.mrb[114].mxu1 }
0x2112   : > { %v3845_v45 = vpack.c.bf16 %v3841_v42, %v3838_v25  ;;  %v11003_v36 = vpop.f32.mrb[115].mxu1  ;;  %v13058_v25 = vld [vmem:[%s14824_s15] ss:$0 sm:$0xff] }
0x2114   : > { %3847 = vrot.lane.b32.xlu0 %v3845_v45, %s14918_s25  ;;  %11011 = vmatpush3.bf16.msra.mxu1 %v3845_v45 }
0x2115   : > { %11024 = vmatprep.subr.bf16.mxu1 %v14908_v44 }
0x2117   : > { %11013 = vmatmul.mubr.msk.bf16.vlgmr.msra.gmra.mrb[116].mxu1 %vm1573_vm6, %v12818_v57 }
0x2118   : > { %3937 = vrot.lane.b32.xlu0 %v12961_v49, %s14906_s0  ;;  %11025 = vmatpush3.bf16.msra.mxu1 %v13009_v26 }
0x2119   : > { %11026 = vmatprep.subr.bf16.mxu1 %v14908_v44  ;;  %11028 = vmatprep.mubr.msk.bf16.mxu1 %vm11859_vm3, %v14908_v44 }
0x211c   : > { %3998 = vrot.lane.b32.xlu0 %v3728_v59, %s14919_s24  ;;  %11027 = vmatpush3.bf16.msra.mxu1 %v13019_v53 }
0x211d   : > { %10426 = vmatprep.subr.msk.bf16.mxu1 %vm972_vm1, %v12369_v34 }
0x2186   : > { %v3848_v39 = vpop.permute.xlu0 %3847 }
0x2187   : > { %11005 = vmatpush3.bf16.msra.mxu0 %v3848_v39 }
0x2188   : > { %11016 = vmatprep.subr.bf16.mxu0 %v14908_v44 }
0x218a   : > { %11007 = vmatmul.mubr.msk.bf16.vlgmr.msra.gmra.mrb[96].mxu0 %vm1573_vm6, %v12833_v52  ;;  %v3938_v21 = vpop.permute.xlu0 %3937 }
0x218b   : > { %11017 = vmatpush3.bf16.msra.mxu0 %v13030_v33  ;;  %11020 = vmatprep.mubr.msk.bf16.mxu0 %vm11859_vm3, %v14908_v44 }
0x218c   : > { %11018 = vmatprep.subr.bf16.mxu0 %v14908_v44 }
0x218f   : > { %11019 = vmatpush3.bf16.msra.mxu0 %v13039_v11 }
0x2190   : > { %10424 = vmatprep.subr.msk.bf16.mxu0 %vm972_vm1, %v12341_v32 }
0x21ea   : > { %v3925_v59 = vpop.f32.mrb[116].mxu1 }
0x21eb   : > { %v11014_v18 = vpop.f32.mrb[117].mxu1 }
0x21ec   : > { %v3928_v9 = vpop.f32.mrb[118].mxu1 }
0x21ed   : > { %v11015_v60 = vpop.f32.mrb[119].mxu1 }
0x225d   : > { %v3884_v15 = vpop.f32.mrb[96].mxu0 }
0x225e   : > { %v3926_v29 = vadd.f32 %v3925_v59, %v3884_v15  ;;  %v11008_v17 = vpop.f32.mrb[97].mxu0  ;;  %v3997_v15 = vpop.permute.xlu1 %3996 }
0x225f   : > { %v3887_v8 = vpop.f32.mrb[98].mxu0 }
0x2260   : > { %v3929_v43 = vadd.f32 %v3928_v9, %v3887_v8  ;;  %v11009_v35 = vpop.f32.mrb[99].mxu0  ;;  %v3932_v41 = vadd.f32 %v13047_v20, %v3926_v29 }
0x2262   : > { %v3933_v50 = vadd.f32 %v13047_v20, %v3929_v43  ;;  %v3999_v43 = vpop.permute.xlu0 %3998 }
0x2264   : > { %v3934_v14 = vpack.c.bf16 %v3933_v50, %v3932_v41  ;;  %v13075_v41 = vld [vmem:[%s14825_s16] ss:$0 sm:$0xff] }
0x2266   : > { %11021 = vmatmul.mubr.msk.bf16.vlgmr.msra.gmra.mrb[100].mxu0 %vm863_vm0, %v3934_v14 }
0x2267   : > { %4055 = vmatpush1.bf16.msra.mxu0 %v12404_v6  ;;  %4086 = vmatprep.mubr.bf16.mxu0 %v14914_v12 }
0x2268   : > { %11032 = vmatprep.subr.bf16.mxu0 %v14908_v44 }
0x2339   : > { %v3978_v54 = vpop.f32.mrb[100].mxu0 }
0x233a   : > { %v3979_v30 = vadd.f32 %v3978_v54, %v3936_v31  ;;  %v11022_v1 = vpop.f32.mrb[101].mxu0 }
0x233b   : > { %v3981_v37 = vpop.f32.mrb[102].mxu0 }
0x233c   : > { %v3985_v40 = vadd.f32 %v13058_v25, %v3979_v30  ;;  %v3982_v42 = vadd.f32 %v3981_v37, %v3938_v21  ;;  %v11023_v45 = vpop.f32.mrb[103].mxu0 }
0x233e   : > { %vm3987_vm15 = vcmp.gt.f32.partialorder %v3985_v40, 0.0  ;;  %v3989_v36 = vmul.f32 %v3985_v40, %v12380_v23  ;;  %v3986_v39 = vadd.f32 %v13058_v25, %v3982_v42 }
0x2340   : > { %v3991_v59 = vsel %vm3987_vm15, %v3985_v40, %v3989_v36  ;;  %vm3988_vm4 = vcmp.gt.f32.partialorder %v3986_v39, 0.0  ;;  %v3990_v18 = vmul.f32 %v3986_v39, %v12380_v23  ;;  %v14920_v36 = vld [vmem:[#allocation8_spill] sm:$0xff] }
0x2341   : > { %4683 = vst.msk [vmem:[%s12392_s6 + $0x20] sm:$0xff] %vm863_vm0, %v3991_v59 }
0x2342   : > { %v3992_v9 = vsel %vm3988_vm4, %v3986_v39, %v3990_v18 }
0x2343   : > { %v3993_v60 = vpack.c.bf16 %v3992_v9, %v3991_v59  ;;  %4684 = vst.msk [vmem:[%s12392_s6 + $0x28] sm:$0xff] %vm863_vm0, %v3992_v9 }
0x2345   : > { %11029 = vmatmul.mubr.msk.bf16.vlgmr.msra.gmra.mrb[120].mxu1 %vm863_vm0, %v3993_v60 }
0x2346   : > { %4098 = vmatpush1.bf16.msra.mxu1 %v12408_v13  ;;  %4129 = vmatprep.mubr.bf16.mxu1 %v14914_v12 }
0x2347   : > { %11038 = vmatprep.subr.bf16.mxu1 %v14908_v44 }
0x2418   : > { %v4039_v29 = vpop.f32.mrb[120].mxu1 }
0x2419   : > { %v4040_v17 = vadd.f32 %v4039_v29, %v3997_v15  ;;  %v11030_v8 = vpop.f32.mrb[121].mxu1  ;;  %v13144_v29 = vld [vmem:[%s14820_s11 + $0x10] ss:$8 sps:$4 sm:$0xff]  }
0x241a   : > { %v4042_v35 = vpop.f32.mrb[122].mxu1 }
0x241b   : > { %v4046_v50 = vadd.f32 %v13075_v41, %v4040_v17  ;;  %v4043_v14 = vadd.f32 %v4042_v35, %v3999_v43  ;;  %v11031_v31 = vpop.f32.mrb[123].mxu1 }
0x241d   : > { %4681 = vst.msk [vmem:[%s12423_s20 + $0x20] sm:$0xff] %vm947_vm2, %v4046_v50  ;;  %v4047_v54 = vadd.f32 %v13075_v41, %v4043_v14  ;;  %v4048_v30 = vsel %vm3628_vm13, %v12964_v24, %v4046_v50 }
0x241f   : > { %v4049_v1 = vsel %vm3629_vm14, %v12970_v0, %v4047_v54  ;;  %4682 = vst.msk [vmem:[%s12423_s20 + $0x28] sm:$0xff] %vm947_vm2, %v4047_v54 }
0x2420   : > { %v4050_v21 = vpack.c.bf16 %v4049_v1, %v4048_v30 }
0x2422   : > { %10425 = vmatmul.mubr.msk.bf16.vlgmr.msra.gmra.mrb[8].mxu0 %vm947_vm2, %v4050_v21  ;;  %10427 = vmatmul.mubr.msk.bf16.vlgmr.msra.gmra.mrb[124].mxu1 %vm947_vm2, %v4050_v21 }
0x2423   : > { %11034 = vmatprep.mubr.msk.bf16.mxu0 %vm11859_vm3, %v14908_v44  ;;  %11040 = vmatprep.mubr.msk.bf16.mxu1 %vm11859_vm3, %v14908_v44 }
0x24f5   : > { %v13095_v37 = vpop.f32.mrb[8].mxu0  ;;  %v4131_v16 = vpop.f32.mrb[124].mxu1 }
0x24f6   : > { %v13098_v24 = vadd.f32 %v4131_v16, %v12186_v2  ;;  %v4090_v7 = vpop.f32.mrb[9].mxu0  ;;  %v4133_v0 = vpop.f32.mrb[125].mxu1 }
0x24f7   : > { %v13101_v40 = vadd.f32 %v4133_v0, %v12188_v3  ;;  %v13103_v42 = vpop.f32.mrb[10].mxu0  ;;  %v4135_v45 = vpop.f32.mrb[126].mxu1 }
0x24f8   : > { %v13106_v39 = vadd.f32 %v4135_v45, %v14920_v36  ;;  %v4094_v59 = vpop.f32.mrb[11].mxu0  ;;  %v4137_v18 = vpop.f32.mrb[127].mxu1  ;;  %v4150_v2 = vadd.f32 %v13098_v24, %v12945_v61  ;;  %v13131_v61 = vld [vmem:[%s14820_s11] ss:$8 sps:$4 sm:$0xff]  }
0x24f9   : > { %v4152_v9 = vpack.c.bf16 %v4094_v59, %v4090_v7  ;;  %v13109_v60 = vadd.f32 %v4137_v18, %v12192_v5  ;;  %v13123_v5 = vld [vmem:[%s14820_s11 + $0x4] ss:$8 sps:$4 sm:$0xff]  }
0x24fa   : > { %v4151_v15 = vadd.f32 %v13106_v39, %v12961_v49  ;;  %v13138_v49 = vld [vmem:[%s14820_s11 + $0x14] ss:$8 sps:$4 sm:$0xff]  }
0x24fb   : > { %11033 = vmatpush3.bf16.msra.mxu0 %v4152_v9 }
0x24fc   : > { %v4252_v3 = vpack.c.bf16 %v4151_v15, %v4150_v2  ;;  %11044 = vmatprep.subr.bf16.mxu0 %v14908_v44 }
0x24fe   : > { %11035 = vmatmul.mubr.msk.bf16.vlgmr.msra.gmra.mrb[104].mxu0 %vm1573_vm6, %v12818_v57 }
0x24ff   : > { %11045 = vmatpush3.bf16.msra.mxu0 %v4252_v3  ;;  %11046 = vmatprep.mubr.msk.bf16.mxu0 %vm11859_vm3, %v14908_v44 }
0x2500   : > { %4372 = vmatprep.subr.bf16.mxu0 %v13123_v5 }
0x2506   : > { %11047 = vmatmul.mubr.msk.bf16.vlgmr.msra.gmra.mrb[108].mxu0 %vm1573_vm6, %v12833_v52 }
0x2507   : > { %4373 = vmatpush1.bf16.msra.mxu0 %v13131_v61  ;;  %4404 = vmatprep.mubr.bf16.mxu0 %v14914_v12 }
0x2508   : > { %4374 = vmatprep.subr.bf16.mxu0 %v13138_v49 }
0x250b   : > { %4375 = vmatpush1.bf16.msra.mxu0 %v13144_v29 }
0x250c   : > { %11062 = vmatprep.subr.bf16.mxu0 %v14908_v44 }
0x25d1   : > { %v4187_v17 = vpop.f32.mrb[104].mxu0 }
0x25d2   : > { %4196 = vrot.lane.b32.xlu1 %v4187_v17, %s14917_s4  ;;  %v11036_v8 = vpop.f32.mrb[105].mxu0 }
0x25d3   : > { %v4190_v43 = vpop.f32.mrb[106].mxu0 }
0x25d4   : > { %4198 = vrot.lane.b32.xlu0 %v4190_v43, %s14917_s4  ;;  %v11037_v35 = vpop.f32.mrb[107].mxu0 }
0x25d9   : > { %v4287_v50 = vpop.f32.mrb[108].mxu0 }
0x25da   : > { %4296 = vrot.lane.b32.xlu1 %v4287_v50, %s14917_s4  ;;  %v11048_v14 = vpop.f32.mrb[109].mxu0 }
0x25db   : > { %v4290_v31 = vpop.f32.mrb[110].mxu0 }
0x25dc   : > { %4298 = vrot.lane.b32.xlu0 %v4290_v31, %s14917_s4  ;;  %v11049_v54 = vpop.f32.mrb[111].mxu0 }
0x2644   : > { %v4197_v30 = vpop.permute.xlu1 %4196 }
0x2645   : > { %v4202_v21 = vadd.f32 %v4197_v30, %v13095_v37 }
0x2646   : > { %v4199_v1 = vpop.permute.xlu0 %4198 }
0x2647   : > { %v4203_v16 = vadd.f32 %v4199_v1, %v13103_v42 }
0x2649   : > { %v4204_v0 = vpack.c.bf16 %v4203_v16, %v4202_v21  ;;  %v13179_v21 = vld [vmem:[%s14826_s17] ss:$0 sm:$0xff] }
0x264b   : > { %4206 = vrot.lane.b32.xlu1 %v4204_v0, %s14917_s4 }
0x264c   : > { %v4297_v45 = vpop.permute.xlu1 %4296 }
0x264d   : > { %v4302_v18 = vadd.f32 %v4297_v45, %v4090_v7 }
0x264e   : > { %v4299_v36 = vpop.permute.xlu0 %4298 }
0x264f   : > { %v4303_v9 = vadd.f32 %v4299_v36, %v4094_v59  ;;  %3616 = vrot.lane.b32.xlu1 %v12914_v27, %s14918_s25 }
0x2651   : > { %v4304_v2 = vpack.c.bf16 %v4303_v9, %v4302_v18 }
0x2653   : > { %4306 = vrot.lane.b32.xlu0 %v4304_v2, %s14917_s4 }
0x2657   : > { %3618 = vrot.lane.b32.xlu0 %v12916_v46, %s14918_s25 }
0x26bd   : > { %v4207_v15 = vpop.permute.xlu1 %4206 }
0x26be   : > { %11039 = vmatpush3.bf16.msra.mxu1 %v4207_v15 }
0x26bf   : > { %11050 = vmatprep.subr.bf16.mxu1 %v14908_v44 }
0x26c1   : > { %11041 = vmatmul.mubr.msk.bf16.vlgmr.msra.gmra.mrb[128].mxu1 %vm1573_vm6, %v12818_v57  ;;  %v3617_v3 = vpop.permute.xlu1 %3616 }
0x26c2   : > { %3622 = vst.msk [vmem:[%s12776_s21 + $0x10] sm:$0xff] %vm863_vm0, %v3617_v3  ;;  %11052 = vmatprep.mubr.msk.bf16.mxu1 %vm11859_vm3, %v14908_v44 }
0x26c5   : > { %v4307_v7 = vpop.permute.xlu0 %4306 }
0x26c6   : > { %11051 = vmatpush3.bf16.msra.mxu1 %v4307_v7 }
0x26c7   : > { %11056 = vmatprep.subr.bf16.mxu1 %v14908_v44 }
0x26c9   : > { %11053 = vmatmul.mubr.msk.bf16.vlgmr.msra.gmra.mrb[132].mxu1 %vm1573_vm6, %v12833_v52  ;;  %v3619_v59 = vpop.permute.xlu0 %3618 }
0x26ca   : > { %3623 = vst.msk [vmem:[%s12776_s21 + $0x18] sm:$0xff] %vm863_vm0, %v3619_v59  ;;  %11058 = vmatprep.mubr.msk.bf16.mxu1 %vm11859_vm3, %v14908_v44 }
0x2794   : > { %v4243_v17 = vpop.f32.mrb[128].mxu1 }
0x2795   : > { %v4250_v8 = vadd.f32 %v4243_v17, %v13095_v37  ;;  %v11042_v43 = vpop.f32.mrb[129].mxu1 }
0x2796   : > { %v4246_v35 = vpop.f32.mrb[130].mxu1 }
0x2797   : > { %v4251_v50 = vadd.f32 %v4246_v35, %v13103_v42  ;;  %v11043_v14 = vpop.f32.mrb[131].mxu1 }
0x279c   : > { %v4343_v31 = vpop.f32.mrb[132].mxu1 }
0x279d   : > { %v4350_v54 = vadd.f32 %v4343_v31, %v4250_v8  ;;  %v11054_v30 = vpop.f32.mrb[133].mxu1 }
0x279e   : > { %v4346_v1 = vpop.f32.mrb[134].mxu1 }
0x279f   : > { %v4352_v16 = vadd.f32 %v13179_v21, %v4350_v54  ;;  %v4351_v0 = vadd.f32 %v4346_v1, %v4251_v50  ;;  %v11055_v45 = vpop.f32.mrb[135].mxu1 }
0x27a1   : > { %v10432_v36 = vmul.f32 -1.442695, %v4352_v16  ;;  %v4353_v37 = vadd.f32 %v13179_v21, %v4351_v0 }
0x27a3   : > { %11680 = vpow2.f32 %v10432_v36  ;;  %v10433_v18 = vmul.f32 -1.442695, %v4353_v37 }
0x27a5   : > { %11682 = vpow2.f32 %v10433_v18 }
0x27ad   : > { %v11681_v42 = vpop.eup %11680 }
0x27ae   : > { %v4360_v9 = vadd.f32 1.0, %v11681_v42 }
0x27af   : > { %v11683_v2 = vpop.eup %11682 }
0x27b0   : > { %11684 = vrcp.f32 %v4360_v9  ;;  %v4361_v15 = vadd.f32 1.0, %v11683_v2 }
0x27b2   : > { %11686 = vrcp.f32 %v4361_v15 }
0x27ba   : > { %v13183_v7 = vpop.eup %11684 }
0x27bb   : > { %v4366_v8 = vmul.f32 %v13183_v7, %v3617_v3 }
0x27bc   : > { %v13185_v17 = vpop.eup %11686 }
0x27bd   : > { %v4367_v43 = vmul.f32 %v13185_v17, %v3619_v59 }
0x27bf   : > { %v4368_v35 = vpack.c.bf16 %v4367_v43, %v4366_v8 }
0x27c1   : > { %10434 = vmatmul.mubr.msk.bf16.vlgmr.msra.gmra.mrb[112].mxu0 %vm863_vm0, %v4368_v35 }
0x27c2   : > { %11064 = vmatprep.mubr.msk.bf16.mxu0 %vm11859_vm3, %v14908_v44 }
0x2894   : > { %v4406_v50 = vpop.f32.mrb[112].mxu0 }
0x2895   : > { %v4408_v14 = vpop.f32.mrb[113].mxu0 }
0x2896   : > { %4431 = vrot.lane.b32.xlu1 %v4408_v14, %s14917_s4  ;;  %v4410_v31 = vpop.f32.mrb[114].mxu0 }
0x2897   : > { %v4412_v54 = vpop.f32.mrb[115].mxu0 }
0x2898   : > { %4433 = vrot.lane.b32.xlu0 %v4412_v54, %s14917_s4 }
0x289a   : > { %4417 = vrot.lane.b32.xlu1 %v4406_v50, %s14917_s4 }
0x289c   : > { %4419 = vrot.lane.b32.xlu0 %v4410_v31, %s14917_s4 }
0x2908   : > { %v4432_v3 = vpop.permute.xlu1 %4431 }
0x2909   : > { %v4437_v30 = vadd.f32 %v4432_v3, %v13101_v40 }
0x290a   : > { %v4434_v59 = vpop.permute.xlu0 %4433 }
0x290b   : > { %v4438_v1 = vadd.f32 %v4434_v59, %v13109_v60 }
0x290c   : > { %v4418_v16 = vpop.permute.xlu1 %4417 }
0x290d   : > { %v4547_v0 = vpack.c.bf16 %v4438_v1, %v4437_v30  ;;  %v4427_v36 = vadd.f32 %v13101_v40, %v4418_v16 }
0x290e   : > { %v4420_v45 = vpop.permute.xlu0 %4419 }
0x290f   : > { %v4428_v37 = vadd.f32 %v13109_v60, %v4420_v45  ;;  %4549 = vrot.lane.b32.xlu1 %v4547_v0, %s14917_s4  ;;  %v4424_v43 = vadd.f32 %v4420_v45, %v13106_v39 }
0x2911   : > { %v4439_v18 = vpack.c.bf16 %v4428_v37, %v4427_v36 }
0x2913   : > { %11057 = vmatpush3.bf16.msra.mxu1 %v4439_v18 }
0x2914   : > { %11068 = vmatprep.subr.bf16.mxu1 %v14908_v44 }
0x2916   : > { %11059 = vmatmul.mubr.msk.bf16.vlgmr.msra.gmra.mrb[136].mxu1 %vm1573_vm6, %v12818_v57 }
0x2917   : > { %11070 = vmatprep.mubr.msk.bf16.mxu1 %vm11859_vm3, %v14908_v44 }
0x2981   : > { %v4550_v42 = vpop.permute.xlu1 %4549 }
0x2982   : > { %11069 = vmatpush3.bf16.msra.mxu1 %v4550_v42 }
0x2983   : > { %4759 = vmatprep.subr.bf16.mxu1 %v12873_v48 }
0x2985   : > { %11071 = vmatmul.mubr.msk.bf16.vlgmr.msra.gmra.mrb[140].mxu1 %vm1573_vm6, %v12833_v52 }
0x2986   : > { %4760 = vmatpush1.bf16.msra.mxu1 %v12881_v10  ;;  %4791 = vmatprep.mubr.bf16.mxu1 %v14914_v12 }
0x2987   : > { %4761 = vmatprep.subr.bf16.mxu1 %v12888_v62 }
0x298a   : > { %4762 = vmatpush1.bf16.msra.mxu1 %v12894_v63  ;;  %v4423_v63 = vadd.f32 %v4418_v16, %v13098_v24 }
0x298b   : > { %11080 = vmatprep.subr.bf16.mxu1 %v14908_v44 }
0x29e9   : > { %v4474_v40 = vpop.f32.mrb[136].mxu1 }
0x29ea   : > { %4483 = vrot.lane.b32.xlu0 %v4474_v40, %s14918_s25  ;;  %v11060_v60 = vpop.f32.mrb[137].mxu1 }
0x29eb   : > { %v4477_v9 = vpop.f32.mrb[138].mxu1 }
0x29ec   : > { %4485 = vrot.lane.b32.xlu1 %v4477_v9, %s14918_s25  ;;  %v11061_v48 = vpop.f32.mrb[139].mxu1 }
0x2a58   : > { %v4586_v2 = vpop.f32.mrb[140].mxu1 }
0x2a59   : > { %4595 = vrot.lane.b32.xlu0 %v4586_v2, %s14906_s0  ;;  %v11072_v10 = vpop.f32.mrb[141].mxu1 }
0x2a5a   : > { %v4589_v15 = vpop.f32.mrb[142].mxu1 }
0x2a5b   : > { %4597 = vrot.lane.b32.xlu1 %v4589_v15, %s14906_s0  ;;  %v11073_v62 = vpop.f32.mrb[143].mxu1 }
0x2a5c   : > { %v4484_v8 = vpop.permute.xlu0 %4483 }
0x2a5d   : > { %v4489_v50 = vadd.f32 %v4484_v8, %v4423_v63 }
0x2a5e   : > { %v4486_v35 = vpop.permute.xlu1 %4485 }
0x2a5f   : > { %v4490_v14 = vadd.f32 %v4486_v35, %v4424_v43  ;;  %v14921_v35 = vld [vmem:[#allocation10_spill] sm:$0xff] }
0x2a61   : > { %v4491_v31 = vpack.c.bf16 %v4490_v14, %v4489_v50  ;;  %v4666_v14 = vsub.f32 1.0, %v13185_v17 }
0x2a63   : > { %4493 = vrot.lane.b32.xlu0 %v4491_v31, %s14906_s0 }
0x2acb   : > { %v4596_v54 = vpop.permute.xlu0 %4595 }
0x2acc   : > { %v4601_v59 = vadd.f32 %v4596_v54, %v4427_v36  ;;  %v4663_v54 = vmul.f32 %v13183_v7, %v12914_v27 }
0x2acd   : > { %v4598_v3 = vpop.permute.xlu1 %4597 }
0x2ace   : > { %v4602_v30 = vadd.f32 %v4598_v3, %v4428_v37  ;;  %v4664_v3 = vmul.f32 %v13185_v17, %v12916_v46  ;;  %v13275_v46 = vld [vmem:[%s12031_s3 + $0x30] sm:$0xff] }
0x2acf   : > { %vm4699_vm5 = vcmp.gt.f32.partialorder %v13275_v46, 0.5 }
0x2ad0   : > { %v4603_v1 = vpack.c.bf16 %v4602_v30, %v4601_v59 }
0x2ad2   : > { %4605 = vrot.lane.b32.xlu1 %v4603_v1, %s14918_s25 }
0x2ad5   : > { %v4494_v0 = vpop.permute.xlu0 %4493 }
0x2ad6   : > { %11063 = vmatpush3.bf16.msra.mxu0 %v4494_v0 }
0x2ad7   : > { %11074 = vmatprep.subr.bf16.mxu0 %v14908_v44 }
0x2ad9   : > { %11065 = vmatmul.mubr.msk.bf16.vlgmr.msra.gmra.mrb[116].mxu0 %vm1573_vm6, %v12818_v57 }
0x2ada   : > { %11076 = vmatprep.mubr.msk.bf16.mxu0 %vm11859_vm3, %v14908_v44 }
0x2b44   : > { %v4606_v24 = vpop.permute.xlu1 %4605 }
0x2b45   : > { %11075 = vmatpush3.bf16.msra.mxu0 %v4606_v24  ;;  %v14922_v24 = vld [vmem:[#allocation12_spill] sm:$0xff] }
0x2b46   : > { %4716 = vmatprep.subr.bf16.mxu0 %v12827_v28 }
0x2b48   : > { %11077 = vmatmul.mubr.msk.bf16.vlgmr.msra.gmra.mrb[120].mxu0 %vm1573_vm6, %v12833_v52 }
0x2b49   : > { %4717 = vmatpush1.bf16.msra.mxu0 %v12840_v4  ;;  %4748 = vmatprep.mubr.bf16.mxu0 %v14914_v12 }
0x2b4a   : > { %4718 = vmatprep.subr.bf16.mxu0 %v12847_v38 }
0x2b4d   : > { %4719 = vmatpush1.bf16.msra.mxu0 %v12853_v55 }
0x2b4e   : > { %11086 = vmatprep.subr.bf16.mxu0 %v14908_v44 }
0x2bac   : > { %v4530_v39 = vpop.f32.mrb[116].mxu0 }
0x2bad   : > { %4539 = vrot.lane.b32.xlu0 %v4530_v39, %s14917_s4  ;;  %v11066_v16 = vpop.f32.mrb[117].mxu0 }
0x2bae   : > { %v4533_v45 = vpop.f32.mrb[118].mxu0 }
0x2baf   : > { %4541 = vrot.lane.b32.xlu1 %v4533_v45, %s14917_s4  ;;  %v11067_v28 = vpop.f32.mrb[119].mxu0  ;;  %v13286_v45 = vld [vmem:[%s12245_s2 + $0x30] sm:$0xff] }
0x2c1b   : > { %v4642_v36 = vpop.f32.mrb[120].mxu0 }
0x2c1c   : > { %4651 = vrot.lane.b32.xlu0 %v4642_v36, %s14917_s4  ;;  %v11078_v4 = vpop.f32.mrb[121].mxu0 }
0x2c1d   : > { %v4645_v37 = vpop.f32.mrb[122].mxu0 }
0x2c1e   : > { %4653 = vrot.lane.b32.xlu1 %v4645_v37, %s14917_s4  ;;  %v11079_v38 = vpop.f32.mrb[123].mxu0 }
0x2c1f   : > { %v4540_v18 = vpop.permute.xlu0 %4539 }
0x2c20   : > { %v4545_v42 = vadd.f32 %v4540_v18, %v4423_v63  ;;  %v4665_v63 = vsub.f32 1.0, %v13183_v7  ;;  %v13278_v7 = vld [vmem:[%s12031_s3 + $0x38] sm:$0xff] }
0x2c21   : > { %v4542_v55 = vpop.permute.xlu1 %4541  ;;  %vm4700_vm7 = vcmp.gt.f32.partialorder %v13278_v7, 0.5 }
0x2c22   : > { %v4546_v60 = vadd.f32 %v4542_v55, %v4424_v43 }
0x2c8e   : > { %v4652_v40 = vpop.permute.xlu0 %4651 }
0x2c8f   : > { %v4657_v9 = vadd.f32 %v4652_v40, %v4545_v42 }
0x2c90   : > { %v4654_v48 = vpop.permute.xlu1 %4653 }
0x2c91   : > { %v4659_v2 = vadd.f32 %v4657_v9, %v12589_v19  ;;  %v4658_v10 = vadd.f32 %v4654_v48, %v4546_v60 }
0x2c93   : > { %11688 = vtanh.f32 %v4659_v2  ;;  %v4660_v15 = vadd.f32 %v4658_v10, %v12589_v19 }
0x2c95   : > { %11690 = vtanh.f32 %v4660_v15 }
0x2c9d   : > { %v11689_v62 = vpop.eup %11688 }
0x2c9e   : > { %4669 = vrot.lane.b32.xlu0 %v11689_v62, %s14918_s25 }
0x2c9f   : > { %v11691_v8 = vpop.eup %11690 }
0x2ca0   : > { %4671 = vrot.lane.b32.xlu1 %v11691_v8, %s14918_s25 }
0x2ca4   : > { %4809 = vrot.lane.b32.xlu1 %v14921_v35, %s14906_s0 }
0x2d10   : > { %v4670_v43 = vpop.permute.xlu0 %4669 }
0x2d11   : > { %v4675_v50 = vmul.f32 %v4670_v43, %v4665_v63 }
0x2d12   : > { %v4672_v31 = vpop.permute.xlu1 %4671 }
0x2d13   : > { %v4676_v59 = vmul.f32 %v4672_v31, %v4666_v14  ;;  %v13251_v30 = vadd.f32 %v4675_v50, %v4663_v54 }
0x2d15   : > { %v13253_v1 = vadd.f32 %v4676_v59, %v4664_v3 }
0x2d17   : > { %v4709_v0 = vpack.c.bf16 %v13253_v1, %v13251_v30 }
0x2d19   : > { %4711 = vrot.lane.b32.xlu0 %v4709_v0, %s14918_s25 }
0x2d1d   : > { %4811 = vrot.lane.b32.xlu0 %v14922_v24, %s14906_s0 }
0x2d8b   : > { %v4712_v39 = vpop.permute.xlu0 %4711 }
0x2d8c   : > { %10439 = vmatmul.mubr.msk.bf16.vlgmr.msra.gmra.mrb[12].mxu0 %vm863_vm0, %v4712_v39  ;;  %10440 = vmatmul.mubr.msk.bf16.vlgmr.msra.gmra.mrb[144].mxu1 %vm863_vm0, %v4712_v39 }
0x2d8d   : > { %11081 = vmatpush3.bf16.msra.mxu1 %v12158_v56  ;;  %11082 = vmatprep.mubr.msk.bf16.mxu1 %vm11859_vm3, %v14908_v44 }
0x2d8e   : > { %11087 = vmatpush3.bf16.msra.mxu0 %v12931_v51  ;;  %11090 = vmatprep.mubr.msk.bf16.mxu0 %vm11859_vm3, %v14908_v44 }
0x2d8f   : > { %11088 = vmatprep.subr.bf16.mxu0 %v14908_v44  ;;  %11094 = vmatprep.subr.bf16.mxu1 %v14908_v44  ;;  %v4812_v18 = vpop.permute.xlu0 %4811 }
0x2d92   : > { %11089 = vmatpush3.bf16.msra.mxu0 %v12941_v58  ;;  %v13292_v58 = vld [vmem:[%s12245_s2 + $0x38] sm:$0xff] }
0x2d93   : > { %11100 = vmatprep.subr.bf16.mxu0 %v14908_v44 }
0x2e5f   : > { %v13272_v27 = vpop.f32.mrb[144].mxu1 }
0x2e60   : > { %4861 = vrot.lane.b32.xlu1 %v13272_v27, %s14917_s4  ;;  %v4795_v51 = vpop.f32.mrb[145].mxu1 }
0x2e61   : > { %v4802_v17 = vadd.f32 %v12958_v22, %v4795_v51  ;;  %v13283_v16 = vpop.f32.mrb[146].mxu1 }
0x2e62   : > { %4863 = vrot.lane.b32.xlu0 %v13283_v16, %s14917_s4  ;;  %v4799_v28 = vpop.f32.mrb[147].mxu1 }
0x2e63   : > { %5750 = vst.msk [vmem:[%s12253_s29 + $0x30] sm:$0xff] %vm947_vm2, %v4802_v17  ;;  %v4803_v36 = vadd.f32 %v12958_v22, %v4799_v28  ;;  %v4804_v4 = vsel %vm4699_vm5, %v13286_v45, %v4802_v17  ;;  %v4810_v22 = vpop.permute.xlu1 %4809 }
0x2e65   : > { %v4805_v37 = vsel %vm4700_vm7, %v13292_v58, %v4803_v36  ;;  %5751 = vst.msk [vmem:[%s12253_s29 + $0x38] sm:$0xff] %vm947_vm2, %v4803_v36 }
0x2e66   : > { %v4806_v38 = vpack.c.bf16 %v4805_v37, %v4804_v4  ;;  %5006 = vrot.lane.b32.xlu0 %v13272_v27, %s14906_s0 }
0x2e68   : > { %11083 = vmatmul.mubr.msk.bf16.vlgmr.msra.gmra.mrb[148].mxu1 %vm947_vm2, %v4806_v38 }
0x2e69   : > { %11096 = vmatprep.mubr.msk.bf16.mxu1 %vm11859_vm3, %v14908_v44 }
0x2e6a   : > { %5067 = vrot.lane.b32.xlu0 %v4795_v51, %s14919_s24 }
0x2ed2   : > { %v4862_v60 = vpop.permute.xlu1 %4861 }
0x2ed4   : > { %v4864_v15 = vpop.permute.xlu0 %4863 }
0x2f3b   : > { %v4852_v55 = vpop.f32.mrb[148].mxu1 }
0x2f3c   : > { %v4853_v42 = vadd.f32 %v4852_v55, %v4810_v22  ;;  %v11084_v40 = vpop.f32.mrb[149].mxu1 }
0x2f3d   : > { %v4855_v9 = vpop.f32.mrb[150].mxu1 }
0x2f3e   : > { %v4867_v48 = vadd.f32 %v4862_v60, %v4853_v42  ;;  %v4856_v2 = vadd.f32 %v4855_v9, %v4812_v18  ;;  %v11085_v10 = vpop.f32.mrb[151].mxu1 }
0x2f40   : > { %v4868_v62 = vadd.f32 %v4864_v15, %v4856_v2  ;;  %v4869_v8 = vadd.f32 %v12993_v47, %v4867_v48 }
0x2f42   : > { %v4870_v63 = vadd.f32 %v12993_v47, %v4868_v62 }
0x2f44   : > { %v4871_v43 = vpack.c.bf16 %v4870_v63, %v4869_v8 }
0x2f46   : > { %11091 = vmatmul.mubr.msk.bf16.vlgmr.msra.gmra.mrb[124].mxu0 %vm863_vm0, %v4871_v43 }
0x2f47   : > { %11102 = vmatprep.mubr.msk.bf16.mxu0 %vm11859_vm3, %v14908_v44 }
0x3019   : > { %v4909_v50 = vpop.f32.mrb[124].mxu0 }
0x301a   : > { %v11092_v14 = vpop.f32.mrb[125].mxu0 }
0x301b   : > { %v4912_v31 = vpop.f32.mrb[126].mxu0 }
0x301c   : > { %v4916_v54 = vpack.c.bf16 %v4912_v31, %v4909_v50  ;;  %v11093_v3 = vpop.f32.mrb[127].mxu0 }
0x301e   : > { %4918 = vrot.lane.b32.xlu1 %v4916_v54, %s14918_s25  ;;  %11101 = vmatpush3.bf16.msra.mxu0 %v4916_v54 }
0x301f   : > { %11114 = vmatprep.subr.bf16.mxu0 %v14908_v44 }
0x3021   : > { %11103 = vmatmul.mubr.msk.bf16.vlgmr.msra.gmra.mrb[128].mxu0 %vm1573_vm6, %v12818_v57 }
0x3022   : > { %5008 = vrot.lane.b32.xlu1 %v13283_v16, %s14906_s0  ;;  %11115 = vmatpush3.bf16.msra.mxu0 %v13009_v26 }
0x3023   : > { %11116 = vmatprep.subr.bf16.mxu0 %v14908_v44  ;;  %11118 = vmatprep.mubr.msk.bf16.mxu0 %vm11859_vm3, %v14908_v44 }
0x3026   : > { %5069 = vrot.lane.b32.xlu1 %v4799_v28, %s14919_s24  ;;  %11117 = vmatpush3.bf16.msra.mxu0 %v13019_v53 }
0x3027   : > { %10447 = vmatprep.subr.msk.bf16.mxu0 %vm972_vm1, %v12341_v32 }
0x3090   : > { %v4919_v47 = vpop.permute.xlu1 %4918 }
0x3091   : > { %11095 = vmatpush3.bf16.msra.mxu1 %v4919_v47 }
0x3092   : > { %11106 = vmatprep.subr.bf16.mxu1 %v14908_v44 }
0x3094   : > { %11097 = vmatmul.mubr.msk.bf16.vlgmr.msra.gmra.mrb[152].mxu1 %vm1573_vm6, %v12833_v52  ;;  %v5009_v18 = vpop.permute.xlu1 %5008 }
0x3095   : > { %11107 = vmatpush3.bf16.msra.mxu1 %v13030_v33  ;;  %11110 = vmatprep.mubr.msk.bf16.mxu1 %vm11859_vm3, %v14908_v44 }
0x3096   : > { %11108 = vmatprep.subr.bf16.mxu1 %v14908_v44 }
0x3098   : > { %v5070_v43 = vpop.permute.xlu1 %5069 }
0x3099   : > { %11109 = vmatpush3.bf16.msra.mxu1 %v13039_v11  ;;  %v5007_v11 = vpop.permute.xlu0 %5006 }
0x309a   : > { %10449 = vmatprep.subr.msk.bf16.mxu1 %vm972_vm1, %v12369_v34 }
0x30f4   : > { %v4996_v57 = vpop.f32.mrb[128].mxu0 }
0x30f5   : > { %v11104_v26 = vpop.f32.mrb[129].mxu0 }
0x30f6   : > { %v4999_v53 = vpop.f32.mrb[130].mxu0 }
0x30f7   : > { %v11105_v59 = vpop.f32.mrb[131].mxu0 }
0x3167   : > { %v4955_v0 = vpop.f32.mrb[152].mxu1 }
0x3168   : > { %v4997_v39 = vadd.f32 %v4996_v57, %v4955_v0  ;;  %v11098_v51 = vpop.f32.mrb[153].mxu1 }
0x3169   : > { %v4958_v52 = vpop.f32.mrb[154].mxu1  ;;  %v14924_v51 = vld [vmem:[#allocation11_spill] sm:$0xff] }
0x316a   : > { %v5000_v17 = vadd.f32 %v4999_v53, %v4958_v52  ;;  %v11099_v33 = vpop.f32.mrb[155].mxu1  ;;  %v5003_v28 = vadd.f32 %v13047_v20, %v4997_v39 }
0x316c   : > { %v5004_v36 = vadd.f32 %v13047_v20, %v5000_v17 }
0x316e   : > { %v5005_v4 = vpack.c.bf16 %v5004_v36, %v5003_v28 }
0x3170   : > { %11111 = vmatmul.mubr.msk.bf16.vlgmr.msra.gmra.mrb[156].mxu1 %vm863_vm0, %v5005_v4 }
0x3171   : > { %5169 = vmatpush1.bf16.msra.mxu1 %v12408_v13  ;;  %5200 = vmatprep.mubr.bf16.mxu1 %v14914_v12 }
0x3172   : > { %11122 = vmatprep.subr.bf16.mxu1 %v14908_v44 }
0x3243   : > { %v5049_v37 = vpop.f32.mrb[156].mxu1 }
0x3244   : > { %v5050_v38 = vadd.f32 %v5049_v37, %v5007_v11  ;;  %v11112_v22 = vpop.f32.mrb[157].mxu1  ;;  %v13401_v37 = vld [vmem:[%s14910_s1] sm:$0xff]  }
0x3245   : > { %v5052_v55 = vpop.f32.mrb[158].mxu1 }
0x3246   : > { %v5056_v42 = vadd.f32 %v13058_v25, %v5050_v38  ;;  %v5053_v20 = vadd.f32 %v5052_v55, %v5009_v18  ;;  %v11113_v40 = vpop.f32.mrb[159].mxu1 }
0x3248   : > { %vm5058_vm8 = vcmp.gt.f32.partialorder %v5056_v42, 0.0  ;;  %v5060_v60 = vmul.f32 %v5056_v42, %v12380_v23  ;;  %v5057_v9 = vadd.f32 %v13058_v25, %v5053_v20  ;;  %v5068_v25 = vpop.permute.xlu0 %5067 }
0x324a   : > { %v5062_v48 = vsel %vm5058_vm8, %v5056_v42, %v5060_v60  ;;  %vm5059_vm9 = vcmp.gt.f32.partialorder %v5057_v9, 0.0  ;;  %v5061_v2 = vmul.f32 %v5057_v9, %v12380_v23 }
0x324b   : > { %5754 = vst.msk [vmem:[%s12392_s6 + $0x30] sm:$0xff] %vm863_vm0, %v5062_v48 }
0x324c   : > { %v5063_v10 = vsel %vm5059_vm9, %v5057_v9, %v5061_v2 }
0x324d   : > { %v5064_v15 = vpack.c.bf16 %v5063_v10, %v5062_v48  ;;  %5755 = vst.msk [vmem:[%s12392_s6 + $0x38] sm:$0xff] %vm863_vm0, %v5063_v10 }
0x324f   : > { %11119 = vmatmul.mubr.msk.bf16.vlgmr.msra.gmra.mrb[132].mxu0 %vm863_vm0, %v5064_v15 }
0x3250   : > { %5126 = vmatpush1.bf16.msra.mxu0 %v12404_v6  ;;  %5157 = vmatprep.mubr.bf16.mxu0 %v14914_v12 }
0x3251   : > { %11128 = vmatprep.subr.bf16.mxu0 %v14908_v44 }
0x3322   : > { %v5110_v62 = vpop.f32.mrb[132].mxu0 }
0x3323   : > { %v5111_v8 = vadd.f32 %v5110_v62, %v5068_v25  ;;  %v11120_v63 = vpop.f32.mrb[133].mxu0 }
0x3324   : > { %v5113_v50 = vpop.f32.mrb[134].mxu0 }
0x3325   : > { %v5117_v14 = vadd.f32 %v13075_v41, %v5111_v8  ;;  %v5114_v31 = vadd.f32 %v5113_v50, %v5070_v43  ;;  %v11121_v54 = vpop.f32.mrb[135].mxu0 }
0x3327   : > { %5752 = vst.msk [vmem:[%s12423_s20 + $0x30] sm:$0xff] %vm947_vm2, %v5117_v14  ;;  %v5118_v3 = vadd.f32 %v13075_v41, %v5114_v31  ;;  %v5119_v47 = vsel %vm4699_vm5, %v13286_v45, %v5117_v14  ;;  %v14923_v45 = vld [vmem:[#allocation9_spill] sm:$0xff] }
0x3329   : > { %v5120_v57 = vsel %vm4700_vm7, %v13292_v58, %v5118_v3  ;;  %5753 = vst.msk [vmem:[%s12423_s20 + $0x38] sm:$0xff] %vm947_vm2, %v5118_v3 }
0x332a   : > { %v5121_v26 = vpack.c.bf16 %v5120_v57, %v5119_v47 }
0x332c   : > { %10448 = vmatmul.mubr.msk.bf16.vlgmr.msra.gmra.mrb[12].mxu0 %vm947_vm2, %v5121_v26  ;;  %10450 = vmatmul.mubr.msk.bf16.vlgmr.msra.gmra.mrb[160].mxu1 %vm947_vm2, %v5121_v26 }
0x332d   : > { %11124 = vmatprep.mubr.msk.bf16.mxu1 %vm11859_vm3, %v14908_v44  ;;  %11130 = vmatprep.mubr.msk.bf16.mxu0 %vm11859_vm3, %v14908_v44 }
0x33ff   : > { %v13377_v41 = vpop.f32.mrb[12].mxu0  ;;  %v5202_v46 = vpop.f32.mrb[160].mxu1 }
0x3400   : > { %v13380_v53 = vadd.f32 %v5202_v46, %v14923_v45  ;;  %v5161_v7 = vpop.f32.mrb[13].mxu0  ;;  %v5204_v58 = vpop.f32.mrb[161].mxu1 }
0x3401   : > { %v13383_v59 = vadd.f32 %v5204_v58, %v14921_v35  ;;  %v13385_v0 = vpop.f32.mrb[14].mxu0  ;;  %v5206_v39 = vpop.f32.mrb[162].mxu1 }
0x3402   : > { %v13388_v52 = vadd.f32 %v5206_v39, %v14924_v51  ;;  %v5165_v17 = vpop.f32.mrb[15].mxu0  ;;  %v5208_v33 = vpop.f32.mrb[163].mxu1  ;;  %v5221_v4 = vadd.f32 %v13380_v53, %v13272_v27 }
0x3403   : > { %v5223_v28 = vpack.c.bf16 %v5165_v17, %v5161_v7  ;;  %v13391_v36 = vadd.f32 %v5208_v33, %v14922_v24  ;;  %v13411_v24 = vld [vmem:[%s14912_s9] sm:$0xff]  }
0x3404   : > { %v5222_v11 = vadd.f32 %v13388_v52, %v13283_v16 }
0x3405   : > { %11123 = vmatpush3.bf16.msra.mxu1 %v5223_v28 }
0x3406   : > { %v5323_v35 = vpack.c.bf16 %v5222_v11, %v5221_v4  ;;  %11134 = vmatprep.subr.bf16.mxu1 %v14908_v44 }
0x3408   : > { %11125 = vmatmul.mubr.msk.bf16.vlgmr.msra.gmra.mrb[164].mxu1 %vm1573_vm6, %v13401_v37 }
0x3409   : > { %11135 = vmatpush3.bf16.msra.mxu1 %v5323_v35  ;;  %11136 = vmatprep.mubr.msk.bf16.mxu1 %vm11859_vm3, %v14908_v44 }
0x340a   : > { %5443 = vmatprep.subr.bf16.mxu1 %v13123_v5 }
0x3410   : > { %11137 = vmatmul.mubr.msk.bf16.vlgmr.msra.gmra.mrb[168].mxu1 %vm1573_vm6, %v13411_v24 }
0x3411   : > { %5444 = vmatpush1.bf16.msra.mxu1 %v13131_v61  ;;  %5475 = vmatprep.mubr.bf16.mxu1 %v14914_v12 }
0x3412   : > { %5445 = vmatprep.subr.bf16.mxu1 %v13138_v49 }
0x3415   : > { %5446 = vmatpush1.bf16.msra.mxu1 %v13144_v29 }
0x3416   : > { %11152 = vmatprep.subr.bf16.mxu1 %v14908_v44 }
0x34db   : > { %v5258_v27 = vpop.f32.mrb[164].mxu1 }
0x34dc   : > { %5267 = vrot.lane.b32.xlu0 %v5258_v27, %s14917_s4  ;;  %v11126_v5 = vpop.f32.mrb[165].mxu1 }
0x34dd   : > { %v5261_v16 = vpop.f32.mrb[166].mxu1 }
0x34de   : > { %5269 = vrot.lane.b32.xlu1 %v5261_v16, %s14917_s4  ;;  %v11127_v38 = vpop.f32.mrb[167].mxu1 }
0x34e3   : > { %v5358_v22 = vpop.f32.mrb[168].mxu1 }
0x34e4   : > { %5367 = vrot.lane.b32.xlu0 %v5358_v22, %s14917_s4  ;;  %v11138_v61 = vpop.f32.mrb[169].mxu1 }
0x34e5   : > { %v5361_v18 = vpop.f32.mrb[170].mxu1 }
0x34e6   : > { %5369 = vrot.lane.b32.xlu1 %v5361_v18, %s14917_s4  ;;  %v11139_v49 = vpop.f32.mrb[171].mxu1 }
0x354e   : > { %v5268_v55 = vpop.permute.xlu0 %5267 }
0x354f   : > { %v5273_v42 = vadd.f32 %v5268_v55, %v13377_v41 }
0x3550   : > { %v5270_v29 = vpop.permute.xlu1 %5269 }
0x3551   : > { %v5274_v20 = vadd.f32 %v5270_v29, %v13385_v0 }
0x3553   : > { %v5275_v40 = vpack.c.bf16 %v5274_v20, %v5273_v42 }
0x3555   : > { %5277 = vrot.lane.b32.xlu0 %v5275_v40, %s14917_s4 }
0x3556   : > { %v5368_v60 = vpop.permute.xlu0 %5367 }
0x3557   : > { %v5373_v48 = vadd.f32 %v5368_v60, %v5161_v7 }
0x3558   : > { %v5370_v9 = vpop.permute.xlu1 %5369 }
0x3559   : > { %v5374_v2 = vadd.f32 %v5370_v9, %v5165_v17  ;;  %4687 = vrot.lane.b32.xlu0 %v13251_v30, %s14918_s25 }
0x355b   : > { %v5375_v10 = vpack.c.bf16 %v5374_v2, %v5373_v48  ;;  %v13491_v48 = vld [vmem:[%s14881_s30 + $0x24] ss:$16 sps:$4 sm:$0xff]   ;;  %v13497_v2 = vld [vmem:[%s14881_s30 + $0x20] ss:$16 sps:$4 sm:$0xff]  }
0x355d   : > { %5377 = vrot.lane.b32.xlu1 %v5375_v10, %s14917_s4 }
0x3561   : > { %4689 = vrot.lane.b32.xlu1 %v13253_v1, %s14918_s25 }
0x35c7   : > { %v5278_v15 = vpop.permute.xlu0 %5277 }
0x35c8   : > { %11129 = vmatpush3.bf16.msra.mxu0 %v5278_v15 }
0x35c9   : > { %11140 = vmatprep.subr.bf16.mxu0 %v14908_v44 }
0x35cb   : > { %11131 = vmatmul.mubr.msk.bf16.vlgmr.msra.gmra.mrb[136].mxu0 %vm1573_vm6, %v13401_v37  ;;  %v4688_v25 = vpop.permute.xlu0 %4687 }
0x35cc   : > { %4693 = vst.msk [vmem:[%s12776_s21 + $0x20] sm:$0xff] %vm863_vm0, %v4688_v25  ;;  %11142 = vmatprep.mubr.msk.bf16.mxu0 %vm11859_vm3, %v14908_v44 }
0x35cf   : > { %v5378_v62 = vpop.permute.xlu1 %5377 }
0x35d0   : > { %11141 = vmatpush3.bf16.msra.mxu0 %v5378_v62 }
0x35d1   : > { %11146 = vmatprep.subr.bf16.mxu0 %v14908_v44 }
0x35d3   : > { %11143 = vmatmul.mubr.msk.bf16.vlgmr.msra.gmra.mrb[140].mxu0 %vm1573_vm6, %v13411_v24  ;;  %v4690_v8 = vpop.permute.xlu1 %4689 }
0x35d4   : > { %4694 = vst.msk [vmem:[%s12776_s21 + $0x28] sm:$0xff] %vm863_vm0, %v4690_v8  ;;  %11148 = vmatprep.mubr.msk.bf16.mxu0 %vm11859_vm3, %v14908_v44 }
0x369e   : > { %v5314_v63 = vpop.f32.mrb[136].mxu0 }
0x369f   : > { %v5321_v43 = vadd.f32 %v5314_v63, %v13377_v41  ;;  %v11132_v50 = vpop.f32.mrb[137].mxu0 }
0x36a0   : > { %v5317_v14 = vpop.f32.mrb[138].mxu0 }
0x36a1   : > { %v5322_v31 = vadd.f32 %v5317_v14, %v13385_v0  ;;  %v11133_v54 = vpop.f32.mrb[139].mxu0 }
0x36a6   : > { %v5414_v3 = vpop.f32.mrb[140].mxu0 }
0x36a7   : > { %v5421_v47 = vadd.f32 %v5414_v3, %v5321_v43  ;;  %v11144_v57 = vpop.f32.mrb[141].mxu0 }
0x36a8   : > { %v5417_v26 = vpop.f32.mrb[142].mxu0 }
0x36a9   : > { %v5423_v46 = vadd.f32 %v13179_v21, %v5421_v47  ;;  %v5422_v45 = vadd.f32 %v5417_v26, %v5322_v31  ;;  %v11145_v7 = vpop.f32.mrb[143].mxu0 }
0x36ab   : > { %v10455_v58 = vmul.f32 -1.442695, %v5423_v46  ;;  %v5424_v39 = vadd.f32 %v13179_v21, %v5422_v45 }
0x36ad   : > { %11692 = vpow2.f32 %v10455_v58  ;;  %v10456_v51 = vmul.f32 -1.442695, %v5424_v39 }
0x36af   : > { %11694 = vpow2.f32 %v10456_v51 }
0x36b7   : > { %v11693_v41 = vpop.eup %11692 }
0x36b8   : > { %v5431_v17 = vadd.f32 1.0, %v11693_v41  ;;  %v13525_v41 = vld [vmem:[%s14881_s30 + $0x8] ss:$16 sps:$4 sm:$0xff]  }
0x36b9   : > { %v11695_v33 = vpop.eup %11694 }
0x36ba   : > { %11696 = vrcp.f32 %v5431_v17  ;;  %v5432_v0 = vadd.f32 1.0, %v11695_v33  ;;  %v13532_v17 = vld [vmem:[%s14881_s30 + $0x2c] ss:$16 sps:$4 sm:$0xff]   ;;  %v13538_v33 = vld [vmem:[%s14881_s30 + $0x28] ss:$16 sps:$4 sm:$0xff]  }
0x36bc   : > { %11698 = vrcp.f32 %v5432_v0 }
0x36c4   : > { %v13450_v28 = vpop.eup %11696 }
0x36c5   : > { %v5437_v11 = vmul.f32 %v13450_v28, %v4688_v25 }
0x36c6   : > { %v13452_v4 = vpop.eup %11698 }
0x36c7   : > { %v5438_v35 = vmul.f32 %v13452_v4, %v4690_v8 }
0x36c9   : > { %v5439_v27 = vpack.c.bf16 %v5438_v35, %v5437_v11 }
0x36cb   : > { %10457 = vmatmul.mubr.msk.bf16.vlgmr.msra.gmra.mrb[172].mxu1 %vm863_vm0, %v5439_v27 }
0x36cc   : > { %11154 = vmatprep.mubr.msk.bf16.mxu1 %vm11859_vm3, %v14908_v44 }
0x379e   : > { %v5477_v21 = vpop.f32.mrb[172].mxu1 }
0x379f   : > { %v5479_v5 = vpop.f32.mrb[173].mxu1 }
0x37a0   : > { %5502 = vrot.lane.b32.xlu0 %v5479_v5, %s14917_s4  ;;  %v5481_v16 = vpop.f32.mrb[174].mxu1 }
0x37a1   : > { %v5483_v38 = vpop.f32.mrb[175].mxu1 }
0x37a2   : > { %5504 = vrot.lane.b32.xlu1 %v5483_v38, %s14917_s4 }
0x37a4   : > { %5488 = vrot.lane.b32.xlu0 %v5477_v21, %s14917_s4 }
0x37a6   : > { %5490 = vrot.lane.b32.xlu1 %v5481_v16, %s14917_s4 }
0x3812   : > { %v5503_v22 = vpop.permute.xlu0 %5502 }
0x3813   : > { %v5508_v18 = vadd.f32 %v5503_v22, %v13383_v59 }
0x3814   : > { %v5505_v61 = vpop.permute.xlu1 %5504 }
0x3815   : > { %v5509_v49 = vadd.f32 %v5505_v61, %v13391_v36 }
0x3816   : > { %v5489_v55 = vpop.permute.xlu0 %5488 }
0x3817   : > { %v5618_v29 = vpack.c.bf16 %v5509_v49, %v5508_v18  ;;  %v5498_v20 = vadd.f32 %v13383_v59, %v5489_v55  ;;  %v13476_v59 = vld [vmem:[%s14881_s30 + $0x4] ss:$16 sps:$4 sm:$0xff]   ;;  %v5494_v31 = vadd.f32 %v5489_v55, %v13380_v53 }
0x3818   : > { %v5491_v42 = vpop.permute.xlu1 %5490 }
0x3819   : > { %v5499_v40 = vadd.f32 %v13391_v36, %v5491_v42  ;;  %5620 = vrot.lane.b32.xlu0 %v5618_v29, %s14917_s4  ;;  %v13484_v36 = vld [vmem:[%s14881_s30] ss:$16 sps:$4 sm:$0xff]   ;;  %v5495_v54 = vadd.f32 %v5491_v42, %v13388_v52  ;;  %v13517_v52 = vld [vmem:[%s14881_s30 + $0xc] ss:$16 sps:$4 sm:$0xff]  }
0x381b   : > { %v5510_v60 = vpack.c.bf16 %v5499_v40, %v5498_v20 }
0x381d   : > { %11147 = vmatpush3.bf16.msra.mxu0 %v5510_v60 }
0x381e   : > { %11158 = vmatprep.subr.bf16.mxu0 %v14908_v44 }
0x3820   : > { %11149 = vmatmul.mubr.msk.bf16.vlgmr.msra.gmra.mrb[144].mxu0 %vm1573_vm6, %v13401_v37 }
0x3821   : > { %11160 = vmatprep.mubr.msk.bf16.mxu0 %vm11859_vm3, %v14908_v44 }
0x388b   : > { %v5621_v9 = vpop.permute.xlu0 %5620 }
0x388c   : > { %11159 = vmatpush3.bf16.msra.mxu0 %v5621_v9 }
0x388d   : > { %5787 = vmatprep.subr.bf16.mxu0 %v13476_v59 }
0x388f   : > { %11161 = vmatmul.mubr.msk.bf16.vlgmr.msra.gmra.mrb[148].mxu0 %vm1573_vm6, %v13411_v24 }
0x3890   : > { %5788 = vmatpush1.bf16.msra.mxu0 %v13484_v36  ;;  %5819 = vmatprep.mubr.bf16.mxu0 %v14914_v12 }
0x3891   : > { %5789 = vmatprep.subr.bf16.mxu0 %v13491_v48 }
0x3894   : > { %5790 = vmatpush1.bf16.msra.mxu0 %v13497_v2 }
0x3895   : > { %11170 = vmatprep.subr.bf16.mxu0 %v14908_v44 }
0x38f3   : > { %v5545_v10 = vpop.f32.mrb[144].mxu0 }
0x38f4   : > { %5554 = vrot.lane.b32.xlu1 %v5545_v10, %s14918_s25  ;;  %v11150_v15 = vpop.f32.mrb[145].mxu0 }
0x38f5   : > { %v5548_v25 = vpop.f32.mrb[146].mxu0  ;;  %v14925_v15 = vld [vmem:[#allocation14_spill] sm:$0xff] }
0x38f6   : > { %5556 = vrot.lane.b32.xlu0 %v5548_v25, %s14918_s25  ;;  %v11151_v62 = vpop.f32.mrb[147].mxu0  ;;  %v5736_v25 = vsub.f32 1.0, %v13450_v28 }
0x3962   : > { %v5657_v8 = vpop.f32.mrb[148].mxu0 }
0x3963   : > { %5666 = vrot.lane.b32.xlu1 %v5657_v8, %s14906_s0  ;;  %v11162_v63 = vpop.f32.mrb[149].mxu0 }
0x3964   : > { %v5660_v43 = vpop.f32.mrb[150].mxu0  ;;  %v5737_v63 = vsub.f32 1.0, %v13452_v4 }
0x3965   : > { %5668 = vrot.lane.b32.xlu0 %v5660_v43, %s14906_s0  ;;  %v11163_v50 = vpop.f32.mrb[151].mxu0 }
0x3966   : > { %v5555_v14 = vpop.permute.xlu1 %5554  ;;  %v5734_v50 = vmul.f32 %v13450_v28, %v13251_v30  ;;  %v13575_v30 = vld [vmem:[%s14907_s26] sm:$0xff]  }
0x3967   : > { %v5560_v47 = vadd.f32 %v5555_v14, %v5494_v31  ;;  %v5735_v14 = vmul.f32 %v13452_v4, %v13253_v1  ;;  %v13585_v1 = vld [vmem:[%s14907_s26 + $0x8] sm:$0xff]   ;;  %v13592_v4 = vld [vmem:[%s12031_s3 + $0x40] sm:$0xff] }
0x3968   : > { %v5557_v3 = vpop.permute.xlu0 %5556  ;;  %vm5770_vm10 = vcmp.gt.f32.partialorder %v13592_v4, 0.5 }
0x3969   : > { %v5561_v57 = vadd.f32 %v5557_v3, %v5495_v54 }
0x396b   : > { %v5562_v26 = vpack.c.bf16 %v5561_v57, %v5560_v47  ;;  %v14926_v57 = vld [vmem:[#allocation16_spill] sm:$0xff] }
0x396d   : > { %5564 = vrot.lane.b32.xlu1 %v5562_v26, %s14906_s0 }
0x39d5   : > { %v5667_v46 = vpop.permute.xlu1 %5666 }
0x39d6   : > { %v5672_v7 = vadd.f32 %v5667_v46, %v5498_v20  ;;  %v13595_v46 = vld [vmem:[%s12031_s3 + $0x48] sm:$0xff] }
0x39d7   : > { %v5669_v45 = vpop.permute.xlu0 %5668  ;;  %vm5771_vm11 = vcmp.gt.f32.partialorder %v13595_v46, 0.5 }
0x39d8   : > { %v5673_v58 = vadd.f32 %v5669_v45, %v5499_v40 }
0x39da   : > { %v5674_v39 = vpack.c.bf16 %v5673_v58, %v5672_v7  ;;  %v13602_v7 = vld [vmem:[%s14821_s12] ss:$0 sm:$0xff] }
0x39dc   : > { %5676 = vrot.lane.b32.xlu0 %v5674_v39, %s14918_s25 }
0x39df   : > { %v5565_v51 = vpop.permute.xlu1 %5564 }
0x39e0   : > { %11153 = vmatpush3.bf16.msra.mxu1 %v5565_v51  ;;  %v13608_v51 = vld [vmem:[%s12245_s2 + $0x40] sm:$0xff] }
0x39e1   : > { %11164 = vmatprep.subr.bf16.mxu1 %v14908_v44 }
0x39e3   : > { %11155 = vmatmul.mubr.msk.bf16.vlgmr.msra.gmra.mrb[176].mxu1 %vm1573_vm6, %v13401_v37 }
0x39e4   : > { %11166 = vmatprep.mubr.msk.bf16.mxu1 %vm11859_vm3, %v14908_v44 }
0x3a4e   : > { %v5677_v53 = vpop.permute.xlu0 %5676 }
0x3a4f   : > { %11165 = vmatpush3.bf16.msra.mxu1 %v5677_v53  ;;  %v13614_v53 = vld [vmem:[%s12245_s2 + $0x48] sm:$0xff] }
0x3a50   : > { %5830 = vmatprep.subr.bf16.mxu1 %v13517_v52 }
0x3a52   : > { %11167 = vmatmul.mubr.msk.bf16.vlgmr.msra.gmra.mrb[180].mxu1 %vm1573_vm6, %v13411_v24 }
0x3a53   : > { %5831 = vmatpush1.bf16.msra.mxu1 %v13525_v41  ;;  %5862 = vmatprep.mubr.bf16.mxu1 %v14914_v12 }
0x3a54   : > { %5832 = vmatprep.subr.bf16.mxu1 %v13532_v17 }
0x3a57   : > { %5833 = vmatpush1.bf16.msra.mxu1 %v13538_v33 }
0x3a58   : > { %11176 = vmatprep.subr.bf16.mxu1 %v14908_v44 }
0x3ab6   : > { %v5601_v0 = vpop.f32.mrb[176].mxu1 }
0x3ab7   : > { %5610 = vrot.lane.b32.xlu1 %v5601_v0, %s14917_s4  ;;  %v11156_v11 = vpop.f32.mrb[177].mxu1 }
0x3ab8   : > { %v5604_v35 = vpop.f32.mrb[178].mxu1 }
0x3ab9   : > { %5612 = vrot.lane.b32.xlu0 %v5604_v35, %s14917_s4  ;;  %v11157_v27 = vpop.f32.mrb[179].mxu1 }
0x3b25   : > { %v5713_v21 = vpop.f32.mrb[180].mxu1 }
0x3b26   : > { %5722 = vrot.lane.b32.xlu1 %v5713_v21, %s14917_s4  ;;  %v11168_v5 = vpop.f32.mrb[181].mxu1 }
0x3b27   : > { %v5716_v16 = vpop.f32.mrb[182].mxu1 }
0x3b28   : > { %5724 = vrot.lane.b32.xlu0 %v5716_v16, %s14917_s4  ;;  %v11169_v38 = vpop.f32.mrb[183].mxu1 }
0x3b29   : > { %v5611_v22 = vpop.permute.xlu1 %5610 }
0x3b2a   : > { %v5616_v18 = vadd.f32 %v5611_v22, %v5494_v31 }
0x3b2b   : > { %v5613_v61 = vpop.permute.xlu0 %5612 }
0x3b2c   : > { %v5617_v55 = vadd.f32 %v5613_v61, %v5495_v54 }
0x3b98   : > { %v5723_v49 = vpop.permute.xlu1 %5722 }
0x3b99   : > { %v5728_v29 = vadd.f32 %v5723_v49, %v5616_v18 }
0x3b9a   : > { %v5725_v42 = vpop.permute.xlu0 %5724 }
0x3b9b   : > { %v5730_v20 = vadd.f32 %v5728_v29, %v12589_v19  ;;  %v5729_v40 = vadd.f32 %v5725_v42, %v5617_v55 }
0x3b9d   : > { %11700 = vtanh.f32 %v5730_v20  ;;  %v5731_v60 = vadd.f32 %v5729_v40, %v12589_v19 }
0x3b9f   : > { %11702 = vtanh.f32 %v5731_v60  ;;  %v13637_v60 = vld [vmem:[%s14822_s13] ss:$0 sm:$0xff] }
0x3ba7   : > { %v11701_v9 = vpop.eup %11700 }
0x3ba8   : > { %5740 = vrot.lane.b32.xlu1 %v11701_v9, %s14918_s25 }
0x3ba9   : > { %v11703_v10 = vpop.eup %11702 }
0x3baa   : > { %5742 = vrot.lane.b32.xlu0 %v11703_v10, %s14918_s25 }
0x3bae   : > { %5880 = vrot.lane.b32.xlu0 %v14925_v15, %s14906_s0 }
0x3c1a   : > { %v5741_v62 = vpop.permute.xlu1 %5740 }
0x3c1b   : > { %v5746_v8 = vmul.f32 %v5741_v62, %v5736_v25 }
0x3c1c   : > { %v5743_v43 = vpop.permute.xlu0 %5742 }
0x3c1d   : > { %v5747_v31 = vmul.f32 %v5743_v43, %v5737_v63  ;;  %v13558_v54 = vadd.f32 %v5746_v8, %v5734_v50 }
0x3c1f   : > { %v13560_v3 = vadd.f32 %v5747_v31, %v5735_v14  ;;  %v13653_v14 = vld [vmem:[%s14817_s8] sm:$0xff]   ;;  %v13663_v31 = vld [vmem:[%s14817_s8 + $0x8] sm:$0xff]  }
0x3c20   : > { %v5881_v5 = vpop.permute.xlu0 %5880 }
0x3c21   : > { %v5780_v47 = vpack.c.bf16 %v13560_v3, %v13558_v54 }
0x3c23   : > { %5782 = vrot.lane.b32.xlu1 %v5780_v47, %s14918_s25 }
0x3c27   : > { %5882 = vrot.lane.b32.xlu1 %v14926_v57, %s14906_s0 }
0x3c95   : > { %v5783_v26 = vpop.permute.xlu1 %5782 }
0x3c96   : > { %10462 = vmatmul.mubr.msk.bf16.vlgmr.msra.gmra.mrb[16].mxu0 %vm863_vm0, %v5783_v26  ;;  %10463 = vmatmul.mubr.msk.bf16.vlgmr.msra.gmra.mrb[184].mxu1 %vm863_vm0, %v5783_v26  ;;  %v13674_v26 = vld [vmem:[%s14913_s10] sm:$0xff]  }
0x3c97   : > { %11171 = vmatpush3.bf16.msra.mxu0 %v12158_v56  ;;  %11172 = vmatprep.mubr.msk.bf16.mxu0 %vm11859_vm3, %v14908_v44 }
0x3c98   : > { %11177 = vmatpush3.bf16.msra.mxu1 %v13575_v30  ;;  %11180 = vmatprep.mubr.msk.bf16.mxu1 %vm11859_vm3, %v14908_v44 }
0x3c99   : > { %11178 = vmatprep.subr.bf16.mxu1 %v14908_v44  ;;  %11184 = vmatprep.subr.bf16.mxu0 %v14908_v44  ;;  %v5883_v16 = vpop.permute.xlu1 %5882 }
0x3c9c   : > { %11179 = vmatpush3.bf16.msra.mxu1 %v13585_v1 }
0x3c9d   : > { %11190 = vmatprep.subr.bf16.mxu1 %v14908_v44 }
0x3d69   : > { %v13589_v28 = vpop.f32.mrb[184].mxu1 }
0x3d6a   : > { %5932 = vrot.lane.b32.xlu0 %v13589_v28, %s14917_s4  ;;  %v5866_v45 = vpop.f32.mrb[185].mxu1 }
0x3d6b   : > { %v5873_v58 = vadd.f32 %v13602_v7, %v5866_v45  ;;  %v13605_v39 = vpop.f32.mrb[186].mxu1 }
0x3d6c   : > { %5934 = vrot.lane.b32.xlu1 %v13605_v39, %s14917_s4  ;;  %v5870_v0 = vpop.f32.mrb[187].mxu1 }
0x3d6d   : > { %6821 = vst.msk [vmem:[%s12253_s29 + $0x40] sm:$0xff] %vm947_vm2, %v5873_v58  ;;  %v5874_v11 = vadd.f32 %v13602_v7, %v5870_v0  ;;  %v5875_v35 = vsel %vm5770_vm10, %v13608_v51, %v5873_v58 }
0x3d6f   : > { %v5876_v27 = vsel %vm5771_vm11, %v13614_v53, %v5874_v11  ;;  %6822 = vst.msk [vmem:[%s12253_s29 + $0x48] sm:$0xff] %vm947_vm2, %v5874_v11 }
0x3d70   : > { %v5877_v21 = vpack.c.bf16 %v5876_v27, %v5875_v35  ;;  %6077 = vrot.lane.b32.xlu1 %v13589_v28, %s14906_s0 }
0x3d72   : > { %11173 = vmatmul.mubr.msk.bf16.vlgmr.msra.gmra.mrb[152].mxu0 %vm947_vm2, %v5877_v21 }
0x3d73   : > { %11186 = vmatprep.mubr.msk.bf16.mxu0 %vm11859_vm3, %v14908_v44 }
0x3d74   : > { %6138 = vrot.lane.b32.xlu1 %v5866_v45, %s14919_s24  ;;  %v13683_v45 = vld [vmem:[%s14913_s10 + $0x8] sm:$0xff]  }
0x3ddc   : > { %v5933_v18 = vpop.permute.xlu0 %5932 }
0x3dde   : > { %v5935_v20 = vpop.permute.xlu1 %5934 }
0x3e45   : > { %v5923_v38 = vpop.f32.mrb[152].mxu0 }
0x3e46   : > { %v5924_v22 = vadd.f32 %v5923_v38, %v5881_v5  ;;  %v11174_v61 = vpop.f32.mrb[153].mxu0 }
0x3e47   : > { %v5926_v49 = vpop.f32.mrb[154].mxu0  ;;  %v13691_v61 = vld [vmem:[%s14823_s14] ss:$0 sm:$0xff] }
0x3e48   : > { %v5938_v55 = vadd.f32 %v5933_v18, %v5924_v22  ;;  %v5927_v29 = vadd.f32 %v5926_v49, %v5883_v16  ;;  %v11175_v42 = vpop.f32.mrb[155].mxu0 }
0x3e4a   : > { %v5939_v40 = vadd.f32 %v5935_v20, %v5927_v29  ;;  %v5940_v9 = vadd.f32 %v13637_v60, %v5938_v55  ;;  %v6078_v29 = vpop.permute.xlu1 %6077 }
0x3e4c   : > { %v5941_v10 = vadd.f32 %v13637_v60, %v5939_v40 }
0x3e4e   : > { %v5942_v25 = vpack.c.bf16 %v5941_v10, %v5940_v9 }
0x3e50   : > { %11181 = vmatmul.mubr.msk.bf16.vlgmr.msra.gmra.mrb[188].mxu1 %vm863_vm0, %v5942_v25  ;;  %v13702_v25 = vld [vmem:[%s14824_s15] ss:$0 sm:$0xff] }
0x3e51   : > { %11192 = vmatprep.mubr.msk.bf16.mxu1 %vm11859_vm3, %v14908_v44 }
0x3f23   : > { %v5980_v62 = vpop.f32.mrb[188].mxu1 }
0x3f24   : > { %v11182_v8 = vpop.f32.mrb[189].mxu1 }
0x3f25   : > { %v5983_v63 = vpop.f32.mrb[190].mxu1 }
0x3f26   : > { %v5987_v43 = vpack.c.bf16 %v5983_v63, %v5980_v62  ;;  %v11183_v50 = vpop.f32.mrb[191].mxu1 }
0x3f28   : > { %5989 = vrot.lane.b32.xlu0 %v5987_v43, %s14918_s25  ;;  %11191 = vmatpush3.bf16.msra.mxu1 %v5987_v43 }
0x3f29   : > { %11204 = vmatprep.subr.bf16.mxu1 %v14908_v44 }
0x3f2b   : > { %11193 = vmatmul.mubr.msk.bf16.vlgmr.msra.gmra.mrb[192].mxu1 %vm1573_vm6, %v13401_v37 }
0x3f2c   : > { %6079 = vrot.lane.b32.xlu0 %v13605_v39, %s14906_s0  ;;  %11205 = vmatpush3.bf16.msra.mxu1 %v13653_v14 }
0x3f2d   : > { %11206 = vmatprep.subr.bf16.mxu1 %v14908_v44  ;;  %11208 = vmatprep.mubr.msk.bf16.mxu1 %vm11859_vm3, %v14908_v44 }
0x3f30   : > { %6140 = vrot.lane.b32.xlu0 %v5870_v0, %s14919_s24  ;;  %11207 = vmatpush3.bf16.msra.mxu1 %v13663_v31 }
0x3f31   : > { %10472 = vmatprep.subr.msk.bf16.mxu1 %vm972_vm1, %v12369_v34 }
0x3f9a   : > { %v5990_v47 = vpop.permute.xlu0 %5989 }
0x3f9b   : > { %11185 = vmatpush3.bf16.msra.mxu0 %v5990_v47 }
0x3f9c   : > { %11196 = vmatprep.subr.bf16.mxu0 %v14908_v44 }
0x3f9e   : > { %11187 = vmatmul.mubr.msk.bf16.vlgmr.msra.gmra.mrb[156].mxu0 %vm1573_vm6, %v13411_v24  ;;  %v6080_v9 = vpop.permute.xlu0 %6079 }
0x3f9f   : > { %11197 = vmatpush3.bf16.msra.mxu0 %v13674_v26  ;;  %11200 = vmatprep.mubr.msk.bf16.mxu0 %vm11859_vm3, %v14908_v44 }
0x3fa0   : > { %11198 = vmatprep.subr.bf16.mxu0 %v14908_v44 }
0x3fa3   : > { %11199 = vmatpush3.bf16.msra.mxu0 %v13683_v45 }
0x3fa4   : > { %10470 = vmatprep.subr.msk.bf16.mxu0 %vm972_vm1, %v12341_v32 }
0x3ffe   : > { %v6067_v58 = vpop.f32.mrb[192].mxu1 }
0x3fff   : > { %v11194_v0 = vpop.f32.mrb[193].mxu1 }
0x4000   : > { %v6070_v11 = vpop.f32.mrb[194].mxu1 }
0x4001   : > { %v11195_v35 = vpop.f32.mrb[195].mxu1 }
0x4002   : > { %v6139_v35 = vpop.permute.xlu1 %6138 }
0x4071   : > { %v6026_v27 = vpop.f32.mrb[156].mxu0 }
0x4072   : > { %v6068_v21 = vadd.f32 %v6067_v58, %v6026_v27  ;;  %v11188_v5 = vpop.f32.mrb[157].mxu0 }
0x4073   : > { %v6029_v16 = vpop.f32.mrb[158].mxu0 }
0x4074   : > { %v6071_v38 = vadd.f32 %v6070_v11, %v6029_v16  ;;  %v11189_v22 = vpop.f32.mrb[159].mxu0  ;;  %v6074_v18 = vadd.f32 %v13691_v61, %v6068_v21  ;;  %v6141_v16 = vpop.permute.xlu0 %6140 }
0x4075   : > { %v13719_v22 = vld [vmem:[%s14825_s16] ss:$0 sm:$0xff] }
0x4076   : > { %v6075_v49 = vadd.f32 %v13691_v61, %v6071_v38 }
0x4078   : > { %v6076_v55 = vpack.c.bf16 %v6075_v49, %v6074_v18 }
0x407a   : > { %11201 = vmatmul.mubr.msk.bf16.vlgmr.msra.gmra.mrb[160].mxu0 %vm863_vm0, %v6076_v55 }
0x407b   : > { %6197 = vmatpush1.bf16.msra.mxu0 %v12404_v6  ;;  %6228 = vmatprep.mubr.bf16.mxu0 %v14914_v12 }
0x407c   : > { %11212 = vmatprep.subr.bf16.mxu0 %v14908_v44 }
0x414d   : > { %v6120_v42 = vpop.f32.mrb[160].mxu0 }
0x414e   : > { %v6121_v20 = vadd.f32 %v6120_v42, %v6078_v29  ;;  %v11202_v40 = vpop.f32.mrb[161].mxu0 }
0x414f   : > { %v6123_v10 = vpop.f32.mrb[162].mxu0 }
0x4150   : > { %v6127_v62 = vadd.f32 %v13702_v25, %v6121_v20  ;;  %v6124_v8 = vadd.f32 %v6123_v10, %v6080_v9  ;;  %v11203_v63 = vpop.f32.mrb[163].mxu0 }
0x4152   : > { %vm6129_vm12 = vcmp.gt.f32.partialorder %v6127_v62, 0.0  ;;  %v6131_v43 = vmul.f32 %v6127_v62, %v12380_v23  ;;  %v6128_v50 = vadd.f32 %v13702_v25, %v6124_v8 }
0x4154   : > { %v6133_v47 = vsel %vm6129_vm12, %v6127_v62, %v6131_v43  ;;  %vm6130_vm13 = vcmp.gt.f32.partialorder %v6128_v50, 0.0  ;;  %v6132_v58 = vmul.f32 %v6128_v50, %v12380_v23  ;;  %v14928_v43 = vld [vmem:[#allocation15_spill] sm:$0xff] }
0x4155   : > { %6825 = vst.msk [vmem:[%s12392_s6 + $0x40] sm:$0xff] %vm863_vm0, %v6133_v47 }
0x4156   : > { %v6134_v0 = vsel %vm6130_vm13, %v6128_v50, %v6132_v58 }
0x4157   : > { %v6135_v11 = vpack.c.bf16 %v6134_v0, %v6133_v47  ;;  %6826 = vst.msk [vmem:[%s12392_s6 + $0x48] sm:$0xff] %vm863_vm0, %v6134_v0 }
0x4159   : > { %11209 = vmatmul.mubr.msk.bf16.vlgmr.msra.gmra.mrb[196].mxu1 %vm863_vm0, %v6135_v11 }
0x415a   : > { %6240 = vmatpush1.bf16.msra.mxu1 %v12408_v13  ;;  %6271 = vmatprep.mubr.bf16.mxu1 %v14914_v12 }
0x415b   : > { %11218 = vmatprep.subr.bf16.mxu1 %v14908_v44 }
0x422c   : > { %v6181_v27 = vpop.f32.mrb[196].mxu1 }
0x422d   : > { %v6182_v21 = vadd.f32 %v6181_v27, %v6139_v35  ;;  %v11210_v5 = vpop.f32.mrb[197].mxu1 }
0x422e   : > { %v6184_v38 = vpop.f32.mrb[198].mxu1 }
0x422f   : > { %v6188_v18 = vadd.f32 %v13719_v22, %v6182_v21  ;;  %v6185_v49 = vadd.f32 %v6184_v38, %v6141_v16  ;;  %v11211_v55 = vpop.f32.mrb[199].mxu1  ;;  %v13788_v21 = vld [vmem:[%s14820_s11 + $0x10] ss:$8 sps:$4 sm:$0xff]  }
0x4231   : > { %6823 = vst.msk [vmem:[%s12423_s20 + $0x40] sm:$0xff] %vm947_vm2, %v6188_v18  ;;  %v6189_v29 = vadd.f32 %v13719_v22, %v6185_v49  ;;  %v6190_v42 = vsel %vm5770_vm10, %v13608_v51, %v6188_v18  ;;  %v14927_v51 = vld [vmem:[#allocation13_spill] sm:$0xff] }
0x4233   : > { %v6191_v20 = vsel %vm5771_vm11, %v13614_v53, %v6189_v29  ;;  %6824 = vst.msk [vmem:[%s12423_s20 + $0x48] sm:$0xff] %vm947_vm2, %v6189_v29 }
0x4234   : > { %v6192_v40 = vpack.c.bf16 %v6191_v20, %v6190_v42 }
0x4236   : > { %10471 = vmatmul.mubr.msk.bf16.vlgmr.msra.gmra.mrb[16].mxu0 %vm947_vm2, %v6192_v40  ;;  %10473 = vmatmul.mubr.msk.bf16.vlgmr.msra.gmra.mrb[200].mxu1 %vm947_vm2, %v6192_v40 }
0x4237   : > { %11214 = vmatprep.mubr.msk.bf16.mxu0 %vm11859_vm3, %v14908_v44  ;;  %11220 = vmatprep.mubr.msk.bf16.mxu1 %vm11859_vm3, %v14908_v44 }
0x4309   : > { %v13739_v9 = vpop.f32.mrb[16].mxu0  ;;  %v6273_v4 = vpop.f32.mrb[200].mxu1 }
0x430a   : > { %v13742_v10 = vadd.f32 %v6273_v4, %v14927_v51  ;;  %v6232_v46 = vpop.f32.mrb[17].mxu0  ;;  %v6275_v53 = vpop.f32.mrb[201].mxu1 }
0x430b   : > { %v13745_v62 = vadd.f32 %v6275_v53, %v14925_v15  ;;  %v13747_v8 = vpop.f32.mrb[18].mxu0  ;;  %v6277_v63 = vpop.f32.mrb[202].mxu1 }
0x430c   : > { %v13750_v50 = vadd.f32 %v6277_v63, %v14928_v43  ;;  %v6236_v47 = vpop.f32.mrb[19].mxu0  ;;  %v6279_v58 = vpop.f32.mrb[203].mxu1  ;;  %v6292_v35 = vadd.f32 %v13742_v10, %v13589_v28  ;;  %v13775_v28 = vld [vmem:[%s14820_s11] ss:$8 sps:$4 sm:$0xff]  }
0x430d   : > { %v6294_v0 = vpack.c.bf16 %v6236_v47, %v6232_v46  ;;  %v13753_v11 = vadd.f32 %v6279_v58, %v14926_v57  ;;  %v13767_v57 = vld [vmem:[%s14820_s11 + $0x4] ss:$8 sps:$4 sm:$0xff]  }
0x430e   : > { %v6293_v27 = vadd.f32 %v13750_v50, %v13605_v39  ;;  %v13782_v39 = vld [vmem:[%s14820_s11 + $0x14] ss:$8 sps:$4 sm:$0xff]  }
0x430f   : > { %11213 = vmatpush3.bf16.msra.mxu0 %v6294_v0 }
0x4310   : > { %v6394_v15 = vpack.c.bf16 %v6293_v27, %v6292_v35  ;;  %11224 = vmatprep.subr.bf16.mxu0 %v14908_v44 }
0x4312   : > { %11215 = vmatmul.mubr.msk.bf16.vlgmr.msra.gmra.mrb[164].mxu0 %vm1573_vm6, %v13401_v37 }
0x4313   : > { %11225 = vmatpush3.bf16.msra.mxu0 %v6394_v15  ;;  %11226 = vmatprep.mubr.msk.bf16.mxu0 %vm11859_vm3, %v14908_v44 }
0x4314   : > { %6514 = vmatprep.subr.bf16.mxu0 %v13767_v57 }
0x431a   : > { %11227 = vmatmul.mubr.msk.bf16.vlgmr.msra.gmra.mrb[168].mxu0 %vm1573_vm6, %v13411_v24 }
0x431b   : > { %6515 = vmatpush1.bf16.msra.mxu0 %v13775_v28  ;;  %6546 = vmatprep.mubr.bf16.mxu0 %v14914_v12 }
0x431c   : > { %6516 = vmatprep.subr.bf16.mxu0 %v13782_v39 }
0x431f   : > { %6517 = vmatpush1.bf16.msra.mxu0 %v13788_v21 }
0x4320   : > { %11242 = vmatprep.subr.bf16.mxu0 %v14908_v44 }
0x43e5   : > { %v6329_v5 = vpop.f32.mrb[164].mxu0 }
0x43e6   : > { %6338 = vrot.lane.b32.xlu1 %v6329_v5, %s14917_s4  ;;  %v11216_v16 = vpop.f32.mrb[165].mxu0 }
0x43e7   : > { %v6332_v38 = vpop.f32.mrb[166].mxu0 }
0x43e8   : > { %6340 = vrot.lane.b32.xlu0 %v6332_v38, %s14917_s4  ;;  %v11217_v18 = vpop.f32.mrb[167].mxu0 }
0x43ed   : > { %v6429_v49 = vpop.f32.mrb[168].mxu0 }
0x43ee   : > { %6438 = vrot.lane.b32.xlu1 %v6429_v49, %s14917_s4  ;;  %v11228_v55 = vpop.f32.mrb[169].mxu0 }
0x43ef   : > { %v6432_v29 = vpop.f32.mrb[170].mxu0 }
0x43f0   : > { %6440 = vrot.lane.b32.xlu0 %v6432_v29, %s14917_s4  ;;  %v11229_v42 = vpop.f32.mrb[171].mxu0 }
0x4458   : > { %v6339_v20 = vpop.permute.xlu1 %6338 }
0x4459   : > { %v6344_v4 = vadd.f32 %v6339_v20, %v13739_v9 }
0x445a   : > { %v6341_v40 = vpop.permute.xlu0 %6340 }
0x445b   : > { %v6345_v51 = vadd.f32 %v6341_v40, %v13747_v8 }
0x445d   : > { %v6346_v53 = vpack.c.bf16 %v6345_v51, %v6344_v4  ;;  %v13823_v4 = vld [vmem:[%s14826_s17] ss:$0 sm:$0xff] }
0x445f   : > { %6348 = vrot.lane.b32.xlu1 %v6346_v53, %s14917_s4 }
0x4460   : > { %v6439_v63 = vpop.permute.xlu1 %6438 }
0x4461   : > { %v6444_v58 = vadd.f32 %v6439_v63, %v6232_v46 }
0x4462   : > { %v6441_v43 = vpop.permute.xlu0 %6440 }
0x4463   : > { %v6445_v0 = vadd.f32 %v6441_v43, %v6236_v47  ;;  %5758 = vrot.lane.b32.xlu1 %v13558_v54, %s14918_s25 }
0x4465   : > { %v6446_v35 = vpack.c.bf16 %v6445_v0, %v6444_v58 }
0x4467   : > { %6448 = vrot.lane.b32.xlu0 %v6446_v35, %s14917_s4 }
0x446b   : > { %5760 = vrot.lane.b32.xlu0 %v13560_v3, %s14918_s25 }
0x44d1   : > { %v6349_v27 = vpop.permute.xlu1 %6348 }
0x44d2   : > { %11219 = vmatpush3.bf16.msra.mxu1 %v6349_v27 }
0x44d3   : > { %11230 = vmatprep.subr.bf16.mxu1 %v14908_v44 }
0x44d5   : > { %11221 = vmatmul.mubr.msk.bf16.vlgmr.msra.gmra.mrb[204].mxu1 %vm1573_vm6, %v13401_v37  ;;  %v5759_v15 = vpop.permute.xlu1 %5758 }
0x44d6   : > { %5764 = vst.msk [vmem:[%s12776_s21 + $0x30] sm:$0xff] %vm863_vm0, %v5759_v15  ;;  %11232 = vmatprep.mubr.msk.bf16.mxu1 %vm11859_vm3, %v14908_v44 }
0x44d9   : > { %v6449_v46 = vpop.permute.xlu0 %6448 }
0x44da   : > { %11231 = vmatpush3.bf16.msra.mxu1 %v6449_v46 }
0x44db   : > { %11236 = vmatprep.subr.bf16.mxu1 %v14908_v44 }
0x44dd   : > { %11233 = vmatmul.mubr.msk.bf16.vlgmr.msra.gmra.mrb[208].mxu1 %vm1573_vm6, %v13411_v24  ;;  %v5761_v47 = vpop.permute.xlu0 %5760 }
0x44de   : > { %5765 = vst.msk [vmem:[%s12776_s21 + $0x38] sm:$0xff] %vm863_vm0, %v5761_v47  ;;  %11238 = vmatprep.mubr.msk.bf16.mxu1 %vm11859_vm3, %v14908_v44 }
0x45a8   : > { %v6385_v5 = vpop.f32.mrb[204].mxu1 }
0x45a9   : > { %v6392_v16 = vadd.f32 %v6385_v5, %v13739_v9  ;;  %v11222_v38 = vpop.f32.mrb[205].mxu1 }
0x45aa   : > { %v6388_v18 = vpop.f32.mrb[206].mxu1 }
0x45ab   : > { %v6393_v49 = vadd.f32 %v6388_v18, %v13747_v8  ;;  %v11223_v55 = vpop.f32.mrb[207].mxu1 }
0x45b0   : > { %v6485_v29 = vpop.f32.mrb[208].mxu1 }
0x45b1   : > { %v6492_v42 = vadd.f32 %v6485_v29, %v6392_v16  ;;  %v11234_v20 = vpop.f32.mrb[209].mxu1 }
0x45b2   : > { %v6488_v40 = vpop.f32.mrb[210].mxu1 }
0x45b3   : > { %v6494_v51 = vadd.f32 %v13823_v4, %v6492_v42  ;;  %v6493_v53 = vadd.f32 %v6488_v40, %v6393_v49  ;;  %v11235_v63 = vpop.f32.mrb[211].mxu1 }
0x45b5   : > { %v10478_v43 = vmul.f32 -1.442695, %v6494_v51  ;;  %v6495_v9 = vadd.f32 %v13823_v4, %v6493_v53 }
0x45b7   : > { %11704 = vpow2.f32 %v10478_v43  ;;  %v10479_v58 = vmul.f32 -1.442695, %v6495_v9 }
0x45b9   : > { %11706 = vpow2.f32 %v10479_v58 }
0x45c1   : > { %v11705_v8 = vpop.eup %11704 }
0x45c2   : > { %v6502_v0 = vadd.f32 1.0, %v11705_v8 }
0x45c3   : > { %v11707_v35 = vpop.eup %11706 }
0x45c4   : > { %11708 = vrcp.f32 %v6502_v0  ;;  %v6503_v27 = vadd.f32 1.0, %v11707_v35 }
0x45c6   : > { %11710 = vrcp.f32 %v6503_v27 }
0x45ce   : > { %v13827_v46 = vpop.eup %11708 }
0x45cf   : > { %v6508_v16 = vmul.f32 %v13827_v46, %v5759_v15 }
0x45d0   : > { %v13829_v5 = vpop.eup %11710 }
0x45d1   : > { %v6509_v38 = vmul.f32 %v13829_v5, %v5761_v47 }
0x45d3   : > { %v6510_v18 = vpack.c.bf16 %v6509_v38, %v6508_v16 }
0x45d5   : > { %10480 = vmatmul.mubr.msk.bf16.vlgmr.msra.gmra.mrb[172].mxu0 %vm863_vm0, %v6510_v18 }
0x45d6   : > { %11244 = vmatprep.mubr.msk.bf16.mxu0 %vm11859_vm3, %v14908_v44 }
0x46a8   : > { %v6548_v49 = vpop.f32.mrb[172].mxu0 }
0x46a9   : > { %v6550_v55 = vpop.f32.mrb[173].mxu0 }
0x46aa   : > { %6573 = vrot.lane.b32.xlu1 %v6550_v55, %s14917_s4  ;;  %v6552_v29 = vpop.f32.mrb[174].mxu0 }
0x46ab   : > { %v6554_v42 = vpop.f32.mrb[175].mxu0 }
0x46ac   : > { %6575 = vrot.lane.b32.xlu0 %v6554_v42, %s14917_s4 }
0x46ae   : > { %6559 = vrot.lane.b32.xlu1 %v6548_v49, %s14917_s4 }
0x46b0   : > { %6561 = vrot.lane.b32.xlu0 %v6552_v29, %s14917_s4 }
0x471c   : > { %v6574_v15 = vpop.permute.xlu1 %6573 }
0x471d   : > { %v6579_v20 = vadd.f32 %v6574_v15, %v13745_v62 }
0x471e   : > { %v6576_v47 = vpop.permute.xlu0 %6575 }
0x471f   : > { %v6580_v40 = vadd.f32 %v6576_v47, %v13753_v11 }
0x4720   : > { %v6560_v51 = vpop.permute.xlu1 %6559 }
0x4721   : > { %v6689_v53 = vpack.c.bf16 %v6580_v40, %v6579_v20  ;;  %v6569_v43 = vadd.f32 %v13745_v62, %v6560_v51 }
0x4722   : > { %v6562_v63 = vpop.permute.xlu0 %6561 }
0x4723   : > { %v6570_v9 = vadd.f32 %v13753_v11, %v6562_v63  ;;  %6691 = vrot.lane.b32.xlu1 %v6689_v53, %s14917_s4  ;;  %v6566_v38 = vadd.f32 %v6562_v63, %v13750_v50 }
0x4725   : > { %v6581_v58 = vpack.c.bf16 %v6570_v9, %v6569_v43 }
0x4727   : > { %11237 = vmatpush3.bf16.msra.mxu1 %v6581_v58 }
0x4728   : > { %11248 = vmatprep.subr.bf16.mxu1 %v14908_v44 }
0x472a   : > { %11239 = vmatmul.mubr.msk.bf16.vlgmr.msra.gmra.mrb[212].mxu1 %vm1573_vm6, %v13401_v37 }
0x472b   : > { %11250 = vmatprep.mubr.msk.bf16.mxu1 %vm11859_vm3, %v14908_v44 }
0x4795   : > { %v6692_v8 = vpop.permute.xlu1 %6691 }
0x4796   : > { %11249 = vmatpush3.bf16.msra.mxu1 %v6692_v8 }
0x4797   : > { %6901 = vmatprep.subr.bf16.mxu1 %v13517_v52 }
0x4799   : > { %11251 = vmatmul.mubr.msk.bf16.vlgmr.msra.gmra.mrb[216].mxu1 %vm1573_vm6, %v13411_v24 }
0x479a   : > { %6902 = vmatpush1.bf16.msra.mxu1 %v13525_v41  ;;  %6933 = vmatprep.mubr.bf16.mxu1 %v14914_v12 }
0x479b   : > { %6903 = vmatprep.subr.bf16.mxu1 %v13532_v17 }
0x479e   : > { %6904 = vmatpush1.bf16.msra.mxu1 %v13538_v33  ;;  %v6565_v33 = vadd.f32 %v6560_v51, %v13742_v10 }
0x479f   : > { %11260 = vmatprep.subr.bf16.mxu1 %v14908_v44 }
0x47fd   : > { %v6616_v62 = vpop.f32.mrb[212].mxu1 }
0x47fe   : > { %6625 = vrot.lane.b32.xlu0 %v6616_v62, %s14918_s25  ;;  %v11240_v11 = vpop.f32.mrb[213].mxu1 }
0x47ff   : > { %v6619_v0 = vpop.f32.mrb[214].mxu1 }
0x4800   : > { %6627 = vrot.lane.b32.xlu1 %v6619_v0, %s14918_s25  ;;  %v11241_v52 = vpop.f32.mrb[215].mxu1 }
0x486c   : > { %v6728_v35 = vpop.f32.mrb[216].mxu1 }
0x486d   : > { %6737 = vrot.lane.b32.xlu0 %v6728_v35, %s14906_s0  ;;  %v11252_v41 = vpop.f32.mrb[217].mxu1 }
0x486e   : > { %v6731_v27 = vpop.f32.mrb[218].mxu1 }
0x486f   : > { %6739 = vrot.lane.b32.xlu1 %v6731_v27, %s14906_s0  ;;  %v11253_v17 = vpop.f32.mrb[219].mxu1 }
0x4870   : > { %v6626_v16 = vpop.permute.xlu0 %6625  ;;  %v14929_v17 = vld [vmem:[#allocation18_spill] sm:$0xff] }
0x4871   : > { %v6631_v49 = vadd.f32 %v6626_v16, %v6565_v33  ;;  %v6807_v16 = vsub.f32 1.0, %v13827_v46 }
0x4872   : > { %v6628_v18 = vpop.permute.xlu1 %6627 }
0x4873   : > { %v6632_v55 = vadd.f32 %v6628_v18, %v6566_v38  ;;  %v6808_v18 = vsub.f32 1.0, %v13829_v5 }
0x4875   : > { %v6633_v29 = vpack.c.bf16 %v6632_v55, %v6631_v49  ;;  %v6805_v55 = vmul.f32 %v13827_v46, %v13558_v54  ;;  %v13922_v46 = vld [vmem:[%s12031_s3 + $0x58] sm:$0xff] }
0x4876   : > { %vm6842_vm15 = vcmp.gt.f32.partialorder %v13922_v46, 0.5 }
0x4877   : > { %6635 = vrot.lane.b32.xlu0 %v6633_v29, %s14906_s0  ;;  %v6806_v29 = vmul.f32 %v13829_v5, %v13560_v3  ;;  %v13919_v3 = vld [vmem:[%s12031_s3 + $0x50] sm:$0xff] }
0x4878   : > { %vm6841_vm14 = vcmp.gt.f32.partialorder %v13919_v3, 0.5 }
0x48df   : > { %v6738_v42 = vpop.permute.xlu0 %6737 }
0x48e0   : > { %v6743_v47 = vadd.f32 %v6738_v42, %v6569_v43 }
0x48e1   : > { %v6740_v15 = vpop.permute.xlu1 %6739 }
0x48e2   : > { %v6744_v20 = vadd.f32 %v6740_v15, %v6570_v9 }
0x48e4   : > { %v6745_v40 = vpack.c.bf16 %v6744_v20, %v6743_v47 }
0x48e6   : > { %6747 = vrot.lane.b32.xlu1 %v6745_v40, %s14918_s25  ;;  %v14930_v40 = vld [vmem:[#allocation20_spill] sm:$0xff] }
0x48e9   : > { %v6636_v53 = vpop.permute.xlu0 %6635 }
0x48ea   : > { %11243 = vmatpush3.bf16.msra.mxu0 %v6636_v53 }
0x48eb   : > { %11254 = vmatprep.subr.bf16.mxu0 %v14908_v44 }
0x48ed   : > { %11245 = vmatmul.mubr.msk.bf16.vlgmr.msra.gmra.mrb[176].mxu0 %vm1573_vm6, %v13401_v37 }
0x48ee   : > { %11256 = vmatprep.mubr.msk.bf16.mxu0 %vm11859_vm3, %v14908_v44 }
0x4958   : > { %v6748_v10 = vpop.permute.xlu1 %6747 }
0x4959   : > { %11255 = vmatpush3.bf16.msra.mxu0 %v6748_v10 }
0x495a   : > { %6858 = vmatprep.subr.bf16.mxu0 %v13476_v59 }
0x495c   : > { %11257 = vmatmul.mubr.msk.bf16.vlgmr.msra.gmra.mrb[180].mxu0 %vm1573_vm6, %v13411_v24 }
0x495d   : > { %6859 = vmatpush1.bf16.msra.mxu0 %v13484_v36  ;;  %6890 = vmatprep.mubr.bf16.mxu0 %v14914_v12 }
0x495e   : > { %6860 = vmatprep.subr.bf16.mxu0 %v13491_v48 }
0x4961   : > { %6861 = vmatpush1.bf16.msra.mxu0 %v13497_v2 }
0x4962   : > { %11266 = vmatprep.subr.bf16.mxu0 %v14908_v44 }
0x49c0   : > { %v6672_v37 = vpop.f32.mrb[176].mxu0 }
0x49c1   : > { %6681 = vrot.lane.b32.xlu0 %v6672_v37, %s14917_s4  ;;  %v11246_v50 = vpop.f32.mrb[177].mxu0  ;;  %v13930_v37 = vld [vmem:[%s12245_s2 + $0x50] sm:$0xff] }
0x49c2   : > { %v6675_v51 = vpop.f32.mrb[178].mxu0 }
0x49c3   : > { %6683 = vrot.lane.b32.xlu1 %v6675_v51, %s14917_s4  ;;  %v11247_v59 = vpop.f32.mrb[179].mxu0 }
0x4a2f   : > { %v6784_v63 = vpop.f32.mrb[180].mxu0 }
0x4a30   : > { %6793 = vrot.lane.b32.xlu0 %v6784_v63, %s14917_s4  ;;  %v11258_v24 = vpop.f32.mrb[181].mxu0 }
0x4a31   : > { %v6787_v36 = vpop.f32.mrb[182].mxu0 }
0x4a32   : > { %6795 = vrot.lane.b32.xlu1 %v6787_v36, %s14917_s4  ;;  %v11259_v48 = vpop.f32.mrb[183].mxu0 }
0x4a33   : > { %v6682_v43 = vpop.permute.xlu0 %6681 }
0x4a34   : > { %v6687_v9 = vadd.f32 %v6682_v43, %v6565_v33 }
0x4a35   : > { %v6684_v2 = vpop.permute.xlu1 %6683 }
0x4a36   : > { %v6688_v8 = vadd.f32 %v6684_v2, %v6566_v38 }
0x4aa2   : > { %v6794_v58 = vpop.permute.xlu0 %6793 }
0x4aa3   : > { %v6799_v62 = vadd.f32 %v6794_v58, %v6687_v9 }
0x4aa4   : > { %v6796_v11 = vpop.permute.xlu1 %6795 }
0x4aa5   : > { %v6801_v0 = vadd.f32 %v6799_v62, %v12589_v19  ;;  %v6800_v52 = vadd.f32 %v6796_v11, %v6688_v8 }
0x4aa7   : > { %11712 = vtanh.f32 %v6801_v0  ;;  %v6802_v35 = vadd.f32 %v6800_v52, %v12589_v19 }
0x4aa9   : > { %11714 = vtanh.f32 %v6802_v35 }
0x4ab1   : > { %v11713_v41 = vpop.eup %11712 }
0x4ab2   : > { %6811 = vrot.lane.b32.xlu0 %v11713_v41, %s14918_s25 }
0x4ab3   : > { %v11715_v27 = vpop.eup %11714 }
0x4ab4   : > { %6813 = vrot.lane.b32.xlu1 %v11715_v27, %s14918_s25 }
0x4ab8   : > { %6951 = vrot.lane.b32.xlu1 %v14929_v17, %s14906_s0 }
0x4b24   : > { %v6812_v33 = vpop.permute.xlu0 %6811 }
0x4b25   : > { %v6817_v38 = vmul.f32 %v6812_v33, %v6807_v16 }
0x4b26   : > { %v6814_v49 = vpop.permute.xlu1 %6813 }
0x4b27   : > { %v6818_v42 = vmul.f32 %v6814_v49, %v6808_v18  ;;  %v13895_v15 = vadd.f32 %v6817_v38, %v6805_v55 }
0x4b29   : > { %v13897_v47 = vadd.f32 %v6818_v42, %v6806_v29 }
0x4b2b   : > { %v6851_v20 = vpack.c.bf16 %v13897_v47, %v13895_v15 }
0x4b2d   : > { %6853 = vrot.lane.b32.xlu0 %v6851_v20, %s14918_s25 }
0x4b31   : > { %6953 = vrot.lane.b32.xlu0 %v14930_v40, %s14906_s0 }
0x4b9f   : > { %v6854_v53 = vpop.permute.xlu0 %6853 }
0x4ba0   : > { %10485 = vmatmul.mubr.msk.bf16.vlgmr.msra.gmra.mrb[20].mxu0 %vm863_vm0, %v6854_v53  ;;  %10486 = vmatmul.mubr.msk.bf16.vlgmr.msra.gmra.mrb[220].mxu1 %vm863_vm0, %v6854_v53 }
0x4ba1   : > { %11261 = vmatpush3.bf16.msra.mxu1 %v12158_v56  ;;  %11262 = vmatprep.mubr.msk.bf16.mxu1 %vm11859_vm3, %v14908_v44 }
0x4ba2   : > { %11267 = vmatpush3.bf16.msra.mxu0 %v13575_v30  ;;  %11270 = vmatprep.mubr.msk.bf16.mxu0 %vm11859_vm3, %v14908_v44 }
0x4ba3   : > { %11268 = vmatprep.subr.bf16.mxu0 %v14908_v44  ;;  %11274 = vmatprep.subr.bf16.mxu1 %v14908_v44  ;;  %v6954_v36 = vpop.permute.xlu0 %6953 }
0x4ba6   : > { %11269 = vmatpush3.bf16.msra.mxu0 %v13585_v1  ;;  %v13936_v1 = vld [vmem:[%s12245_s2 + $0x58] sm:$0xff] }
0x4ba7   : > { %11280 = vmatprep.subr.bf16.mxu0 %v14908_v44 }
0x4c73   : > { %v13916_v54 = vpop.f32.mrb[220].mxu1 }
0x4c74   : > { %7003 = vrot.lane.b32.xlu1 %v13916_v54, %s14917_s4  ;;  %v6937_v30 = vpop.f32.mrb[221].mxu1 }
0x4c75   : > { %v6944_v5 = vadd.f32 %v13602_v7, %v6937_v30  ;;  %v13927_v10 = vpop.f32.mrb[222].mxu1 }
0x4c76   : > { %7005 = vrot.lane.b32.xlu0 %v13927_v10, %s14917_s4  ;;  %v6941_v50 = vpop.f32.mrb[223].mxu1 }
0x4c77   : > { %7892 = vst.msk [vmem:[%s12253_s29 + $0x50] sm:$0xff] %vm947_vm2, %v6944_v5  ;;  %v6945_v51 = vadd.f32 %v13602_v7, %v6941_v50  ;;  %v6946_v59 = vsel %vm6841_vm14, %v13930_v37, %v6944_v5  ;;  %v6952_v7 = vpop.permute.xlu1 %6951 }
0x4c79   : > { %v6947_v63 = vsel %vm6842_vm15, %v13936_v1, %v6945_v51  ;;  %7893 = vst.msk [vmem:[%s12253_s29 + $0x58] sm:$0xff] %vm947_vm2, %v6945_v51 }
0x4c7a   : > { %v6948_v24 = vpack.c.bf16 %v6947_v63, %v6946_v59  ;;  %7148 = vrot.lane.b32.xlu0 %v13916_v54, %s14906_s0 }
0x4c7c   : > { %11263 = vmatmul.mubr.msk.bf16.vlgmr.msra.gmra.mrb[224].mxu1 %vm947_vm2, %v6948_v24 }
0x4c7d   : > { %11276 = vmatprep.mubr.msk.bf16.mxu1 %vm11859_vm3, %v14908_v44 }
0x4c7e   : > { %7209 = vrot.lane.b32.xlu0 %v6937_v30, %s14919_s24 }
0x4ce6   : > { %v7004_v9 = vpop.permute.xlu1 %7003 }
0x4ce8   : > { %v7006_v0 = vpop.permute.xlu0 %7005 }
0x4d4f   : > { %v6994_v48 = vpop.f32.mrb[224].mxu1 }
0x4d50   : > { %v6995_v43 = vadd.f32 %v6994_v48, %v6952_v7  ;;  %v11264_v2 = vpop.f32.mrb[225].mxu1 }
0x4d51   : > { %v6997_v58 = vpop.f32.mrb[226].mxu1 }
0x4d52   : > { %v7009_v8 = vadd.f32 %v7004_v9, %v6995_v43  ;;  %v6998_v62 = vadd.f32 %v6997_v58, %v6954_v36  ;;  %v11265_v11 = vpop.f32.mrb[227].mxu1 }
0x4d54   : > { %v7010_v52 = vadd.f32 %v7006_v0, %v6998_v62  ;;  %v7011_v35 = vadd.f32 %v13637_v60, %v7009_v8 }
0x4d56   : > { %v7012_v41 = vadd.f32 %v13637_v60, %v7010_v52  ;;  %v13966_v60 = vld [vmem:[%s14910_s1] sm:$0xff]  }
0x4d58   : > { %v7013_v27 = vpack.c.bf16 %v7012_v41, %v7011_v35 }
0x4d5a   : > { %11271 = vmatmul.mubr.msk.bf16.vlgmr.msra.gmra.mrb[184].mxu0 %vm863_vm0, %v7013_v27 }
0x4d5b   : > { %11282 = vmatprep.mubr.msk.bf16.mxu0 %vm11859_vm3, %v14908_v44 }
0x4e2d   : > { %v7051_v16 = vpop.f32.mrb[184].mxu0 }
0x4e2e   : > { %v11272_v33 = vpop.f32.mrb[185].mxu0 }
0x4e2f   : > { %v7054_v38 = vpop.f32.mrb[186].mxu0 }
0x4e30   : > { %v7058_v18 = vpack.c.bf16 %v7054_v38, %v7051_v16  ;;  %v11273_v49 = vpop.f32.mrb[187].mxu0 }
0x4e32   : > { %7060 = vrot.lane.b32.xlu1 %v7058_v18, %s14918_s25  ;;  %11281 = vmatpush3.bf16.msra.mxu0 %v7058_v18 }
0x4e33   : > { %11294 = vmatprep.subr.bf16.mxu0 %v14908_v44 }
0x4e35   : > { %11283 = vmatmul.mubr.msk.bf16.vlgmr.msra.gmra.mrb[188].mxu0 %vm1573_vm6, %v13966_v60 }
0x4e36   : > { %7150 = vrot.lane.b32.xlu1 %v13927_v10, %s14906_s0  ;;  %11295 = vmatpush3.bf16.msra.mxu0 %v13653_v14  ;;  %v13984_v14 = vld [vmem:[%s14912_s9] sm:$0xff]  }
0x4e37   : > { %11296 = vmatprep.subr.bf16.mxu0 %v14908_v44  ;;  %11298 = vmatprep.mubr.msk.bf16.mxu0 %vm11859_vm3, %v14908_v44 }
0x4e3a   : > { %7211 = vrot.lane.b32.xlu1 %v6941_v50, %s14919_s24  ;;  %11297 = vmatpush3.bf16.msra.mxu0 %v13663_v31 }
0x4e3b   : > { %10493 = vmatprep.subr.msk.bf16.mxu0 %vm972_vm1, %v12341_v32 }
0x4ea4   : > { %v7061_v55 = vpop.permute.xlu1 %7060 }
0x4ea5   : > { %11275 = vmatpush3.bf16.msra.mxu1 %v7061_v55 }
0x4ea6   : > { %11286 = vmatprep.subr.bf16.mxu1 %v14908_v44 }
0x4ea8   : > { %11277 = vmatmul.mubr.msk.bf16.vlgmr.msra.gmra.mrb[228].mxu1 %vm1573_vm6, %v13984_v14  ;;  %v7151_v43 = vpop.permute.xlu1 %7150 }
0x4ea9   : > { %11287 = vmatpush3.bf16.msra.mxu1 %v13674_v26  ;;  %11290 = vmatprep.mubr.msk.bf16.mxu1 %vm11859_vm3, %v14908_v44 }
0x4eaa   : > { %11288 = vmatprep.subr.bf16.mxu1 %v14908_v44 }
0x4eac   : > { %v7212_v33 = vpop.permute.xlu1 %7211 }
0x4ead   : > { %11289 = vmatpush3.bf16.msra.mxu1 %v13683_v45  ;;  %v7149_v45 = vpop.permute.xlu0 %7148 }
0x4eae   : > { %10495 = vmatprep.subr.msk.bf16.mxu1 %vm972_vm1, %v12369_v34 }
0x4f08   : > { %v7138_v31 = vpop.f32.mrb[188].mxu0 }
0x4f09   : > { %v11284_v29 = vpop.f32.mrb[189].mxu0 }
0x4f0a   : > { %v7141_v42 = vpop.f32.mrb[190].mxu0 }
0x4f0b   : > { %v11285_v20 = vpop.f32.mrb[191].mxu0 }
0x4f7b   : > { %v7097_v53 = vpop.f32.mrb[228].mxu1 }
0x4f7c   : > { %v7139_v30 = vadd.f32 %v7138_v31, %v7097_v53  ;;  %v11278_v5 = vpop.f32.mrb[229].mxu1 }
0x4f7d   : > { %v7100_v50 = vpop.f32.mrb[230].mxu1 }
0x4f7e   : > { %v7142_v51 = vadd.f32 %v7141_v42, %v7100_v50  ;;  %v11279_v26 = vpop.f32.mrb[231].mxu1  ;;  %v7145_v59 = vadd.f32 %v13691_v61, %v7139_v30 }
0x4f80   : > { %v7146_v63 = vadd.f32 %v13691_v61, %v7142_v51  ;;  %v14932_v51 = vld [vmem:[#allocation19_spill] sm:$0xff] }
0x4f82   : > { %v7147_v24 = vpack.c.bf16 %v7146_v63, %v7145_v59 }
0x4f84   : > { %11291 = vmatmul.mubr.msk.bf16.vlgmr.msra.gmra.mrb[232].mxu1 %vm863_vm0, %v7147_v24 }
0x4f85   : > { %7311 = vmatpush1.bf16.msra.mxu1 %v12408_v13  ;;  %7342 = vmatprep.mubr.bf16.mxu1 %v14914_v12 }
0x4f86   : > { %11302 = vmatprep.subr.bf16.mxu1 %v14908_v44 }
0x5057   : > { %v7191_v7 = vpop.f32.mrb[232].mxu1 }
0x5058   : > { %v7192_v36 = vadd.f32 %v7191_v7, %v7149_v45  ;;  %v11292_v48 = vpop.f32.mrb[233].mxu1 }
0x5059   : > { %v7194_v2 = vpop.f32.mrb[234].mxu1 }
0x505a   : > { %v7198_v9 = vadd.f32 %v13702_v25, %v7192_v36  ;;  %v7195_v61 = vadd.f32 %v7194_v2, %v7151_v43  ;;  %v11293_v58 = vpop.f32.mrb[235].mxu1 }
0x505c   : > { %vm7200_vm4 = vcmp.gt.f32.partialorder %v7198_v9, 0.0  ;;  %v7202_v8 = vmul.f32 %v7198_v9, %v12380_v23  ;;  %v7199_v62 = vadd.f32 %v13702_v25, %v7195_v61  ;;  %v7210_v25 = vpop.permute.xlu0 %7209 }
0x505e   : > { %v7204_v11 = vsel %vm7200_vm4, %v7198_v9, %v7202_v8  ;;  %vm7201_vm5 = vcmp.gt.f32.partialorder %v7199_v62, 0.0  ;;  %v7203_v0 = vmul.f32 %v7199_v62, %v12380_v23 }
0x505f   : > { %7896 = vst.msk [vmem:[%s12392_s6 + $0x50] sm:$0xff] %vm863_vm0, %v7204_v11 }
0x5060   : > { %v7205_v52 = vsel %vm7201_vm5, %v7199_v62, %v7203_v0 }
0x5061   : > { %v7206_v35 = vpack.c.bf16 %v7205_v52, %v7204_v11  ;;  %7897 = vst.msk [vmem:[%s12392_s6 + $0x58] sm:$0xff] %vm863_vm0, %v7205_v52 }
0x5063   : > { %11299 = vmatmul.mubr.msk.bf16.vlgmr.msra.gmra.mrb[192].mxu0 %vm863_vm0, %v7206_v35 }
0x5064   : > { %7268 = vmatpush1.bf16.msra.mxu0 %v12404_v6  ;;  %7299 = vmatprep.mubr.bf16.mxu0 %v14914_v12 }
0x5065   : > { %11308 = vmatprep.subr.bf16.mxu0 %v14908_v44 }
0x5136   : > { %v7252_v41 = vpop.f32.mrb[192].mxu0 }
0x5137   : > { %v7253_v27 = vadd.f32 %v7252_v41, %v7210_v25  ;;  %v11300_v16 = vpop.f32.mrb[193].mxu0 }
0x5138   : > { %v7255_v38 = vpop.f32.mrb[194].mxu0 }
0x5139   : > { %v7259_v18 = vadd.f32 %v13719_v22, %v7253_v27  ;;  %v7256_v49 = vadd.f32 %v7255_v38, %v7212_v33  ;;  %v11301_v55 = vpop.f32.mrb[195].mxu0 }
0x513b   : > { %7894 = vst.msk [vmem:[%s12423_s20 + $0x50] sm:$0xff] %vm947_vm2, %v7259_v18  ;;  %v7260_v31 = vadd.f32 %v13719_v22, %v7256_v49  ;;  %v7261_v29 = vsel %vm6841_vm14, %v13930_v37, %v7259_v18  ;;  %v14931_v37 = vld [vmem:[#allocation17_spill] sm:$0xff] }
0x513d   : > { %v7262_v42 = vsel %vm6842_vm15, %v13936_v1, %v7260_v31  ;;  %7895 = vst.msk [vmem:[%s12423_s20 + $0x58] sm:$0xff] %vm947_vm2, %v7260_v31 }
0x513e   : > { %v7263_v20 = vpack.c.bf16 %v7262_v42, %v7261_v29 }
0x5140   : > { %10494 = vmatmul.mubr.msk.bf16.vlgmr.msra.gmra.mrb[20].mxu0 %vm947_vm2, %v7263_v20  ;;  %10496 = vmatmul.mubr.msk.bf16.vlgmr.msra.gmra.mrb[236].mxu1 %vm947_vm2, %v7263_v20 }
0x5141   : > { %11304 = vmatprep.mubr.msk.bf16.mxu1 %vm11859_vm3, %v14908_v44  ;;  %11310 = vmatprep.mubr.msk.bf16.mxu0 %vm11859_vm3, %v14908_v44 }
0x5213   : > { %v14031_v22 = vpop.f32.mrb[20].mxu0  ;;  %v7344_v3 = vpop.f32.mrb[236].mxu1 }
0x5214   : > { %v14034_v53 = vadd.f32 %v7344_v3, %v14931_v37  ;;  %v7303_v46 = vpop.f32.mrb[21].mxu0  ;;  %v7346_v1 = vpop.f32.mrb[237].mxu1 }
0x5215   : > { %v14037_v30 = vadd.f32 %v7346_v1, %v14929_v17  ;;  %v14039_v5 = vpop.f32.mrb[22].mxu0  ;;  %v7348_v50 = vpop.f32.mrb[238].mxu1 }
0x5216   : > { %v14042_v26 = vadd.f32 %v7348_v50, %v14932_v51  ;;  %v7307_v59 = vpop.f32.mrb[23].mxu0  ;;  %v7350_v63 = vpop.f32.mrb[239].mxu1  ;;  %v7363_v7 = vadd.f32 %v14034_v53, %v13916_v54 }
0x5217   : > { %v7365_v24 = vpack.c.bf16 %v7307_v59, %v7303_v46  ;;  %v14045_v45 = vadd.f32 %v7350_v63, %v14930_v40 }
0x5218   : > { %v7364_v36 = vadd.f32 %v14042_v26, %v13927_v10 }
0x5219   : > { %11303 = vmatpush3.bf16.msra.mxu1 %v7365_v24 }
0x521a   : > { %v7465_v17 = vpack.c.bf16 %v7364_v36, %v7363_v7  ;;  %11314 = vmatprep.subr.bf16.mxu1 %v14908_v44 }
0x521c   : > { %11305 = vmatmul.mubr.msk.bf16.vlgmr.msra.gmra.mrb[240].mxu1 %vm1573_vm6, %v13966_v60 }
0x521d   : > { %11315 = vmatpush3.bf16.msra.mxu1 %v7465_v17  ;;  %11316 = vmatprep.mubr.msk.bf16.mxu1 %vm11859_vm3, %v14908_v44 }
0x521e   : > { %7585 = vmatprep.subr.bf16.mxu1 %v13767_v57 }
0x5224   : > { %11317 = vmatmul.mubr.msk.bf16.vlgmr.msra.gmra.mrb[244].mxu1 %vm1573_vm6, %v13984_v14 }
0x5225   : > { %7586 = vmatpush1.bf16.msra.mxu1 %v13775_v28  ;;  %7617 = vmatprep.mubr.bf16.mxu1 %v14914_v12 }
0x5226   : > { %7587 = vmatprep.subr.bf16.mxu1 %v13782_v39 }
0x5229   : > { %7588 = vmatpush1.bf16.msra.mxu1 %v13788_v21 }
0x522a   : > { %11332 = vmatprep.subr.bf16.mxu1 %v14908_v44 }
0x52ef   : > { %v7400_v40 = vpop.f32.mrb[240].mxu1 }
0x52f0   : > { %7409 = vrot.lane.b32.xlu0 %v7400_v40, %s14917_s4  ;;  %v11306_v54 = vpop.f32.mrb[241].mxu1 }
0x52f1   : > { %v7403_v10 = vpop.f32.mrb[242].mxu1 }
0x52f2   : > { %7411 = vrot.lane.b32.xlu1 %v7403_v10, %s14917_s4  ;;  %v11307_v57 = vpop.f32.mrb[243].mxu1 }
0x52f7   : > { %v7500_v48 = vpop.f32.mrb[244].mxu1 }
0x52f8   : > { %7509 = vrot.lane.b32.xlu0 %v7500_v48, %s14917_s4  ;;  %v11318_v28 = vpop.f32.mrb[245].mxu1 }
0x52f9   : > { %v7503_v43 = vpop.f32.mrb[246].mxu1 }
0x52fa   : > { %7511 = vrot.lane.b32.xlu1 %v7503_v43, %s14917_s4  ;;  %v11319_v39 = vpop.f32.mrb[247].mxu1 }
0x5362   : > { %v7410_v2 = vpop.permute.xlu0 %7409 }
0x5363   : > { %v7415_v9 = vadd.f32 %v7410_v2, %v14031_v22 }
0x5364   : > { %v7412_v21 = vpop.permute.xlu1 %7411 }
0x5365   : > { %v7416_v61 = vadd.f32 %v7412_v21, %v14039_v5 }
0x5367   : > { %v7417_v58 = vpack.c.bf16 %v7416_v61, %v7415_v9 }
0x5369   : > { %7419 = vrot.lane.b32.xlu0 %v7417_v58, %s14917_s4 }
0x536a   : > { %v7510_v8 = vpop.permute.xlu0 %7509 }
0x536b   : > { %v7515_v11 = vadd.f32 %v7510_v8, %v7303_v46 }
0x536c   : > { %v7512_v62 = vpop.permute.xlu1 %7511 }
0x536d   : > { %v7516_v0 = vadd.f32 %v7512_v62, %v7307_v59  ;;  %6829 = vrot.lane.b32.xlu0 %v13895_v15, %s14918_s25 }
0x536f   : > { %v7517_v52 = vpack.c.bf16 %v7516_v0, %v7515_v11  ;;  %v14135_v11 = vld [vmem:[%s14881_s30 + $0x24] ss:$16 sps:$4 sm:$0xff]   ;;  %v14141_v0 = vld [vmem:[%s14881_s30 + $0x20] ss:$16 sps:$4 sm:$0xff]  }
0x5371   : > { %7519 = vrot.lane.b32.xlu1 %v7517_v52, %s14917_s4 }
0x5375   : > { %6831 = vrot.lane.b32.xlu1 %v13897_v47, %s14918_s25 }
0x53db   : > { %v7420_v35 = vpop.permute.xlu0 %7419 }
0x53dc   : > { %11309 = vmatpush3.bf16.msra.mxu0 %v7420_v35 }
0x53dd   : > { %11320 = vmatprep.subr.bf16.mxu0 %v14908_v44 }
0x53df   : > { %11311 = vmatmul.mubr.msk.bf16.vlgmr.msra.gmra.mrb[196].mxu0 %vm1573_vm6, %v13966_v60  ;;  %v6830_v25 = vpop.permute.xlu0 %6829 }
0x53e0   : > { %6835 = vst.msk [vmem:[%s12776_s21 + $0x40] sm:$0xff] %vm863_vm0, %v6830_v25  ;;  %11322 = vmatprep.mubr.msk.bf16.mxu0 %vm11859_vm3, %v14908_v44 }
0x53e3   : > { %v7520_v41 = vpop.permute.xlu1 %7519 }
0x53e4   : > { %11321 = vmatpush3.bf16.msra.mxu0 %v7520_v41 }
0x53e5   : > { %11326 = vmatprep.subr.bf16.mxu0 %v14908_v44 }
0x53e7   : > { %11323 = vmatmul.mubr.msk.bf16.vlgmr.msra.gmra.mrb[200].mxu0 %vm1573_vm6, %v13984_v14  ;;  %v6832_v27 = vpop.permute.xlu1 %6831 }
0x53e8   : > { %6836 = vst.msk [vmem:[%s12776_s21 + $0x48] sm:$0xff] %vm863_vm0, %v6832_v27  ;;  %11328 = vmatprep.mubr.msk.bf16.mxu0 %vm11859_vm3, %v14908_v44 }
0x54b2   : > { %v7456_v16 = vpop.f32.mrb[196].mxu0 }
0x54b3   : > { %v7463_v33 = vadd.f32 %v7456_v16, %v14031_v22  ;;  %v11312_v38 = vpop.f32.mrb[197].mxu0 }
0x54b4   : > { %v7459_v18 = vpop.f32.mrb[198].mxu0 }
0x54b5   : > { %v7464_v49 = vadd.f32 %v7459_v18, %v14039_v5  ;;  %v11313_v55 = vpop.f32.mrb[199].mxu0 }
0x54ba   : > { %v7556_v31 = vpop.f32.mrb[200].mxu0 }
0x54bb   : > { %v7563_v29 = vadd.f32 %v7556_v31, %v7463_v33  ;;  %v11324_v42 = vpop.f32.mrb[201].mxu0 }
0x54bc   : > { %v7559_v20 = vpop.f32.mrb[202].mxu0 }
0x54bd   : > { %v7565_v3 = vadd.f32 %v13823_v4, %v7563_v29  ;;  %v7564_v37 = vadd.f32 %v7559_v20, %v7464_v49  ;;  %v11325_v46 = vpop.f32.mrb[203].mxu0 }
0x54bf   : > { %v10501_v1 = vmul.f32 -1.442695, %v7565_v3  ;;  %v7566_v50 = vadd.f32 %v13823_v4, %v7564_v37 }
0x54c1   : > { %11716 = vpow2.f32 %v10501_v1  ;;  %v10502_v51 = vmul.f32 -1.442695, %v7566_v50 }
0x54c3   : > { %11718 = vpow2.f32 %v10502_v51 }
0x54cb   : > { %v11717_v22 = vpop.eup %11716 }
0x54cc   : > { %v7573_v59 = vadd.f32 1.0, %v11717_v22  ;;  %v14169_v22 = vld [vmem:[%s14881_s30 + $0x8] ss:$16 sps:$4 sm:$0xff]  }
0x54cd   : > { %v11719_v63 = vpop.eup %11718 }
0x54ce   : > { %11720 = vrcp.f32 %v7573_v59  ;;  %v7574_v5 = vadd.f32 1.0, %v11719_v63  ;;  %v14176_v59 = vld [vmem:[%s14881_s30 + $0x2c] ss:$16 sps:$4 sm:$0xff]   ;;  %v14182_v63 = vld [vmem:[%s14881_s30 + $0x28] ss:$16 sps:$4 sm:$0xff]  }
0x54d0   : > { %11722 = vrcp.f32 %v7574_v5 }
0x54d8   : > { %v14094_v24 = vpop.eup %11720 }
0x54d9   : > { %v7579_v36 = vmul.f32 %v14094_v24, %v6830_v25 }
0x54da   : > { %v14096_v7 = vpop.eup %11722 }
0x54db   : > { %v7580_v17 = vmul.f32 %v14096_v7, %v6832_v27 }
0x54dd   : > { %v7581_v40 = vpack.c.bf16 %v7580_v17, %v7579_v36 }
0x54df   : > { %10503 = vmatmul.mubr.msk.bf16.vlgmr.msra.gmra.mrb[248].mxu1 %vm863_vm0, %v7581_v40 }
0x54e0   : > { %11334 = vmatprep.mubr.msk.bf16.mxu1 %vm11859_vm3, %v14908_v44 }
0x55b2   : > { %v7619_v4 = vpop.f32.mrb[248].mxu1 }
0x55b3   : > { %v7621_v54 = vpop.f32.mrb[249].mxu1 }
0x55b4   : > { %7644 = vrot.lane.b32.xlu0 %v7621_v54, %s14917_s4  ;;  %v7623_v10 = vpop.f32.mrb[250].mxu1 }
0x55b5   : > { %v7625_v57 = vpop.f32.mrb[251].mxu1 }
0x55b6   : > { %7646 = vrot.lane.b32.xlu1 %v7625_v57, %s14917_s4 }
0x55b8   : > { %7630 = vrot.lane.b32.xlu0 %v7619_v4, %s14917_s4 }
0x55ba   : > { %7632 = vrot.lane.b32.xlu1 %v7623_v10, %s14917_s4 }
0x5626   : > { %v7645_v48 = vpop.permute.xlu0 %7644 }
0x5627   : > { %v7650_v43 = vadd.f32 %v7645_v48, %v14037_v30 }
0x5628   : > { %v7647_v28 = vpop.permute.xlu1 %7646 }
0x5629   : > { %v7651_v39 = vadd.f32 %v7647_v28, %v14045_v45 }
0x562a   : > { %v7631_v2 = vpop.permute.xlu0 %7630 }
0x562b   : > { %v7760_v21 = vpack.c.bf16 %v7651_v39, %v7650_v43  ;;  %v7640_v61 = vadd.f32 %v14037_v30, %v7631_v2  ;;  %v14120_v30 = vld [vmem:[%s14881_s30 + $0x4] ss:$16 sps:$4 sm:$0xff]   ;;  %v7636_v49 = vadd.f32 %v7631_v2, %v14034_v53 }
0x562c   : > { %v7633_v9 = vpop.permute.xlu1 %7632 }
0x562d   : > { %v7641_v58 = vadd.f32 %v14045_v45, %v7633_v9  ;;  %7762 = vrot.lane.b32.xlu0 %v7760_v21, %s14917_s4  ;;  %v14128_v45 = vld [vmem:[%s14881_s30] ss:$16 sps:$4 sm:$0xff]   ;;  %v7637_v55 = vadd.f32 %v7633_v9, %v14042_v26  ;;  %v14161_v26 = vld [vmem:[%s14881_s30 + $0xc] ss:$16 sps:$4 sm:$0xff]  }
0x562f   : > { %v7652_v8 = vpack.c.bf16 %v7641_v58, %v7640_v61 }
0x5631   : > { %11327 = vmatpush3.bf16.msra.mxu0 %v7652_v8 }
0x5632   : > { %11338 = vmatprep.subr.bf16.mxu0 %v14908_v44 }
0x5634   : > { %11329 = vmatmul.mubr.msk.bf16.vlgmr.msra.gmra.mrb[204].mxu0 %vm1573_vm6, %v13966_v60 }
0x5635   : > { %11340 = vmatprep.mubr.msk.bf16.mxu0 %vm11859_vm3, %v14908_v44 }
0x569f   : > { %v7763_v62 = vpop.permute.xlu0 %7762 }
0x56a0   : > { %11339 = vmatpush3.bf16.msra.mxu0 %v7763_v62 }
0x56a1   : > { %7929 = vmatprep.subr.bf16.mxu0 %v14120_v30 }
0x56a3   : > { %11341 = vmatmul.mubr.msk.bf16.vlgmr.msra.gmra.mrb[208].mxu0 %vm1573_vm6, %v13984_v14 }
0x56a4   : > { %7930 = vmatpush1.bf16.msra.mxu0 %v14128_v45  ;;  %7961 = vmatprep.mubr.bf16.mxu0 %v14914_v12 }
0x56a5   : > { %7931 = vmatprep.subr.bf16.mxu0 %v14135_v11 }
0x56a8   : > { %7932 = vmatpush1.bf16.msra.mxu0 %v14141_v0 }
0x56a9   : > { %11350 = vmatprep.subr.bf16.mxu0 %v14908_v44 }
0x5707   : > { %v7687_v52 = vpop.f32.mrb[204].mxu0 }
0x5708   : > { %7696 = vrot.lane.b32.xlu1 %v7687_v52, %s14918_s25  ;;  %v11330_v35 = vpop.f32.mrb[205].mxu0 }
0x5709   : > { %v7690_v25 = vpop.f32.mrb[206].mxu0  ;;  %v14933_v35 = vld [vmem:[#allocation22_spill] sm:$0xff] }
0x570a   : > { %7698 = vrot.lane.b32.xlu0 %v7690_v25, %s14918_s25  ;;  %v11331_v41 = vpop.f32.mrb[207].mxu0  ;;  %v7878_v25 = vsub.f32 1.0, %v14094_v24 }
0x5776   : > { %v7799_v27 = vpop.f32.mrb[208].mxu0 }
0x5777   : > { %7808 = vrot.lane.b32.xlu1 %v7799_v27, %s14906_s0  ;;  %v11342_v16 = vpop.f32.mrb[209].mxu0 }
0x5778   : > { %v7802_v33 = vpop.f32.mrb[210].mxu0  ;;  %v7879_v16 = vsub.f32 1.0, %v14096_v7 }
0x5779   : > { %7810 = vrot.lane.b32.xlu0 %v7802_v33, %s14906_s0  ;;  %v11343_v38 = vpop.f32.mrb[211].mxu0 }
0x577a   : > { %v7697_v18 = vpop.permute.xlu1 %7696  ;;  %v7876_v38 = vmul.f32 %v14094_v24, %v13895_v15  ;;  %v14219_v15 = vld [vmem:[%s14907_s26] sm:$0xff]  }
0x577b   : > { %v7702_v29 = vadd.f32 %v7697_v18, %v7636_v49  ;;  %v7877_v18 = vmul.f32 %v14096_v7, %v13897_v47  ;;  %v14229_v47 = vld [vmem:[%s14907_s26 + $0x8] sm:$0xff]   ;;  %v14236_v7 = vld [vmem:[%s12031_s3 + $0x60] sm:$0xff] }
0x577c   : > { %v7699_v31 = vpop.permute.xlu0 %7698  ;;  %vm7912_vm7 = vcmp.gt.f32.partialorder %v14236_v7, 0.5 }
0x577d   : > { %v7703_v42 = vadd.f32 %v7699_v31, %v7637_v55 }
0x577f   : > { %v7704_v20 = vpack.c.bf16 %v7703_v42, %v7702_v29  ;;  %v14934_v42 = vld [vmem:[#allocation24_spill] sm:$0xff] }
0x5781   : > { %7706 = vrot.lane.b32.xlu1 %v7704_v20, %s14906_s0 }
0x57e9   : > { %v7809_v3 = vpop.permute.xlu1 %7808 }
0x57ea   : > { %v7814_v46 = vadd.f32 %v7809_v3, %v7640_v61  ;;  %v14239_v3 = vld [vmem:[%s12031_s3 + $0x68] sm:$0xff] }
0x57eb   : > { %v7811_v37 = vpop.permute.xlu0 %7810  ;;  %vm7913_vm8 = vcmp.gt.f32.partialorder %v14239_v3, 0.5 }
0x57ec   : > { %v7815_v1 = vadd.f32 %v7811_v37, %v7641_v58 }
0x57ee   : > { %v7816_v50 = vpack.c.bf16 %v7815_v1, %v7814_v46  ;;  %v14246_v46 = vld [vmem:[%s14821_s12] ss:$0 sm:$0xff] }
0x57f0   : > { %7818 = vrot.lane.b32.xlu0 %v7816_v50, %s14918_s25 }
0x57f3   : > { %v7707_v51 = vpop.permute.xlu1 %7706 }
0x57f4   : > { %11333 = vmatpush3.bf16.msra.mxu1 %v7707_v51  ;;  %v14252_v51 = vld [vmem:[%s12245_s2 + $0x60] sm:$0xff] }
0x57f5   : > { %11344 = vmatprep.subr.bf16.mxu1 %v14908_v44 }
0x57f7   : > { %11335 = vmatmul.mubr.msk.bf16.vlgmr.msra.gmra.mrb[252].mxu1 %vm1573_vm6, %v13966_v60 }
0x57f8   : > { %11346 = vmatprep.mubr.msk.bf16.mxu1 %vm11859_vm3, %v14908_v44 }
0x5862   : > { %v7819_v53 = vpop.permute.xlu0 %7818 }
0x5863   : > { %11345 = vmatpush3.bf16.msra.mxu1 %v7819_v53  ;;  %v14258_v53 = vld [vmem:[%s12245_s2 + $0x68] sm:$0xff] }
0x5864   : > { %7972 = vmatprep.subr.bf16.mxu1 %v14161_v26 }
0x5866   : > { %11347 = vmatmul.mubr.msk.bf16.vlgmr.msra.gmra.mrb[0].mxu1 %vm1573_vm6, %v13984_v14 }
0x5867   : > { %7973 = vmatpush1.bf16.msra.mxu1 %v14169_v22  ;;  %8004 = vmatprep.mubr.bf16.mxu1 %v14914_v12 }
0x5868   : > { %7974 = vmatprep.subr.bf16.mxu1 %v14176_v59 }
0x586b   : > { %7975 = vmatpush1.bf16.msra.mxu1 %v14182_v63 }
0x586c   : > { %11356 = vmatprep.subr.bf16.mxu1 %v14908_v44 }
0x58ca   : > { %v7743_v5 = vpop.f32.mrb[252].mxu1 }
0x58cb   : > { %7752 = vrot.lane.b32.xlu1 %v7743_v5, %s14917_s4  ;;  %v11336_v36 = vpop.f32.mrb[253].mxu1 }
0x58cc   : > { %v7746_v17 = vpop.f32.mrb[254].mxu1 }
0x58cd   : > { %7754 = vrot.lane.b32.xlu0 %v7746_v17, %s14917_s4  ;;  %v11337_v40 = vpop.f32.mrb[255].mxu1 }
0x5939   : > { %v7855_v4 = vpop.f32.mrb[0].mxu1 }
0x593a   : > { %7864 = vrot.lane.b32.xlu1 %v7855_v4, %s14917_s4  ;;  %v11348_v54 = vpop.f32.mrb[1].mxu1 }
0x593b   : > { %v7858_v10 = vpop.f32.mrb[2].mxu1 }
0x593c   : > { %7866 = vrot.lane.b32.xlu0 %v7858_v10, %s14917_s4  ;;  %v11349_v57 = vpop.f32.mrb[3].mxu1 }
0x593d   : > { %v7753_v48 = vpop.permute.xlu1 %7752 }
0x593e   : > { %v7758_v43 = vadd.f32 %v7753_v48, %v7636_v49 }
0x593f   : > { %v7755_v28 = vpop.permute.xlu0 %7754 }
0x5940   : > { %v7759_v2 = vadd.f32 %v7755_v28, %v7637_v55 }
0x59ac   : > { %v7865_v39 = vpop.permute.xlu1 %7864 }
0x59ad   : > { %v7870_v21 = vadd.f32 %v7865_v39, %v7758_v43 }
0x59ae   : > { %v7867_v9 = vpop.permute.xlu0 %7866 }
0x59af   : > { %v7872_v61 = vadd.f32 %v7870_v21, %v12589_v19  ;;  %v7871_v58 = vadd.f32 %v7867_v9, %v7759_v2 }
0x59b1   : > { %11724 = vtanh.f32 %v7872_v61  ;;  %v7873_v8 = vadd.f32 %v7871_v58, %v12589_v19 }
0x59b3   : > { %11726 = vtanh.f32 %v7873_v8  ;;  %v14281_v8 = vld [vmem:[%s14822_s13] ss:$0 sm:$0xff] }
0x59bb   : > { %v11725_v62 = vpop.eup %11724 }
0x59bc   : > { %7882 = vrot.lane.b32.xlu1 %v11725_v62, %s14918_s25 }
0x59bd   : > { %v11727_v52 = vpop.eup %11726 }
0x59be   : > { %7884 = vrot.lane.b32.xlu0 %v11727_v52, %s14918_s25 }
0x59c2   : > { %8022 = vrot.lane.b32.xlu0 %v14933_v35, %s14906_s0 }
0x5a2e   : > { %v7883_v41 = vpop.permute.xlu1 %7882 }
0x5a2f   : > { %v7888_v27 = vmul.f32 %v7883_v41, %v7878_v25 }
0x5a30   : > { %v7885_v33 = vpop.permute.xlu0 %7884 }
0x5a31   : > { %v7889_v49 = vmul.f32 %v7885_v33, %v7879_v16  ;;  %v14202_v55 = vadd.f32 %v7888_v27, %v7876_v38 }
0x5a33   : > { %v14204_v31 = vadd.f32 %v7889_v49, %v7877_v18  ;;  %v14297_v18 = vld [vmem:[%s14817_s8] sm:$0xff]   ;;  %v14307_v49 = vld [vmem:[%s14817_s8 + $0x8] sm:$0xff]  }
0x5a34   : > { %v8023_v54 = vpop.permute.xlu0 %8022 }
0x5a35   : > { %v7922_v29 = vpack.c.bf16 %v14204_v31, %v14202_v55 }
0x5a37   : > { %7924 = vrot.lane.b32.xlu1 %v7922_v29, %s14918_s25 }
0x5a3b   : > { %8024 = vrot.lane.b32.xlu1 %v14934_v42, %s14906_s0 }
0x5aa9   : > { %v7925_v20 = vpop.permute.xlu1 %7924 }
0x5aaa   : > { %10508 = vmatmul.mubr.msk.bf16.vlgmr.msra.gmra.mrb[24].mxu0 %vm863_vm0, %v7925_v20  ;;  %10509 = vmatmul.mubr.msk.bf16.vlgmr.msra.gmra.mrb[4].mxu1 %vm863_vm0, %v7925_v20  ;;  %v14318_v20 = vld [vmem:[%s14913_s10] sm:$0xff]  }
0x5aab   : > { %11351 = vmatpush3.bf16.msra.mxu0 %v12158_v56  ;;  %11352 = vmatprep.mubr.msk.bf16.mxu0 %vm11859_vm3, %v14908_v44 }
0x5aac   : > { %11357 = vmatpush3.bf16.msra.mxu1 %v14219_v15  ;;  %11360 = vmatprep.mubr.msk.bf16.mxu1 %vm11859_vm3, %v14908_v44 }
0x5aad   : > { %11358 = vmatprep.subr.bf16.mxu1 %v14908_v44  ;;  %11364 = vmatprep.subr.bf16.mxu0 %v14908_v44  ;;  %v8025_v10 = vpop.permute.xlu1 %8024 }
0x5ab0   : > { %11359 = vmatpush3.bf16.msra.mxu1 %v14229_v47 }
0x5ab1   : > { %11370 = vmatprep.subr.bf16.mxu1 %v14908_v44 }
0x5b7d   : > { %v14233_v24 = vpop.f32.mrb[4].mxu1 }
0x5b7e   : > { %8074 = vrot.lane.b32.xlu0 %v14233_v24, %s14917_s4  ;;  %v8008_v37 = vpop.f32.mrb[5].mxu1 }
0x5b7f   : > { %v8015_v1 = vadd.f32 %v14246_v46, %v8008_v37  ;;  %v14249_v50 = vpop.f32.mrb[6].mxu1 }
0x5b80   : > { %8076 = vrot.lane.b32.xlu1 %v14249_v50, %s14917_s4  ;;  %v8012_v5 = vpop.f32.mrb[7].mxu1 }
0x5b81   : > { %8963 = vst.msk [vmem:[%s12253_s29 + $0x60] sm:$0xff] %vm947_vm2, %v8015_v1  ;;  %v8016_v36 = vadd.f32 %v14246_v46, %v8012_v5  ;;  %v8017_v17 = vsel %vm7912_vm7, %v14252_v51, %v8015_v1 }
0x5b83   : > { %v8018_v40 = vsel %vm7913_vm8, %v14258_v53, %v8016_v36  ;;  %8964 = vst.msk [vmem:[%s12253_s29 + $0x68] sm:$0xff] %vm947_vm2, %v8016_v36 }
0x5b84   : > { %v8019_v4 = vpack.c.bf16 %v8018_v40, %v8017_v17  ;;  %8219 = vrot.lane.b32.xlu1 %v14233_v24, %s14906_s0 }
0x5b86   : > { %11353 = vmatmul.mubr.msk.bf16.vlgmr.msra.gmra.mrb[212].mxu0 %vm947_vm2, %v8019_v4 }
0x5b87   : > { %11366 = vmatprep.mubr.msk.bf16.mxu0 %vm11859_vm3, %v14908_v44 }
0x5b88   : > { %8280 = vrot.lane.b32.xlu1 %v8008_v37, %s14919_s24  ;;  %v14327_v37 = vld [vmem:[%s14913_s10 + $0x8] sm:$0xff]  }
0x5bf0   : > { %v8075_v43 = vpop.permute.xlu0 %8074 }
0x5bf2   : > { %v8077_v61 = vpop.permute.xlu1 %8076 }
0x5c59   : > { %v8065_v57 = vpop.f32.mrb[212].mxu0 }
0x5c5a   : > { %v8066_v48 = vadd.f32 %v8065_v57, %v8023_v54  ;;  %v11354_v28 = vpop.f32.mrb[213].mxu0 }
0x5c5b   : > { %v8068_v39 = vpop.f32.mrb[214].mxu0  ;;  %v14335_v28 = vld [vmem:[%s14823_s14] ss:$0 sm:$0xff] }
0x5c5c   : > { %v8080_v2 = vadd.f32 %v8075_v43, %v8066_v48  ;;  %v8069_v21 = vadd.f32 %v8068_v39, %v8025_v10  ;;  %v11355_v9 = vpop.f32.mrb[215].mxu0 }
0x5c5e   : > { %v8081_v58 = vadd.f32 %v8077_v61, %v8069_v21  ;;  %v8082_v62 = vadd.f32 %v14281_v8, %v8080_v2  ;;  %v8220_v21 = vpop.permute.xlu1 %8219 }
0x5c60   : > { %v8083_v52 = vadd.f32 %v14281_v8, %v8081_v58 }
0x5c62   : > { %v8084_v25 = vpack.c.bf16 %v8083_v52, %v8082_v62 }
0x5c64   : > { %11361 = vmatmul.mubr.msk.bf16.vlgmr.msra.gmra.mrb[8].mxu1 %vm863_vm0, %v8084_v25  ;;  %v14346_v25 = vld [vmem:[%s14824_s15] ss:$0 sm:$0xff] }
0x5c65   : > { %11372 = vmatprep.mubr.msk.bf16.mxu1 %vm11859_vm3, %v14908_v44 }
0x5d37   : > { %v8122_v41 = vpop.f32.mrb[8].mxu1 }
0x5d38   : > { %v11362_v27 = vpop.f32.mrb[9].mxu1 }
0x5d39   : > { %v8125_v16 = vpop.f32.mrb[10].mxu1 }
0x5d3a   : > { %v8129_v33 = vpack.c.bf16 %v8125_v16, %v8122_v41  ;;  %v11363_v38 = vpop.f32.mrb[11].mxu1 }
0x5d3c   : > { %8131 = vrot.lane.b32.xlu0 %v8129_v33, %s14918_s25  ;;  %11371 = vmatpush3.bf16.msra.mxu1 %v8129_v33 }
0x5d3d   : > { %11384 = vmatprep.subr.bf16.mxu1 %v14908_v44 }
0x5d3f   : > { %11373 = vmatmul.mubr.msk.bf16.vlgmr.msra.gmra.mrb[12].mxu1 %vm1573_vm6, %v13966_v60 }
0x5d40   : > { %8221 = vrot.lane.b32.xlu0 %v14249_v50, %s14906_s0  ;;  %11385 = vmatpush3.bf16.msra.mxu1 %v14297_v18 }
0x5d41   : > { %11386 = vmatprep.subr.bf16.mxu1 %v14908_v44  ;;  %11388 = vmatprep.mubr.msk.bf16.mxu1 %vm11859_vm3, %v14908_v44 }
0x5d44   : > { %8282 = vrot.lane.b32.xlu0 %v8012_v5, %s14919_s24  ;;  %11387 = vmatpush3.bf16.msra.mxu1 %v14307_v49 }
0x5d45   : > { %10518 = vmatprep.subr.msk.bf16.mxu1 %vm972_vm1, %v12369_v34 }
0x5dae   : > { %v8132_v29 = vpop.permute.xlu0 %8131 }
0x5daf   : > { %11365 = vmatpush3.bf16.msra.mxu0 %v8132_v29 }
0x5db0   : > { %11376 = vmatprep.subr.bf16.mxu0 %v14908_v44 }
0x5db2   : > { %11367 = vmatmul.mubr.msk.bf16.vlgmr.msra.gmra.mrb[216].mxu0 %vm1573_vm6, %v13984_v14  ;;  %v8222_v62 = vpop.permute.xlu0 %8221 }
0x5db3   : > { %11377 = vmatpush3.bf16.msra.mxu0 %v14318_v20  ;;  %11380 = vmatprep.mubr.msk.bf16.mxu0 %vm11859_vm3, %v14908_v44 }
0x5db4   : > { %11378 = vmatprep.subr.bf16.mxu0 %v14908_v44 }
0x5db7   : > { %11379 = vmatpush3.bf16.msra.mxu0 %v14327_v37 }
0x5db8   : > { %10516 = vmatprep.subr.msk.bf16.mxu0 %vm972_vm1, %v12341_v32 }
0x5e12   : > { %v8209_v1 = vpop.f32.mrb[12].mxu1 }
0x5e13   : > { %v11374_v5 = vpop.f32.mrb[13].mxu1 }
0x5e14   : > { %v8212_v36 = vpop.f32.mrb[14].mxu1 }
0x5e15   : > { %v11375_v17 = vpop.f32.mrb[15].mxu1 }
0x5e16   : > { %v8281_v17 = vpop.permute.xlu1 %8280 }
0x5e85   : > { %v8168_v40 = vpop.f32.mrb[216].mxu0 }
0x5e86   : > { %v8210_v4 = vadd.f32 %v8209_v1, %v8168_v40  ;;  %v11368_v54 = vpop.f32.mrb[217].mxu0 }
0x5e87   : > { %v8171_v10 = vpop.f32.mrb[218].mxu0 }
0x5e88   : > { %v8213_v57 = vadd.f32 %v8212_v36, %v8171_v10  ;;  %v11369_v48 = vpop.f32.mrb[219].mxu0  ;;  %v8216_v43 = vadd.f32 %v14335_v28, %v8210_v4  ;;  %v8283_v10 = vpop.permute.xlu0 %8282 }
0x5e89   : > { %v14363_v48 = vld [vmem:[%s14825_s16] ss:$0 sm:$0xff] }
0x5e8a   : > { %v8217_v39 = vadd.f32 %v14335_v28, %v8213_v57 }
0x5e8c   : > { %v8218_v2 = vpack.c.bf16 %v8217_v39, %v8216_v43 }
0x5e8e   : > { %11381 = vmatmul.mubr.msk.bf16.vlgmr.msra.gmra.mrb[220].mxu0 %vm863_vm0, %v8218_v2 }
0x5e8f   : > { %8339 = vmatpush1.bf16.msra.mxu0 %v12404_v6  ;;  %8370 = vmatprep.mubr.bf16.mxu0 %v14914_v12 }
0x5e90   : > { %11392 = vmatprep.subr.bf16.mxu0 %v14908_v44 }
0x5f61   : > { %v8262_v9 = vpop.f32.mrb[220].mxu0 }
0x5f62   : > { %v8263_v61 = vadd.f32 %v8262_v9, %v8220_v21  ;;  %v11382_v58 = vpop.f32.mrb[221].mxu0 }
0x5f63   : > { %v8265_v52 = vpop.f32.mrb[222].mxu0 }
0x5f64   : > { %v8269_v41 = vadd.f32 %v14346_v25, %v8263_v61  ;;  %v8266_v27 = vadd.f32 %v8265_v52, %v8222_v62  ;;  %v11383_v16 = vpop.f32.mrb[223].mxu0 }
0x5f66   : > { %vm8271_vm9 = vcmp.gt.f32.partialorder %v8269_v41, 0.0  ;;  %v8273_v33 = vmul.f32 %v8269_v41, %v12380_v23  ;;  %v8270_v38 = vadd.f32 %v14346_v25, %v8266_v27 }
0x5f68   : > { %v8275_v29 = vsel %vm8271_vm9, %v8269_v41, %v8273_v33  ;;  %vm8272_vm10 = vcmp.gt.f32.partialorder %v8270_v38, 0.0  ;;  %v8274_v1 = vmul.f32 %v8270_v38, %v12380_v23  ;;  %v14936_v33 = vld [vmem:[#allocation23_spill] sm:$0xff] }
0x5f69   : > { %8967 = vst.msk [vmem:[%s12392_s6 + $0x60] sm:$0xff] %vm863_vm0, %v8275_v29 }
0x5f6a   : > { %v8276_v5 = vsel %vm8272_vm10, %v8270_v38, %v8274_v1 }
0x5f6b   : > { %v8277_v36 = vpack.c.bf16 %v8276_v5, %v8275_v29  ;;  %8968 = vst.msk [vmem:[%s12392_s6 + $0x68] sm:$0xff] %vm863_vm0, %v8276_v5 }
0x5f6d   : > { %11389 = vmatmul.mubr.msk.bf16.vlgmr.msra.gmra.mrb[16].mxu1 %vm863_vm0, %v8277_v36 }
0x5f6e   : > { %8382 = vmatpush1.bf16.msra.mxu1 %v12408_v13  ;;  %8413 = vmatprep.mubr.bf16.mxu1 %v14914_v12 }
0x5f6f   : > { %11398 = vmatprep.subr.bf16.mxu1 %v14908_v44 }
0x6040   : > { %v8323_v40 = vpop.f32.mrb[16].mxu1 }
0x6041   : > { %v8324_v4 = vadd.f32 %v8323_v40, %v8281_v17  ;;  %v11390_v54 = vpop.f32.mrb[17].mxu1 }
0x6042   : > { %v8326_v57 = vpop.f32.mrb[18].mxu1 }
0x6043   : > { %v8330_v43 = vadd.f32 %v14363_v48, %v8324_v4  ;;  %v8327_v39 = vadd.f32 %v8326_v57, %v8283_v10  ;;  %v11391_v2 = vpop.f32.mrb[19].mxu1  ;;  %v14432_v4 = vld [vmem:[%s14820_s11 + $0x10] ss:$8 sps:$4 sm:$0xff]  }
0x6045   : > { %8965 = vst.msk [vmem:[%s12423_s20 + $0x60] sm:$0xff] %vm947_vm2, %v8330_v43  ;;  %v8331_v21 = vadd.f32 %v14363_v48, %v8327_v39  ;;  %v8332_v9 = vsel %vm7912_vm7, %v14252_v51, %v8330_v43  ;;  %v14935_v51 = vld [vmem:[#allocation21_spill] sm:$0xff] }
0x6047   : > { %v8333_v61 = vsel %vm7913_vm8, %v14258_v53, %v8331_v21  ;;  %8966 = vst.msk [vmem:[%s12423_s20 + $0x68] sm:$0xff] %vm947_vm2, %v8331_v21 }
0x6048   : > { %v8334_v58 = vpack.c.bf16 %v8333_v61, %v8332_v9 }
0x604a   : > { %10517 = vmatmul.mubr.msk.bf16.vlgmr.msra.gmra.mrb[24].mxu0 %vm947_vm2, %v8334_v58  ;;  %10519 = vmatmul.mubr.msk.bf16.vlgmr.msra.gmra.mrb[20].mxu1 %vm947_vm2, %v8334_v58 }
0x604b   : > { %11394 = vmatprep.mubr.msk.bf16.mxu0 %vm11859_vm3, %v14908_v44  ;;  %11400 = vmatprep.mubr.msk.bf16.mxu1 %vm11859_vm3, %v14908_v44 }
0x611d   : > { %v14383_v62 = vpop.f32.mrb[24].mxu0  ;;  %v8415_v7 = vpop.f32.mrb[20].mxu1 }
0x611e   : > { %v14386_v52 = vadd.f32 %v8415_v7, %v14935_v51  ;;  %v8374_v3 = vpop.f32.mrb[25].mxu0  ;;  %v8417_v53 = vpop.f32.mrb[21].mxu1 }
0x611f   : > { %v14389_v41 = vadd.f32 %v8417_v53, %v14933_v35  ;;  %v14391_v27 = vpop.f32.mrb[26].mxu0  ;;  %v8419_v16 = vpop.f32.mrb[22].mxu1 }
0x6120   : > { %v14394_v38 = vadd.f32 %v8419_v16, %v14936_v33  ;;  %v8378_v29 = vpop.f32.mrb[27].mxu0  ;;  %v8421_v1 = vpop.f32.mrb[23].mxu1  ;;  %v8434_v17 = vadd.f32 %v14386_v52, %v14233_v24  ;;  %v14419_v24 = vld [vmem:[%s14820_s11] ss:$8 sps:$4 sm:$0xff]  }
0x6121   : > { %v8436_v5 = vpack.c.bf16 %v8378_v29, %v8374_v3  ;;  %v14397_v36 = vadd.f32 %v8421_v1, %v14934_v42  ;;  %v14411_v42 = vld [vmem:[%s14820_s11 + $0x4] ss:$8 sps:$4 sm:$0xff]  }
0x6122   : > { %v8435_v40 = vadd.f32 %v14394_v38, %v14249_v50  ;;  %v14426_v50 = vld [vmem:[%s14820_s11 + $0x14] ss:$8 sps:$4 sm:$0xff]  }
0x6123   : > { %11393 = vmatpush3.bf16.msra.mxu0 %v8436_v5 }
0x6124   : > { %v8536_v35 = vpack.c.bf16 %v8435_v40, %v8434_v17  ;;  %11404 = vmatprep.subr.bf16.mxu0 %v14908_v44 }
0x6126   : > { %11395 = vmatmul.mubr.msk.bf16.vlgmr.msra.gmra.mrb[224].mxu0 %vm1573_vm6, %v13966_v60 }
0x6127   : > { %11405 = vmatpush3.bf16.msra.mxu0 %v8536_v35  ;;  %11406 = vmatprep.mubr.msk.bf16.mxu0 %vm11859_vm3, %v14908_v44 }
0x6128   : > { %8656 = vmatprep.subr.bf16.mxu0 %v14411_v42 }
0x612e   : > { %11407 = vmatmul.mubr.msk.bf16.vlgmr.msra.gmra.mrb[228].mxu0 %vm1573_vm6, %v13984_v14 }
0x612f   : > { %8657 = vmatpush1.bf16.msra.mxu0 %v14419_v24  ;;  %8688 = vmatprep.mubr.bf16.mxu0 %v14914_v12 }
0x6130   : > { %8658 = vmatprep.subr.bf16.mxu0 %v14426_v50 }
0x6133   : > { %8659 = vmatpush1.bf16.msra.mxu0 %v14432_v4 }
0x6134   : > { %11422 = vmatprep.subr.bf16.mxu0 %v14908_v44 }
0x61f9   : > { %v8471_v54 = vpop.f32.mrb[224].mxu0 }
0x61fa   : > { %8480 = vrot.lane.b32.xlu1 %v8471_v54, %s14917_s4  ;;  %v11396_v10 = vpop.f32.mrb[225].mxu0 }
0x61fb   : > { %v8474_v57 = vpop.f32.mrb[226].mxu0 }
0x61fc   : > { %8482 = vrot.lane.b32.xlu0 %v8474_v57, %s14917_s4  ;;  %v11397_v43 = vpop.f32.mrb[227].mxu0 }
0x6201   : > { %v8571_v39 = vpop.f32.mrb[228].mxu0 }
0x6202   : > { %8580 = vrot.lane.b32.xlu1 %v8571_v39, %s14917_s4  ;;  %v11408_v2 = vpop.f32.mrb[229].mxu0 }
0x6203   : > { %v8574_v21 = vpop.f32.mrb[230].mxu0 }
0x6204   : > { %8582 = vrot.lane.b32.xlu0 %v8574_v21, %s14917_s4  ;;  %v11409_v9 = vpop.f32.mrb[231].mxu0 }
0x626c   : > { %v8481_v61 = vpop.permute.xlu1 %8480 }
0x626d   : > { %v8486_v7 = vadd.f32 %v8481_v61, %v14383_v62 }
0x626e   : > { %v8483_v58 = vpop.permute.xlu0 %8482 }
0x626f   : > { %v8487_v51 = vadd.f32 %v8483_v58, %v14391_v27 }
0x6271   : > { %v8488_v53 = vpack.c.bf16 %v8487_v51, %v8486_v7 }
0x6273   : > { %8490 = vrot.lane.b32.xlu1 %v8488_v53, %s14917_s4 }
0x6274   : > { %v8581_v16 = vpop.permute.xlu1 %8580 }
0x6275   : > { %v8586_v1 = vadd.f32 %v8581_v16, %v8374_v3 }
0x6276   : > { %v8583_v33 = vpop.permute.xlu0 %8582 }
0x6277   : > { %v8587_v5 = vadd.f32 %v8583_v33, %v8378_v29  ;;  %7900 = vrot.lane.b32.xlu1 %v14202_v55, %s14918_s25 }
0x6279   : > { %v8588_v17 = vpack.c.bf16 %v8587_v5, %v8586_v1 }
0x627b   : > { %8590 = vrot.lane.b32.xlu0 %v8588_v17, %s14917_s4 }
0x627f   : > { %7902 = vrot.lane.b32.xlu0 %v14204_v31, %s14918_s25 }
0x62e5   : > { %v8491_v40 = vpop.permute.xlu1 %8490 }
0x62e6   : > { %11399 = vmatpush3.bf16.msra.mxu1 %v8491_v40 }
0x62e7   : > { %11410 = vmatprep.subr.bf16.mxu1 %v14908_v44 }
0x62e9   : > { %11401 = vmatmul.mubr.msk.bf16.vlgmr.msra.gmra.mrb[24].mxu1 %vm1573_vm6, %v13966_v60  ;;  %v7901_v35 = vpop.permute.xlu1 %7900 }
0x62ea   : > { %7906 = vst.msk [vmem:[%s12776_s21 + $0x50] sm:$0xff] %vm863_vm0, %v7901_v35  ;;  %11412 = vmatprep.mubr.msk.bf16.mxu1 %vm11859_vm3, %v14908_v44 }
0x62ed   : > { %v8591_v3 = vpop.permute.xlu0 %8590 }
0x62ee   : > { %11411 = vmatpush3.bf16.msra.mxu1 %v8591_v3 }
0x62ef   : > { %11416 = vmatprep.subr.bf16.mxu1 %v14908_v44 }
0x62f1   : > { %11413 = vmatmul.mubr.msk.bf16.vlgmr.msra.gmra.mrb[28].mxu1 %vm1573_vm6, %v13984_v14  ;;  %v7903_v29 = vpop.permute.xlu0 %7902  ;;  %v14467_v14 = vld [vmem:[%s14826_s17] ss:$0 sm:$0xff] }
0x62f2   : > { %7907 = vst.msk [vmem:[%s12776_s21 + $0x58] sm:$0xff] %vm863_vm0, %v7903_v29  ;;  %11418 = vmatprep.mubr.msk.bf16.mxu1 %vm11859_vm3, %v14908_v44 }
0x63bc   : > { %v8527_v60 = vpop.f32.mrb[24].mxu1 }
0x63bd   : > { %v8534_v54 = vadd.f32 %v8527_v60, %v14383_v62  ;;  %v11402_v10 = vpop.f32.mrb[25].mxu1 }
0x63be   : > { %v8530_v57 = vpop.f32.mrb[26].mxu1 }
0x63bf   : > { %v8535_v43 = vadd.f32 %v8530_v57, %v14391_v27  ;;  %v11403_v39 = vpop.f32.mrb[27].mxu1 }
0x63c4   : > { %v8627_v2 = vpop.f32.mrb[28].mxu1 }
0x63c5   : > { %v8634_v21 = vadd.f32 %v8627_v2, %v8534_v54  ;;  %v11414_v9 = vpop.f32.mrb[29].mxu1 }
0x63c6   : > { %v8630_v61 = vpop.f32.mrb[30].mxu1 }
0x63c7   : > { %v8636_v58 = vadd.f32 %v14467_v14, %v8634_v21  ;;  %v8635_v7 = vadd.f32 %v8630_v61, %v8535_v43  ;;  %v11415_v51 = vpop.f32.mrb[31].mxu1 }
0x63c9   : > { %v10524_v53 = vmul.f32 -1.442695, %v8636_v58  ;;  %v8637_v62 = vadd.f32 %v14467_v14, %v8635_v7 }
0x63cb   : > { %11728 = vpow2.f32 %v10524_v53  ;;  %v10525_v16 = vmul.f32 -1.442695, %v8637_v62  ;;  %v14493_v62 = vld [vmem:[%s14910_s1] sm:$0xff]  }
0x63cd   : > { %11730 = vpow2.f32 %v10525_v16 }
0x63d5   : > { %v11729_v27 = vpop.eup %11728 }
0x63d6   : > { %v8644_v33 = vadd.f32 1.0, %v11729_v27 }
0x63d7   : > { %v11731_v1 = vpop.eup %11730 }
0x63d8   : > { %11732 = vrcp.f32 %v8644_v33  ;;  %v8645_v5 = vadd.f32 1.0, %v11731_v1 }
0x63da   : > { %11734 = vrcp.f32 %v8645_v5 }
0x63e2   : > { %v14471_v17 = vpop.eup %11732 }
0x63e3   : > { %v8650_v3 = vmul.f32 %v14471_v17, %v7901_v35 }
0x63e4   : > { %v14473_v40 = vpop.eup %11734 }
0x63e5   : > { %v8651_v60 = vmul.f32 %v14473_v40, %v7903_v29 }
0x63e7   : > { %v8652_v54 = vpack.c.bf16 %v8651_v60, %v8650_v3 }
0x63e9   : > { %10526 = vmatmul.mubr.msk.bf16.vlgmr.msra.gmra.mrb[232].mxu0 %vm863_vm0, %v8652_v54 }
0x63ea   : > { %11424 = vmatprep.mubr.msk.bf16.mxu0 %vm11859_vm3, %v14908_v44 }
0x64bc   : > { %v8690_v10 = vpop.f32.mrb[232].mxu0 }
0x64bd   : > { %v8692_v57 = vpop.f32.mrb[233].mxu0 }
0x64be   : > { %8715 = vrot.lane.b32.xlu1 %v8692_v57, %s14917_s4  ;;  %v8694_v43 = vpop.f32.mrb[234].mxu0 }
0x64bf   : > { %v8696_v39 = vpop.f32.mrb[235].mxu0 }
0x64c0   : > { %8717 = vrot.lane.b32.xlu0 %v8696_v39, %s14917_s4 }
0x64c2   : > { %8701 = vrot.lane.b32.xlu1 %v8690_v10, %s14917_s4 }
0x64c4   : > { %8703 = vrot.lane.b32.xlu0 %v8694_v43, %s14917_s4 }
0x6530   : > { %v8716_v35 = vpop.permute.xlu1 %8715 }
0x6531   : > { %v8721_v2 = vadd.f32 %v8716_v35, %v14389_v41 }
0x6532   : > { %v8718_v29 = vpop.permute.xlu0 %8717 }
0x6533   : > { %v8722_v21 = vadd.f32 %v8718_v29, %v14397_v36 }
0x6534   : > { %v8702_v9 = vpop.permute.xlu1 %8701 }
0x6535   : > { %v8831_v61 = vpack.c.bf16 %v8722_v21, %v8721_v2  ;;  %v8711_v7 = vadd.f32 %v14389_v41, %v8702_v9 }
0x6536   : > { %v8704_v58 = vpop.permute.xlu0 %8703 }
0x6537   : > { %v8712_v51 = vadd.f32 %v14397_v36, %v8704_v58  ;;  %8833 = vrot.lane.b32.xlu1 %v8831_v61, %s14917_s4  ;;  %v14503_v36 = vld [vmem:[%s14912_s9] sm:$0xff]   ;;  %v8708_v60 = vadd.f32 %v8704_v58, %v14394_v38 }
0x6539   : > { %v8723_v53 = vpack.c.bf16 %v8712_v51, %v8711_v7 }
0x653b   : > { %11417 = vmatpush3.bf16.msra.mxu1 %v8723_v53 }
0x653c   : > { %11428 = vmatprep.subr.bf16.mxu1 %v14908_v44 }
0x653e   : > { %11419 = vmatmul.mubr.msk.bf16.vlgmr.msra.gmra.mrb[32].mxu1 %vm1573_vm6, %v14493_v62 }
0x653f   : > { %11430 = vmatprep.mubr.msk.bf16.mxu1 %vm11859_vm3, %v14908_v44 }
0x65a9   : > { %v8834_v41 = vpop.permute.xlu1 %8833 }
0x65aa   : > { %11429 = vmatpush3.bf16.msra.mxu1 %v8834_v41 }
0x65ab   : > { %9043 = vmatprep.subr.bf16.mxu1 %v14161_v26 }
0x65ad   : > { %11431 = vmatmul.mubr.msk.bf16.vlgmr.msra.gmra.mrb[36].mxu1 %vm1573_vm6, %v14503_v36 }
0x65ae   : > { %9044 = vmatpush1.bf16.msra.mxu1 %v14169_v22  ;;  %9075 = vmatprep.mubr.bf16.mxu1 %v14914_v12 }
0x65af   : > { %9045 = vmatprep.subr.bf16.mxu1 %v14176_v59 }
0x65b2   : > { %9046 = vmatpush1.bf16.msra.mxu1 %v14182_v63  ;;  %v8707_v63 = vadd.f32 %v8702_v9, %v14386_v52 }
0x65b3   : > { %11440 = vmatprep.subr.bf16.mxu1 %v14908_v44 }
0x6611   : > { %v8758_v16 = vpop.f32.mrb[32].mxu1 }
0x6612   : > { %8767 = vrot.lane.b32.xlu0 %v8758_v16, %s14918_s25  ;;  %v11420_v26 = vpop.f32.mrb[33].mxu1 }
0x6613   : > { %v8761_v27 = vpop.f32.mrb[34].mxu1 }
0x6614   : > { %8769 = vrot.lane.b32.xlu1 %v8761_v27, %s14918_s25  ;;  %v11421_v33 = vpop.f32.mrb[35].mxu1 }
0x6680   : > { %v8870_v1 = vpop.f32.mrb[36].mxu1 }
0x6681   : > { %8879 = vrot.lane.b32.xlu0 %v8870_v1, %s14906_s0  ;;  %v11432_v22 = vpop.f32.mrb[37].mxu1 }
0x6682   : > { %v8873_v5 = vpop.f32.mrb[38].mxu1 }
0x6683   : > { %8881 = vrot.lane.b32.xlu1 %v8873_v5, %s14906_s0  ;;  %v11433_v59 = vpop.f32.mrb[39].mxu1 }
0x6684   : > { %v8768_v3 = vpop.permute.xlu0 %8767 }
0x6685   : > { %v8773_v10 = vadd.f32 %v8768_v3, %v8707_v63 }
0x6686   : > { %v8770_v54 = vpop.permute.xlu1 %8769 }
0x6687   : > { %v8774_v57 = vadd.f32 %v8770_v54, %v8708_v60  ;;  %v14937_v54 = vld [vmem:[#allocation26_spill] sm:$0xff] }
0x6689   : > { %v8775_v43 = vpack.c.bf16 %v8774_v57, %v8773_v10  ;;  %v8950_v57 = vsub.f32 1.0, %v14473_v40 }
0x668b   : > { %8777 = vrot.lane.b32.xlu0 %v8775_v43, %s14906_s0 }
0x66f3   : > { %v8880_v39 = vpop.permute.xlu0 %8879 }
0x66f4   : > { %v8885_v29 = vadd.f32 %v8880_v39, %v8711_v7  ;;  %v8947_v39 = vmul.f32 %v14471_v17, %v14202_v55 }
0x66f5   : > { %v8882_v35 = vpop.permute.xlu1 %8881 }
0x66f6   : > { %v8886_v2 = vadd.f32 %v8882_v35, %v8712_v51  ;;  %v8948_v35 = vmul.f32 %v14473_v40, %v14204_v31  ;;  %v14576_v31 = vld [vmem:[%s12031_s3 + $0x78] sm:$0xff] }
0x66f7   : > { %vm8984_vm12 = vcmp.gt.f32.partialorder %v14576_v31, 0.5 }
0x66f8   : > { %v8887_v21 = vpack.c.bf16 %v8886_v2, %v8885_v29 }
0x66fa   : > { %8889 = vrot.lane.b32.xlu1 %v8887_v21, %s14918_s25 }
0x66fd   : > { %v8778_v61 = vpop.permute.xlu0 %8777 }
0x66fe   : > { %11423 = vmatpush3.bf16.msra.mxu0 %v8778_v61 }
0x66ff   : > { %11434 = vmatprep.subr.bf16.mxu0 %v14908_v44 }
0x6701   : > { %11425 = vmatmul.mubr.msk.bf16.vlgmr.msra.gmra.mrb[236].mxu0 %vm1573_vm6, %v14493_v62 }
0x6702   : > { %11436 = vmatprep.mubr.msk.bf16.mxu0 %vm11859_vm3, %v14908_v44 }
0x676c   : > { %v8890_v52 = vpop.permute.xlu1 %8889 }
0x676d   : > { %11435 = vmatpush3.bf16.msra.mxu0 %v8890_v52  ;;  %v14938_v52 = vld [vmem:[#allocation28_spill] sm:$0xff] }
0x676e   : > { %9000 = vmatprep.subr.bf16.mxu0 %v14120_v30 }
0x6770   : > { %11437 = vmatmul.mubr.msk.bf16.vlgmr.msra.gmra.mrb[240].mxu0 %vm1573_vm6, %v14503_v36 }
0x6771   : > { %9001 = vmatpush1.bf16.msra.mxu0 %v14128_v45  ;;  %9032 = vmatprep.mubr.bf16.mxu0 %v14914_v12 }
0x6772   : > { %9002 = vmatprep.subr.bf16.mxu0 %v14135_v11 }
0x6775   : > { %9003 = vmatpush1.bf16.msra.mxu0 %v14141_v0 }
0x6776   : > { %11446 = vmatprep.subr.bf16.mxu0 %v14908_v44 }
0x67d4   : > { %v8814_v38 = vpop.f32.mrb[236].mxu0 }
0x67d5   : > { %8823 = vrot.lane.b32.xlu0 %v8814_v38, %s14917_s4  ;;  %v11426_v9 = vpop.f32.mrb[237].mxu0 }
0x67d6   : > { %v8817_v58 = vpop.f32.mrb[238].mxu0  ;;  %v14584_v9 = vld [vmem:[%s12245_s2 + $0x70] sm:$0xff] }
0x67d7   : > { %8825 = vrot.lane.b32.xlu1 %v8817_v58, %s14917_s4  ;;  %v11427_v30 = vpop.f32.mrb[239].mxu0 }
0x6843   : > { %v8926_v7 = vpop.f32.mrb[240].mxu0 }
0x6844   : > { %8935 = vrot.lane.b32.xlu0 %v8926_v7, %s14917_s4  ;;  %v11438_v45 = vpop.f32.mrb[241].mxu0 }
0x6845   : > { %v8929_v51 = vpop.f32.mrb[242].mxu0 }
0x6846   : > { %8937 = vrot.lane.b32.xlu1 %v8929_v51, %s14917_s4  ;;  %v11439_v11 = vpop.f32.mrb[243].mxu0 }
0x6847   : > { %v8824_v53 = vpop.permute.xlu0 %8823 }
0x6848   : > { %v8829_v41 = vadd.f32 %v8824_v53, %v8707_v63  ;;  %v8949_v63 = vsub.f32 1.0, %v14471_v17 }
0x6849   : > { %v8826_v0 = vpop.permute.xlu1 %8825 }
0x684a   : > { %v8830_v26 = vadd.f32 %v8826_v0, %v8708_v60 }
0x68b6   : > { %v8936_v16 = vpop.permute.xlu0 %8935 }
0x68b7   : > { %v8941_v27 = vadd.f32 %v8936_v16, %v8829_v41 }
0x68b8   : > { %v8938_v33 = vpop.permute.xlu1 %8937 }
0x68b9   : > { %v8943_v1 = vadd.f32 %v8941_v27, %v12589_v19  ;;  %v8942_v22 = vadd.f32 %v8938_v33, %v8830_v26 }
0x68bb   : > { %11736 = vtanh.f32 %v8943_v1  ;;  %v8944_v5 = vadd.f32 %v8942_v22, %v12589_v19 }
0x68bd   : > { %11738 = vtanh.f32 %v8944_v5 }
0x68c5   : > { %v11737_v59 = vpop.eup %11736 }
0x68c6   : > { %8953 = vrot.lane.b32.xlu0 %v11737_v59, %s14918_s25 }
0x68c7   : > { %v11739_v3 = vpop.eup %11738 }
0x68c8   : > { %8955 = vrot.lane.b32.xlu1 %v11739_v3, %s14918_s25 }
0x68cc   : > { %9093 = vrot.lane.b32.xlu1 %v14937_v54, %s14906_s0 }
0x6938   : > { %v8954_v60 = vpop.permute.xlu0 %8953 }
0x6939   : > { %v8959_v10 = vmul.f32 %v8954_v60, %v8949_v63 }
0x693a   : > { %v8956_v43 = vpop.permute.xlu1 %8955 }
0x693b   : > { %v8960_v29 = vmul.f32 %v8956_v43, %v8950_v57  ;;  %v14549_v2 = vadd.f32 %v8959_v10, %v8947_v39 }
0x693d   : > { %v14551_v21 = vadd.f32 %v8960_v29, %v8948_v35 }
0x693f   : > { %v8993_v61 = vpack.c.bf16 %v14551_v21, %v14549_v2 }
0x6941   : > { %8995 = vrot.lane.b32.xlu0 %v8993_v61, %s14918_s25 }
0x6945   : > { %9095 = vrot.lane.b32.xlu0 %v14938_v52, %s14906_s0 }
0x69b3   : > { %v8996_v38 = vpop.permute.xlu0 %8995 }
0x69b4   : > { %10531 = vmatmul.mubr.msk.bf16.vlgmr.msra.gmra.mrb[28].mxu0 %vm863_vm0, %v8996_v38  ;;  %10532 = vmatmul.mubr.msk.bf16.vlgmr.msra.gmra.mrb[40].mxu1 %vm863_vm0, %v8996_v38 }
0x69b5   : > { %11441 = vmatpush3.bf16.msra.mxu1 %v12158_v56  ;;  %11442 = vmatprep.mubr.msk.bf16.mxu1 %vm11859_vm3, %v14908_v44  ;;  %v14573_v56 = vld [vmem:[%s12031_s3 + $0x70] sm:$0xff] }
0x69b6   : > { %11447 = vmatpush3.bf16.msra.mxu0 %v14219_v15  ;;  %11450 = vmatprep.mubr.msk.bf16.mxu0 %vm11859_vm3, %v14908_v44  ;;  %vm8983_vm11 = vcmp.gt.f32.partialorder %v14573_v56, 0.5 }
0x69b7   : > { %11448 = vmatprep.subr.bf16.mxu0 %v14908_v44  ;;  %11454 = vmatprep.subr.bf16.mxu1 %v14908_v44  ;;  %v9096_v11 = vpop.permute.xlu0 %9095 }
0x69ba   : > { %11449 = vmatpush3.bf16.msra.mxu0 %v14229_v47  ;;  %v14590_v47 = vld [vmem:[%s12245_s2 + $0x78] sm:$0xff] }
0x69bb   : > { %11460 = vmatprep.subr.bf16.mxu0 %v14908_v44 }
0x6a87   : > { %v14570_v55 = vpop.f32.mrb[40].mxu1 }
0x6a88   : > { %9145 = vrot.lane.b32.xlu1 %v14570_v55, %s14917_s4  ;;  %v9079_v15 = vpop.f32.mrb[41].mxu1 }
0x6a89   : > { %v9086_v17 = vadd.f32 %v14246_v46, %v9079_v15  ;;  %v14581_v40 = vpop.f32.mrb[42].mxu1 }
0x6a8a   : > { %9147 = vrot.lane.b32.xlu0 %v14581_v40, %s14917_s4  ;;  %v9083_v58 = vpop.f32.mrb[43].mxu1 }
0x6a8b   : > { %10034 = vst.msk [vmem:[%s12253_s29 + $0x70] sm:$0xff] %vm947_vm2, %v9086_v17  ;;  %v9087_v30 = vadd.f32 %v14246_v46, %v9083_v58  ;;  %v9088_v7 = vsel %vm8983_vm11, %v14584_v9, %v9086_v17  ;;  %v9094_v46 = vpop.permute.xlu1 %9093 }
0x6a8d   : > { %v9089_v45 = vsel %vm8984_vm12, %v14590_v47, %v9087_v30  ;;  %10035 = vst.msk [vmem:[%s12253_s29 + $0x78] sm:$0xff] %vm947_vm2, %v9087_v30 }
0x6a8e   : > { %v9090_v51 = vpack.c.bf16 %v9089_v45, %v9088_v7  ;;  %9290 = vrot.lane.b32.xlu0 %v14570_v55, %s14906_s0 }
0x6a90   : > { %11443 = vmatmul.mubr.msk.bf16.vlgmr.msra.gmra.mrb[44].mxu1 %vm947_vm2, %v9090_v51 }
0x6a91   : > { %11456 = vmatprep.mubr.msk.bf16.mxu1 %vm11859_vm3, %v14908_v44 }
0x6a92   : > { %9351 = vrot.lane.b32.xlu0 %v9079_v15, %s14919_s24 }
0x6afa   : > { %v9146_v16 = vpop.permute.xlu1 %9145 }
0x6afc   : > { %v9148_v22 = vpop.permute.xlu0 %9147 }
0x6b63   : > { %v9136_v53 = vpop.f32.mrb[44].mxu1 }
0x6b64   : > { %v9137_v0 = vadd.f32 %v9136_v53, %v9094_v46  ;;  %v11444_v41 = vpop.f32.mrb[45].mxu1 }
0x6b65   : > { %v9139_v26 = vpop.f32.mrb[46].mxu1 }
0x6b66   : > { %v9151_v27 = vadd.f32 %v9146_v16, %v9137_v0  ;;  %v9140_v33 = vadd.f32 %v9139_v26, %v9096_v11  ;;  %v11445_v1 = vpop.f32.mrb[47].mxu1 }
0x6b68   : > { %v9152_v5 = vadd.f32 %v9148_v22, %v9140_v33  ;;  %v9153_v59 = vadd.f32 %v14281_v8, %v9151_v27 }
0x6b6a   : > { %v9154_v3 = vadd.f32 %v14281_v8, %v9152_v5 }
0x6b6c   : > { %v9155_v63 = vpack.c.bf16 %v9154_v3, %v9153_v59 }
0x6b6e   : > { %11451 = vmatmul.mubr.msk.bf16.vlgmr.msra.gmra.mrb[244].mxu0 %vm863_vm0, %v9155_v63 }
0x6b6f   : > { %11462 = vmatprep.mubr.msk.bf16.mxu0 %vm11859_vm3, %v14908_v44 }
0x6c41   : > { %v9193_v60 = vpop.f32.mrb[244].mxu0 }
0x6c42   : > { %v11452_v10 = vpop.f32.mrb[245].mxu0 }
0x6c43   : > { %v9196_v57 = vpop.f32.mrb[246].mxu0 }
0x6c44   : > { %v9200_v43 = vpack.c.bf16 %v9196_v57, %v9193_v60  ;;  %v11453_v39 = vpop.f32.mrb[247].mxu0 }
0x6c46   : > { %9202 = vrot.lane.b32.xlu1 %v9200_v43, %s14918_s25  ;;  %11461 = vmatpush3.bf16.msra.mxu0 %v9200_v43 }
0x6c47   : > { %11474 = vmatprep.subr.bf16.mxu0 %v14908_v44 }
0x6c49   : > { %11463 = vmatmul.mubr.msk.bf16.vlgmr.msra.gmra.mrb[248].mxu0 %vm1573_vm6, %v14493_v62 }
0x6c4a   : > { %9292 = vrot.lane.b32.xlu1 %v14581_v40, %s14906_s0  ;;  %11475 = vmatpush3.bf16.msra.mxu0 %v14297_v18 }
0x6c4b   : > { %11476 = vmatprep.subr.bf16.mxu0 %v14908_v44  ;;  %11478 = vmatprep.mubr.msk.bf16.mxu0 %vm11859_vm3, %v14908_v44 }
0x6c4e   : > { %9353 = vrot.lane.b32.xlu1 %v9083_v58, %s14919_s24  ;;  %11477 = vmatpush3.bf16.msra.mxu0 %v14307_v49 }
0x6c4f   : > { %10539 = vmatprep.subr.msk.bf16.mxu0 %vm972_vm1, %v12341_v32 }
0x6cb8   : > { %v9203_v8 = vpop.permute.xlu1 %9202 }
0x6cb9   : > { %11455 = vmatpush3.bf16.msra.mxu1 %v9203_v8 }
0x6cba   : > { %11466 = vmatprep.subr.bf16.mxu1 %v14908_v44 }
0x6cbc   : > { %11457 = vmatmul.mubr.msk.bf16.vlgmr.msra.gmra.mrb[48].mxu1 %vm1573_vm6, %v14503_v36  ;;  %v9293_v46 = vpop.permute.xlu1 %9292 }
0x6cbd   : > { %11467 = vmatpush3.bf16.msra.mxu1 %v14318_v20  ;;  %11470 = vmatprep.mubr.msk.bf16.mxu1 %vm11859_vm3, %v14908_v44 }
0x6cbe   : > { %11468 = vmatprep.subr.bf16.mxu1 %v14908_v44 }
0x6cc0   : > { %v9354_v5 = vpop.permute.xlu1 %9353 }
0x6cc1   : > { %11469 = vmatpush3.bf16.msra.mxu1 %v14327_v37 }
0x6cc2   : > { %10541 = vmatprep.subr.msk.bf16.mxu1 %vm972_vm1, %v12369_v34  ;;  %v9291_v34 = vpop.permute.xlu0 %9290 }
0x6d1c   : > { %v9280_v32 = vpop.f32.mrb[248].mxu0 }
0x6d1d   : > { %v11464_v18 = vpop.f32.mrb[249].mxu0 }
0x6d1e   : > { %v9283_v49 = vpop.f32.mrb[250].mxu0 }
0x6d1f   : > { %v11465_v35 = vpop.f32.mrb[251].mxu0 }
0x6d8f   : > { %v9239_v29 = vpop.f32.mrb[48].mxu1 }
0x6d90   : > { %v9281_v61 = vadd.f32 %v9280_v32, %v9239_v29  ;;  %v11458_v38 = vpop.f32.mrb[49].mxu1 }
0x6d91   : > { %v9242_v15 = vpop.f32.mrb[50].mxu1 }
0x6d92   : > { %v9284_v17 = vadd.f32 %v9283_v49, %v9242_v15  ;;  %v11459_v20 = vpop.f32.mrb[51].mxu1  ;;  %v9287_v58 = vadd.f32 %v14335_v28, %v9281_v61  ;;  %v14940_v49 = vld [vmem:[#allocation27_spill] sm:$0xff] }
0x6d94   : > { %v9288_v30 = vadd.f32 %v14335_v28, %v9284_v17 }
0x6d96   : > { %v9289_v7 = vpack.c.bf16 %v9288_v30, %v9287_v58 }
0x6d98   : > { %11471 = vmatmul.mubr.msk.bf16.vlgmr.msra.gmra.mrb[52].mxu1 %vm863_vm0, %v9289_v7 }
0x6d99   : > { %9453 = vmatpush1.bf16.msra.mxu1 %v12408_v13  ;;  %9484 = vmatprep.mubr.bf16.mxu1 %v14914_v12 }
0x6d9a   : > { %11482 = vmatprep.subr.bf16.mxu1 %v14908_v44 }
0x6e6b   : > { %v9333_v37 = vpop.f32.mrb[52].mxu1 }
0x6e6c   : > { %v9334_v45 = vadd.f32 %v9333_v37, %v9291_v34  ;;  %v11472_v51 = vpop.f32.mrb[53].mxu1 }
0x6e6d   : > { %v9336_v11 = vpop.f32.mrb[54].mxu1 }
0x6e6e   : > { %v9340_v53 = vadd.f32 %v14346_v25, %v9334_v45  ;;  %v9337_v28 = vadd.f32 %v9336_v11, %v9293_v46  ;;  %v11473_v0 = vpop.f32.mrb[55].mxu1 }
0x6e70   : > { %vm9342_vm1 = vcmp.gt.f32.partialorder %v9340_v53, 0.0  ;;  %v9344_v41 = vmul.f32 %v9340_v53, %v12380_v23  ;;  %v9341_v13 = vadd.f32 %v14346_v25, %v9337_v28  ;;  %v9352_v25 = vpop.permute.xlu0 %9351 }
0x6e72   : > { %v9346_v16 = vsel %vm9342_vm1, %v9340_v53, %v9344_v41  ;;  %vm9343_vm13 = vcmp.gt.f32.partialorder %v9341_v13, 0.0  ;;  %v9345_v26 = vmul.f32 %v9341_v13, %v12380_v23 }
0x6e73   : > { %10038 = vst.msk [vmem:[%s12392_s6 + $0x70] sm:$0xff] %vm863_vm0, %v9346_v16 }
0x6e74   : > { %v9347_v27 = vsel %vm9343_vm13, %v9341_v13, %v9345_v26 }
0x6e75   : > { %v9348_v33 = vpack.c.bf16 %v9347_v27, %v9346_v16  ;;  %10039 = vst.msk [vmem:[%s12392_s6 + $0x78] sm:$0xff] %vm863_vm0, %v9347_v27 }
0x6e77   : > { %11479 = vmatmul.mubr.msk.bf16.vlgmr.msra.gmra.mrb[252].mxu0 %vm863_vm0, %v9348_v33 }
0x6e78   : > { %9410 = vmatpush1.bf16.msra.mxu0 %v12404_v6  ;;  %9441 = vmatprep.mubr.bf16.mxu0 %v14914_v12 }
0x6e79   : > { %11488 = vmatprep.subr.bf16.mxu0 %v14908_v44 }
0x6f4a   : > { %v9394_v1 = vpop.f32.mrb[252].mxu0 }
0x6f4b   : > { %v9395_v22 = vadd.f32 %v9394_v1, %v9352_v25  ;;  %v11480_v23 = vpop.f32.mrb[253].mxu0 }
0x6f4c   : > { %v9397_v59 = vpop.f32.mrb[254].mxu0 }
0x6f4d   : > { %v9401_v3 = vadd.f32 %v14363_v48, %v9395_v22  ;;  %v9398_v63 = vadd.f32 %v9397_v59, %v9354_v5  ;;  %v11481_v60 = vpop.f32.mrb[255].mxu0 }
0x6f4f   : > { %10036 = vst.msk [vmem:[%s12423_s20 + $0x70] sm:$0xff] %vm947_vm2, %v9401_v3  ;;  %v9402_v10 = vadd.f32 %v14363_v48, %v9398_v63  ;;  %v9403_v6 = vsel %vm8983_vm11, %v14584_v9, %v9401_v3  ;;  %v14939_v9 = vld [vmem:[#allocation25_spill] sm:$0xff] }
0x6f51   : > { %v9404_v57 = vsel %vm8984_vm12, %v14590_v47, %v9402_v10  ;;  %10037 = vst.msk [vmem:[%s12423_s20 + $0x78] sm:$0xff] %vm947_vm2, %v9402_v10 }
0x6f52   : > { %v9405_v43 = vpack.c.bf16 %v9404_v57, %v9403_v6 }
0x6f54   : > { %10540 = vmatmul.mubr.msk.bf16.vlgmr.msra.gmra.mrb[28].mxu0 %vm947_vm2, %v9405_v43  ;;  %10542 = vmatmul.mubr.msk.bf16.vlgmr.msra.gmra.mrb[56].mxu1 %vm947_vm2, %v9405_v43 }
0x6f55   : > { %11484 = vmatprep.mubr.msk.bf16.mxu1 %vm11859_vm3, %v14908_v44  ;;  %11490 = vmatprep.mubr.msk.bf16.mxu0 %vm11859_vm3, %v14908_v44 }
0x7027   : > { %v14675_v48 = vpop.f32.mrb[28].mxu0  ;;  %v9486_v56 = vpop.f32.mrb[56].mxu1 }
0x7028   : > { %v14678_v39 = vadd.f32 %v9486_v56, %v14939_v9  ;;  %v9445_v31 = vpop.f32.mrb[29].mxu0  ;;  %v9488_v47 = vpop.f32.mrb[57].mxu1 }
0x7029   : > { %v14681_v8 = vadd.f32 %v9488_v47, %v14937_v54  ;;  %v14683_v32 = vpop.f32.mrb[30].mxu0  ;;  %v9490_v18 = vpop.f32.mrb[58].mxu1 }
0x702a   : > { %v14686_v35 = vadd.f32 %v9490_v18, %v14940_v49  ;;  %v9449_v29 = vpop.f32.mrb[31].mxu0  ;;  %v9492_v61 = vpop.f32.mrb[59].mxu1  ;;  %v9505_v17 = vadd.f32 %v14678_v39, %v14570_v55 }
0x702b   : > { %v9507_v38 = vpack.c.bf16 %v9449_v29, %v9445_v31  ;;  %v14689_v15 = vadd.f32 %v9492_v61, %v14938_v52 }
0x702c   : > { %v9506_v20 = vadd.f32 %v14686_v35, %v14581_v40 }
0x702d   : > { %11483 = vmatpush3.bf16.msra.mxu1 %v9507_v38 }
0x702e   : > { %v9607_v54 = vpack.c.bf16 %v9506_v20, %v9505_v17  ;;  %11494 = vmatprep.subr.bf16.mxu1 %v14908_v44 }
0x7030   : > { %11485 = vmatmul.mubr.msk.bf16.vlgmr.msra.gmra.mrb[60].mxu1 %vm1573_vm6, %v14493_v62 }
0x7031   : > { %11495 = vmatpush3.bf16.msra.mxu1 %v9607_v54  ;;  %11496 = vmatprep.mubr.msk.bf16.mxu1 %vm11859_vm3, %v14908_v44 }
0x7032   : > { %9727 = vmatprep.subr.bf16.mxu1 %v14411_v42 }
0x7038   : > { %11497 = vmatmul.mubr.msk.bf16.vlgmr.msra.gmra.mrb[64].mxu1 %vm1573_vm6, %v14503_v36 }
0x7039   : > { %9728 = vmatpush1.bf16.msra.mxu1 %v14419_v24  ;;  %9759 = vmatprep.mubr.bf16.mxu1 %v14914_v12 }
0x703a   : > { %9729 = vmatprep.subr.bf16.mxu1 %v14426_v50 }
0x703d   : > { %9730 = vmatpush1.bf16.msra.mxu1 %v14432_v4 }
0x703e   : > { %11512 = vmatprep.subr.bf16.mxu1 %v14908_v44 }
0x7103   : > { %v9542_v52 = vpop.f32.mrb[60].mxu1 }
0x7104   : > { %9551 = vrot.lane.b32.xlu0 %v9542_v52, %s14917_s4  ;;  %v11486_v55 = vpop.f32.mrb[61].mxu1 }
0x7105   : > { %v9545_v40 = vpop.f32.mrb[62].mxu1 }
0x7106   : > { %9553 = vrot.lane.b32.xlu1 %v9545_v40, %s14917_s4  ;;  %v11487_v42 = vpop.f32.mrb[63].mxu1 }
0x710b   : > { %v9642_v58 = vpop.f32.mrb[64].mxu1 }
0x710c   : > { %9651 = vrot.lane.b32.xlu0 %v9642_v58, %s14917_s4  ;;  %v11498_v24 = vpop.f32.mrb[65].mxu1 }
0x710d   : > { %v9645_v30 = vpop.f32.mrb[66].mxu1 }
0x710e   : > { %9653 = vrot.lane.b32.xlu1 %v9645_v30, %s14917_s4  ;;  %v11499_v12 = vpop.f32.mrb[67].mxu1 }
0x7176   : > { %v9552_v50 = vpop.permute.xlu0 %9551 }
0x7177   : > { %v9557_v7 = vadd.f32 %v9552_v50, %v14675_v48 }
0x7178   : > { %v9554_v4 = vpop.permute.xlu1 %9553 }
0x7179   : > { %v9558_v34 = vadd.f32 %v9554_v4, %v14683_v32 }
0x717b   : > { %v9559_v37 = vpack.c.bf16 %v9558_v34, %v9557_v7 }
0x717d   : > { %9561 = vrot.lane.b32.xlu0 %v9559_v37, %s14917_s4 }
0x717e   : > { %v9652_v45 = vpop.permute.xlu0 %9651 }
0x717f   : > { %v9657_v46 = vadd.f32 %v9652_v45, %v9445_v31 }
0x7180   : > { %v9654_v51 = vpop.permute.xlu1 %9653 }
0x7181   : > { %v9658_v11 = vadd.f32 %v9654_v51, %v9449_v29  ;;  %8971 = vrot.lane.b32.xlu0 %v14549_v2, %s14918_s25 }
0x7183   : > { %v9659_v53 = vpack.c.bf16 %v9658_v11, %v9657_v46 }
0x7185   : > { %9661 = vrot.lane.b32.xlu1 %v9659_v53, %s14917_s4 }
0x7189   : > { %8973 = vrot.lane.b32.xlu1 %v14551_v21, %s14918_s25 }
0x71ef   : > { %v9562_v28 = vpop.permute.xlu0 %9561 }
0x71f0   : > { %11489 = vmatpush3.bf16.msra.mxu0 %v9562_v28 }
0x71f1   : > { %11500 = vmatprep.subr.bf16.mxu0 %v14908_v44 }
0x71f3   : > { %11491 = vmatmul.mubr.msk.bf16.vlgmr.msra.gmra.mrb[32].mxu0 %vm1573_vm6, %v14493_v62  ;;  %v8972_v0 = vpop.permute.xlu0 %8971 }
0x71f4   : > { %8977 = vst.msk [vmem:[%s12776_s21 + $0x60] sm:$0xff] %vm863_vm0, %v8972_v0  ;;  %11502 = vmatprep.mubr.msk.bf16.mxu0 %vm11859_vm3, %v14908_v44 }
0x71f7   : > { %v9662_v41 = vpop.permute.xlu1 %9661 }
0x71f8   : > { %11501 = vmatpush3.bf16.msra.mxu0 %v9662_v41 }
0x71f9   : > { %11506 = vmatprep.subr.bf16.mxu0 %v14908_v44 }
0x71fb   : > { %11503 = vmatmul.mubr.msk.bf16.vlgmr.msra.gmra.mrb[36].mxu0 %vm1573_vm6, %v14503_v36  ;;  %v8974_v13 = vpop.permute.xlu1 %8973 }
0x71fc   : > { %8978 = vst.msk [vmem:[%s12776_s21 + $0x68] sm:$0xff] %vm863_vm0, %v8974_v13  ;;  %11508 = vmatprep.mubr.msk.bf16.mxu0 %vm11859_vm3, %v14908_v44 }
0x72c6   : > { %v9598_v16 = vpop.f32.mrb[32].mxu0 }
0x72c7   : > { %v9605_v26 = vadd.f32 %v9598_v16, %v14675_v48  ;;  %v11492_v27 = vpop.f32.mrb[33].mxu0 }
0x72c8   : > { %v9601_v33 = vpop.f32.mrb[34].mxu0 }
0x72c9   : > { %v9606_v25 = vadd.f32 %v9601_v33, %v14683_v32  ;;  %v11493_v1 = vpop.f32.mrb[35].mxu0 }
0x72ce   : > { %v9698_v22 = vpop.f32.mrb[36].mxu0 }
0x72cf   : > { %v9705_v23 = vadd.f32 %v9698_v22, %v9605_v26  ;;  %v11504_v5 = vpop.f32.mrb[37].mxu0 }
0x72d0   : > { %v9701_v59 = vpop.f32.mrb[38].mxu0 }
0x72d1   : > { %v9707_v3 = vadd.f32 %v14467_v14, %v9705_v23  ;;  %v9706_v63 = vadd.f32 %v9701_v59, %v9606_v25  ;;  %v11505_v60 = vpop.f32.mrb[39].mxu0 }
0x72d3   : > { %v10547_v10 = vmul.f32 -1.442695, %v9707_v3  ;;  %v9708_v6 = vadd.f32 %v14467_v14, %v9706_v63 }
0x72d5   : > { %11740 = vpow2.f32 %v10547_v10  ;;  %v10548_v57 = vmul.f32 -1.442695, %v9708_v6 }
0x72d7   : > { %11742 = vpow2.f32 %v10548_v57 }
0x72df   : > { %v11741_v43 = vpop.eup %11740 }
0x72e0   : > { %v9715_v48 = vadd.f32 1.0, %v11741_v43 }
0x72e1   : > { %v11743_v56 = vpop.eup %11742 }
0x72e2   : > { %11744 = vrcp.f32 %v9715_v48  ;;  %v9716_v9 = vadd.f32 1.0, %v11743_v56 }
0x72e4   : > { %11746 = vrcp.f32 %v9716_v9 }
0x72ec   : > { %v14738_v31 = vpop.eup %11744 }
0x72ed   : > { %v9721_v32 = vmul.f32 %v14738_v31, %v8972_v0 }
0x72ee   : > { %v14740_v47 = vpop.eup %11746 }
0x72ef   : > { %v9722_v18 = vmul.f32 %v14740_v47, %v8974_v13 }
0x72f1   : > { %v9723_v49 = vpack.c.bf16 %v9722_v18, %v9721_v32  ;;  %v10020_v18 = vsub.f32 1.0, %v14738_v31 }
0x72f3   : > { %10549 = vmatmul.mubr.msk.bf16.vlgmr.msra.gmra.mrb[68].mxu1 %vm863_vm0, %v9723_v49 }
0x72f4   : > { %11514 = vmatprep.mubr.msk.bf16.mxu1 %vm11859_vm3, %v14908_v44 }
0x73c6   : > { %v9761_v14 = vpop.f32.mrb[68].mxu1 }
0x73c7   : > { %v9763_v29 = vpop.f32.mrb[69].mxu1 }
0x73c8   : > { %9786 = vrot.lane.b32.xlu0 %v9763_v29, %s14917_s4  ;;  %v9765_v61 = vpop.f32.mrb[70].mxu1 }
0x73c9   : > { %v9767_v38 = vpop.f32.mrb[71].mxu1 }
0x73ca   : > { %9788 = vrot.lane.b32.xlu1 %v9767_v38, %s14917_s4 }
0x73cc   : > { %9772 = vrot.lane.b32.xlu0 %v9761_v14, %s14917_s4  ;;  %v10018_v14 = vmul.f32 %v14738_v31, %v14549_v2 }
0x73ce   : > { %9774 = vrot.lane.b32.xlu1 %v9765_v61, %s14917_s4  ;;  %v10021_v61 = vsub.f32 1.0, %v14740_v47 }
0x743a   : > { %v9787_v17 = vpop.permute.xlu0 %9786 }
0x743b   : > { %v9792_v54 = vadd.f32 %v9787_v17, %v14681_v8  ;;  %v10019_v17 = vmul.f32 %v14740_v47, %v14551_v21 }
0x743c   : > { %v9789_v20 = vpop.permute.xlu1 %9788 }
0x743d   : > { %v9793_v52 = vadd.f32 %v9789_v20, %v14689_v15 }
0x743e   : > { %v9773_v55 = vpop.permute.xlu0 %9772 }
0x743f   : > { %v9902_v40 = vpack.c.bf16 %v9793_v52, %v9792_v54  ;;  %v9782_v58 = vadd.f32 %v14681_v8, %v9773_v55  ;;  %v9778_v46 = vadd.f32 %v9773_v55, %v14678_v39 }
0x7440   : > { %v9775_v42 = vpop.permute.xlu1 %9774 }
0x7441   : > { %v9783_v24 = vadd.f32 %v14689_v15, %v9775_v42  ;;  %9904 = vrot.lane.b32.xlu0 %v9902_v40, %s14917_s4  ;;  %v9779_v11 = vadd.f32 %v9775_v42, %v14686_v35 }
0x7443   : > { %v9794_v30 = vpack.c.bf16 %v9783_v24, %v9782_v58 }
0x7445   : > { %11507 = vmatpush3.bf16.msra.mxu0 %v9794_v30 }
0x7446   : > { %11518 = vmatprep.subr.bf16.mxu0 %v14908_v44 }
0x7448   : > { %11509 = vmatmul.mubr.msk.bf16.vlgmr.msra.gmra.mrb[40].mxu0 %vm1573_vm6, %v14493_v62 }
0x7449   : > { %11520 = vmatprep.mubr.msk.bf16.mxu0 %vm11859_vm3, %v14908_v44 }
0x74b3   : > { %v9905_v12 = vpop.permute.xlu0 %9904 }
0x74b4   : > { %11519 = vmatpush3.bf16.msra.mxu0 %v9905_v12 }
0x74b7   : > { %11521 = vmatmul.mubr.msk.bf16.vlgmr.msra.gmra.mrb[0].mxu0 %vm1573_vm6, %v14503_v36 }
0x751b   : > { %v9829_v8 = vpop.f32.mrb[40].mxu0 }
0x751c   : > { %9838 = vrot.lane.b32.xlu1 %v9829_v8, %s14918_s25  ;;  %v11510_v15 = vpop.f32.mrb[41].mxu0 }
0x751d   : > { %v9832_v50 = vpop.f32.mrb[42].mxu0 }
0x751e   : > { %9840 = vrot.lane.b32.xlu0 %v9832_v50, %s14918_s25  ;;  %v11511_v4 = vpop.f32.mrb[43].mxu0 }
0x758a   : > { %v9941_v7 = vpop.f32.mrb[0].mxu0 }
0x758b   : > { %9950 = vrot.lane.b32.xlu1 %v9941_v7, %s14906_s0  ;;  %v11522_v34 = vpop.f32.mrb[1].mxu0 }
0x758c   : > { %v9944_v37 = vpop.f32.mrb[2].mxu0 }
0x758d   : > { %9952 = vrot.lane.b32.xlu0 %v9944_v37, %s14906_s0  ;;  %v11523_v45 = vpop.f32.mrb[3].mxu0 }
0x758e   : > { %v9839_v51 = vpop.permute.xlu1 %9838 }
0x758f   : > { %v9844_v28 = vadd.f32 %v9839_v51, %v9778_v46 }
0x7590   : > { %v9841_v53 = vpop.permute.xlu0 %9840 }
0x7591   : > { %v9845_v0 = vadd.f32 %v9841_v53, %v9779_v11 }
0x7593   : > { %v9846_v41 = vpack.c.bf16 %v9845_v0, %v9844_v28 }
0x7595   : > { %9848 = vrot.lane.b32.xlu1 %v9846_v41, %s14906_s0 }
0x75fd   : > { %v9951_v13 = vpop.permute.xlu1 %9950 }
0x75fe   : > { %v9956_v26 = vadd.f32 %v9951_v13, %v9782_v58 }
0x75ff   : > { %v9953_v16 = vpop.permute.xlu0 %9952 }
0x7600   : > { %v9957_v27 = vadd.f32 %v9953_v16, %v9783_v24 }
0x7602   : > { %v9958_v33 = vpack.c.bf16 %v9957_v27, %v9956_v26 }
0x7604   : > { %9960 = vrot.lane.b32.xlu0 %v9958_v33, %s14918_s25 }
0x7607   : > { %v9849_v25 = vpop.permute.xlu1 %9848 }
0x7608   : > { %11513 = vmatpush3.bf16.msra.mxu1 %v9849_v25 }
0x7609   : > { %11524 = vmatprep.subr.bf16.mxu1 %v14908_v44 }
0x760b   : > { %11515 = vmatmul.mubr.msk.bf16.vlgmr.msra.gmra.mrb[72].mxu1 %vm1573_vm6, %v14493_v62 }
0x760c   : > { %11526 = vmatprep.mubr.msk.bf16.mxu1 %vm11859_vm3, %v14908_v44 }
0x7676   : > { %v9961_v39 = vpop.permute.xlu0 %9960 }
0x7677   : > { %11525 = vmatpush3.bf16.msra.mxu1 %v9961_v39 }
0x767a   : > { %11527 = vmatmul.mubr.msk.bf16.vlgmr.msra.gmra.mrb[76].mxu1 %vm1573_vm6, %v14503_v36 }
0x76de   : > { %v9885_v35 = vpop.f32.mrb[72].mxu1 }
0x76df   : > { %9894 = vrot.lane.b32.xlu1 %v9885_v35, %s14917_s4  ;;  %v11516_v1 = vpop.f32.mrb[73].mxu1 }
0x76e0   : > { %v9888_v22 = vpop.f32.mrb[74].mxu1 }
0x76e1   : > { %9896 = vrot.lane.b32.xlu0 %v9888_v22, %s14917_s4  ;;  %v11517_v23 = vpop.f32.mrb[75].mxu1 }
0x774d   : > { %v9997_v5 = vpop.f32.mrb[76].mxu1 }
0x774e   : > { %10006 = vrot.lane.b32.xlu1 %v9997_v5, %s14917_s4  ;;  %v11528_v62 = vpop.f32.mrb[77].mxu1 }
0x774f   : > { %v10000_v59 = vpop.f32.mrb[78].mxu1 }
0x7750   : > { %10008 = vrot.lane.b32.xlu0 %v10000_v59, %s14917_s4  ;;  %v11529_v44 = vpop.f32.mrb[79].mxu1 }
0x7751   : > { %v9895_v3 = vpop.permute.xlu1 %9894 }
0x7752   : > { %v9900_v60 = vadd.f32 %v9895_v3, %v9778_v46 }
0x7753   : > { %v9897_v63 = vpop.permute.xlu0 %9896 }
0x7754   : > { %v9901_v10 = vadd.f32 %v9897_v63, %v9779_v11 }
0x77c0   : > { %v10007_v36 = vpop.permute.xlu1 %10006 }
0x77c1   : > { %v10012_v6 = vadd.f32 %v10007_v36, %v9900_v60 }
0x77c2   : > { %v10009_v57 = vpop.permute.xlu0 %10008 }
0x77c3   : > { %v10014_v43 = vadd.f32 %v10012_v6, %v12589_v19  ;;  %v10013_v48 = vadd.f32 %v10009_v57, %v9901_v10 }
0x77c5   : > { %11748 = vtanh.f32 %v10014_v43  ;;  %v10015_v56 = vadd.f32 %v10013_v48, %v12589_v19 }
0x77c7   : > { %11750 = vtanh.f32 %v10015_v56 }
0x77cf   : > { %v11749_v9 = vpop.eup %11748 }
0x77d0   : > { %10024 = vrot.lane.b32.xlu1 %v11749_v9, %s14918_s25 }
0x77d1   : > { %v11751_v32 = vpop.eup %11750 }
0x77d2   : > { %10026 = vrot.lane.b32.xlu0 %v11751_v32, %s14918_s25 }
0x7842   : > { %v10025_v49 = vpop.permute.xlu1 %10024 }
0x7843   : > { %v10030_v29 = vmul.f32 %v10025_v49, %v10020_v18 }
0x7844   : > { %v10027_v38 = vpop.permute.xlu0 %10026 }
0x7845   : > { %v10032_v19 = vadd.f32 %v10030_v29, %v10018_v14  ;;  %v10031_v20 = vmul.f32 %v10027_v38, %v10021_v61 }
0x7847   : > { %v10033_v54 = vadd.f32 %v10031_v20, %v10019_v17  ;;  %10042 = vrot.lane.b32.xlu1 %v10032_v19, %s14918_s25 }
0x7849   : > { %10044 = vrot.lane.b32.xlu0 %v10033_v54, %s14918_s25 }
0x78b9   : > { %v10043_v52 = vpop.permute.xlu1 %10042 }
0x78ba   : > { %10048 = vst.msk [vmem:[%s12776_s21 + $0x70] sm:$0xff] %vm863_vm0, %v10043_v52  ;;  %10050 = vst.msk [vmem:[#allocation2] sm:$0xff] %vm863_vm0, %v10043_v52 }
0x78bb   : > { %v10045_v2 = vpop.permute.xlu0 %10044 }
0x78bc   : > { %10049 = vst.msk [vmem:[%s12776_s21 + $0x78] sm:$0xff] %vm863_vm0, %v10045_v2  ;;  %10051 = vst.msk [vmem:[#allocation2 + $0x8] sm:$0xff] %vm863_vm0, %v10045_v2 }
0x78bd PF: > { %s14941_s20 = sld [smem:[#allocation6_spill]]  ;;  %s14942_s24 = sld [smem:[#allocation5_spill]] }
0x78be   : > { %s14943_s25 = sld [smem:[#allocation7_spill]] }
0x78c3   : > { %s36_s5 = sadd.s32 1, %s14941_s20  }
0x78c4   : > { %p33_p5 = scmp.ge.s32.totalorder %s36_s5, 4  }
0x78c6   :  { %35 = sbr.rel (!%p33_p5) target bundleno = 14 (0xe), region = 173 }

</bundles_post_ra>
